<compile_context>
chip_gen: v7x
topology: tpu7x:2x2x1
jax: 0.10.0
libtpu: 0.0.40
codegen_flags: <defaults>
</compile_context>

<pallas_src>
import functools

import jax
import jax.numpy as jnp
import numpy as np
from jax.experimental import pallas as pl
from jax.experimental.pallas import tpu as pltpu

GROUPS = 32          # nn.GroupNorm(32, C)
EPS = 1e-5           # PyTorch GroupNorm default eps
HIGHEST = jax.lax.Precision.HIGHEST
LEFT = 8             # left-halo width -> interior image store is sublane-aligned
IM2COL_MAX_C = 128   # below this, K=C under-fills the MXU -> use one im2col matmul


# --------------------------------------------------------------------------------------
# host-side helpers
# --------------------------------------------------------------------------------------
def _group_matrices_np(C, groups):
    """One-hot (C, groups) scatter matrix and its (groups, C) gather transpose (f32)."""
    cpg = C // groups
    scat = np.zeros((C, groups), np.float32)
    scat[np.arange(C), np.arange(C) // cpg] = 1.0
    return jnp.asarray(scat), jnp.asarray(np.ascontiguousarray(scat.T))


def _vmem_limit_bytes(requested):
    """Generation-aware scoped-VMEM limit: physical capacity minus headroom."""
    try:
        info = pltpu.get_tpu_info()
        cap = int(getattr(info, "vmem_capacity_bytes", 64 * 1024 * 1024))
    except Exception:
        cap = 64 * 1024 * 1024
    headroom = 16 * 1024 * 1024
    return int(min(max(requested, 32 * 1024 * 1024), cap - headroom))


# --------------------------------------------------------------------------------------
# in-kernel building blocks
# --------------------------------------------------------------------------------------
def _groupnorm_silu(x2, gamma, beta, scat, gath, n_per_group):
    """x2: (HW, C) f32; gamma/beta: (1, C); scat: (C, G); gath: (G, C).  GN + SiLU, f32."""
    ch_sum = jnp.sum(x2, axis=0, keepdims=True)                  # (1, C)
    ch_ssq = jnp.sum(x2 * x2, axis=0, keepdims=True)             # (1, C)
    # Tiny (1,C)@(C,G) matmuls; HIGHEST keeps the f32 statistics exact, negligible cost.
    g_sum = jnp.dot(ch_sum, scat, precision=HIGHEST, preferred_element_type=jnp.float32)
    g_ssq = jnp.dot(ch_ssq, scat, precision=HIGHEST, preferred_element_type=jnp.float32)
    g_mean = g_sum / n_per_group                                 # (1, G)
    g_var = jnp.maximum(g_ssq / n_per_group - g_mean * g_mean, 0.0)   # clamp cancellation
    g_inv = jax.lax.rsqrt(g_var + EPS)
    mean_c = jnp.dot(g_mean, gath, precision=HIGHEST, preferred_element_type=jnp.float32)
    inv_c = jnp.dot(g_inv, gath, precision=HIGHEST, preferred_element_type=jnp.float32)
    y = (x2 - mean_c) * inv_c * gamma + beta
    return y * jax.nn.sigmoid(y)                                 # SiLU fused


def _conv3x3(pad_ref, col_ref, img_f32, w_ref, bias_f32, H, W, C):
    """3x3 SAME conv with bf16 operands and f32 accumulation.

    pad_ref: VMEM (H+2, Wp, C) bf16 scratch.  Interior lives at rows 1..H,
             cols LEFT..LEFT+W-1; only cols LEFT-1..LEFT+W are ever read, columns
             outside that window stay uninitialized by design.
    col_ref: VMEM (H*W, 9*C) bf16 scratch (im2col path, C < 128) or None
             (9 accumulating tap matmuls, C >= 128).
    w_ref:   (9*C, Cout) bf16 weights in im2col row-major (dy, dx, C) order.
    """
    # Zero ONLY the 1-pixel halo border actually read by the taps.
    zrow = jnp.zeros((1, W + 2, C), jnp.bfloat16)
    pad_ref[0:1, LEFT - 1:LEFT + W + 1, :] = zrow
    pad_ref[H + 1:H + 2, LEFT - 1:LEFT + W + 1, :] = zrow
    zcol = jnp.zeros((H, 1, C), jnp.bfloat16)
    pad_ref[1:H + 1, LEFT - 1:LEFT, :] = zcol
    pad_ref[1:H + 1, LEFT + W:LEFT + W + 1, :] = zcol
    # Interior store: sublane-aligned at column LEFT; single bf16 rounding point.
    pad_ref[1:H + 1, LEFT:LEFT + W, :] = img_f32.astype(jnp.bfloat16)

    Cout = w_ref.shape[1]
    if col_ref is not None:
        # C < 128: one im2col MXU matmul (K = 9*C), col buffer kept in bf16.
        for k in range(9):
            dy, dx = k // 3, k % 3
            col_ref[:, k * C:(k + 1) * C] = pad_ref[
                dy:dy + H, LEFT - 1 + dx:LEFT - 1 + dx + W, :].reshape(H * W, C)
        out = jnp.dot(col_ref[...], w_ref[...], preferred_element_type=jnp.float32)
    else:
        # C >= 128: K = C already fills the MXU; 9 accumulating tap matmuls, no col scratch.
        out = jnp.zeros((H * W, Cout), jnp.float32)
        for k in range(9):
            dy, dx = k // 3, k % 3
            tap = pad_ref[dy:dy + H, LEFT - 1 + dx:LEFT - 1 + dx + W, :].reshape(H * W, C)
            out = out + jnp.dot(tap, w_ref[k * C:(k + 1) * C, :],
                                preferred_element_type=jnp.float32)
    return out + bias_f32                                        # (HW, Cout) f32


# --------------------------------------------------------------------------------------
# fused kernel
# --------------------------------------------------------------------------------------
def vae_resblock_kernel(*refs, identity_residual, im2col_1, im2col_2):
    (x_ref, g1_ref, be1_ref, sc1_ref, ga1_ref, w1_ref, b1_ref,
     g2_ref, be2_ref, sc2_ref, ga2_ref, w2_ref, b2_ref) = refs[:13]
    p = 13
    if identity_residual:
        wr_ref = br_ref = None
    else:
        wr_ref, br_ref = refs[p], refs[p + 1]
        p += 2
    o_ref = refs[p]
    pad1, pad2 = refs[p + 1], refs[p + 2]
    p += 3
    col1 = col2 = None
    if im2col_1:
        col1 = refs[p]
        p += 1
    if im2col_2:
        col2 = refs[p]

    H, W, Cin = x_ref.shape[1], x_ref.shape[2], x_ref.shape[3]
    Cout = o_ref.shape[3]

    x2 = x_ref[0].astype(jnp.float32).reshape(H * W, Cin)        # residual kept f32

    # groupnorm_1 + SiLU (f32 stats on the VPU)
    h = _groupnorm_silu(x2, g1_ref[...], be1_ref[...], sc1_ref[...], ga1_ref[...],
                        jnp.float32(H * W * (Cin // GROUPS)))
    # conv_1 : 3x3, padding=1
    h = _conv3x3(pad1, col1, h.reshape(H, W, Cin), w1_ref, b1_ref[...], H, W, Cin)
    # groupnorm_2 + SiLU
    h = _groupnorm_silu(h, g2_ref[...], be2_ref[...], sc2_ref[...], ga2_ref[...],
                        jnp.float32(H * W * (Cout // GROUPS)))
    # conv_2 : 3x3, padding=1
    h = _conv3x3(pad2, col2, h.reshape(H, W, Cout), w2_ref, b2_ref[...], H, W, Cout)

    # residual path: nn.Identity() when in_channels == out_channels, else 1x1 conv.
    if identity_residual:
        res = x2
    else:
        res = jnp.dot(x2.astype(jnp.bfloat16), wr_ref[...],
                      preferred_element_type=jnp.float32) + br_ref[...]

    o_ref[0] = (h + res).reshape(H, W, Cout).astype(o_ref.dtype)


# --------------------------------------------------------------------------------------
# wrappers
# --------------------------------------------------------------------------------------
def vae_residual_block_nhwc(x_nhwc, params):
    """NHWC core entry point: (N, H, W, Cin) f32 -> (N, H, W, Cout) f32 (no transposes)."""
    N, H, W, Cin = x_nhwc.shape
    Cout = params["w2"].shape[-1]
    identity_residual = params.get("wr") is None
    if identity_residual:
        assert Cin == Cout
    assert Cin % GROUPS == 0 and Cout % GROUPS == 0

    x = x_nhwc.astype(jnp.float32)

    # constant one-hot group matrices, built once on the host
    sc1, ga1 = _group_matrices_np(Cin, GROUPS)
    sc2, ga2 = _group_matrices_np(Cout, GROUPS)

    # bf16 weights in im2col layout (HWIO (3,3,Ci,Co) row-major == (9*Ci, Co))
    w1m = params["w1"].reshape(9 * Cin, Cout).astype(jnp.bfloat16)
    w2m = params["w2"].reshape(9 * Cout, Cout).astype(jnp.bfloat16)
    g1 = params["gn1_g"].astype(jnp.float32)
    be1 = params["gn1_b"].astype(jnp.float32)
    g2 = params["gn2_g"].astype(jnp.float32)
    be2 = params["gn2_b"].astype(jnp.float32)
    b1 = params["b1"].astype(jnp.float32)
    b2 = params["b2"].astype(jnp.float32)

    im2col_1 = Cin < IM2COL_MAX_C
    im2col_2 = Cout < IM2COL_MAX_C

    Wp = ((LEFT + W + 1 + 7) // 8) * 8                           # sublane-friendly width

    args = [x, g1, be1, sc1, ga1, w1m, b1, g2, be2, sc2, ga2, w2m, b2]
    if not identity_residual:
        args += [params["wr"].astype(jnp.bfloat16), params["br"].astype(jnp.float32)]

    scratch_shapes = [pltpu.VMEM((H + 2, Wp, Cin), jnp.bfloat16),   # padded image, conv_1
                      pltpu.VMEM((H + 2, Wp, Cout), jnp.bfloat16)]  # padded image, conv_2
    if im2col_1:
        scratch_shapes.append(pltpu.VMEM((H * W, 9 * Cin), jnp.bfloat16))
    if im2col_2:
        scratch_shapes.append(pltpu.VMEM((H * W, 9 * Cout), jnp.bfloat16))

    kernel = functools.partial(vae_resblock_kernel,
                               identity_residual=identity_residual,
                               im2col_1=im2col_1, im2col_2=im2col_2)

    # VMEM budget estimate (blocks assumed double-buffered; params at worst double).
    param_bytes = sum(int(a.size) * a.dtype.itemsize for a in args[1:])
    block_bytes = (H * W * Cin + H * W * Cout) * 4
    scratch_bytes = (H + 2) * Wp * (Cin + Cout) * 2
    if im2col_1:
        scratch_bytes += H * W * 9 * Cin * 2
    if im2col_2:
        scratch_bytes += H * W * 9 * Cout * 2
    requested = int(1.5 * (2 * (2 * block_bytes + param_bytes) + scratch_bytes))
    vmem_limit = _vmem_limit_bytes(requested)

    def _in_specs(single_buffer_weights):
        def invariant(shape):
            nd = len(shape)
            idx = lambda n, _nd=nd: (0,) * _nd
            if single_buffer_weights:
                # grid-invariant block: no point double-buffering it
                return pl.BlockSpec(shape, idx, pipeline_mode=pl.Buffered(1))
            return pl.BlockSpec(shape, idx)

        specs = [pl.BlockSpec((1, H, W, Cin), lambda n: (n, 0, 0, 0)),
                 invariant((1, Cin)), invariant((1, Cin)),
                 invariant((Cin, GROUPS)), invariant((GROUPS, Cin)),
                 invariant((9 * Cin, Cout)), invariant((1, Cout)),
                 invariant((1, Cout)), invariant((1, Cout)),
                 invariant((Cout, GROUPS)), invariant((GROUPS, Cout)),
                 invariant((9 * Cout, Cout)), invariant((1, Cout))]
        if not identity_residual:
            specs += [invariant((Cin, Cout)), invariant((1, Cout))]
        return specs

    def _call(single_buffer_weights):
        grid_spec = pltpu.PrefetchScalarGridSpec(
            num_scalar_prefetch=0,
            grid=(N,),
            in_specs=_in_specs(single_buffer_weights),
            out_specs=pl.BlockSpec((1, H, W, Cout), lambda n: (n, 0, 0, 0)),
            scratch_shapes=scratch_shapes,
        )
        return pl.pallas_call(
            kernel,
            out_shape=jax.ShapeDtypeStruct((N, H, W, Cout), jnp.float32),
            grid_spec=grid_spec,
            compiler_params=pltpu.CompilerParams(
                dimension_semantics=("parallel",),   # batch elems independent (v7x: 2 TCs)
                vmem_limit_bytes=vmem_limit,
            ),
        )(*args)

    try:
        return _call(True)
    except Exception:
        # TODO(synk): pl.Buffered(1) single-buffering rejected by this jax version;
        # fall back to default double-buffering of the grid-invariant operands.
        return _call(False)


def vae_residual_block(x_nchw, params):
    """PyTorch-layout entry point: (N, Cin, H, W) f32 -> (N, Cout, H, W) f32.
    Prefer vae_residual_block_nhwc inside an NHWC model to avoid the two transposes."""
    x = jnp.transpose(x_nchw, (0, 2, 3, 1))
    out = vae_residual_block_nhwc(x, params)
    return jnp.transpose(out, (0, 3, 1, 2))


# --------------------------------------------------------------------------------------
# pure-JAX reference (same bf16-operand / f32-accumulation conv numerics as the kernel)
# --------------------------------------------------------------------------------------
def reference(x_nchw, params):
    x = jnp.transpose(x_nchw, (0, 2, 3, 1)).astype(jnp.float32)  # NHWC

    def gn(h, g, b):
        N, H, W, C = h.shape
        hg = h.reshape(N, H, W, GROUPS, C // GROUPS)
        mean = jnp.mean(hg, axis=(1, 2, 4), keepdims=True)
        var = jnp.mean((hg - mean) ** 2, axis=(1, 2, 4), keepdims=True)
        hn = ((hg - mean) / jnp.sqrt(var + EPS)).reshape(N, H, W, C)
        return hn * g.reshape(1, 1, 1, C) + b.reshape(1, 1, 1, C)

    def silu(h):
        return h * jax.nn.sigmoid(h)

    def conv(h, w, b):
        y = jax.lax.conv_general_dilated(
            h.astype(jnp.bfloat16), w.astype(jnp.bfloat16),
            window_strides=(1, 1), padding="SAME",
            dimension_numbers=("NHWC", "HWIO", "NHWC"),
            preferred_element_type=jnp.float32)
        return y + b.reshape(1, 1, 1, -1)

    h = silu(gn(x, params["gn1_g"], params["gn1_b"]))
    h = conv(h, params["w1"], params["b1"])
    h = silu(gn(h, params["gn2_g"], params["gn2_b"]))
    h = conv(h, params["w2"], params["b2"])
    if params.get("wr") is None:
        res = x                                                  # nn.Identity()
    else:
        cin, cout = params["wr"].shape
        res = conv(x, params["wr"].reshape(1, 1, cin, cout), params["br"])
    return jnp.transpose(h + res, (0, 3, 1, 2))


def init_params(key, cin, cout, *, residual_conv=True):
    ks = jax.random.split(key, 10)
    f32 = jnp.float32
    p = {
        "gn1_g": (1.0 + 0.1 * jax.random.normal(ks[0], (1, cin))).astype(f32),
        "gn1_b": (0.1 * jax.random.normal(ks[1], (1, cin))).astype(f32),
        "w1":    (0.05 * jax.random.normal(ks[2], (3, 3, cin, cout))).astype(f32),
        "b1":    (0.05 * jax.random.normal(ks[3], (1, cout))).astype(f32),
        "gn2_g": (1.0 + 0.1 * jax.random.normal(ks[4], (1, cout))).astype(f32),
        "gn2_b": (0.1 * jax.random.normal(ks[5], (1, cout))).astype(f32),
        "w2":    (0.05 * jax.random.normal(ks[6], (3, 3, cout, cout))).astype(f32),
        "b2":    (0.05 * jax.random.normal(ks[7], (1, cout))).astype(f32),
        "wr":    None,
        "br":    None,
    }
    if residual_conv:   # in_channels != out_channels -> Conv2d(cin, cout, 1)
        p["wr"] = (0.05 * jax.random.normal(ks[8], (cin, cout))).astype(f32)
        p["br"] = (0.05 * jax.random.normal(ks[9], (1, cout))).astype(f32)
    return p


def _check(x, params, shape):
    out = jax.block_until_ready(vae_residual_block(x, params))
    ref = jax.block_until_ready(reference(x, params))
    assert out.shape == shape and out.dtype == jnp.float32
    np.testing.assert_allclose(np.asarray(out), np.asarray(ref), rtol=3e-3, atol=3e-3)


if __name__ == "__main__":
    # GroupNorm(32, C) requires C % 32 == 0 -> smallest interesting configs.
    key = jax.random.PRNGKey(0)
    k1, k2, k3, k4, k5, k6, k7, k8 = jax.random.split(key, 8)

    # 1) in != out, both convs on the bf16 im2col path (C < 128), 1x1-conv residual.
    N, Cin, Cout, H, W = 2, 32, 64, 8, 8
    _check(jax.random.normal(k1, (N, Cin, H, W), jnp.float32),
           init_params(k2, Cin, Cout, residual_conv=True), (N, Cout, H, W))

    # 2) in == out -> nn.Identity() residual branch.
    _check(jax.random.normal(k3, (2, 32, 8, 8), jnp.float32),
           init_params(k4, 32, 32, residual_conv=False), (2, 32, 8, 8))

    # 3) mixed paths: conv_1 im2col (Cin=64), conv_2 9-tap matmuls (Cout=128), conv residual.
    _check(jax.random.normal(k5, (1, 64, 8, 8), jnp.float32),
           init_params(k6, 64, 128, residual_conv=True), (1, 128, 8, 8))

    # 4) both convs on the 9-tap accumulating-matmul path (C = 128), identity residual.
    _check(jax.random.normal(k7, (1, 128, 8, 8), jnp.float32),
           init_params(k8, 128, 128, residual_conv=False), (1, 128, 8, 8))

    print("KERNEL_OK")
</pallas_src>

<mosaic_0001>
module attributes {stable_mosaic.version = 11 : i64} {
  func.func @vae_resblock_kernel(%arg0: i32, %arg1: memref<1x8x8x32xf32, #tpu.memory_space<vmem>>, %arg2: memref<1x32xf32, #tpu.memory_space<vmem>>, %arg3: memref<1x32xf32, #tpu.memory_space<vmem>>, %arg4: memref<32x32xf32, #tpu.memory_space<vmem>>, %arg5: memref<32x32xf32, #tpu.memory_space<vmem>>, %arg6: memref<288x64xbf16, #tpu.memory_space<vmem>>, %arg7: memref<1x64xf32, #tpu.memory_space<vmem>>, %arg8: memref<1x64xf32, #tpu.memory_space<vmem>>, %arg9: memref<1x64xf32, #tpu.memory_space<vmem>>, %arg10: memref<64x32xf32, #tpu.memory_space<vmem>>, %arg11: memref<32x64xf32, #tpu.memory_space<vmem>>, %arg12: memref<576x64xbf16, #tpu.memory_space<vmem>>, %arg13: memref<1x64xf32, #tpu.memory_space<vmem>>, %arg14: memref<32x64xbf16, #tpu.memory_space<vmem>>, %arg15: memref<1x64xf32, #tpu.memory_space<vmem>>, %arg16: memref<1x8x8x64xf32, #tpu.memory_space<vmem>>, %arg17: memref<10x24x32xbf16, #tpu.memory_space<vmem>>, %arg18: memref<10x24x64xbf16, #tpu.memory_space<vmem>>, %arg19: memref<64x288xbf16, #tpu.memory_space<vmem>>, %arg20: memref<64x576xbf16, #tpu.memory_space<vmem>>) attributes {dimension_semantics = [#tpu.dimension_semantics<parallel>], iteration_bounds = array<i64: 2>, scalar_prefetch = 0 : i64, scratch_operands = 4 : i64, tpu.core_type = #tpu.core_type<tc>, window_params = [{transform_indices = @transform_0, window_bounds = array<i64: 1, 8, 8, 32>}, {pipeline_mode = #tpu.pipeline_mode<synchronous>, transform_indices = @transform_1, window_bounds = array<i64: 1, 32>}, {pipeline_mode = #tpu.pipeline_mode<synchronous>, transform_indices = @transform_2, window_bounds = array<i64: 1, 32>}, {pipeline_mode = #tpu.pipeline_mode<synchronous>, transform_indices = @transform_3, window_bounds = array<i64: 32, 32>}, {pipeline_mode = #tpu.pipeline_mode<synchronous>, transform_indices = @transform_4, window_bounds = array<i64: 32, 32>}, {pipeline_mode = #tpu.pipeline_mode<synchronous>, transform_indices = @transform_5, window_bounds = array<i64: 288, 64>}, {pipeline_mode = #tpu.pipeline_mode<synchronous>, transform_indices = @transform_6, window_bounds = array<i64: 1, 64>}, {pipeline_mode = #tpu.pipeline_mode<synchronous>, transform_indices = @transform_7, window_bounds = array<i64: 1, 64>}, {pipeline_mode = #tpu.pipeline_mode<synchronous>, transform_indices = @transform_8, window_bounds = array<i64: 1, 64>}, {pipeline_mode = #tpu.pipeline_mode<synchronous>, transform_indices = @transform_9, window_bounds = array<i64: 64, 32>}, {pipeline_mode = #tpu.pipeline_mode<synchronous>, transform_indices = @transform_10, window_bounds = array<i64: 32, 64>}, {pipeline_mode = #tpu.pipeline_mode<synchronous>, transform_indices = @transform_11, window_bounds = array<i64: 576, 64>}, {pipeline_mode = #tpu.pipeline_mode<synchronous>, transform_indices = @transform_12, window_bounds = array<i64: 1, 64>}, {pipeline_mode = #tpu.pipeline_mode<synchronous>, transform_indices = @transform_13, window_bounds = array<i64: 32, 64>}, {pipeline_mode = #tpu.pipeline_mode<synchronous>, transform_indices = @transform_14, window_bounds = array<i64: 1, 64>}, {transform_indices = @transform_15, window_bounds = array<i64: 1, 8, 8, 64>}]} {
    %c0 = arith.constant 0 : index
    %c0_0 = arith.constant 0 : index
    %c0_1 = arith.constant 0 : index
    %c0_2 = arith.constant 0 : index
    %0 = vector.load %arg1[%c0, %c0_0, %c0_1, %c0_2] : memref<1x8x8x32xf32, #tpu.memory_space<vmem>>, vector<1x8x8x32xf32>
    %1 = vector.shape_cast %0 : vector<1x8x8x32xf32> to vector<8x8x32xf32>
    %2 = vector.shape_cast %1 : vector<8x8x32xf32> to vector<64x32xf32>
    %c0_3 = arith.constant 0 : index
    %c0_4 = arith.constant 0 : index
    %3 = vector.load %arg2[%c0_3, %c0_4] : memref<1x32xf32, #tpu.memory_space<vmem>>, vector<1x32xf32>
    %c0_5 = arith.constant 0 : index
    %c0_6 = arith.constant 0 : index
    %4 = vector.load %arg3[%c0_5, %c0_6] : memref<1x32xf32, #tpu.memory_space<vmem>>, vector<1x32xf32>
    %c0_7 = arith.constant 0 : index
    %c0_8 = arith.constant 0 : index
    %5 = vector.load %arg4[%c0_7, %c0_8] : memref<32x32xf32, #tpu.memory_space<vmem>>, vector<32x32xf32>
    %c0_9 = arith.constant 0 : index
    %c0_10 = arith.constant 0 : index
    %6 = vector.load %arg5[%c0_9, %c0_10] : memref<32x32xf32, #tpu.memory_space<vmem>>, vector<32x32xf32>
    %cst = arith.constant dense<0.000000e+00> : vector<32xf32>
    %7 = vector.multi_reduction <add>, %2, %cst [0] : vector<64x32xf32> to vector<32xf32>
    %8 = vector.shape_cast %7 : vector<32xf32> to vector<1x32xf32>
    %9 = arith.mulf %2, %2 : vector<64x32xf32>
    %cst_11 = arith.constant dense<0.000000e+00> : vector<32xf32>
    %10 = vector.multi_reduction <add>, %9, %cst_11 [0] : vector<64x32xf32> to vector<32xf32>
    %11 = vector.shape_cast %10 : vector<32xf32> to vector<1x32xf32>
    %cst_12 = arith.constant dense<0.000000e+00> : vector<1x32xf32>
    %12 = tpu.matmul %8, %5, %cst_12 {dimension_numbers = #tpu.dot_dimension_numbers<[1], [0], [0], [1], [0, 0, 1, 1], [], []>, precision = #tpu.contract_precision<fp32>} : vector<1x32xf32>, vector<32x32xf32>, vector<1x32xf32> -> vector<1x32xf32>
    %cst_13 = arith.constant dense<0.000000e+00> : vector<1x32xf32>
    %13 = tpu.matmul %11, %5, %cst_13 {dimension_numbers = #tpu.dot_dimension_numbers<[1], [0], [0], [1], [0, 0, 1, 1], [], []>, precision = #tpu.contract_precision<fp32>} : vector<1x32xf32>, vector<32x32xf32>, vector<1x32xf32> -> vector<1x32xf32>
    %cst_14 = arith.constant 6.400000e+01 : f32
    %14 = vector.broadcast %cst_14 : f32 to vector<1x32xf32>
    %15 = arith.divf %12, %14 : vector<1x32xf32>
    %cst_15 = arith.constant 6.400000e+01 : f32
    %16 = vector.broadcast %cst_15 : f32 to vector<1x32xf32>
    %17 = arith.divf %13, %16 : vector<1x32xf32>
    %18 = arith.mulf %15, %15 : vector<1x32xf32>
    %19 = arith.subf %17, %18 : vector<1x32xf32>
    %cst_16 = arith.constant 0.000000e+00 : f32
    %20 = vector.broadcast %cst_16 : f32 to vector<1x32xf32>
    %21 = arith.maximumf %19, %20 : vector<1x32xf32>
    %cst_17 = arith.constant 9.99999974E-6 : f32
    %22 = vector.broadcast %cst_17 : f32 to vector<1x32xf32>
    %23 = arith.addf %21, %22 : vector<1x32xf32>
    %24 = math.rsqrt %23 : vector<1x32xf32>
    %cst_18 = arith.constant dense<0.000000e+00> : vector<1x32xf32>
    %25 = tpu.matmul %15, %6, %cst_18 {dimension_numbers = #tpu.dot_dimension_numbers<[1], [0], [0], [1], [0, 0, 1, 1], [], []>, precision = #tpu.contract_precision<fp32>} : vector<1x32xf32>, vector<32x32xf32>, vector<1x32xf32> -> vector<1x32xf32>
    %cst_19 = arith.constant dense<0.000000e+00> : vector<1x32xf32>
    %26 = tpu.matmul %24, %6, %cst_19 {dimension_numbers = #tpu.dot_dimension_numbers<[1], [0], [0], [1], [0, 0, 1, 1], [], []>, precision = #tpu.contract_precision<fp32>} : vector<1x32xf32>, vector<32x32xf32>, vector<1x32xf32> -> vector<1x32xf32>
    %27 = vector.broadcast %25 : vector<1x32xf32> to vector<64x32xf32>
    %28 = arith.subf %2, %27 : vector<64x32xf32>
    %29 = vector.broadcast %26 : vector<1x32xf32> to vector<64x32xf32>
    %30 = arith.mulf %28, %29 : vector<64x32xf32>
    %31 = vector.broadcast %3 : vector<1x32xf32> to vector<64x32xf32>
    %32 = arith.mulf %30, %31 : vector<64x32xf32>
    %33 = vector.broadcast %4 : vector<1x32xf32> to vector<64x32xf32>
    %34 = arith.addf %32, %33 : vector<64x32xf32>
    %35 = arith.negf %34 : vector<64x32xf32>
    %36 = math.exp %35 : vector<64x32xf32>
    %cst_20 = arith.constant 1.000000e+00 : f32
    %37 = vector.broadcast %cst_20 : f32 to vector<64x32xf32>
    %38 = arith.addf %37, %36 : vector<64x32xf32>
    %39 = arith.divf %37, %38 : vector<64x32xf32>
    %40 = arith.mulf %34, %39 : vector<64x32xf32>
    %41 = vector.shape_cast %40 : vector<64x32xf32> to vector<8x8x32xf32>
    %c0_21 = arith.constant 0 : index
    %c0_22 = arith.constant 0 : index
    %42 = vector.load %arg7[%c0_21, %c0_22] : memref<1x64xf32, #tpu.memory_space<vmem>>, vector<1x64xf32>
    %cst_23 = arith.constant 0.000000e+00 : bf16
    %43 = vector.broadcast %cst_23 : bf16 to vector<1x10x32xbf16>
    %c0_24 = arith.constant 0 : index
    %c7 = arith.constant 7 : index
    %c0_25 = arith.constant 0 : index
    %44 = vector.load %arg17[%c0_24, %c7, %c0_25] : memref<10x24x32xbf16, #tpu.memory_space<vmem>>, vector<1x10x32xbf16>
    tpu.vector_store %arg17[%c0_24, %c7, %c0_25], %43 {strides = array<i32>} : memref<10x24x32xbf16, #tpu.memory_space<vmem>>, vector<1x10x32xbf16>,
    %c9 = arith.constant 9 : index
    %c7_26 = arith.constant 7 : index
    %c0_27 = arith.constant 0 : index
    %45 = vector.load %arg17[%c9, %c7_26, %c0_27] : memref<10x24x32xbf16, #tpu.memory_space<vmem>>, vector<1x10x32xbf16>
    tpu.vector_store %arg17[%c9, %c7_26, %c0_27], %43 {strides = array<i32>} : memref<10x24x32xbf16, #tpu.memory_space<vmem>>, vector<1x10x32xbf16>,
    %cst_28 = arith.constant 0.000000e+00 : bf16
    %46 = vector.broadcast %cst_28 : bf16 to vector<8x1x32xbf16>
    %c1 = arith.constant 1 : index
    %c7_29 = arith.constant 7 : index
    %c0_30 = arith.constant 0 : index
    %47 = vector.load %arg17[%c1, %c7_29, %c0_30] : memref<10x24x32xbf16, #tpu.memory_space<vmem>>, vector<8x1x32xbf16>
    tpu.vector_store %arg17[%c1, %c7_29, %c0_30], %46 {strides = array<i32>} : memref<10x24x32xbf16, #tpu.memory_space<vmem>>, vector<8x1x32xbf16>,
    %c1_31 = arith.constant 1 : index
    %c16 = arith.constant 16 : index
    %c0_32 = arith.constant 0 : index
    %48 = vector.load %arg17[%c1_31, %c16, %c0_32] : memref<10x24x32xbf16, #tpu.memory_space<vmem>>, vector<8x1x32xbf16>
    tpu.vector_store %arg17[%c1_31, %c16, %c0_32], %46 {strides = array<i32>} : memref<10x24x32xbf16, #tpu.memory_space<vmem>>, vector<8x1x32xbf16>,
    %49 = arith.truncf %41 : vector<8x8x32xf32> to vector<8x8x32xbf16>
    %c1_33 = arith.constant 1 : index
    %c8 = arith.constant 8 : index
    %c0_34 = arith.constant 0 : index
    %50 = vector.load %arg17[%c1_33, %c8, %c0_34] : memref<10x24x32xbf16, #tpu.memory_space<vmem>>, vector<8x8x32xbf16>
    tpu.vector_store %arg17[%c1_33, %c8, %c0_34], %49 {strides = array<i32>} : memref<10x24x32xbf16, #tpu.memory_space<vmem>>, vector<8x8x32xbf16>,
    %c0_35 = arith.constant 0 : index
    %c7_36 = arith.constant 7 : index
    %c0_37 = arith.constant 0 : index
    %51 = vector.load %arg17[%c0_35, %c7_36, %c0_37] : memref<10x24x32xbf16, #tpu.memory_space<vmem>>, vector<8x8x32xbf16>
    %52 = vector.shape_cast %51 : vector<8x8x32xbf16> to vector<64x32xbf16>
    %c0_38 = arith.constant 0 : index
    %c0_39 = arith.constant 0 : index
    %53 = vector.load %arg19[%c0_38, %c0_39] : memref<64x288xbf16, #tpu.memory_space<vmem>>, vector<64x32xbf16>
    tpu.vector_store %arg19[%c0_38, %c0_39], %52 {strides = array<i32>} : memref<64x288xbf16, #tpu.memory_space<vmem>>, vector<64x32xbf16>,
    %c0_40 = arith.constant 0 : index
    %c8_41 = arith.constant 8 : index
    %c0_42 = arith.constant 0 : index
    %54 = vector.load %arg17[%c0_40, %c8_41, %c0_42] : memref<10x24x32xbf16, #tpu.memory_space<vmem>>, vector<8x8x32xbf16>
    %55 = vector.shape_cast %54 : vector<8x8x32xbf16> to vector<64x32xbf16>
    %c0_43 = arith.constant 0 : index
    %c32 = arith.constant 32 : index
    %56 = vector.load %arg19[%c0_43, %c32] : memref<64x288xbf16, #tpu.memory_space<vmem>>, vector<64x32xbf16>
    tpu.vector_store %arg19[%c0_43, %c32], %55 {strides = array<i32>} : memref<64x288xbf16, #tpu.memory_space<vmem>>, vector<64x32xbf16>,
    %c0_44 = arith.constant 0 : index
    %c9_45 = arith.constant 9 : index
    %c0_46 = arith.constant 0 : index
    %57 = vector.load %arg17[%c0_44, %c9_45, %c0_46] : memref<10x24x32xbf16, #tpu.memory_space<vmem>>, vector<8x8x32xbf16>
    %58 = vector.shape_cast %57 : vector<8x8x32xbf16> to vector<64x32xbf16>
    %c0_47 = arith.constant 0 : index
    %c64 = arith.constant 64 : index
    %59 = vector.load %arg19[%c0_47, %c64] : memref<64x288xbf16, #tpu.memory_space<vmem>>, vector<64x32xbf16>
    tpu.vector_store %arg19[%c0_47, %c64], %58 {strides = array<i32>} : memref<64x288xbf16, #tpu.memory_space<vmem>>, vector<64x32xbf16>,
    %c1_48 = arith.constant 1 : index
    %c7_49 = arith.constant 7 : index
    %c0_50 = arith.constant 0 : index
    %60 = vector.load %arg17[%c1_48, %c7_49, %c0_50] : memref<10x24x32xbf16, #tpu.memory_space<vmem>>, vector<8x8x32xbf16>
    %61 = vector.shape_cast %60 : vector<8x8x32xbf16> to vector<64x32xbf16>
    %c0_51 = arith.constant 0 : index
    %c96 = arith.constant 96 : index
    %62 = vector.load %arg19[%c0_51, %c96] : memref<64x288xbf16, #tpu.memory_space<vmem>>, vector<64x32xbf16>
    tpu.vector_store %arg19[%c0_51, %c96], %61 {strides = array<i32>} : memref<64x288xbf16, #tpu.memory_space<vmem>>, vector<64x32xbf16>,
    %c1_52 = arith.constant 1 : index
    %c8_53 = arith.constant 8 : index
    %c0_54 = arith.constant 0 : index
    %63 = vector.load %arg17[%c1_52, %c8_53, %c0_54] : memref<10x24x32xbf16, #tpu.memory_space<vmem>>, vector<8x8x32xbf16>
    %64 = vector.shape_cast %63 : vector<8x8x32xbf16> to vector<64x32xbf16>
    %c0_55 = arith.constant 0 : index
    %c128 = arith.constant 128 : index
    %65 = vector.load %arg19[%c0_55, %c128] : memref<64x288xbf16, #tpu.memory_space<vmem>>, vector<64x32xbf16>
    tpu.vector_store %arg19[%c0_55, %c128], %64 {strides = array<i32>} : memref<64x288xbf16, #tpu.memory_space<vmem>>, vector<64x32xbf16>,
    %c1_56 = arith.constant 1 : index
    %c9_57 = arith.constant 9 : index
    %c0_58 = arith.constant 0 : index
    %66 = vector.load %arg17[%c1_56, %c9_57, %c0_58] : memref<10x24x32xbf16, #tpu.memory_space<vmem>>, vector<8x8x32xbf16>
    %67 = vector.shape_cast %66 : vector<8x8x32xbf16> to vector<64x32xbf16>
    %c0_59 = arith.constant 0 : index
    %c160 = arith.constant 160 : index
    %68 = vector.load %arg19[%c0_59, %c160] : memref<64x288xbf16, #tpu.memory_space<vmem>>, vector<64x32xbf16>
    tpu.vector_store %arg19[%c0_59, %c160], %67 {strides = array<i32>} : memref<64x288xbf16, #tpu.memory_space<vmem>>, vector<64x32xbf16>,
    %c2 = arith.constant 2 : index
    %c7_60 = arith.constant 7 : index
    %c0_61 = arith.constant 0 : index
    %69 = vector.load %arg17[%c2, %c7_60, %c0_61] : memref<10x24x32xbf16, #tpu.memory_space<vmem>>, vector<8x8x32xbf16>
    %70 = vector.shape_cast %69 : vector<8x8x32xbf16> to vector<64x32xbf16>
    %c0_62 = arith.constant 0 : index
    %c192 = arith.constant 192 : index
    %71 = vector.load %arg19[%c0_62, %c192] : memref<64x288xbf16, #tpu.memory_space<vmem>>, vector<64x32xbf16>
    tpu.vector_store %arg19[%c0_62, %c192], %70 {strides = array<i32>} : memref<64x288xbf16, #tpu.memory_space<vmem>>, vector<64x32xbf16>,
    %c2_63 = arith.constant 2 : index
    %c8_64 = arith.constant 8 : index
    %c0_65 = arith.constant 0 : index
    %72 = vector.load %arg17[%c2_63, %c8_64, %c0_65] : memref<10x24x32xbf16, #tpu.memory_space<vmem>>, vector<8x8x32xbf16>
    %73 = vector.shape_cast %72 : vector<8x8x32xbf16> to vector<64x32xbf16>
    %c0_66 = arith.constant 0 : index
    %c224 = arith.constant 224 : index
    %74 = vector.load %arg19[%c0_66, %c224] : memref<64x288xbf16, #tpu.memory_space<vmem>>, vector<64x32xbf16>
    tpu.vector_store %arg19[%c0_66, %c224], %73 {strides = array<i32>} : memref<64x288xbf16, #tpu.memory_space<vmem>>, vector<64x32xbf16>,
    %c2_67 = arith.constant 2 : index
    %c9_68 = arith.constant 9 : index
    %c0_69 = arith.constant 0 : index
    %75 = vector.load %arg17[%c2_67, %c9_68, %c0_69] : memref<10x24x32xbf16, #tpu.memory_space<vmem>>, vector<8x8x32xbf16>
    %76 = vector.shape_cast %75 : vector<8x8x32xbf16> to vector<64x32xbf16>
    %c0_70 = arith.constant 0 : index
    %c256 = arith.constant 256 : index
    %77 = vector.load %arg19[%c0_70, %c256] : memref<64x288xbf16, #tpu.memory_space<vmem>>, vector<64x32xbf16>
    tpu.vector_store %arg19[%c0_70, %c256], %76 {strides = array<i32>} : memref<64x288xbf16, #tpu.memory_space<vmem>>, vector<64x32xbf16>,
    %c0_71 = arith.constant 0 : index
    %c0_72 = arith.constant 0 : index
    %78 = vector.load %arg19[%c0_71, %c0_72] : memref<64x288xbf16, #tpu.memory_space<vmem>>, vector<64x288xbf16>
    %c0_73 = arith.constant 0 : index
    %c0_74 = arith.constant 0 : index
    %79 = vector.load %arg6[%c0_73, %c0_74] : memref<288x64xbf16, #tpu.memory_space<vmem>>, vector<288x64xbf16>
    %cst_75 = arith.constant dense<0.000000e+00> : vector<64x64xf32>
    %80 = tpu.matmul %78, %79, %cst_75 {dimension_numbers = #tpu.dot_dimension_numbers<[1], [0], [0], [1], [0, 0, 1, 1], [], []>} : vector<64x288xbf16>, vector<288x64xbf16>, vector<64x64xf32> -> vector<64x64xf32>
    %81 = vector.broadcast %42 : vector<1x64xf32> to vector<64x64xf32>
    %82 = arith.addf %80, %81 : vector<64x64xf32>
    %c0_76 = arith.constant 0 : index
    %c0_77 = arith.constant 0 : index
    %83 = vector.load %arg8[%c0_76, %c0_77] : memref<1x64xf32, #tpu.memory_space<vmem>>, vector<1x64xf32>
    %c0_78 = arith.constant 0 : index
    %c0_79 = arith.constant 0 : index
    %84 = vector.load %arg9[%c0_78, %c0_79] : memref<1x64xf32, #tpu.memory_space<vmem>>, vector<1x64xf32>
    %c0_80 = arith.constant 0 : index
    %c0_81 = arith.constant 0 : index
    %85 = vector.load %arg10[%c0_80, %c0_81] : memref<64x32xf32, #tpu.memory_space<vmem>>, vector<64x32xf32>
    %c0_82 = arith.constant 0 : index
    %c0_83 = arith.constant 0 : index
    %86 = vector.load %arg11[%c0_82, %c0_83] : memref<32x64xf32, #tpu.memory_space<vmem>>, vector<32x64xf32>
    %cst_84 = arith.constant dense<0.000000e+00> : vector<64xf32>
    %87 = vector.multi_reduction <add>, %82, %cst_84 [0] : vector<64x64xf32> to vector<64xf32>
    %88 = vector.shape_cast %87 : vector<64xf32> to vector<1x64xf32>
    %89 = arith.mulf %82, %82 : vector<64x64xf32>
    %cst_85 = arith.constant dense<0.000000e+00> : vector<64xf32>
    %90 = vector.multi_reduction <add>, %89, %cst_85 [0] : vector<64x64xf32> to vector<64xf32>
    %91 = vector.shape_cast %90 : vector<64xf32> to vector<1x64xf32>
    %cst_86 = arith.constant dense<0.000000e+00> : vector<1x32xf32>
    %92 = tpu.matmul %88, %85, %cst_86 {dimension_numbers = #tpu.dot_dimension_numbers<[1], [0], [0], [1], [0, 0, 1, 1], [], []>, precision = #tpu.contract_precision<fp32>} : vector<1x64xf32>, vector<64x32xf32>, vector<1x32xf32> -> vector<1x32xf32>
    %cst_87 = arith.constant dense<0.000000e+00> : vector<1x32xf32>
    %93 = tpu.matmul %91, %85, %cst_87 {dimension_numbers = #tpu.dot_dimension_numbers<[1], [0], [0], [1], [0, 0, 1, 1], [], []>, precision = #tpu.contract_precision<fp32>} : vector<1x64xf32>, vector<64x32xf32>, vector<1x32xf32> -> vector<1x32xf32>
    %cst_88 = arith.constant 1.280000e+02 : f32
    %94 = vector.broadcast %cst_88 : f32 to vector<1x32xf32>
    %95 = arith.divf %92, %94 : vector<1x32xf32>
    %cst_89 = arith.constant 1.280000e+02 : f32
    %96 = vector.broadcast %cst_89 : f32 to vector<1x32xf32>
    %97 = arith.divf %93, %96 : vector<1x32xf32>
    %98 = arith.mulf %95, %95 : vector<1x32xf32>
    %99 = arith.subf %97, %98 : vector<1x32xf32>
    %cst_90 = arith.constant 0.000000e+00 : f32
    %100 = vector.broadcast %cst_90 : f32 to vector<1x32xf32>
    %101 = arith.maximumf %99, %100 : vector<1x32xf32>
    %cst_91 = arith.constant 9.99999974E-6 : f32
    %102 = vector.broadcast %cst_91 : f32 to vector<1x32xf32>
    %103 = arith.addf %101, %102 : vector<1x32xf32>
    %104 = math.rsqrt %103 : vector<1x32xf32>
    %cst_92 = arith.constant dense<0.000000e+00> : vector<1x64xf32>
    %105 = tpu.matmul %95, %86, %cst_92 {dimension_numbers = #tpu.dot_dimension_numbers<[1], [0], [0], [1], [0, 0, 1, 1], [], []>, precision = #tpu.contract_precision<fp32>} : vector<1x32xf32>, vector<32x64xf32>, vector<1x64xf32> -> vector<1x64xf32>
    %cst_93 = arith.constant dense<0.000000e+00> : vector<1x64xf32>
    %106 = tpu.matmul %104, %86, %cst_93 {dimension_numbers = #tpu.dot_dimension_numbers<[1], [0], [0], [1], [0, 0, 1, 1], [], []>, precision = #tpu.contract_precision<fp32>} : vector<1x32xf32>, vector<32x64xf32>, vector<1x64xf32> -> vector<1x64xf32>
    %107 = vector.broadcast %105 : vector<1x64xf32> to vector<64x64xf32>
    %108 = arith.subf %82, %107 : vector<64x64xf32>
    %109 = vector.broadcast %106 : vector<1x64xf32> to vector<64x64xf32>
    %110 = arith.mulf %108, %109 : vector<64x64xf32>
    %111 = vector.broadcast %83 : vector<1x64xf32> to vector<64x64xf32>
    %112 = arith.mulf %110, %111 : vector<64x64xf32>
    %113 = vector.broadcast %84 : vector<1x64xf32> to vector<64x64xf32>
    %114 = arith.addf %112, %113 : vector<64x64xf32>
    %115 = arith.negf %114 : vector<64x64xf32>
    %116 = math.exp %115 : vector<64x64xf32>
    %cst_94 = arith.constant 1.000000e+00 : f32
    %117 = vector.broadcast %cst_94 : f32 to vector<64x64xf32>
    %118 = arith.addf %117, %116 : vector<64x64xf32>
    %119 = arith.divf %117, %118 : vector<64x64xf32>
    %120 = arith.mulf %114, %119 : vector<64x64xf32>
    %121 = vector.shape_cast %120 : vector<64x64xf32> to vector<8x8x64xf32>
    %c0_95 = arith.constant 0 : index
    %c0_96 = arith.constant 0 : index
    %122 = vector.load %arg13[%c0_95, %c0_96] : memref<1x64xf32, #tpu.memory_space<vmem>>, vector<1x64xf32>
    %cst_97 = arith.constant 0.000000e+00 : bf16
    %123 = vector.broadcast %cst_97 : bf16 to vector<1x10x64xbf16>
    %c0_98 = arith.constant 0 : index
    %c7_99 = arith.constant 7 : index
    %c0_100 = arith.constant 0 : index
    %124 = vector.load %arg18[%c0_98, %c7_99, %c0_100] : memref<10x24x64xbf16, #tpu.memory_space<vmem>>, vector<1x10x64xbf16>
    tpu.vector_store %arg18[%c0_98, %c7_99, %c0_100], %123 {strides = array<i32>} : memref<10x24x64xbf16, #tpu.memory_space<vmem>>, vector<1x10x64xbf16>,
    %c9_101 = arith.constant 9 : index
    %c7_102 = arith.constant 7 : index
    %c0_103 = arith.constant 0 : index
    %125 = vector.load %arg18[%c9_101, %c7_102, %c0_103] : memref<10x24x64xbf16, #tpu.memory_space<vmem>>, vector<1x10x64xbf16>
    tpu.vector_store %arg18[%c9_101, %c7_102, %c0_103], %123 {strides = array<i32>} : memref<10x24x64xbf16, #tpu.memory_space<vmem>>, vector<1x10x64xbf16>,
    %cst_104 = arith.constant 0.000000e+00 : bf16
    %126 = vector.broadcast %cst_104 : bf16 to vector<8x1x64xbf16>
    %c1_105 = arith.constant 1 : index
    %c7_106 = arith.constant 7 : index
    %c0_107 = arith.constant 0 : index
    %127 = vector.load %arg18[%c1_105, %c7_106, %c0_107] : memref<10x24x64xbf16, #tpu.memory_space<vmem>>, vector<8x1x64xbf16>
    tpu.vector_store %arg18[%c1_105, %c7_106, %c0_107], %126 {strides = array<i32>} : memref<10x24x64xbf16, #tpu.memory_space<vmem>>, vector<8x1x64xbf16>,
    %c1_108 = arith.constant 1 : index
    %c16_109 = arith.constant 16 : index
    %c0_110 = arith.constant 0 : index
    %128 = vector.load %arg18[%c1_108, %c16_109, %c0_110] : memref<10x24x64xbf16, #tpu.memory_space<vmem>>, vector<8x1x64xbf16>
    tpu.vector_store %arg18[%c1_108, %c16_109, %c0_110], %126 {strides = array<i32>} : memref<10x24x64xbf16, #tpu.memory_space<vmem>>, vector<8x1x64xbf16>,
    %129 = arith.truncf %121 : vector<8x8x64xf32> to vector<8x8x64xbf16>
    %c1_111 = arith.constant 1 : index
    %c8_112 = arith.constant 8 : index
    %c0_113 = arith.constant 0 : index
    %130 = vector.load %arg18[%c1_111, %c8_112, %c0_113] : memref<10x24x64xbf16, #tpu.memory_space<vmem>>, vector<8x8x64xbf16>
    tpu.vector_store %arg18[%c1_111, %c8_112, %c0_113], %129 {strides = array<i32>} : memref<10x24x64xbf16, #tpu.memory_space<vmem>>, vector<8x8x64xbf16>,
    %c0_114 = arith.constant 0 : index
    %c7_115 = arith.constant 7 : index
    %c0_116 = arith.constant 0 : index
    %131 = vector.load %arg18[%c0_114, %c7_115, %c0_116] : memref<10x24x64xbf16, #tpu.memory_space<vmem>>, vector<8x8x64xbf16>
    %132 = vector.shape_cast %131 : vector<8x8x64xbf16> to vector<64x64xbf16>
    %c0_117 = arith.constant 0 : index
    %c0_118 = arith.constant 0 : index
    %133 = vector.load %arg20[%c0_117, %c0_118] : memref<64x576xbf16, #tpu.memory_space<vmem>>, vector<64x64xbf16>
    tpu.vector_store %arg20[%c0_117, %c0_118], %132 {strides = array<i32>} : memref<64x576xbf16, #tpu.memory_space<vmem>>, vector<64x64xbf16>,
    %c0_119 = arith.constant 0 : index
    %c8_120 = arith.constant 8 : index
    %c0_121 = arith.constant 0 : index
    %134 = vector.load %arg18[%c0_119, %c8_120, %c0_121] : memref<10x24x64xbf16, #tpu.memory_space<vmem>>, vector<8x8x64xbf16>
    %135 = vector.shape_cast %134 : vector<8x8x64xbf16> to vector<64x64xbf16>
    %c0_122 = arith.constant 0 : index
    %c64_123 = arith.constant 64 : index
    %136 = vector.load %arg20[%c0_122, %c64_123] : memref<64x576xbf16, #tpu.memory_space<vmem>>, vector<64x64xbf16>
    tpu.vector_store %arg20[%c0_122, %c64_123], %135 {strides = array<i32>} : memref<64x576xbf16, #tpu.memory_space<vmem>>, vector<64x64xbf16>,
    %c0_124 = arith.constant 0 : index
    %c9_125 = arith.constant 9 : index
    %c0_126 = arith.constant 0 : index
    %137 = vector.load %arg18[%c0_124, %c9_125, %c0_126] : memref<10x24x64xbf16, #tpu.memory_space<vmem>>, vector<8x8x64xbf16>
    %138 = vector.shape_cast %137 : vector<8x8x64xbf16> to vector<64x64xbf16>
    %c0_127 = arith.constant 0 : index
    %c128_128 = arith.constant 128 : index
    %139 = vector.load %arg20[%c0_127, %c128_128] : memref<64x576xbf16, #tpu.memory_space<vmem>>, vector<64x64xbf16>
    tpu.vector_store %arg20[%c0_127, %c128_128], %138 {strides = array<i32>} : memref<64x576xbf16, #tpu.memory_space<vmem>>, vector<64x64xbf16>,
    %c1_129 = arith.constant 1 : index
    %c7_130 = arith.constant 7 : index
    %c0_131 = arith.constant 0 : index
    %140 = vector.load %arg18[%c1_129, %c7_130, %c0_131] : memref<10x24x64xbf16, #tpu.memory_space<vmem>>, vector<8x8x64xbf16>
    %141 = vector.shape_cast %140 : vector<8x8x64xbf16> to vector<64x64xbf16>
    %c0_132 = arith.constant 0 : index
    %c192_133 = arith.constant 192 : index
    %142 = vector.load %arg20[%c0_132, %c192_133] : memref<64x576xbf16, #tpu.memory_space<vmem>>, vector<64x64xbf16>
    tpu.vector_store %arg20[%c0_132, %c192_133], %141 {strides = array<i32>} : memref<64x576xbf16, #tpu.memory_space<vmem>>, vector<64x64xbf16>,
    %c1_134 = arith.constant 1 : index
    %c8_135 = arith.constant 8 : index
    %c0_136 = arith.constant 0 : index
    %143 = vector.load %arg18[%c1_134, %c8_135, %c0_136] : memref<10x24x64xbf16, #tpu.memory_space<vmem>>, vector<8x8x64xbf16>
    %144 = vector.shape_cast %143 : vector<8x8x64xbf16> to vector<64x64xbf16>
    %c0_137 = arith.constant 0 : index
    %c256_138 = arith.constant 256 : index
    %145 = vector.load %arg20[%c0_137, %c256_138] : memref<64x576xbf16, #tpu.memory_space<vmem>>, vector<64x64xbf16>
    tpu.vector_store %arg20[%c0_137, %c256_138], %144 {strides = array<i32>} : memref<64x576xbf16, #tpu.memory_space<vmem>>, vector<64x64xbf16>,
    %c1_139 = arith.constant 1 : index
    %c9_140 = arith.constant 9 : index
    %c0_141 = arith.constant 0 : index
    %146 = vector.load %arg18[%c1_139, %c9_140, %c0_141] : memref<10x24x64xbf16, #tpu.memory_space<vmem>>, vector<8x8x64xbf16>
    %147 = vector.shape_cast %146 : vector<8x8x64xbf16> to vector<64x64xbf16>
    %c0_142 = arith.constant 0 : index
    %c320 = arith.constant 320 : index
    %148 = vector.load %arg20[%c0_142, %c320] : memref<64x576xbf16, #tpu.memory_space<vmem>>, vector<64x64xbf16>
    tpu.vector_store %arg20[%c0_142, %c320], %147 {strides = array<i32>} : memref<64x576xbf16, #tpu.memory_space<vmem>>, vector<64x64xbf16>,
    %c2_143 = arith.constant 2 : index
    %c7_144 = arith.constant 7 : index
    %c0_145 = arith.constant 0 : index
    %149 = vector.load %arg18[%c2_143, %c7_144, %c0_145] : memref<10x24x64xbf16, #tpu.memory_space<vmem>>, vector<8x8x64xbf16>
    %150 = vector.shape_cast %149 : vector<8x8x64xbf16> to vector<64x64xbf16>
    %c0_146 = arith.constant 0 : index
    %c384 = arith.constant 384 : index
    %151 = vector.load %arg20[%c0_146, %c384] : memref<64x576xbf16, #tpu.memory_space<vmem>>, vector<64x64xbf16>
    tpu.vector_store %arg20[%c0_146, %c384], %150 {strides = array<i32>} : memref<64x576xbf16, #tpu.memory_space<vmem>>, vector<64x64xbf16>,
    %c2_147 = arith.constant 2 : index
    %c8_148 = arith.constant 8 : index
    %c0_149 = arith.constant 0 : index
    %152 = vector.load %arg18[%c2_147, %c8_148, %c0_149] : memref<10x24x64xbf16, #tpu.memory_space<vmem>>, vector<8x8x64xbf16>
    %153 = vector.shape_cast %152 : vector<8x8x64xbf16> to vector<64x64xbf16>
    %c0_150 = arith.constant 0 : index
    %c448 = arith.constant 448 : index
    %154 = vector.load %arg20[%c0_150, %c448] : memref<64x576xbf16, #tpu.memory_space<vmem>>, vector<64x64xbf16>
    tpu.vector_store %arg20[%c0_150, %c448], %153 {strides = array<i32>} : memref<64x576xbf16, #tpu.memory_space<vmem>>, vector<64x64xbf16>,
    %c2_151 = arith.constant 2 : index
    %c9_152 = arith.constant 9 : index
    %c0_153 = arith.constant 0 : index
    %155 = vector.load %arg18[%c2_151, %c9_152, %c0_153] : memref<10x24x64xbf16, #tpu.memory_space<vmem>>, vector<8x8x64xbf16>
    %156 = vector.shape_cast %155 : vector<8x8x64xbf16> to vector<64x64xbf16>
    %c0_154 = arith.constant 0 : index
    %c512 = arith.constant 512 : index
    %157 = vector.load %arg20[%c0_154, %c512] : memref<64x576xbf16, #tpu.memory_space<vmem>>, vector<64x64xbf16>
    tpu.vector_store %arg20[%c0_154, %c512], %156 {strides = array<i32>} : memref<64x576xbf16, #tpu.memory_space<vmem>>, vector<64x64xbf16>,
    %c0_155 = arith.constant 0 : index
    %c0_156 = arith.constant 0 : index
    %158 = vector.load %arg20[%c0_155, %c0_156] : memref<64x576xbf16, #tpu.memory_space<vmem>>, vector<64x576xbf16>
    %c0_157 = arith.constant 0 : index
    %c0_158 = arith.constant 0 : index
    %159 = vector.load %arg12[%c0_157, %c0_158] : memref<576x64xbf16, #tpu.memory_space<vmem>>, vector<576x64xbf16>
    %cst_159 = arith.constant dense<0.000000e+00> : vector<64x64xf32>
    %160 = tpu.matmul %158, %159, %cst_159 {dimension_numbers = #tpu.dot_dimension_numbers<[1], [0], [0], [1], [0, 0, 1, 1], [], []>} : vector<64x576xbf16>, vector<576x64xbf16>, vector<64x64xf32> -> vector<64x64xf32>
    %161 = vector.broadcast %122 : vector<1x64xf32> to vector<64x64xf32>
    %162 = arith.addf %160, %161 : vector<64x64xf32>
    %163 = arith.truncf %2 : vector<64x32xf32> to vector<64x32xbf16>
    %c0_160 = arith.constant 0 : index
    %c0_161 = arith.constant 0 : index
    %164 = vector.load %arg14[%c0_160, %c0_161] : memref<32x64xbf16, #tpu.memory_space<vmem>>, vector<32x64xbf16>
    %cst_162 = arith.constant dense<0.000000e+00> : vector<64x64xf32>
    %165 = tpu.matmul %163, %164, %cst_162 {dimension_numbers = #tpu.dot_dimension_numbers<[1], [0], [0], [1], [0, 0, 1, 1], [], []>} : vector<64x32xbf16>, vector<32x64xbf16>, vector<64x64xf32> -> vector<64x64xf32>
    %c0_163 = arith.constant 0 : index
    %c0_164 = arith.constant 0 : index
    %166 = vector.load %arg15[%c0_163, %c0_164] : memref<1x64xf32, #tpu.memory_space<vmem>>, vector<1x64xf32>
    %167 = vector.broadcast %166 : vector<1x64xf32> to vector<64x64xf32>
    %168 = arith.addf %165, %167 : vector<64x64xf32>
    %169 = arith.addf %162, %168 : vector<64x64xf32>
    %170 = vector.shape_cast %169 : vector<64x64xf32> to vector<8x8x64xf32>
    %c0_165 = arith.constant 0 : index
    %c0_166 = arith.constant 0 : index
    %c0_167 = arith.constant 0 : index
    %c0_168 = arith.constant 0 : index
    %171 = vector.load %arg16[%c0_165, %c0_166, %c0_167, %c0_168] : memref<1x8x8x64xf32, #tpu.memory_space<vmem>>, vector<1x8x8x64xf32>
    %172 = vector.shape_cast %171 : vector<1x8x8x64xf32> to vector<8x8x64xf32>
    %173 = vector.shape_cast %170 : vector<8x8x64xf32> to vector<1x8x8x64xf32>
    tpu.vector_store %arg16[%c0_165, %c0_166, %c0_167, %c0_168], %173 {strides = array<i32>} : memref<1x8x8x64xf32, #tpu.memory_space<vmem>>, vector<1x8x8x64xf32>,
    return
  }
  func.func @transform_0(%arg0: i32) -> (i32, i32, i32, i32) {
    %c0_i32 = arith.constant 0 : i32
    %c0_i32_0 = arith.constant 0 : i32
    %c0_i32_1 = arith.constant 0 : i32
    %c0_i32_2 = arith.constant 0 : i32
    return %arg0, %c0_i32, %c0_i32_0, %c0_i32_1 : i32, i32, i32, i32
  }
  func.func @transform_1(%arg0: i32) -> (i32, i32) {
    %c0_i32 = arith.constant 0 : i32
    %c0_i32_0 = arith.constant 0 : i32
    %c0_i32_1 = arith.constant 0 : i32
    return %c0_i32, %c0_i32_0 : i32, i32
  }
  func.func @transform_2(%arg0: i32) -> (i32, i32) {
    %c0_i32 = arith.constant 0 : i32
    %c0_i32_0 = arith.constant 0 : i32
    %c0_i32_1 = arith.constant 0 : i32
    return %c0_i32, %c0_i32_0 : i32, i32
  }
  func.func @transform_3(%arg0: i32) -> (i32, i32) {
    %c0_i32 = arith.constant 0 : i32
    %c0_i32_0 = arith.constant 0 : i32
    %c0_i32_1 = arith.constant 0 : i32
    return %c0_i32, %c0_i32_0 : i32, i32
  }
  func.func @transform_4(%arg0: i32) -> (i32, i32) {
    %c0_i32 = arith.constant 0 : i32
    %c0_i32_0 = arith.constant 0 : i32
    %c0_i32_1 = arith.constant 0 : i32
    return %c0_i32, %c0_i32_0 : i32, i32
  }
  func.func @transform_5(%arg0: i32) -> (i32, i32) {
    %c0_i32 = arith.constant 0 : i32
    %c0_i32_0 = arith.constant 0 : i32
    %c0_i32_1 = arith.constant 0 : i32
    return %c0_i32, %c0_i32_0 : i32, i32
  }
  func.func @transform_6(%arg0: i32) -> (i32, i32) {
    %c0_i32 = arith.constant 0 : i32
    %c0_i32_0 = arith.constant 0 : i32
    %c0_i32_1 = arith.constant 0 : i32
    return %c0_i32, %c0_i32_0 : i32, i32
  }
  func.func @transform_7(%arg0: i32) -> (i32, i32) {
    %c0_i32 = arith.constant 0 : i32
    %c0_i32_0 = arith.constant 0 : i32
    %c0_i32_1 = arith.constant 0 : i32
    return %c0_i32, %c0_i32_0 : i32, i32
  }
  func.func @transform_8(%arg0: i32) -> (i32, i32) {
    %c0_i32 = arith.constant 0 : i32
    %c0_i32_0 = arith.constant 0 : i32
    %c0_i32_1 = arith.constant 0 : i32
    return %c0_i32, %c0_i32_0 : i32, i32
  }
  func.func @transform_9(%arg0: i32) -> (i32, i32) {
    %c0_i32 = arith.constant 0 : i32
    %c0_i32_0 = arith.constant 0 : i32
    %c0_i32_1 = arith.constant 0 : i32
    return %c0_i32, %c0_i32_0 : i32, i32
  }
  func.func @transform_10(%arg0: i32) -> (i32, i32) {
    %c0_i32 = arith.constant 0 : i32
    %c0_i32_0 = arith.constant 0 : i32
    %c0_i32_1 = arith.constant 0 : i32
    return %c0_i32, %c0_i32_0 : i32, i32
  }
  func.func @transform_11(%arg0: i32) -> (i32, i32) {
    %c0_i32 = arith.constant 0 : i32
    %c0_i32_0 = arith.constant 0 : i32
    %c0_i32_1 = arith.constant 0 : i32
    return %c0_i32, %c0_i32_0 : i32, i32
  }
  func.func @transform_12(%arg0: i32) -> (i32, i32) {
    %c0_i32 = arith.constant 0 : i32
    %c0_i32_0 = arith.constant 0 : i32
    %c0_i32_1 = arith.constant 0 : i32
    return %c0_i32, %c0_i32_0 : i32, i32
  }
  func.func @transform_13(%arg0: i32) -> (i32, i32) {
    %c0_i32 = arith.constant 0 : i32
    %c0_i32_0 = arith.constant 0 : i32
    %c0_i32_1 = arith.constant 0 : i32
    return %c0_i32, %c0_i32_0 : i32, i32
  }
  func.func @transform_14(%arg0: i32) -> (i32, i32) {
    %c0_i32 = arith.constant 0 : i32
    %c0_i32_0 = arith.constant 0 : i32
    %c0_i32_1 = arith.constant 0 : i32
    return %c0_i32, %c0_i32_0 : i32, i32
  }
  func.func @transform_15(%arg0: i32) -> (i32, i32, i32, i32) {
    %c0_i32 = arith.constant 0 : i32
    %c0_i32_0 = arith.constant 0 : i32
    %c0_i32_1 = arith.constant 0 : i32
    %c0_i32_2 = arith.constant 0 : i32
    return %arg0, %c0_i32, %c0_i32_0, %c0_i32_1 : i32, i32, i32, i32
  }
}

module attributes {stable_mosaic.version = 11 : i64} {
  func.func @vae_resblock_kernel(%arg0: i32, %arg1: memref<1x8x8x32xf32, #tpu.memory_space<vmem>>, %arg2: memref<1x32xf32, #tpu.memory_space<vmem>>, %arg3: memref<1x32xf32, #tpu.memory_space<vmem>>, %arg4: memref<32x32xf32, #tpu.memory_space<vmem>>, %arg5: memref<32x32xf32, #tpu.memory_space<vmem>>, %arg6: memref<288x64xbf16, #tpu.memory_space<vmem>>, %arg7: memref<1x64xf32, #tpu.memory_space<vmem>>, %arg8: memref<1x64xf32, #tpu.memory_space<vmem>>, %arg9: memref<1x64xf32, #tpu.memory_space<vmem>>, %arg10: memref<64x32xf32, #tpu.memory_space<vmem>>, %arg11: memref<32x64xf32, #tpu.memory_space<vmem>>, %arg12: memref<576x64xbf16, #tpu.memory_space<vmem>>, %arg13: memref<1x64xf32, #tpu.memory_space<vmem>>, %arg14: memref<32x64xbf16, #tpu.memory_space<vmem>>, %arg15: memref<1x64xf32, #tpu.memory_space<vmem>>, %arg16: memref<1x8x8x64xf32, #tpu.memory_space<vmem>>, %arg17: memref<10x24x32xbf16, #tpu.memory_space<vmem>>, %arg18: memref<10x24x64xbf16, #tpu.memory_space<vmem>>, %arg19: memref<64x288xbf16, #tpu.memory_space<vmem>>, %arg20: memref<64x576xbf16, #tpu.memory_space<vmem>>) attributes {dimension_semantics = [#tpu.dimension_semantics<parallel>], iteration_bounds = array<i64: 2>, scalar_prefetch = 0 : i64, scratch_operands = 4 : i64, tpu.core_type = #tpu.core_type<tc>, window_params = [{transform_indices = @transform_0, window_bounds = array<i64: 1, 8, 8, 32>}, {pipeline_mode = #tpu.pipeline_mode<synchronous>, transform_indices = @transform_1, window_bounds = array<i64: 1, 32>}, {pipeline_mode = #tpu.pipeline_mode<synchronous>, transform_indices = @transform_2, window_bounds = array<i64: 1, 32>}, {pipeline_mode = #tpu.pipeline_mode<synchronous>, transform_indices = @transform_3, window_bounds = array<i64: 32, 32>}, {pipeline_mode = #tpu.pipeline_mode<synchronous>, transform_indices = @transform_4, window_bounds = array<i64: 32, 32>}, {pipeline_mode = #tpu.pipeline_mode<synchronous>, transform_indices = @transform_5, window_bounds = array<i64: 288, 64>}, {pipeline_mode = #tpu.pipeline_mode<synchronous>, transform_indices = @transform_6, window_bounds = array<i64: 1, 64>}, {pipeline_mode = #tpu.pipeline_mode<synchronous>, transform_indices = @transform_7, window_bounds = array<i64: 1, 64>}, {pipeline_mode = #tpu.pipeline_mode<synchronous>, transform_indices = @transform_8, window_bounds = array<i64: 1, 64>}, {pipeline_mode = #tpu.pipeline_mode<synchronous>, transform_indices = @transform_9, window_bounds = array<i64: 64, 32>}, {pipeline_mode = #tpu.pipeline_mode<synchronous>, transform_indices = @transform_10, window_bounds = array<i64: 32, 64>}, {pipeline_mode = #tpu.pipeline_mode<synchronous>, transform_indices = @transform_11, window_bounds = array<i64: 576, 64>}, {pipeline_mode = #tpu.pipeline_mode<synchronous>, transform_indices = @transform_12, window_bounds = array<i64: 1, 64>}, {pipeline_mode = #tpu.pipeline_mode<synchronous>, transform_indices = @transform_13, window_bounds = array<i64: 32, 64>}, {pipeline_mode = #tpu.pipeline_mode<synchronous>, transform_indices = @transform_14, window_bounds = array<i64: 1, 64>}, {transform_indices = @transform_15, window_bounds = array<i64: 1, 8, 8, 64>}]} {
    %c0 = arith.constant 0 : index
    %c0_0 = arith.constant 0 : index
    %c0_1 = arith.constant 0 : index
    %c0_2 = arith.constant 0 : index
    %0 = vector.load %arg1[%c0, %c0_0, %c0_1, %c0_2] : memref<1x8x8x32xf32, #tpu.memory_space<vmem>>, vector<1x8x8x32xf32>
    %1 = vector.shape_cast %0 : vector<1x8x8x32xf32> to vector<8x8x32xf32>
    %2 = vector.shape_cast %1 : vector<8x8x32xf32> to vector<64x32xf32>
    %c0_3 = arith.constant 0 : index
    %c0_4 = arith.constant 0 : index
    %3 = vector.load %arg2[%c0_3, %c0_4] : memref<1x32xf32, #tpu.memory_space<vmem>>, vector<1x32xf32>
    %c0_5 = arith.constant 0 : index
    %c0_6 = arith.constant 0 : index
    %4 = vector.load %arg3[%c0_5, %c0_6] : memref<1x32xf32, #tpu.memory_space<vmem>>, vector<1x32xf32>
    %c0_7 = arith.constant 0 : index
    %c0_8 = arith.constant 0 : index
    %5 = vector.load %arg4[%c0_7, %c0_8] : memref<32x32xf32, #tpu.memory_space<vmem>>, vector<32x32xf32>
    %c0_9 = arith.constant 0 : index
    %c0_10 = arith.constant 0 : index
    %6 = vector.load %arg5[%c0_9, %c0_10] : memref<32x32xf32, #tpu.memory_space<vmem>>, vector<32x32xf32>
    %cst = arith.constant dense<0.000000e+00> : vector<32xf32>
    %7 = vector.multi_reduction <add>, %2, %cst [0] : vector<64x32xf32> to vector<32xf32>
    %8 = vector.shape_cast %7 : vector<32xf32> to vector<1x32xf32>
    %9 = arith.mulf %2, %2 : vector<64x32xf32>
    %cst_11 = arith.constant dense<0.000000e+00> : vector<32xf32>
    %10 = vector.multi_reduction <add>, %9, %cst_11 [0] : vector<64x32xf32> to vector<32xf32>
    %11 = vector.shape_cast %10 : vector<32xf32> to vector<1x32xf32>
    %cst_12 = arith.constant dense<0.000000e+00> : vector<1x32xf32>
    %12 = tpu.matmul %8, %5, %cst_12 {dimension_numbers = #tpu.dot_dimension_numbers<[1], [0], [0], [1], [0, 0, 1, 1], [], []>, precision = #tpu.contract_precision<fp32>} : vector<1x32xf32>, vector<32x32xf32>, vector<1x32xf32> -> vector<1x32xf32>
    %cst_13 = arith.constant dense<0.000000e+00> : vector<1x32xf32>
    %13 = tpu.matmul %11, %5, %cst_13 {dimension_numbers = #tpu.dot_dimension_numbers<[1], [0], [0], [1], [0, 0, 1, 1], [], []>, precision = #tpu.contract_precision<fp32>} : vector<1x32xf32>, vector<32x32xf32>, vector<1x32xf32> -> vector<1x32xf32>
    %cst_14 = arith.constant 6.400000e+01 : f32
    %14 = vector.broadcast %cst_14 : f32 to vector<1x32xf32>
    %15 = arith.divf %12, %14 : vector<1x32xf32>
    %cst_15 = arith.constant 6.400000e+01 : f32
    %16 = vector.broadcast %cst_15 : f32 to vector<1x32xf32>
    %17 = arith.divf %13, %16 : vector<1x32xf32>
    %18 = arith.mulf %15, %15 : vector<1x32xf32>
    %19 = arith.subf %17, %18 : vector<1x32xf32>
    %cst_16 = arith.constant 0.000000e+00 : f32
    %20 = vector.broadcast %cst_16 : f32 to vector<1x32xf32>
    %21 = arith.maximumf %19, %20 : vector<1x32xf32>
    %cst_17 = arith.constant 9.99999974E-6 : f32
    %22 = vector.broadcast %cst_17 : f32 to vector<1x32xf32>
    %23 = arith.addf %21, %22 : vector<1x32xf32>
    %24 = math.rsqrt %23 : vector<1x32xf32>
    %cst_18 = arith.constant dense<0.000000e+00> : vector<1x32xf32>
    %25 = tpu.matmul %15, %6, %cst_18 {dimension_numbers = #tpu.dot_dimension_numbers<[1], [0], [0], [1], [0, 0, 1, 1], [], []>, precision = #tpu.contract_precision<fp32>} : vector<1x32xf32>, vector<32x32xf32>, vector<1x32xf32> -> vector<1x32xf32>
    %cst_19 = arith.constant dense<0.000000e+00> : vector<1x32xf32>
    %26 = tpu.matmul %24, %6, %cst_19 {dimension_numbers = #tpu.dot_dimension_numbers<[1], [0], [0], [1], [0, 0, 1, 1], [], []>, precision = #tpu.contract_precision<fp32>} : vector<1x32xf32>, vector<32x32xf32>, vector<1x32xf32> -> vector<1x32xf32>
    %27 = vector.broadcast %25 : vector<1x32xf32> to vector<64x32xf32>
    %28 = arith.subf %2, %27 : vector<64x32xf32>
    %29 = vector.broadcast %26 : vector<1x32xf32> to vector<64x32xf32>
    %30 = arith.mulf %28, %29 : vector<64x32xf32>
    %31 = vector.broadcast %3 : vector<1x32xf32> to vector<64x32xf32>
    %32 = arith.mulf %30, %31 : vector<64x32xf32>
    %33 = vector.broadcast %4 : vector<1x32xf32> to vector<64x32xf32>
    %34 = arith.addf %32, %33 : vector<64x32xf32>
    %35 = arith.negf %34 : vector<64x32xf32>
    %36 = math.exp %35 : vector<64x32xf32>
    %cst_20 = arith.constant 1.000000e+00 : f32
    %37 = vector.broadcast %cst_20 : f32 to vector<64x32xf32>
    %38 = arith.addf %37, %36 : vector<64x32xf32>
    %39 = arith.divf %37, %38 : vector<64x32xf32>
    %40 = arith.mulf %34, %39 : vector<64x32xf32>
    %41 = vector.shape_cast %40 : vector<64x32xf32> to vector<8x8x32xf32>
    %c0_21 = arith.constant 0 : index
    %c0_22 = arith.constant 0 : index
    %42 = vector.load %arg7[%c0_21, %c0_22] : memref<1x64xf32, #tpu.memory_space<vmem>>, vector<1x64xf32>
    %cst_23 = arith.constant 0.000000e+00 : bf16
    %43 = vector.broadcast %cst_23 : bf16 to vector<1x10x32xbf16>
    %c0_24 = arith.constant 0 : index
    %c7 = arith.constant 7 : index
    %c0_25 = arith.constant 0 : index
    %44 = vector.load %arg17[%c0_24, %c7, %c0_25] : memref<10x24x32xbf16, #tpu.memory_space<vmem>>, vector<1x10x32xbf16>
    tpu.vector_store %arg17[%c0_24, %c7, %c0_25], %43 {strides = array<i32>} : memref<10x24x32xbf16, #tpu.memory_space<vmem>>, vector<1x10x32xbf16>,
    %c9 = arith.constant 9 : index
    %c7_26 = arith.constant 7 : index
    %c0_27 = arith.constant 0 : index
    %45 = vector.load %arg17[%c9, %c7_26, %c0_27] : memref<10x24x32xbf16, #tpu.memory_space<vmem>>, vector<1x10x32xbf16>
    tpu.vector_store %arg17[%c9, %c7_26, %c0_27], %43 {strides = array<i32>} : memref<10x24x32xbf16, #tpu.memory_space<vmem>>, vector<1x10x32xbf16>,
    %cst_28 = arith.constant 0.000000e+00 : bf16
    %46 = vector.broadcast %cst_28 : bf16 to vector<8x1x32xbf16>
    %c1 = arith.constant 1 : index
    %c7_29 = arith.constant 7 : index
    %c0_30 = arith.constant 0 : index
    %47 = vector.load %arg17[%c1, %c7_29, %c0_30] : memref<10x24x32xbf16, #tpu.memory_space<vmem>>, vector<8x1x32xbf16>
    tpu.vector_store %arg17[%c1, %c7_29, %c0_30], %46 {strides = array<i32>} : memref<10x24x32xbf16, #tpu.memory_space<vmem>>, vector<8x1x32xbf16>,
    %c1_31 = arith.constant 1 : index
    %c16 = arith.constant 16 : index
    %c0_32 = arith.constant 0 : index
    %48 = vector.load %arg17[%c1_31, %c16, %c0_32] : memref<10x24x32xbf16, #tpu.memory_space<vmem>>, vector<8x1x32xbf16>
    tpu.vector_store %arg17[%c1_31, %c16, %c0_32], %46 {strides = array<i32>} : memref<10x24x32xbf16, #tpu.memory_space<vmem>>, vector<8x1x32xbf16>,
    %49 = arith.truncf %41 : vector<8x8x32xf32> to vector<8x8x32xbf16>
    %c1_33 = arith.constant 1 : index
    %c8 = arith.constant 8 : index
    %c0_34 = arith.constant 0 : index
    %50 = vector.load %arg17[%c1_33, %c8, %c0_34] : memref<10x24x32xbf16, #tpu.memory_space<vmem>>, vector<8x8x32xbf16>
    tpu.vector_store %arg17[%c1_33, %c8, %c0_34], %49 {strides = array<i32>} : memref<10x24x32xbf16, #tpu.memory_space<vmem>>, vector<8x8x32xbf16>,
    %c0_35 = arith.constant 0 : index
    %c7_36 = arith.constant 7 : index
    %c0_37 = arith.constant 0 : index
    %51 = vector.load %arg17[%c0_35, %c7_36, %c0_37] : memref<10x24x32xbf16, #tpu.memory_space<vmem>>, vector<8x8x32xbf16>
    %52 = vector.shape_cast %51 : vector<8x8x32xbf16> to vector<64x32xbf16>
    %c0_38 = arith.constant 0 : index
    %c0_39 = arith.constant 0 : index
    %53 = vector.load %arg19[%c0_38, %c0_39] : memref<64x288xbf16, #tpu.memory_space<vmem>>, vector<64x32xbf16>
    tpu.vector_store %arg19[%c0_38, %c0_39], %52 {strides = array<i32>} : memref<64x288xbf16, #tpu.memory_space<vmem>>, vector<64x32xbf16>,
    %c0_40 = arith.constant 0 : index
    %c8_41 = arith.constant 8 : index
    %c0_42 = arith.constant 0 : index
    %54 = vector.load %arg17[%c0_40, %c8_41, %c0_42] : memref<10x24x32xbf16, #tpu.memory_space<vmem>>, vector<8x8x32xbf16>
    %55 = vector.shape_cast %54 : vector<8x8x32xbf16> to vector<64x32xbf16>
    %c0_43 = arith.constant 0 : index
    %c32 = arith.constant 32 : index
    %56 = vector.load %arg19[%c0_43, %c32] : memref<64x288xbf16, #tpu.memory_space<vmem>>, vector<64x32xbf16>
    tpu.vector_store %arg19[%c0_43, %c32], %55 {strides = array<i32>} : memref<64x288xbf16, #tpu.memory_space<vmem>>, vector<64x32xbf16>,
    %c0_44 = arith.constant 0 : index
    %c9_45 = arith.constant 9 : index
    %c0_46 = arith.constant 0 : index
    %57 = vector.load %arg17[%c0_44, %c9_45, %c0_46] : memref<10x24x32xbf16, #tpu.memory_space<vmem>>, vector<8x8x32xbf16>
    %58 = vector.shape_cast %57 : vector<8x8x32xbf16> to vector<64x32xbf16>
    %c0_47 = arith.constant 0 : index
    %c64 = arith.constant 64 : index
    %59 = vector.load %arg19[%c0_47, %c64] : memref<64x288xbf16, #tpu.memory_space<vmem>>, vector<64x32xbf16>
    tpu.vector_store %arg19[%c0_47, %c64], %58 {strides = array<i32>} : memref<64x288xbf16, #tpu.memory_space<vmem>>, vector<64x32xbf16>,
    %c1_48 = arith.constant 1 : index
    %c7_49 = arith.constant 7 : index
    %c0_50 = arith.constant 0 : index
    %60 = vector.load %arg17[%c1_48, %c7_49, %c0_50] : memref<10x24x32xbf16, #tpu.memory_space<vmem>>, vector<8x8x32xbf16>
    %61 = vector.shape_cast %60 : vector<8x8x32xbf16> to vector<64x32xbf16>
    %c0_51 = arith.constant 0 : index
    %c96 = arith.constant 96 : index
    %62 = vector.load %arg19[%c0_51, %c96] : memref<64x288xbf16, #tpu.memory_space<vmem>>, vector<64x32xbf16>
    tpu.vector_store %arg19[%c0_51, %c96], %61 {strides = array<i32>} : memref<64x288xbf16, #tpu.memory_space<vmem>>, vector<64x32xbf16>,
    %c1_52 = arith.constant 1 : index
    %c8_53 = arith.constant 8 : index
    %c0_54 = arith.constant 0 : index
    %63 = vector.load %arg17[%c1_52, %c8_53, %c0_54] : memref<10x24x32xbf16, #tpu.memory_space<vmem>>, vector<8x8x32xbf16>
    %64 = vector.shape_cast %63 : vector<8x8x32xbf16> to vector<64x32xbf16>
    %c0_55 = arith.constant 0 : index
    %c128 = arith.constant 128 : index
    %65 = vector.load %arg19[%c0_55, %c128] : memref<64x288xbf16, #tpu.memory_space<vmem>>, vector<64x32xbf16>
    tpu.vector_store %arg19[%c0_55, %c128], %64 {strides = array<i32>} : memref<64x288xbf16, #tpu.memory_space<vmem>>, vector<64x32xbf16>,
    %c1_56 = arith.constant 1 : index
    %c9_57 = arith.constant 9 : index
    %c0_58 = arith.constant 0 : index
    %66 = vector.load %arg17[%c1_56, %c9_57, %c0_58] : memref<10x24x32xbf16, #tpu.memory_space<vmem>>, vector<8x8x32xbf16>
    %67 = vector.shape_cast %66 : vector<8x8x32xbf16> to vector<64x32xbf16>
    %c0_59 = arith.constant 0 : index
    %c160 = arith.constant 160 : index
    %68 = vector.load %arg19[%c0_59, %c160] : memref<64x288xbf16, #tpu.memory_space<vmem>>, vector<64x32xbf16>
    tpu.vector_store %arg19[%c0_59, %c160], %67 {strides = array<i32>} : memref<64x288xbf16, #tpu.memory_space<vmem>>, vector<64x32xbf16>,
    %c2 = arith.constant 2 : index
    %c7_60 = arith.constant 7 : index
    %c0_61 = arith.constant 0 : index
    %69 = vector.load %arg17[%c2, %c7_60, %c0_61] : memref<10x24x32xbf16, #tpu.memory_space<vmem>>, vector<8x8x32xbf16>
    %70 = vector.shape_cast %69 : vector<8x8x32xbf16> to vector<64x32xbf16>
    %c0_62 = arith.constant 0 : index
    %c192 = arith.constant 192 : index
    %71 = vector.load %arg19[%c0_62, %c192] : memref<64x288xbf16, #tpu.memory_space<vmem>>, vector<64x32xbf16>
    tpu.vector_store %arg19[%c0_62, %c192], %70 {strides = array<i32>} : memref<64x288xbf16, #tpu.memory_space<vmem>>, vector<64x32xbf16>,
    %c2_63 = arith.constant 2 : index
    %c8_64 = arith.constant 8 : index
    %c0_65 = arith.constant 0 : index
    %72 = vector.load %arg17[%c2_63, %c8_64, %c0_65] : memref<10x24x32xbf16, #tpu.memory_space<vmem>>, vector<8x8x32xbf16>
    %73 = vector.shape_cast %72 : vector<8x8x32xbf16> to vector<64x32xbf16>
    %c0_66 = arith.constant 0 : index
    %c224 = arith.constant 224 : index
    %74 = vector.load %arg19[%c0_66, %c224] : memref<64x288xbf16, #tpu.memory_space<vmem>>, vector<64x32xbf16>
    tpu.vector_store %arg19[%c0_66, %c224], %73 {strides = array<i32>} : memref<64x288xbf16, #tpu.memory_space<vmem>>, vector<64x32xbf16>,
    %c2_67 = arith.constant 2 : index
    %c9_68 = arith.constant 9 : index
    %c0_69 = arith.constant 0 : index
    %75 = vector.load %arg17[%c2_67, %c9_68, %c0_69] : memref<10x24x32xbf16, #tpu.memory_space<vmem>>, vector<8x8x32xbf16>
    %76 = vector.shape_cast %75 : vector<8x8x32xbf16> to vector<64x32xbf16>
    %c0_70 = arith.constant 0 : index
    %c256 = arith.constant 256 : index
    %77 = vector.load %arg19[%c0_70, %c256] : memref<64x288xbf16, #tpu.memory_space<vmem>>, vector<64x32xbf16>
    tpu.vector_store %arg19[%c0_70, %c256], %76 {strides = array<i32>} : memref<64x288xbf16, #tpu.memory_space<vmem>>, vector<64x32xbf16>,
    %c0_71 = arith.constant 0 : index
    %c0_72 = arith.constant 0 : index
    %78 = vector.load %arg19[%c0_71, %c0_72] : memref<64x288xbf16, #tpu.memory_space<vmem>>, vector<64x288xbf16>
    %c0_73 = arith.constant 0 : index
    %c0_74 = arith.constant 0 : index
    %79 = vector.load %arg6[%c0_73, %c0_74] : memref<288x64xbf16, #tpu.memory_space<vmem>>, vector<288x64xbf16>
    %cst_75 = arith.constant dense<0.000000e+00> : vector<64x64xf32>
    %80 = tpu.matmul %78, %79, %cst_75 {dimension_numbers = #tpu.dot_dimension_numbers<[1], [0], [0], [1], [0, 0, 1, 1], [], []>} : vector<64x288xbf16>, vector<288x64xbf16>, vector<64x64xf32> -> vector<64x64xf32>
    %81 = vector.broadcast %42 : vector<1x64xf32> to vector<64x64xf32>
    %82 = arith.addf %80, %81 : vector<64x64xf32>
    %c0_76 = arith.constant 0 : index
    %c0_77 = arith.constant 0 : index
    %83 = vector.load %arg8[%c0_76, %c0_77] : memref<1x64xf32, #tpu.memory_space<vmem>>, vector<1x64xf32>
    %c0_78 = arith.constant 0 : index
    %c0_79 = arith.constant 0 : index
    %84 = vector.load %arg9[%c0_78, %c0_79] : memref<1x64xf32, #tpu.memory_space<vmem>>, vector<1x64xf32>
    %c0_80 = arith.constant 0 : index
    %c0_81 = arith.constant 0 : index
    %85 = vector.load %arg10[%c0_80, %c0_81] : memref<64x32xf32, #tpu.memory_space<vmem>>, vector<64x32xf32>
    %c0_82 = arith.constant 0 : index
    %c0_83 = arith.constant 0 : index
    %86 = vector.load %arg11[%c0_82, %c0_83] : memref<32x64xf32, #tpu.memory_space<vmem>>, vector<32x64xf32>
    %cst_84 = arith.constant dense<0.000000e+00> : vector<64xf32>
    %87 = vector.multi_reduction <add>, %82, %cst_84 [0] : vector<64x64xf32> to vector<64xf32>
    %88 = vector.shape_cast %87 : vector<64xf32> to vector<1x64xf32>
    %89 = arith.mulf %82, %82 : vector<64x64xf32>
    %cst_85 = arith.constant dense<0.000000e+00> : vector<64xf32>
    %90 = vector.multi_reduction <add>, %89, %cst_85 [0] : vector<64x64xf32> to vector<64xf32>
    %91 = vector.shape_cast %90 : vector<64xf32> to vector<1x64xf32>
    %cst_86 = arith.constant dense<0.000000e+00> : vector<1x32xf32>
    %92 = tpu.matmul %88, %85, %cst_86 {dimension_numbers = #tpu.dot_dimension_numbers<[1], [0], [0], [1], [0, 0, 1, 1], [], []>, precision = #tpu.contract_precision<fp32>} : vector<1x64xf32>, vector<64x32xf32>, vector<1x32xf32> -> vector<1x32xf32>
    %cst_87 = arith.constant dense<0.000000e+00> : vector<1x32xf32>
    %93 = tpu.matmul %91, %85, %cst_87 {dimension_numbers = #tpu.dot_dimension_numbers<[1], [0], [0], [1], [0, 0, 1, 1], [], []>, precision = #tpu.contract_precision<fp32>} : vector<1x64xf32>, vector<64x32xf32>, vector<1x32xf32> -> vector<1x32xf32>
    %cst_88 = arith.constant 1.280000e+02 : f32
    %94 = vector.broadcast %cst_88 : f32 to vector<1x32xf32>
    %95 = arith.divf %92, %94 : vector<1x32xf32>
    %cst_89 = arith.constant 1.280000e+02 : f32
    %96 = vector.broadcast %cst_89 : f32 to vector<1x32xf32>
    %97 = arith.divf %93, %96 : vector<1x32xf32>
    %98 = arith.mulf %95, %95 : vector<1x32xf32>
    %99 = arith.subf %97, %98 : vector<1x32xf32>
    %cst_90 = arith.constant 0.000000e+00 : f32
    %100 = vector.broadcast %cst_90 : f32 to vector<1x32xf32>
    %101 = arith.maximumf %99, %100 : vector<1x32xf32>
    %cst_91 = arith.constant 9.99999974E-6 : f32
    %102 = vector.broadcast %cst_91 : f32 to vector<1x32xf32>
    %103 = arith.addf %101, %102 : vector<1x32xf32>
    %104 = math.rsqrt %103 : vector<1x32xf32>
    %cst_92 = arith.constant dense<0.000000e+00> : vector<1x64xf32>
    %105 = tpu.matmul %95, %86, %cst_92 {dimension_numbers = #tpu.dot_dimension_numbers<[1], [0], [0], [1], [0, 0, 1, 1], [], []>, precision = #tpu.contract_precision<fp32>} : vector<1x32xf32>, vector<32x64xf32>, vector<1x64xf32> -> vector<1x64xf32>
    %cst_93 = arith.constant dense<0.000000e+00> : vector<1x64xf32>
    %106 = tpu.matmul %104, %86, %cst_93 {dimension_numbers = #tpu.dot_dimension_numbers<[1], [0], [0], [1], [0, 0, 1, 1], [], []>, precision = #tpu.contract_precision<fp32>} : vector<1x32xf32>, vector<32x64xf32>, vector<1x64xf32> -> vector<1x64xf32>
    %107 = vector.broadcast %105 : vector<1x64xf32> to vector<64x64xf32>
    %108 = arith.subf %82, %107 : vector<64x64xf32>
    %109 = vector.broadcast %106 : vector<1x64xf32> to vector<64x64xf32>
    %110 = arith.mulf %108, %109 : vector<64x64xf32>
    %111 = vector.broadcast %83 : vector<1x64xf32> to vector<64x64xf32>
    %112 = arith.mulf %110, %111 : vector<64x64xf32>
    %113 = vector.broadcast %84 : vector<1x64xf32> to vector<64x64xf32>
    %114 = arith.addf %112, %113 : vector<64x64xf32>
    %115 = arith.negf %114 : vector<64x64xf32>
    %116 = math.exp %115 : vector<64x64xf32>
    %cst_94 = arith.constant 1.000000e+00 : f32
    %117 = vector.broadcast %cst_94 : f32 to vector<64x64xf32>
    %118 = arith.addf %117, %116 : vector<64x64xf32>
    %119 = arith.divf %117, %118 : vector<64x64xf32>
    %120 = arith.mulf %114, %119 : vector<64x64xf32>
    %121 = vector.shape_cast %120 : vector<64x64xf32> to vector<8x8x64xf32>
    %c0_95 = arith.constant 0 : index
    %c0_96 = arith.constant 0 : index
    %122 = vector.load %arg13[%c0_95, %c0_96] : memref<1x64xf32, #tpu.memory_space<vmem>>, vector<1x64xf32>
    %cst_97 = arith.constant 0.000000e+00 : bf16
    %123 = vector.broadcast %cst_97 : bf16 to vector<1x10x64xbf16>
    %c0_98 = arith.constant 0 : index
    %c7_99 = arith.constant 7 : index
    %c0_100 = arith.constant 0 : index
    %124 = vector.load %arg18[%c0_98, %c7_99, %c0_100] : memref<10x24x64xbf16, #tpu.memory_space<vmem>>, vector<1x10x64xbf16>
    tpu.vector_store %arg18[%c0_98, %c7_99, %c0_100], %123 {strides = array<i32>} : memref<10x24x64xbf16, #tpu.memory_space<vmem>>, vector<1x10x64xbf16>,
    %c9_101 = arith.constant 9 : index
    %c7_102 = arith.constant 7 : index
    %c0_103 = arith.constant 0 : index
    %125 = vector.load %arg18[%c9_101, %c7_102, %c0_103] : memref<10x24x64xbf16, #tpu.memory_space<vmem>>, vector<1x10x64xbf16>
    tpu.vector_store %arg18[%c9_101, %c7_102, %c0_103], %123 {strides = array<i32>} : memref<10x24x64xbf16, #tpu.memory_space<vmem>>, vector<1x10x64xbf16>,
    %cst_104 = arith.constant 0.000000e+00 : bf16
    %126 = vector.broadcast %cst_104 : bf16 to vector<8x1x64xbf16>
    %c1_105 = arith.constant 1 : index
    %c7_106 = arith.constant 7 : index
    %c0_107 = arith.constant 0 : index
    %127 = vector.load %arg18[%c1_105, %c7_106, %c0_107] : memref<10x24x64xbf16, #tpu.memory_space<vmem>>, vector<8x1x64xbf16>
    tpu.vector_store %arg18[%c1_105, %c7_106, %c0_107], %126 {strides = array<i32>} : memref<10x24x64xbf16, #tpu.memory_space<vmem>>, vector<8x1x64xbf16>,
    %c1_108 = arith.constant 1 : index
    %c16_109 = arith.constant 16 : index
    %c0_110 = arith.constant 0 : index
    %128 = vector.load %arg18[%c1_108, %c16_109, %c0_110] : memref<10x24x64xbf16, #tpu.memory_space<vmem>>, vector<8x1x64xbf16>
    tpu.vector_store %arg18[%c1_108, %c16_109, %c0_110], %126 {strides = array<i32>} : memref<10x24x64xbf16, #tpu.memory_space<vmem>>, vector<8x1x64xbf16>,
    %129 = arith.truncf %121 : vector<8x8x64xf32> to vector<8x8x64xbf16>
    %c1_111 = arith.constant 1 : index
    %c8_112 = arith.constant 8 : index
    %c0_113 = arith.constant 0 : index
    %130 = vector.load %arg18[%c1_111, %c8_112, %c0_113] : memref<10x24x64xbf16, #tpu.memory_space<vmem>>, vector<8x8x64xbf16>
    tpu.vector_store %arg18[%c1_111, %c8_112, %c0_113], %129 {strides = array<i32>} : memref<10x24x64xbf16, #tpu.memory_space<vmem>>, vector<8x8x64xbf16>,
    %c0_114 = arith.constant 0 : index
    %c7_115 = arith.constant 7 : index
    %c0_116 = arith.constant 0 : index
    %131 = vector.load %arg18[%c0_114, %c7_115, %c0_116] : memref<10x24x64xbf16, #tpu.memory_space<vmem>>, vector<8x8x64xbf16>
    %132 = vector.shape_cast %131 : vector<8x8x64xbf16> to vector<64x64xbf16>
    %c0_117 = arith.constant 0 : index
    %c0_118 = arith.constant 0 : index
    %133 = vector.load %arg20[%c0_117, %c0_118] : memref<64x576xbf16, #tpu.memory_space<vmem>>, vector<64x64xbf16>
    tpu.vector_store %arg20[%c0_117, %c0_118], %132 {strides = array<i32>} : memref<64x576xbf16, #tpu.memory_space<vmem>>, vector<64x64xbf16>,
    %c0_119 = arith.constant 0 : index
    %c8_120 = arith.constant 8 : index
    %c0_121 = arith.constant 0 : index
    %134 = vector.load %arg18[%c0_119, %c8_120, %c0_121] : memref<10x24x64xbf16, #tpu.memory_space<vmem>>, vector<8x8x64xbf16>
    %135 = vector.shape_cast %134 : vector<8x8x64xbf16> to vector<64x64xbf16>
    %c0_122 = arith.constant 0 : index
    %c64_123 = arith.constant 64 : index
    %136 = vector.load %arg20[%c0_122, %c64_123] : memref<64x576xbf16, #tpu.memory_space<vmem>>, vector<64x64xbf16>
    tpu.vector_store %arg20[%c0_122, %c64_123], %135 {strides = array<i32>} : memref<64x576xbf16, #tpu.memory_space<vmem>>, vector<64x64xbf16>,
    %c0_124 = arith.constant 0 : index
    %c9_125 = arith.constant 9 : index
    %c0_126 = arith.constant 0 : index
    %137 = vector.load %arg18[%c0_124, %c9_125, %c0_126] : memref<10x24x64xbf16, #tpu.memory_space<vmem>>, vector<8x8x64xbf16>
    %138 = vector.shape_cast %137 : vector<8x8x64xbf16> to vector<64x64xbf16>
    %c0_127 = arith.constant 0 : index
    %c128_128 = arith.constant 128 : index
    %139 = vector.load %arg20[%c0_127, %c128_128] : memref<64x576xbf16, #tpu.memory_space<vmem>>, vector<64x64xbf16>
    tpu.vector_store %arg20[%c0_127, %c128_128], %138 {strides = array<i32>} : memref<64x576xbf16, #tpu.memory_space<vmem>>, vector<64x64xbf16>,
    %c1_129 = arith.constant 1 : index
    %c7_130 = arith.constant 7 : index
    %c0_131 = arith.constant 0 : index
    %140 = vector.load %arg18[%c1_129, %c7_130, %c0_131] : memref<10x24x64xbf16, #tpu.memory_space<vmem>>, vector<8x8x64xbf16>
    %141 = vector.shape_cast %140 : vector<8x8x64xbf16> to vector<64x64xbf16>
    %c0_132 = arith.constant 0 : index
    %c192_133 = arith.constant 192 : index
    %142 = vector.load %arg20[%c0_132, %c192_133] : memref<64x576xbf16, #tpu.memory_space<vmem>>, vector<64x64xbf16>
    tpu.vector_store %arg20[%c0_132, %c192_133], %141 {strides = array<i32>} : memref<64x576xbf16, #tpu.memory_space<vmem>>, vector<64x64xbf16>,
    %c1_134 = arith.constant 1 : index
    %c8_135 = arith.constant 8 : index
    %c0_136 = arith.constant 0 : index
    %143 = vector.load %arg18[%c1_134, %c8_135, %c0_136] : memref<10x24x64xbf16, #tpu.memory_space<vmem>>, vector<8x8x64xbf16>
    %144 = vector.shape_cast %143 : vector<8x8x64xbf16> to vector<64x64xbf16>
    %c0_137 = arith.constant 0 : index
    %c256_138 = arith.constant 256 : index
    %145 = vector.load %arg20[%c0_137, %c256_138] : memref<64x576xbf16, #tpu.memory_space<vmem>>, vector<64x64xbf16>
    tpu.vector_store %arg20[%c0_137, %c256_138], %144 {strides = array<i32>} : memref<64x576xbf16, #tpu.memory_space<vmem>>, vector<64x64xbf16>,
    %c1_139 = arith.constant 1 : index
    %c9_140 = arith.constant 9 : index
    %c0_141 = arith.constant 0 : index
    %146 = vector.load %arg18[%c1_139, %c9_140, %c0_141] : memref<10x24x64xbf16, #tpu.memory_space<vmem>>, vector<8x8x64xbf16>
    %147 = vector.shape_cast %146 : vector<8x8x64xbf16> to vector<64x64xbf16>
    %c0_142 = arith.constant 0 : index
    %c320 = arith.constant 320 : index
    %148 = vector.load %arg20[%c0_142, %c320] : memref<64x576xbf16, #tpu.memory_space<vmem>>, vector<64x64xbf16>
    tpu.vector_store %arg20[%c0_142, %c320], %147 {strides = array<i32>} : memref<64x576xbf16, #tpu.memory_space<vmem>>, vector<64x64xbf16>,
    %c2_143 = arith.constant 2 : index
    %c7_144 = arith.constant 7 : index
    %c0_145 = arith.constant 0 : index
    %149 = vector.load %arg18[%c2_143, %c7_144, %c0_145] : memref<10x24x64xbf16, #tpu.memory_space<vmem>>, vector<8x8x64xbf16>
    %150 = vector.shape_cast %149 : vector<8x8x64xbf16> to vector<64x64xbf16>
    %c0_146 = arith.constant 0 : index
    %c384 = arith.constant 384 : index
    %151 = vector.load %arg20[%c0_146, %c384] : memref<64x576xbf16, #tpu.memory_space<vmem>>, vector<64x64xbf16>
    tpu.vector_store %arg20[%c0_146, %c384], %150 {strides = array<i32>} : memref<64x576xbf16, #tpu.memory_space<vmem>>, vector<64x64xbf16>,
    %c2_147 = arith.constant 2 : index
    %c8_148 = arith.constant 8 : index
    %c0_149 = arith.constant 0 : index
    %152 = vector.load %arg18[%c2_147, %c8_148, %c0_149] : memref<10x24x64xbf16, #tpu.memory_space<vmem>>, vector<8x8x64xbf16>
    %153 = vector.shape_cast %152 : vector<8x8x64xbf16> to vector<64x64xbf16>
    %c0_150 = arith.constant 0 : index
    %c448 = arith.constant 448 : index
    %154 = vector.load %arg20[%c0_150, %c448] : memref<64x576xbf16, #tpu.memory_space<vmem>>, vector<64x64xbf16>
    tpu.vector_store %arg20[%c0_150, %c448], %153 {strides = array<i32>} : memref<64x576xbf16, #tpu.memory_space<vmem>>, vector<64x64xbf16>,
    %c2_151 = arith.constant 2 : index
    %c9_152 = arith.constant 9 : index
    %c0_153 = arith.constant 0 : index
    %155 = vector.load %arg18[%c2_151, %c9_152, %c0_153] : memref<10x24x64xbf16, #tpu.memory_space<vmem>>, vector<8x8x64xbf16>
    %156 = vector.shape_cast %155 : vector<8x8x64xbf16> to vector<64x64xbf16>
    %c0_154 = arith.constant 0 : index
    %c512 = arith.constant 512 : index
    %157 = vector.load %arg20[%c0_154, %c512] : memref<64x576xbf16, #tpu.memory_space<vmem>>, vector<64x64xbf16>
    tpu.vector_store %arg20[%c0_154, %c512], %156 {strides = array<i32>} : memref<64x576xbf16, #tpu.memory_space<vmem>>, vector<64x64xbf16>,
    %c0_155 = arith.constant 0 : index
    %c0_156 = arith.constant 0 : index
    %158 = vector.load %arg20[%c0_155, %c0_156] : memref<64x576xbf16, #tpu.memory_space<vmem>>, vector<64x576xbf16>
    %c0_157 = arith.constant 0 : index
    %c0_158 = arith.constant 0 : index
    %159 = vector.load %arg12[%c0_157, %c0_158] : memref<576x64xbf16, #tpu.memory_space<vmem>>, vector<576x64xbf16>
    %cst_159 = arith.constant dense<0.000000e+00> : vector<64x64xf32>
    %160 = tpu.matmul %158, %159, %cst_159 {dimension_numbers = #tpu.dot_dimension_numbers<[1], [0], [0], [1], [0, 0, 1, 1], [], []>} : vector<64x576xbf16>, vector<576x64xbf16>, vector<64x64xf32> -> vector<64x64xf32>
    %161 = vector.broadcast %122 : vector<1x64xf32> to vector<64x64xf32>
    %162 = arith.addf %160, %161 : vector<64x64xf32>
    %163 = arith.truncf %2 : vector<64x32xf32> to vector<64x32xbf16>
    %c0_160 = arith.constant 0 : index
    %c0_161 = arith.constant 0 : index
    %164 = vector.load %arg14[%c0_160, %c0_161] : memref<32x64xbf16, #tpu.memory_space<vmem>>, vector<32x64xbf16>
    %cst_162 = arith.constant dense<0.000000e+00> : vector<64x64xf32>
    %165 = tpu.matmul %163, %164, %cst_162 {dimension_numbers = #tpu.dot_dimension_numbers<[1], [0], [0], [1], [0, 0, 1, 1], [], []>} : vector<64x32xbf16>, vector<32x64xbf16>, vector<64x64xf32> -> vector<64x64xf32>
    %c0_163 = arith.constant 0 : index
    %c0_164 = arith.constant 0 : index
    %166 = vector.load %arg15[%c0_163, %c0_164] : memref<1x64xf32, #tpu.memory_space<vmem>>, vector<1x64xf32>
    %167 = vector.broadcast %166 : vector<1x64xf32> to vector<64x64xf32>
    %168 = arith.addf %165, %167 : vector<64x64xf32>
    %169 = arith.addf %162, %168 : vector<64x64xf32>
    %170 = vector.shape_cast %169 : vector<64x64xf32> to vector<8x8x64xf32>
    %c0_165 = arith.constant 0 : index
    %c0_166 = arith.constant 0 : index
    %c0_167 = arith.constant 0 : index
    %c0_168 = arith.constant 0 : index
    %171 = vector.load %arg16[%c0_165, %c0_166, %c0_167, %c0_168] : memref<1x8x8x64xf32, #tpu.memory_space<vmem>>, vector<1x8x8x64xf32>
    %172 = vector.shape_cast %171 : vector<1x8x8x64xf32> to vector<8x8x64xf32>
    %173 = vector.shape_cast %170 : vector<8x8x64xf32> to vector<1x8x8x64xf32>
    tpu.vector_store %arg16[%c0_165, %c0_166, %c0_167, %c0_168], %173 {strides = array<i32>} : memref<1x8x8x64xf32, #tpu.memory_space<vmem>>, vector<1x8x8x64xf32>,
    return
  }
  func.func @transform_0(%arg0: i32) -> (i32, i32, i32, i32) {
    %c0_i32 = arith.constant 0 : i32
    %c0_i32_0 = arith.constant 0 : i32
    %c0_i32_1 = arith.constant 0 : i32
    %c0_i32_2 = arith.constant 0 : i32
    return %arg0, %c0_i32, %c0_i32_0, %c0_i32_1 : i32, i32, i32, i32
  }
  func.func @transform_1(%arg0: i32) -> (i32, i32) {
    %c0_i32 = arith.constant 0 : i32
    %c0_i32_0 = arith.constant 0 : i32
    %c0_i32_1 = arith.constant 0 : i32
    return %c0_i32, %c0_i32_0 : i32, i32
  }
  func.func @transform_2(%arg0: i32) -> (i32, i32) {
    %c0_i32 = arith.constant 0 : i32
    %c0_i32_0 = arith.constant 0 : i32
    %c0_i32_1 = arith.constant 0 : i32
    return %c0_i32, %c0_i32_0 : i32, i32
  }
  func.func @transform_3(%arg0: i32) -> (i32, i32) {
    %c0_i32 = arith.constant 0 : i32
    %c0_i32_0 = arith.constant 0 : i32
    %c0_i32_1 = arith.constant 0 : i32
    return %c0_i32, %c0_i32_0 : i32, i32
  }
  func.func @transform_4(%arg0: i32) -> (i32, i32) {
    %c0_i32 = arith.constant 0 : i32
    %c0_i32_0 = arith.constant 0 : i32
    %c0_i32_1 = arith.constant 0 : i32
    return %c0_i32, %c0_i32_0 : i32, i32
  }
  func.func @transform_5(%arg0: i32) -> (i32, i32) {
    %c0_i32 = arith.constant 0 : i32
    %c0_i32_0 = arith.constant 0 : i32
    %c0_i32_1 = arith.constant 0 : i32
    return %c0_i32, %c0_i32_0 : i32, i32
  }
  func.func @transform_6(%arg0: i32) -> (i32, i32) {
    %c0_i32 = arith.constant 0 : i32
    %c0_i32_0 = arith.constant 0 : i32
    %c0_i32_1 = arith.constant 0 : i32
    return %c0_i32, %c0_i32_0 : i32, i32
  }
  func.func @transform_7(%arg0: i32) -> (i32, i32) {
    %c0_i32 = arith.constant 0 : i32
    %c0_i32_0 = arith.constant 0 : i32
    %c0_i32_1 = arith.constant 0 : i32
    return %c0_i32, %c0_i32_0 : i32, i32
  }
  func.func @transform_8(%arg0: i32) -> (i32, i32) {
    %c0_i32 = arith.constant 0 : i32
    %c0_i32_0 = arith.constant 0 : i32
    %c0_i32_1 = arith.constant 0 : i32
    return %c0_i32, %c0_i32_0 : i32, i32
  }
  func.func @transform_9(%arg0: i32) -> (i32, i32) {
    %c0_i32 = arith.constant 0 : i32
    %c0_i32_0 = arith.constant 0 : i32
    %c0_i32_1 = arith.constant 0 : i32
    return %c0_i32, %c0_i32_0 : i32, i32
  }
  func.func @transform_10(%arg0: i32) -> (i32, i32) {
    %c0_i32 = arith.constant 0 : i32
    %c0_i32_0 = arith.constant 0 : i32
    %c0_i32_1 = arith.constant 0 : i32
    return %c0_i32, %c0_i32_0 : i32, i32
  }
  func.func @transform_11(%arg0: i32) -> (i32, i32) {
    %c0_i32 = arith.constant 0 : i32
    %c0_i32_0 = arith.constant 0 : i32
    %c0_i32_1 = arith.constant 0 : i32
    return %c0_i32, %c0_i32_0 : i32, i32
  }
  func.func @transform_12(%arg0: i32) -> (i32, i32) {
    %c0_i32 = arith.constant 0 : i32
    %c0_i32_0 = arith.constant 0 : i32
    %c0_i32_1 = arith.constant 0 : i32
    return %c0_i32, %c0_i32_0 : i32, i32
  }
  func.func @transform_13(%arg0: i32) -> (i32, i32) {
    %c0_i32 = arith.constant 0 : i32
    %c0_i32_0 = arith.constant 0 : i32
    %c0_i32_1 = arith.constant 0 : i32
    return %c0_i32, %c0_i32_0 : i32, i32
  }
  func.func @transform_14(%arg0: i32) -> (i32, i32) {
    %c0_i32 = arith.constant 0 : i32
    %c0_i32_0 = arith.constant 0 : i32
    %c0_i32_1 = arith.constant 0 : i32
    return %c0_i32, %c0_i32_0 : i32, i32
  }
  func.func @transform_15(%arg0: i32) -> (i32, i32, i32, i32) {
    %c0_i32 = arith.constant 0 : i32
    %c0_i32_0 = arith.constant 0 : i32
    %c0_i32_1 = arith.constant 0 : i32
    %c0_i32_2 = arith.constant 0 : i32
    return %arg0, %c0_i32, %c0_i32_0, %c0_i32_1 : i32, i32, i32, i32
  }
}

</mosaic_0001>

<bundles_post_ra>
// kernel: tpu_custom_call.1
= control target key start
LH: loop header
LB: loop body
LE: loop exit
PB: predicated region body
PF: predicated region fallthrough
CT: control target
= control target key end

     0   :  { %s12207_s0 = inlined_call_operand.vmem [shape: f32[2,8,8,32], index: 0, kind: input, shape index: {}]   ;;  %s12208_s1 = inlined_call_operand.vmem [shape: f32[1,32], index: 1, kind: input, shape index: {}]   ;;  %s12209_s2 = inlined_call_operand.vmem [shape: f32[1,32], index: 2, kind: input, shape index: {}]   ;;  %s12210_s3 = inlined_call_operand.vmem [shape: f32[32,32], index: 3, kind: input, shape index: {}]   ;;  %s12211_s4 = inlined_call_operand.vmem [shape: f32[32,32], index: 4, kind: input, shape index: {}]   ;;  %s12212_s5 = inlined_call_operand.vmem [shape: bf16[288,64], index: 5, kind: input, shape index: {}]   ;;  %s12213_s6 = inlined_call_operand.vmem [shape: f32[1,64], index: 6, kind: input, shape index: {}]   ;;  %s12214_s7 = inlined_call_operand.vmem [shape: f32[1,64], index: 7, kind: input, shape index: {}]   ;;  %s12215_s8 = inlined_call_operand.vmem [shape: f32[1,64], index: 8, kind: input, shape index: {}]   ;;  %s12216_s9 = inlined_call_operand.vmem [shape: f32[64,32], index: 9, kind: input, shape index: {}]   ;;  %s12217_s10 = inlined_call_operand.vmem [shape: f32[32,64], index: 10, kind: input, shape index: {}]   ;;  %s12218_s11 = inlined_call_operand.vmem [shape: bf16[576,64], index: 11, kind: input, shape index: {}]   ;;  %s12219_s12 = inlined_call_operand.vmem [shape: f32[1,64], index: 12, kind: input, shape index: {}]   ;;  %s12220_s13 = inlined_call_operand.vmem [shape: bf16[32,64], index: 13, kind: input, shape index: {}]   ;;  %s12221_s14 = inlined_call_operand.vmem [shape: f32[1,64], index: 14, kind: input, shape index: {}]   ;;  %s12222_s15 = inlined_call_operand.hbm [shape: f32[2,8,8,64], index: 15, kind: output, shape index: {}]  }
   0x1   :  { %12239 = sst [smem:[#allocation32_spill]] %s12207_s0 }
   0x2   :  { %12240 = sst [smem:[#allocation33_spill]] %s12208_s1 }
   0x3   :  { %12241 = sst [smem:[#allocation34_spill]] %s12209_s2 }
   0x4   :  { %12242 = sst [smem:[#allocation35_spill]] %s12210_s3 }
   0x5   :  { %20 = vsyncpa [#allocation7], 0 }
   0x6   :  { %22 = vsyncpa [#allocation7 + $0x1], 0  ;;  %s10244_s18 = smov 0   ;;  %s10246_s19 = smov 0  }
   0x7   :  { %s10248_s20 = smov 0   ;;  %s10250_s21 = smov 0  }
   0x8 LB: > { %s10265_s22 = sadd.s32 4294967295, %s10152_s21   ;;  %s8098_s23 = sadd.s32 4294967294, %s10152_s21   ;;  %s10152_s21 = sphi %s10250_s21, %s12364_s21   ;;  %s10148_s20 = sphi %s10248_s20, %s12363_s20   ;;  %s10144_s19 = sphi %s10246_s19, %s12362_s19   ;;  %s10140_s18 = sphi %s10244_s18, %s12361_s18  }
   0x9   : > { %s10269_s24 = sadd.s32 1, %s10152_s21   ;;  %s355_s25 = sadd.s32 1, %s10148_s20 }
   0xa   : > { %s352_s26 = ssub.s32 %s10152_s21, %s10269_s24  ;;  %p365_p0 = scmp.ne.s32.totalorder %s10148_s20, %s10144_s19 }
   0xb   : > { %p353_p1 = scmp.eq.s32.totalorder %s352_s26, 0  ;;  %p366_p2 = scmp.eq.s32.totalorder %s10265_s22, 1 }
   0xc   : > { %p371_p3 = scmp.ne.s32.totalorder %s10144_s19, %s10140_s18  ;;  %p372_p4 = scmp.eq.s32.totalorder %s8098_s23, 1 }
   0xd   : > { %s10280_s27 = scalar_select %p353_p1, %s10148_s20, %s355_s25  }
   0xe   : > { %p10282_p5 = por %p366_p2, %p365_p0  ;;  %p10286_p6 = por %p372_p4, %p371_p3 }
   0xf   : > { %12243 = sst [smem:[#allocation9_spill]] %s10280_s27  ;;  %p8101_p7 = scmp.ge.s32.totalorder %s10152_s21, 1 }
  0x10   : > { %p440_p8 = scmp.lt.s32.totalorder %s10152_s21, 3 }
  0x12   : > { %p441_p9 = pnand %p8101_p7, %p440_p8 }
  0x14   : > { %444 = sbr.rel (%p441_p9) target bundleno = 2154 (0x86a), region = 80 }
  0x1b   : > { %s12246_s3 = sld [smem:[#allocation35_spill]]  ;;  %v12225_v3 = vmov 0.0|0.0   ;;  %p488_p10 = scmp.lt.s32.totalorder %s10265_s22, 1  ;;  %vm10155_vm0 = vmmov 0   ;;  %v12223_v9 = vmov 0.0   ;;  %vm512_vm1 = vcmask 261120  }
  0x1c   : > { %9415 = vmatprep.subr.bf16.mxu0 %v12225_v3  ;;  %9451 = vmatprep.subr.bf16.mxu1 %v12225_v3  ;;  %s12247_s0 = sld [smem:[#allocation32_spill]]  ;;  %vm2638_vm2 = vcmask 257024   ;;  %vm2632_vm3 = vcmask 257027   ;;  %vm2633_vm4 = vsmask.f32 7950  ;;  %vm6295_vm7 = vcmask 519168  }
  0x1d   : > { %8759 = vmatprep.mubr.msk.f32.mxu0 %vm10155_vm0, %v12223_v9  ;;  %8825 = vmatprep.mubr.msk.f32.mxu1 %vm10155_vm0, %v12223_v9  ;;  %s489_s17 = scalar_select %p488_p10, %s10265_s22, 1  ;;  %vm10574_vm5 = vmand %vm2632_vm3, %vm2633_vm4  ;;  %vm2641_vm6 = vsmask.f32 256  ;;  %vm2640_vm8 = vcmask 253952   ;;  %vm2735_vm10 = vsmask.f32 4368 }
  0x1e   : > { %vm10591_vm9 = vmand %vm2640_vm8, %vm2641_vm6  ;;  %s12253_s1 = sld [smem:[#allocation33_spill]]  ;;  %s12254_s2 = sld [smem:[#allocation34_spill]]  ;;  %vm2922_vm11 = vsmask.f32 3328  ;;  %vm2923_vm12 = vsmask.f32 7440 }
  0x1f   : > { %s8321_s23 = sshll.u32 %s489_s17, 6  ;;  %vm10807_vm13 = vmor %vm2641_vm6, %vm2735_vm10  ;;  %s12232_s25 = smov 64   ;;  %vm2901_vm15 = vcmask 523520   ;;  %vm3210_vm3 = vcmask 1048320   ;;  %vm6290_vm8 = vcmask 519171  }
  0x20   : > { %vm10821_vm14 = vmor %vm2922_vm11, %vm2923_vm12  ;;  %s12325_s26 = smov 64  }
  0x21   : > { %v504_v0 = vld [vmem:[%s12246_s3] sm:$0xff]  ;;  %v505_v1 = vld [vmem:[%s12246_s3 + $0x8] sm:$0xff]  ;;  %v10301_v2 = vld [vmem:[%s12246_s3 + $0x10] sm:$0xff] }
  0x22   : > { %v567_v4 = vand.u32 4294901760, %v504_v0  ;;  %v570_v5 = vand.u32 4294901760, %v505_v1  ;;  %v10308_v6 = vld [vmem:[%s12246_s3 + $0x18] sm:$0xff]  ;;  %v573_v7 = vand.u32 4294901760, %v10301_v2  ;;  %s10335_s30 = scalar_lea.vmem %s12247_s0, %s8321_s23  ;;  %s10158_s0 = smov 32  }
  0x23   : > { %v576_v8 = vand.u32 4294901760, %v10308_v6  ;;  %v494_v13 = vld [vmem:[%s10335_s30] sm:$0xff]  ;;  %v495_v14 = vld [vmem:[%s10335_s30 + $0x8] sm:$0xff]  ;;  %v496_v15 = vld [vmem:[%s10335_s30 + $0x10] sm:$0xff]  ;;  %s10159_s3 = smov 96   ;;  %s485_s23 = sand.u32 1, %s10144_s19  }
  0x24   : > { %v10317_v10 = vpack.c.bf16 %v570_v5, %v567_v4  ;;  %v10328_v12 = vsub.f32 %v504_v0, %v567_v4  ;;  %v497_v16 = vld [vmem:[%s10335_s30 + $0x18] sm:$0xff]  ;;  %v498_v17 = vld [vmem:[%s10335_s30 + $0x20] sm:$0xff]  ;;  %v499_v18 = vld [vmem:[%s10335_s30 + $0x28] sm:$0xff]  ;;  %v513_v19 = vsel %vm512_vm1, %v494_v13, 0.0  ;;  %v514_v20 = vsel %vm512_vm1, %v495_v14, 0.0 }
  0x25   : > { %v10326_v11 = vpack.c.bf16 %v576_v8, %v573_v7  ;;  %v516_v21 = vsel %vm512_vm1, %v496_v15, 0.0  ;;  %v515_v22 = vadd.f32 %v514_v20, %v513_v19  ;;  %v534_v24 = vmul.f32 %v494_v13, %v494_v13  ;;  %v10351_v25 = vld [vmem:[%s10335_s30 + $0x30] sm:$0xff]  ;;  %v10360_v30 = vld [vmem:[%s10335_s30 + $0x38] sm:$0xff] }
  0x26   : > { %9417 = vmatpush3.bf16.msra.mxu0 %v10317_v10  ;;  %9453 = vmatpush3.bf16.msra.mxu1 %v10317_v10  ;;  %v648_v23 = vand.u32 4294901760, %v10328_v12  ;;  %v518_v26 = vsel %vm512_vm1, %v497_v16, 0.0  ;;  %v520_v27 = vsel %vm512_vm1, %v498_v17, 0.0  ;;  %v522_v28 = vsel %vm512_vm1, %v499_v18, 0.0 }
  0x27   : > { %9418 = vmatprep.subr.bf16.mxu0 %v12225_v3  ;;  %9454 = vmatprep.subr.bf16.mxu1 %v12225_v3  ;;  %v10356_v29 = vsub.f32 %v505_v1, %v570_v5  ;;  %v517_v31 = vadd.f32 %v516_v21, %v515_v22  ;;  %v535_v32 = vmul.f32 %v495_v14, %v495_v14  ;;  %v542_v37 = vsel %vm512_vm1, %v534_v24, 0.0 }
  0x28   : > { %v536_v33 = vmul.f32 %v496_v15, %v496_v15  ;;  %v537_v34 = vmul.f32 %v497_v16, %v497_v16  ;;  %v538_v35 = vmul.f32 %v498_v17, %v498_v17  ;;  %v539_v39 = vmul.f32 %v499_v18, %v499_v18 }
  0x29   : > { %v519_v36 = vadd.f32 %v518_v26, %v517_v31  ;;  %v543_v38 = vsel %vm512_vm1, %v535_v32, 0.0  ;;  %v540_v40 = vmul.f32 %v10351_v25, %v10351_v25  ;;  %v524_v44 = vsel %vm512_vm1, %v10351_v25, 0.0 }
  0x2a   : > { %9420 = vmatpush3.bf16.msra.mxu0 %v10326_v11  ;;  %9456 = vmatpush3.bf16.msra.mxu1 %v10326_v11  ;;  %v544_v41 = vadd.f32 %v543_v38, %v542_v37  ;;  %v545_v42 = vsel %vm512_vm1, %v536_v33, 0.0  ;;  %v655_v45 = vand.u32 4294901760, %v10356_v29  ;;  %v547_v46 = vsel %vm512_vm1, %v537_v34, 0.0 }
  0x2b   : > { %9421 = vmatprep.subr.bf16.mxu0 %v12225_v3  ;;  %9457 = vmatprep.subr.bf16.mxu1 %v12225_v3  ;;  %v521_v43 = vadd.f32 %v520_v27, %v519_v36  ;;  %v526_v47 = vsel %vm512_vm1, %v10360_v30, 0.0  ;;  %v549_v49 = vsel %vm512_vm1, %v538_v35, 0.0  ;;  %v551_v52 = vsel %vm512_vm1, %v539_v39, 0.0 }
  0x2c   : > { %v546_v48 = vadd.f32 %v545_v42, %v544_v41  ;;  %v553_v53 = vsel %vm512_vm1, %v540_v40, 0.0  ;;  %v541_v55 = vmul.f32 %v10360_v30, %v10360_v30  ;;  %v10382_v61 = vsub.f32 %v10301_v2, %v573_v7 }
  0x2d   : > { %v523_v50 = vadd.f32 %v522_v28, %v521_v43  ;;  %v10387_v63 = vsub.f32 %v10308_v6, %v576_v8  ;;  %v649_v5 = vsub.f32 %v10328_v12, %v648_v23  ;;  %v656_v2 = vsub.f32 %v10356_v29, %v655_v45 }
  0x2e   : > { %v548_v51 = vadd.f32 %v547_v46, %v546_v48  ;;  %v555_v60 = vsel %vm512_vm1, %v541_v55, 0.0  ;;  %v662_v13 = vand.u32 4294901760, %v10382_v61  ;;  %v9428_v46 = vpack.c.bf16 %v10356_v29, %v10328_v12  ;;  %v509_v12 = vld [vmem:[%s12211_s4 + $0x8] sm:$0xff] }
  0x2f   : > { %v525_v54 = vadd.f32 %v524_v44, %v523_v50  ;;  %v669_v14 = vand.u32 4294901760, %v10387_v63  ;;  %v650_v8 = vand.u32 4294901760, %v649_v5  ;;  %v657_v18 = vand.u32 4294901760, %v656_v2 }
  0x30   : > { %v550_v56 = vadd.f32 %v549_v49, %v548_v51  ;;  %v663_v17 = vsub.f32 %v10382_v61, %v662_v13  ;;  %v9440_v48 = vpack.c.bf16 %v655_v45, %v648_v23  ;;  %v1554_v29 = vand.u32 4294901760, %v509_v12  ;;  %v510_v51 = vld [vmem:[%s12211_s4 + $0x10] sm:$0xff] }
  0x31   : > { %v527_v57 = vadd.f32 %v526_v47, %v525_v54  ;;  %v670_v28 = vsub.f32 %v10387_v63, %v669_v14  ;;  %v9422_v38 = vpack.c.bf16 %v657_v18, %v650_v8  ;;  %v9431_v47 = vpack.c.bf16 %v10387_v63, %v10382_v61 }
  0x32   : > { %v552_v58 = vadd.f32 %v551_v52, %v550_v56  ;;  %v664_v24 = vand.u32 4294901760, %v663_v17  ;;  %v9443_v49 = vpack.c.bf16 %v669_v14, %v662_v13  ;;  %v1638_v50 = vsub.f32 %v509_v12, %v1554_v29  ;;  %v511_v52 = vld [vmem:[%s12211_s4 + $0x18] sm:$0xff]  ;;  %v2655_v12 = vld [vmem:[#allocation2 + $0xc] sm:$0x8] }
  0x33   : > { %v528_v59 = vrot.slane %v527_v57, 4  ;;  %v671_v36 = vand.u32 4294901760, %v670_v28  ;;  %v1560_v54 = vand.u32 4294901760, %v511_v52 }
  0x34   : > { %v554_v62 = vadd.f32 %v553_v53, %v552_v58  ;;  %v1557_v53 = vand.u32 4294901760, %v510_v51  ;;  %v1639_v56 = vand.u32 4294901760, %v1638_v50 }
  0x35   : > { %v529_v0 = vadd.f32 %v528_v59, %v527_v57  ;;  %v9425_v43 = vpack.c.bf16 %v671_v36, %v664_v24  ;;  %v1652_v61 = vsub.f32 %v511_v52, %v1560_v54  ;;  %v2679_v52 = vld [vmem:[#allocation2 + $0x14] sm:$0x1] }
  0x36   : > { %v556_v1 = vadd.f32 %v555_v60, %v554_v62  ;;  %v10499_v57 = vpack.c.bf16 %v1560_v54, %v1557_v53  ;;  %v1640_v59 = vsub.f32 %v1638_v50, %v1639_v56  ;;  %v1645_v60 = vsub.f32 %v510_v51, %v1557_v53  ;;  %v2682_v54 = vld [vmem:[#allocation2 + $0x20] sm:$0x1] }
  0x37   : > { %v530_v4 = vrot.slane %v529_v0, 2  ;;  %v2680_v53 = vsel %vm10591_vm9, 0, %v2679_v52 }
  0x38   : > { %v557_v7 = vrot.slane %v556_v1, 4  ;;  %v1641_v63 = vand.u32 4294901760, %v1640_v59  ;;  %2681 = vst [vmem:[#allocation2 + $0x14] sm:$0x1] %v2680_v53 }
  0x39   : > { %v531_v15 = vadd.f32 %v530_v4, %v529_v0  ;;  %v1646_v0 = vand.u32 4294901760, %v1645_v60 }
  0x3a   : > { %v558_v16 = vadd.f32 %v557_v7, %v556_v1  ;;  %v1653_v1 = vand.u32 4294901760, %v1652_v61 }
  0x3b   : > { %v532_v6 = vrot.slane %v531_v15, 1  ;;  %v1647_v5 = vsub.f32 %v1645_v60, %v1646_v0 }
  0x3c   : > { %v559_v19 = vrot.slane %v558_v16, 2  ;;  %v1654_v13 = vsub.f32 %v1652_v61, %v1653_v1  ;;  %v10509_v8 = vpack.c.bf16 %v1653_v1, %v1646_v0  ;;  %v2694_v0 = vld [vmem:[#allocation2 + $0x50] sm:$0x1]  ;;  %v2697_v1 = vld [vmem:[#allocation2 + $0x5c] sm:$0x1] }
  0x3d   : > { %v533_v20 = vadd.f32 %v532_v6, %v531_v15  ;;  %v1648_v2 = vand.u32 4294901760, %v1647_v5  ;;  %v2698_v5 = vsel %vm10591_vm9, 0, %v2697_v1 }
  0x3e   : > { %v560_v21 = vadd.f32 %v559_v19, %v558_v16  ;;  %v1655_v7 = vand.u32 4294901760, %v1654_v13  ;;  %v10505_v16 = vpack.c.bf16 %v1652_v61, %v1645_v60  ;;  %v2691_v61 = vld [vmem:[#allocation2 + $0x44] sm:$0x1]  ;;  %2699 = vst [vmem:[#allocation2 + $0x5c] sm:$0x1] %v2698_v5 }
  0x3f   : > { %v564_v22 = vsel %vm512_vm1, %v533_v20, 0  ;;  %v2643_v13 = vld [vmem:[#allocation2 + $0x8] sm:$0x1] }
  0x40   : > { %v10401_v26 = vand.u32 4294901760, %v564_v22  ;;  %v561_v27 = vrot.slane %v560_v21, 1  ;;  %v9497_v14 = vpack.c.bf16 %v1655_v7, %v1648_v2  ;;  %v2670_v2 = vld [vmem:[#allocation2 + $0x48] sm:$0x8]  ;;  %v2644_v7 = vsel %vm10591_vm9, 0, %v2643_v13 }
  0x41   : > { %2645 = vst [vmem:[#allocation2 + $0x8] sm:$0x1] %v2644_v7 }
  0x42   : > { %v636_v31 = vsub.f32 %v564_v22, %v10401_v26  ;;  %v562_v32 = vadd.f32 %v561_v27, %v560_v21 }
  0x44   : > { %v637_v33 = vand.u32 4294901760, %v636_v31  ;;  %v1052_v34 = vsel %vm512_vm1, %v562_v32, 0 }
  0x45   : > { %v10408_v35 = vand.u32 4294901760, %v1052_v34 }
  0x46   : > { %v638_v37 = vsub.f32 %v636_v31, %v637_v33 }
  0x47   : > { %v1124_v39 = vsub.f32 %v1052_v34, %v10408_v35 }
  0x48   : > { %v639_v40 = vand.u32 4294901760, %v638_v37 }
  0x49   : > { %v1125_v41 = vand.u32 4294901760, %v1124_v39 }
  0x4a   : > { %8760 = vmatmul.mubr.f32.vlgmr.msra.gmra.mrb[0].mxu0 %v639_v40 }
  0x4b   : > { %9423 = vmatpush3.bf16.msra.mxu0 %v9422_v38  ;;  %v1126_v42 = vsub.f32 %v1124_v39, %v1125_v41  ;;  %8770 = vmatprep.mubr.msk.f32.mxu0 %vm10155_vm0, %v12223_v9 }
  0x4c   : > { %9424 = vmatprep.subr.bf16.mxu0 %v12225_v3 }
  0x4d   : > { %v1127_v44 = vand.u32 4294901760, %v1126_v42 }
  0x4f   : > { %8826 = vmatmul.mubr.f32.vlgmr.msra.gmra.mrb[0].mxu1 %v1127_v44  ;;  %9426 = vmatpush3.bf16.msra.mxu0 %v9425_v43  ;;  %v10157_v44 = vmov 0  }
  0x50   : > { %9459 = vmatpush3.bf16.msra.mxu1 %v9422_v38  ;;  %9427 = vmatprep.subr.bf16.mxu0 %v12225_v3  ;;  %2639 = vst.msk [vmem:[#allocation2 + $0x4] sm:$0xf] %vm2638_vm2, %v10157_v44  ;;  %2650 = vst.msk [vmem:[#allocation2 + $0x70] sm:$0xf] %vm2638_vm2, %v10157_v44 }
  0x51   : > { %9460 = vmatprep.subr.bf16.mxu1 %v12225_v3  ;;  %8836 = vmatprep.mubr.msk.f32.mxu1 %vm10155_vm0, %v12223_v9  ;;  %6306 = vst.msk [vmem:[#allocation3 + $0x70] sm:$0xf] %vm6295_vm7, %v10157_v44  ;;  %6296 = vst.msk [vmem:[#allocation3 + $0x4] sm:$0xf] %vm6295_vm7, %v10157_v44 }
  0x52   : > { %8771 = vmatmul.mubr.f32.vlgmr.msra.gmra.mrb[0].mxu0 %v10401_v26 }
  0x53   : > { %9429 = vmatpush3.bf16.msra.mxu0 %v9428_v46  ;;  %8781 = vmatprep.mubr.msk.f32.mxu0 %vm10155_vm0, %v12223_v9 }
  0x54   : > { %9462 = vmatpush3.bf16.msra.mxu1 %v9425_v43  ;;  %9430 = vmatprep.subr.bf16.mxu0 %v12225_v3 }
  0x55   : > { %9463 = vmatprep.subr.bf16.mxu1 %v12225_v3 }
  0x57   : > { %8837 = vmatmul.mubr.f32.vlgmr.msra.gmra.mrb[0].mxu1 %v10408_v35  ;;  %9432 = vmatpush3.bf16.msra.mxu0 %v9431_v47 }
  0x58   : > { %9465 = vmatpush3.bf16.msra.mxu1 %v9428_v46  ;;  %9433 = vmatprep.subr.bf16.mxu0 %v12225_v3 }
  0x59   : > { %9466 = vmatprep.subr.bf16.mxu1 %v12225_v3  ;;  %8847 = vmatprep.mubr.msk.f32.mxu1 %vm10155_vm0, %v12223_v9 }
  0x5a   : > { %8782 = vmatmul.mubr.f32.vlgmr.msra.gmra.mrb[0].mxu0 %v636_v31 }
  0x5b   : > { %9435 = vmatpush3.bf16.msra.mxu0 %v10317_v10  ;;  %8792 = vmatprep.mubr.msk.f32.mxu0 %vm10155_vm0, %v12223_v9 }
  0x5c   : > { %9468 = vmatpush3.bf16.msra.mxu1 %v9431_v47  ;;  %9436 = vmatprep.subr.bf16.mxu0 %v12225_v3  ;;  %v2658_v47 = vld [vmem:[#allocation2 + $0x18] sm:$0x8] }
  0x5d   : > { %9469 = vmatprep.subr.bf16.mxu1 %v12225_v3 }
  0x5f   : > { %8848 = vmatmul.mubr.f32.vlgmr.msra.gmra.mrb[0].mxu1 %v1124_v39  ;;  %9438 = vmatpush3.bf16.msra.mxu0 %v10326_v11 }
  0x60   : > { %9471 = vmatpush3.bf16.msra.mxu1 %v10317_v10  ;;  %9439 = vmatprep.subr.bf16.mxu0 %v12225_v3 }
  0x61   : > { %9472 = vmatprep.subr.bf16.mxu1 %v12225_v3  ;;  %8858 = vmatprep.mubr.msk.f32.mxu1 %vm10155_vm0, %v12223_v9 }
  0x62   : > { %8793 = vmatmul.mubr.f32.vlgmr.msra.gmra.mrb[0].mxu0 %v637_v33 }
  0x63   : > { %9441 = vmatpush3.bf16.msra.mxu0 %v9440_v48  ;;  %8803 = vmatprep.mubr.msk.f32.mxu0 %vm10155_vm0, %v12223_v9 }
  0x64   : > { %9474 = vmatpush3.bf16.msra.mxu1 %v10326_v11  ;;  %9442 = vmatprep.subr.bf16.mxu0 %v12225_v3 }
  0x65   : > { %9475 = vmatprep.subr.bf16.mxu1 %v12225_v3 }
  0x67   : > { %8859 = vmatmul.mubr.f32.vlgmr.msra.gmra.mrb[0].mxu1 %v1125_v41  ;;  %9444 = vmatpush3.bf16.msra.mxu0 %v9443_v49 }
  0x68   : > { %9477 = vmatpush3.bf16.msra.mxu1 %v9440_v48  ;;  %9445 = vmatprep.subr.bf16.mxu0 %v12225_v3  ;;  %v2661_v48 = vld [vmem:[#allocation2 + $0x24] sm:$0x8] }
  0x69   : > { %9478 = vmatprep.subr.bf16.mxu1 %v12225_v3  ;;  %8869 = vmatprep.mubr.msk.f32.mxu1 %vm10155_vm0, %v12223_v9 }
  0x6a   : > { %8804 = vmatmul.mubr.f32.vlgmr.msra.gmra.mrb[0].mxu0 %v10401_v26 }
  0x6b   : > { %9447 = vmatpush3.bf16.msra.mxu0 %v10317_v10  ;;  %8814 = vmatprep.mubr.msk.f32.mxu0 %vm10155_vm0, %v12223_v9 }
  0x6c   : > { %9480 = vmatpush3.bf16.msra.mxu1 %v9443_v49  ;;  %9448 = vmatprep.subr.bf16.mxu0 %v12225_v3  ;;  %v2659_v49 = vsel %vm10574_vm5, 0, %v2658_v47 }
  0x6d   : > { %9481 = vmatprep.subr.bf16.mxu1 %v12225_v3  ;;  %2660 = vst [vmem:[#allocation2 + $0x18] sm:$0x8] %v2659_v49  ;;  %v9938_v49 = vld [vmem:[%s12212_s5] sm:$0xff]  }
  0x6f   : > { %8870 = vmatmul.mubr.f32.vlgmr.msra.gmra.mrb[0].mxu1 %v10408_v35  ;;  %9450 = vmatpush3.bf16.msra.mxu0 %v10326_v11 }
  0x70   : > { %9483 = vmatpush3.bf16.msra.mxu1 %v10317_v10  ;;  %8880 = vmatprep.mubr.msk.f32.mxu1 %vm10155_vm0, %v12223_v9  ;;  %v508_v10 = vld [vmem:[%s12211_s4] sm:$0xff] }
  0x71   : > { %9484 = vmatprep.subr.bf16.mxu1 %v12225_v3  ;;  %9487 = vmatprep.subr.bf16.mxu0 %v12225_v3  ;;  %v1551_v23 = vand.u32 4294901760, %v508_v10 }
  0x72   : > { %8815 = vmatmul.mubr.f32.vlgmr.msra.gmra.mrb[0].mxu0 %v10401_v26 }
  0x73   : > { %8891 = vmatprep.mubr.msk.f32.mxu0 %vm10155_vm0, %v12223_v9  ;;  %v10487_v45 = vpack.c.bf16 %v1554_v29, %v1551_v23  ;;  %v2664_v29 = vld [vmem:[#allocation2 + $0x30] sm:$0x8] }
  0x74   : > { %9486 = vmatpush3.bf16.msra.mxu1 %v10326_v11  ;;  %v1631_v11 = vsub.f32 %v508_v10, %v1551_v23  ;;  %v2662_v10 = vsel %vm10574_vm5, 0, %v2661_v48  ;;  %v2656_v23 = vsel %vm10574_vm5, 0, %v2655_v12  ;;  %v9937_v48 = vld [vmem:[%s12212_s5 + $0x40] sm:$0xff]  }
  0x75   : > { %9523 = vmatprep.subr.bf16.mxu1 %v12225_v3  ;;  %9489 = vmatpush3.bf16.msra.mxu0 %v10487_v45  ;;  %2663 = vst [vmem:[#allocation2 + $0x24] sm:$0x8] %v2662_v10  ;;  %2657 = vst [vmem:[#allocation2 + $0xc] sm:$0x8] %v2656_v23 }
  0x76   : > { %v1632_v55 = vand.u32 4294901760, %v1631_v11  ;;  %9490 = vmatprep.subr.bf16.mxu0 %v12225_v3  ;;  %v9500_v15 = vpack.c.bf16 %v1638_v50, %v1631_v11 }
  0x77   : > { %8881 = vmatmul.mubr.f32.vlgmr.msra.gmra.mrb[0].mxu1 %v10408_v35 }
  0x78   : > { %8957 = vmatprep.mubr.msk.f32.mxu1 %vm10155_vm0, %v12223_v9  ;;  %9525 = vmatpush3.bf16.msra.mxu1 %v10487_v45  ;;  %v1633_v58 = vsub.f32 %v1631_v11, %v1632_v55  ;;  %v10507_v6 = vpack.c.bf16 %v1639_v56, %v1632_v55  ;;  %v2665_v11 = vsel %vm10574_vm5, 0, %v2664_v29  ;;  %v2683_v55 = vsel %vm10591_vm9, 0, %v2682_v54  ;;  %v9931_v56 = vld [vmem:[%s12212_s5 + $0x80] sm:$0xff]  }
  0x79   : > { %9526 = vmatprep.subr.bf16.mxu1 %v12225_v3  ;;  %9492 = vmatpush3.bf16.msra.mxu0 %v10499_v57  ;;  %2666 = vst [vmem:[#allocation2 + $0x30] sm:$0x8] %v2665_v11  ;;  %2684 = vst [vmem:[#allocation2 + $0x20] sm:$0x1] %v2683_v55 }
  0x7a   : > { %v1634_v62 = vand.u32 4294901760, %v1633_v58  ;;  %9493 = vmatprep.subr.bf16.mxu0 %v12225_v3  ;;  %v2688_v58 = vld [vmem:[#allocation2 + $0x38] sm:$0x1] }
  0x7b   : > { %v2689_v60 = vsel %vm10591_vm9, 0, %v2688_v58 }
  0x7c   : > { %9528 = vmatpush3.bf16.msra.mxu1 %v10499_v57  ;;  %v9494_v4 = vpack.c.bf16 %v1641_v63, %v1634_v62  ;;  %2690 = vst [vmem:[#allocation2 + $0x38] sm:$0x1] %v2689_v60  ;;  %v9932_v62 = vld [vmem:[%s12212_s5 + $0x88] sm:$0xff]   ;;  %v2692_v63 = vsel %vm10591_vm9, 0, %v2691_v61 }
  0x7d   : > { %9529 = vmatprep.subr.bf16.mxu1 %v12225_v3  ;;  %2693 = vst [vmem:[#allocation2 + $0x44] sm:$0x1] %v2692_v63 }
  0x80   : > { %v3601_v47 = vld [vmem:[#allocation2 + $0x20] sm:$0x1] }
  0x81   : > { %v3626_v53 = vshll.u32 %v3601_v47, 16 }
 0x145   : > { %v1047_v17 = vpop.f32.mrb[0].mxu0 }
 0x146   : > { %v1540_v18 = vmul.f32 0.015625, %v1047_v17  ;;  %v8816_v19 = vpop.f32.mrb[1].mxu0  ;;  %v2700_v17 = vld [vmem:[#allocation2 + $0x68] sm:$0x1] }
 0x147   : > { %v2647_v19 = vld [vmem:[#allocation2 + $0x6c] sm:$0x8] }
 0x148   : > { %v1548_v20 = vsel %vm512_vm1, %v1540_v18, 0  ;;  %v1542_v21 = vmul.f32 %v1540_v18, %v1540_v18  ;;  %v2701_v18 = vsel %vm10591_vm9, 0, %v2700_v17  ;;  %v10078_v17 = vld [vmem:[%s10335_s30 + $0x18] sm:$0xff] }
 0x149   : > { %v10512_v22 = vand.u32 4294901760, %v1548_v20  ;;  %2702 = vst [vmem:[#allocation2 + $0x68] sm:$0x1] %v2701_v18 }
 0x14a   : > { %v1535_v24 = vpop.f32.mrb[0].mxu1 }
 0x14b   : > { %v1620_v26 = vsub.f32 %v1548_v20, %v10512_v22  ;;  %v1541_v27 = vmul.f32 0.015625, %v1535_v24  ;;  %v8882_v28 = vpop.f32.mrb[1].mxu1  ;;  %v2676_v20 = vld [vmem:[#allocation2 + $0x60] sm:$0x8] }
 0x14c   : > { %v2635_v24 = vld [vmem:[#allocation2] sm:$0x8] }
 0x14d   : > { %v1621_v31 = vand.u32 4294901760, %v1620_v26  ;;  %v1543_v32 = vsub.f32 %v1541_v27, %v1542_v21  ;;  %v2648_v21 = vsel %vm10574_vm5, 0, %v2647_v19 }
 0x14e   : > { %2649 = vst [vmem:[#allocation2 + $0x6c] sm:$0x8] %v2648_v21  ;;  %v10079_v21 = vld [vmem:[%s10335_s30 + $0x20] sm:$0xff] }
 0x14f   : > { %v1544_v33 = vmax.f32 %v1543_v32, 0.0  ;;  %v1622_v34 = vsub.f32 %v1620_v26, %v1621_v31 }
 0x151   : > { %v1545_v35 = vadd.f32 1e-05, %v1544_v33  ;;  %v1623_v36 = vand.u32 4294901760, %v1622_v34  ;;  %v3408_v34 = vld [vmem:[#allocation2 + $0x18] sm:$0x8] }
 0x152   : > { %v3425_v44 = vshrl.u32 %v3408_v34, 16 }
 0x153   : > { %10007 = vrsqrt.f32 %v1545_v35  ;;  %8892 = vmatmul.mubr.f32.vlgmr.msra.gmra.mrb[2].mxu0 %v1623_v36  ;;  %v3410_v35 = vld [vmem:[#allocation2 + $0x24] sm:$0x8]  ;;  %v3066_v36 = vld [vmem:[#allocation2 + $0xc] sm:$0x8] }
 0x154   : > { %9495 = vmatpush3.bf16.msra.mxu0 %v9494_v4  ;;  %8902 = vmatprep.mubr.msk.f32.mxu0 %vm10155_vm0, %v12223_v9  ;;  %v3438_v46 = vshrl.u32 %v3410_v35, 16  ;;  %v3083_v10 = vshrl.u32 %v3066_v36, 16  ;;  %v10641_v54 = vrot.slane %v3425_v44, 11  ;;  %v3605_v44 = vld [vmem:[#allocation2 + $0x38] sm:$0x1] }
 0x155   : > { %9496 = vmatprep.subr.bf16.mxu0 %v12225_v3 }
 0x156   : > { %v10643_v55 = vrot.slane %v3438_v46, 11  ;;  %v10649_v58 = vrot.slane %v3083_v10, 11 }
 0x158   : > { %9498 = vmatpush3.bf16.msra.mxu0 %v9497_v14 }
 0x159   : > { %9499 = vmatprep.subr.bf16.mxu0 %v12225_v3 }
 0x15b   : > { %8903 = vmatmul.mubr.f32.vlgmr.msra.gmra.mrb[2].mxu0 %v10512_v22 }
 0x15c   : > { %9501 = vmatpush3.bf16.msra.mxu0 %v9500_v15  ;;  %8913 = vmatprep.mubr.msk.f32.mxu0 %vm10155_vm0, %v12223_v9 }
 0x15d   : > { %v10008_v37 = vpop.eup %10007  ;;  %9502 = vmatprep.subr.bf16.mxu0 %v12225_v3 }
 0x15e   : > { %v2036_v38 = vsel %vm512_vm1, %v10008_v37, 0  ;;  %v3068_v37 = vld [vmem:[#allocation2 + $0x18] sm:$0x8] }
 0x15f   : > { %v2107_v39 = vand.u32 4294901760, %v2036_v38  ;;  %v3096_v12 = vshrl.u32 %v3068_v37, 16  ;;  %v8106_v37 = vld [vmem:[%s12254_s2] ss:$0 sm:$0xff] }
 0x160   : > { %9504 = vmatpush3.bf16.msra.mxu0 %v10505_v16 }
 0x161   : > { %9505 = vmatprep.subr.bf16.mxu0 %v12225_v3  ;;  %v2108_v40 = vsub.f32 %v2036_v38, %v2107_v39  ;;  %v3412_v38 = vld [vmem:[#allocation2 + $0x30] sm:$0x8] }
 0x162   : > { %v3451_v23 = vshrl.u32 %v3412_v38, 16 }
 0x163   : > { %8914 = vmatmul.mubr.f32.vlgmr.msra.gmra.mrb[2].mxu0 %v1620_v26  ;;  %v2109_v41 = vand.u32 4294901760, %v2108_v40  ;;  %v2636_v26 = vsel %vm10574_vm5, 0, %v2635_v24  ;;  %v10080_v24 = vld [vmem:[%s10335_s30 + $0x28] sm:$0xff] }
 0x164   : > { %9507 = vmatpush3.bf16.msra.mxu0 %v10487_v45  ;;  %8924 = vmatprep.mubr.msk.f32.mxu0 %vm10155_vm0, %v12223_v9  ;;  %2637 = vst [vmem:[#allocation2] sm:$0x8] %v2636_v26  ;;  %v10653_v60 = vrot.slane %v3451_v23, 11 }
 0x165   : > { %v2110_v42 = vsub.f32 %v2108_v40, %v2109_v41  ;;  %9508 = vmatprep.subr.bf16.mxu0 %v12225_v3 }
 0x167   : > { %v2111_v43 = vand.u32 4294901760, %v2110_v42  ;;  %v3252_v42 = vld [vmem:[#allocation2 + $0x14] sm:$0x1] }
 0x168   : > { %9510 = vmatpush3.bf16.msra.mxu0 %v10499_v57 }
 0x169   : > { %8958 = vmatmul.mubr.f32.vlgmr.msra.gmra.mrb[2].mxu1 %v2111_v43  ;;  %9511 = vmatprep.subr.bf16.mxu0 %v12225_v3  ;;  %v3254_v43 = vld [vmem:[#allocation2 + $0x20] sm:$0x1] }
 0x16a   : > { %9531 = vmatpush3.bf16.msra.mxu1 %v9494_v4  ;;  %8968 = vmatprep.mubr.msk.f32.mxu1 %vm10155_vm0, %v12223_v9  ;;  %v2695_v4 = vsel %vm10591_vm9, 0, %v2694_v0  ;;  %v3291_v51 = vshll.u32 %v3254_v43, 16 }
 0x16b   : > { %9532 = vmatprep.subr.bf16.mxu1 %v12225_v3  ;;  %8925 = vmatmul.mubr.f32.vlgmr.msra.gmra.mrb[2].mxu0 %v1621_v31  ;;  %2696 = vst [vmem:[#allocation2 + $0x50] sm:$0x1] %v2695_v4  ;;  %v2523_v31 = vlaneseq  ;;  %v10075_v4 = vld [vmem:[%s10335_s30] sm:$0xff] }
 0x16c   : > { %9513 = vmatpush3.bf16.msra.mxu0 %v10507_v6  ;;  %8935 = vmatprep.mubr.msk.f32.mxu0 %vm10155_vm0, %v12223_v9  ;;  %v10663_v1 = vrot.slane %v3291_v51, 5  ;;  %v3654_v51 = vshll.u32 %v3605_v44, 16 }
 0x16d   : > { %9514 = vmatprep.subr.bf16.mxu0 %v12225_v3  ;;  %v2524_v32 = vshrl.u32 %v2523_v31, 7  ;;  %v8105_v31 = vld [vmem:[%s12253_s1] ss:$0 sm:$0xff]  ;;  %s8322_s1 = sshll.u32 %s10265_s22, 10  ;;  %s12166_s22 = scalar_lea.sflag [#allocation7], %s485_s23 }
 0x16e   : > { %9534 = vmatpush3.bf16.msra.mxu1 %v9497_v14  ;;  %v2671_v14 = vsel %vm10574_vm5, 0, %v2670_v2  ;;  %v10666_v2 = vrot.slane %v3626_v53, 5  ;;  %s12155_s16 = scalar_lea.hbm %s12222_s15, %s8322_s1 }
 0x16f   : > { %9535 = vmatprep.subr.bf16.mxu1 %v12225_v3  ;;  %2672 = vst [vmem:[#allocation2 + $0x48] sm:$0x8] %v2671_v14  ;;  %v10632_v33 = vsub.s32 0, %v2524_v32 }
 0x170   : > { %9516 = vmatpush3.bf16.msra.mxu0 %v10509_v8 }
 0x171   : > { %8969 = vmatmul.mubr.f32.vlgmr.msra.gmra.mrb[2].mxu1 %v2107_v39  ;;  %9517 = vmatprep.subr.bf16.mxu0 %v12225_v3  ;;  %12252 = vst [vmem:[#allocation10_spill] sm:$0xff] %v10632_v33 }
 0x172   : > { %9537 = vmatpush3.bf16.msra.mxu1 %v9500_v15  ;;  %8979 = vmatprep.mubr.msk.f32.mxu1 %vm10155_vm0, %v12223_v9  ;;  %v2673_v15 = vld [vmem:[#allocation2 + $0x54] sm:$0x8] }
 0x173   : > { %9538 = vmatprep.subr.bf16.mxu1 %v12225_v3  ;;  %8936 = vmatmul.mubr.f32.vlgmr.msra.gmra.mrb[2].mxu0 %v10512_v22 }
 0x174   : > { %9519 = vmatpush3.bf16.msra.mxu0 %v10487_v45  ;;  %8946 = vmatprep.mubr.msk.f32.mxu0 %vm10155_vm0, %v12223_v9 }
 0x175   : > { %9520 = vmatprep.subr.bf16.mxu0 %v12225_v3 }
 0x176   : > { %9540 = vmatpush3.bf16.msra.mxu1 %v10505_v16  ;;  %v2674_v16 = vsel %vm10574_vm5, 0, %v2673_v15  ;;  %v10076_v15 = vld [vmem:[%s10335_s30 + $0x8] sm:$0xff] }
 0x177   : > { %9541 = vmatprep.subr.bf16.mxu1 %v12225_v3  ;;  %2675 = vst [vmem:[#allocation2 + $0x54] sm:$0x8] %v2674_v16 }
 0x178   : > { %9522 = vmatpush3.bf16.msra.mxu0 %v10499_v57 }
 0x179   : > { %8980 = vmatmul.mubr.f32.vlgmr.msra.gmra.mrb[2].mxu1 %v2108_v40  ;;  %v3070_v40 = vld [vmem:[#allocation2 + $0x24] sm:$0x8]  ;;  %8443 = vmatprep.subr.bf16.mxu0 %v9937_v48 }
 0x17a   : > { %9543 = vmatpush3.bf16.msra.mxu1 %v10487_v45  ;;  %8990 = vmatprep.mubr.msk.f32.mxu1 %vm10155_vm0, %v12223_v9 }
 0x17b   : > { %9544 = vmatprep.subr.bf16.mxu1 %v12225_v3  ;;  %8947 = vmatmul.mubr.f32.vlgmr.msra.gmra.mrb[2].mxu0 %v10512_v22  ;;  %v2677_v22 = vsel %vm10574_vm5, 0, %v2676_v20 }
 0x17c   : > { %2678 = vst [vmem:[#allocation2 + $0x60] sm:$0x8] %v2677_v22  ;;  %8444 = vmatpush3.bf16.msra.mxu0 %v9938_v49 }
 0x17e   : > { %9546 = vmatpush3.bf16.msra.mxu1 %v10499_v57 }
 0x17f   : > { %9547 = vmatprep.subr.bf16.mxu1 %v12225_v3 }
 0x181   : > { %8991 = vmatmul.mubr.f32.vlgmr.msra.gmra.mrb[2].mxu1 %v2109_v41  ;;  %v3072_v41 = vld [vmem:[#allocation2 + $0x30] sm:$0x8] }
 0x182   : > { %9549 = vmatpush3.bf16.msra.mxu1 %v10507_v6  ;;  %9001 = vmatprep.mubr.msk.f32.mxu1 %vm10155_vm0, %v12223_v9  ;;  %v2651_v6 = vld [vmem:[#allocation2 + $0x74] sm:$0x1]  ;;  %v3122_v11 = vshrl.u32 %v3072_v41, 16 }
 0x183   : > { %9550 = vmatprep.subr.bf16.mxu1 %v12225_v3 }
 0x184   : > { %v10659_v63 = vrot.slane %v3122_v11, 11 }
 0x186   : > { %9552 = vmatpush3.bf16.msra.mxu1 %v10509_v8  ;;  %v2652_v8 = vsel %vm10591_vm9, 0, %v2651_v6  ;;  %v10077_v6 = vld [vmem:[%s10335_s30 + $0x10] sm:$0xff] }
 0x187   : > { %9553 = vmatprep.subr.bf16.mxu1 %v12225_v3  ;;  %2653 = vst [vmem:[#allocation2 + $0x74] sm:$0x1] %v2652_v8 }
 0x189   : > { %9002 = vmatmul.mubr.f32.vlgmr.msra.gmra.mrb[2].mxu1 %v2107_v39 }
 0x18a   : > { %9555 = vmatpush3.bf16.msra.mxu1 %v10487_v45  ;;  %9012 = vmatprep.mubr.msk.f32.mxu1 %vm10155_vm0, %v12223_v9  ;;  %v2667_v45 = vld [vmem:[#allocation2 + $0x3c] sm:$0x8] }
 0x18b   : > { %9556 = vmatprep.subr.bf16.mxu1 %v12225_v3  ;;  %v2668_v50 = vsel %vm10574_vm5, 0, %v2667_v45  ;;  %v3109_v45 = vshrl.u32 %v3070_v40, 16  ;;  %vm4066_vm5 = vcmask 523264  }
 0x18c   : > { %2669 = vst [vmem:[#allocation2 + $0x3c] sm:$0x8] %v2668_v50  ;;  %v3277_v50 = vshll.u32 %v3252_v42, 16 }
 0x18e   : > { %9558 = vmatpush3.bf16.msra.mxu1 %v10499_v57  ;;  %v2685_v57 = vld [vmem:[#allocation2 + $0x2c] sm:$0x1]  ;;  %v10661_v0 = vrot.slane %v3277_v50, 5 }
 0x18f   : > { %9015 = vmatprep.subr.bf16.mxu1 %v9931_v56  ;;  %v2686_v59 = vsel %vm10591_vm9, 0, %v2685_v57  ;;  %v10647_v57 = vld [vmem:[#allocation2 + $0x4] sm:$0xf] }
 0x190   : > { %2687 = vst [vmem:[#allocation2 + $0x2c] sm:$0x1] %v2686_v59  ;;  %v10651_v59 = vrot.slane %v3096_v12, 11  ;;  %v2926_v14 = vshrl.u32 %v10647_v57, 16  ;;  %v2929_v53 = vshll.u32 %v10647_v57, 16 }
 0x191   : > { %9013 = vmatmul.mubr.f32.vlgmr.msra.gmra.mrb[2].mxu1 %v2107_v39 }
 0x192   : > { %9016 = vmatpush3.bf16.msra.mxu1 %v9931_v56 }
 0x193   : > { %9017 = vmatprep.subr.bf16.mxu1 %v9932_v62  ;;  %v3414_v39 = vld [vmem:[#allocation2 + $0x3c] sm:$0x8] }
 0x194   : > { %v3464_v29 = vshrl.u32 %v3414_v39, 16 }
 0x196   : > { %9018 = vmatpush3.bf16.msra.mxu1 %v9932_v62  ;;  %v10655_v61 = vrot.slane %v3464_v29, 11  ;;  %v10657_v62 = vrot.slane %v3109_v45, 11  ;;  %v3607_v45 = vld [vmem:[#allocation2 + $0x44] sm:$0x1] }
 0x197   : > { %9559 = vmatprep.subr.bf16.mxu1 %v12225_v3  ;;  %v10645_v56 = vld [vmem:[#allocation2 + $0x2c] sm:$0x1] }
 0x198   : > { %v3640_v7 = vshll.u32 %v10645_v56, 16  ;;  %v3074_v56 = vld [vmem:[#allocation2 + $0x3c] sm:$0x8] }
 0x19a   : > { %v10711_v44 = vrot.slane %v3640_v7, 5 }
 0x24e   : > { %v2031_v27 = vpop.f32.mrb[2].mxu0 }
 0x24f   : > { %v8948_v28 = vpop.f32.mrb[3].mxu0  ;;  %v2526_v52 = vrot.slane %v2031_v27, %v10632_v33 }
 0x251   : > { %v2527_v5 = vsub.f32 %v10075_v4, %v2526_v52  ;;  %v2528_v16 = vsub.f32 %v10076_v15, %v2526_v52  ;;  %v2529_v8 = vsub.f32 %v10077_v6, %v2526_v52  ;;  %v2530_v18 = vsub.f32 %v10078_v17, %v2526_v52  ;;  %v3614_v4 = vld [vmem:[#allocation2 + $0x70] sm:$0xf] }
 0x252   : > { %v2531_v22 = vsub.f32 %v10079_v21, %v2526_v52  ;;  %v2532_v26 = vsub.f32 %v10080_v24, %v2526_v52  ;;  %v2533_v27 = vsub.f32 %v10351_v25, %v2526_v52  ;;  %v2534_v28 = vsub.f32 %v10360_v30, %v2526_v52  ;;  %v3609_v52 = vld [vmem:[#allocation2 + $0x50] sm:$0x1] }
 0x253   : > { %v3668_v17 = vshll.u32 %v3607_v45, 16  ;;  %v3718_v57 = vshll.u32 %v3614_v4, 16  ;;  %v3682_v24 = vshll.u32 %v3609_v52, 16 }
 0x255   : > { %v10715_v45 = vrot.slane %v3668_v17, 5 }
 0x264   : > { %v2519_v13 = vpop.f32.mrb[2].mxu1 }
 0x265   : > { %v2538_v19 = vrot.slane %v2519_v13, %v10632_v33  ;;  %v9014_v20 = vpop.f32.mrb[3].mxu1 }
 0x266   : > { %v3715_v20 = vshrl.u32 %v3614_v4, 16  ;;  %v2911_v4 = vld [vmem:[#allocation2 + $0x20] sm:$0x1] }
 0x267   : > { %v2539_v32 = vmul.f32 %v2538_v19, %v2527_v5  ;;  %v2540_v34 = vmul.f32 %v2538_v19, %v2528_v16  ;;  %v2541_v35 = vmul.f32 %v2538_v19, %v2529_v8  ;;  %v2542_v36 = vmul.f32 %v2538_v19, %v2530_v18 }
 0x268   : > { %v2543_v38 = vmul.f32 %v2538_v19, %v2531_v22  ;;  %v2544_v39 = vmul.f32 %v2538_v19, %v2532_v26  ;;  %v2545_v40 = vmul.f32 %v2538_v19, %v2533_v27  ;;  %v2546_v41 = vmul.f32 %v2538_v19, %v2534_v28  ;;  %v3611_v22 = vld [vmem:[#allocation2 + $0x5c] sm:$0x1]  ;;  %v2907_v28 = vld [vmem:[#allocation2 + $0x8] sm:$0x1] }
 0x269   : > { %v2553_v42 = vmul.f32 %v8105_v31, %v2539_v32  ;;  %v2554_v25 = vmul.f32 %v8105_v31, %v2540_v34  ;;  %v2555_v43 = vmul.f32 %v8105_v31, %v2541_v35  ;;  %v2556_v30 = vmul.f32 %v8105_v31, %v2542_v36  ;;  %v3418_v34 = vld [vmem:[#allocation2 + $0x54] sm:$0x8]  ;;  %v3256_v35 = vld [vmem:[#allocation2 + $0x2c] sm:$0x1]  ;;  %v3258_v36 = vld [vmem:[#allocation2 + $0x38] sm:$0x1] }
 0x26a   : > { %v2557_v46 = vmul.f32 %v8105_v31, %v2543_v38  ;;  %v2558_v47 = vmul.f32 %v8105_v31, %v2544_v39  ;;  %v2559_v48 = vmul.f32 %v8105_v31, %v2545_v40  ;;  %v2560_v49 = vmul.f32 %v8105_v31, %v2546_v41  ;;  %v2909_v31 = vld [vmem:[#allocation2 + $0x14] sm:$0x1] }
 0x26b   : > { %v10684_v10 = vadd.f32 %v8106_v37, %v2553_v42  ;;  %v10686_v12 = vadd.f32 %v8106_v37, %v2554_v25  ;;  %v10688_v23 = vadd.f32 %v8106_v37, %v2555_v43  ;;  %v10690_v29 = vadd.f32 %v8106_v37, %v2556_v30  ;;  %v3615_v42 = vld [vmem:[#allocation2 + $0x74] sm:$0x1] }
 0x26c   : > { %v10692_v11 = vadd.f32 %v8106_v37, %v2557_v46  ;;  %v10694_v50 = vadd.f32 %v8106_v37, %v2558_v47  ;;  %v10697_v5 = vadd.f32 %v8106_v37, %v2559_v48  ;;  %v10702_v6 = vadd.f32 %v8106_v37, %v2560_v49  ;;  %v3613_v48 = vld [vmem:[#allocation2 + $0x68] sm:$0x1] }
 0x26d   : > { %v8107_v13 = vmul.f32 -1.442695, %v10684_v10  ;;  %v8108_v15 = vmul.f32 -1.442695, %v10686_v12  ;;  %v8109_v16 = vmul.f32 -1.442695, %v10688_v23 }
 0x26e   : > { %v8110_v8 = vmul.f32 -1.442695, %v10690_v29  ;;  %v2928_v18 = vrot.slane %v2926_v14, 4  ;;  %v8111_v19 = vmul.f32 -1.442695, %v10692_v11  ;;  %v2931_v26 = vrot.slane %v2929_v53, 5 }
 0x26f   : > { %10009 = vpow2.f32 %v8107_v13  ;;  %v8112_v21 = vmul.f32 -1.442695, %v10694_v50  ;;  %v8113_v27 = vmul.f32 -1.442695, %v10697_v5  ;;  %v8114_v32 = vmul.f32 -1.442695, %v10702_v6 }
 0x270   : > { %10011 = vpow2.f32 %v8108_v15  ;;  %v3416_v14 = vld [vmem:[#allocation2 + $0x48] sm:$0x8]  ;;  %v3717_v37 = vrot.slane %v3715_v20, 4  ;;  %v3720_v38 = vrot.slane %v3718_v57, 5  ;;  %v3696_v39 = vshll.u32 %v3611_v22, 16 }
 0x271   : > { %10013 = vpow2.f32 %v8109_v16  ;;  %v2932_v40 = vor.u32 %v2931_v26, %v2928_v18  ;;  %v2935_v41 = vshll.u32 %v2907_v28, 16  ;;  %v2949_v25 = vshll.u32 %v2909_v31, 16  ;;  %v2913_v20 = vld [vmem:[#allocation2 + $0x2c] sm:$0x1] }
 0x272   : > { %10015 = vpow2.f32 %v8110_v8  ;;  %v3477_v43 = vshrl.u32 %v3416_v14, 16  ;;  %v3490_v30 = vshrl.u32 %v3418_v34, 16  ;;  %v3305_v46 = vshll.u32 %v3256_v35, 16  ;;  %v3260_v35 = vld [vmem:[#allocation2 + $0x44] sm:$0x1] }
 0x273   : > { %10017 = vpow2.f32 %v8111_v19  ;;  %v3319_v47 = vshll.u32 %v3258_v36, 16  ;;  %v10713_v49 = vrot.slane %v3654_v51, 5  ;;  %v3721_v52 = vor.u32 %v3720_v38, %v3717_v37 }
 0x274   : > { %10019 = vpow2.f32 %v8112_v21  ;;  %v3724_v53 = vshll.u32 %v3615_v42, 16  ;;  %v10717_v13 = vrot.slane %v3682_v24, 5  ;;  %v10719_v15 = vrot.slane %v3696_v39, 5  ;;  %v3262_v39 = vld [vmem:[#allocation2 + $0x50] sm:$0x1] }
 0x275   : > { %10021 = vpow2.f32 %v8113_v27  ;;  %v10721_v16 = vrot.slane %v2932_v40, 4  ;;  %v10723_v8 = vrot.slane %v2935_v41, 5  ;;  %v10725_v18 = vrot.slane %v2949_v25, 5  ;;  %v3076_v27 = vld [vmem:[#allocation2 + $0x48] sm:$0x8] }
 0x276   : > { %10023 = vpow2.f32 %v8114_v32  ;;  %v10727_v19 = vrot.slane %v3477_v43, 11  ;;  %v10729_v51 = vrot.slane %v3490_v30, 11  ;;  %v3710_v17 = vshll.u32 %v3613_v48, 16  ;;  %v10739_v40 = vld [vmem:[#allocation2 + $0x70] sm:$0xf] }
 0x277   : > { %v10731_v22 = vrot.slane %v3305_v46, 5  ;;  %v10733_v24 = vrot.slane %v3319_v47, 5  ;;  %v2963_v26 = vshll.u32 %v2911_v4, 16  ;;  %v10735_v32 = vrot.slane %v3721_v52, 4  ;;  %v2915_v30 = vld [vmem:[#allocation2 + $0x38] sm:$0x1] }
 0x278   : > { %v10737_v14 = vrot.slane %v3724_v53, 5  ;;  %v3135_v34 = vshrl.u32 %v3074_v56, 16  ;;  %v2977_v38 = vshll.u32 %v2913_v20, 16  ;;  %v10741_v25 = vrot.slane %v3710_v17, 5  ;;  %v2917_v52 = vld [vmem:[#allocation2 + $0x44] sm:$0x1] }
 0x279   : > { %v10010_v7 = vpop.eup %10009  ;;  %v3148_v43 = vshrl.u32 %v3076_v27, 16  ;;  %v3333_v48 = vshll.u32 %v3260_v35, 16  ;;  %v3420_v53 = vld [vmem:[#allocation2 + $0x60] sm:$0x8]  ;;  %v3422_v20 = vld [vmem:[#allocation2 + $0x6c] sm:$0x8] }
 0x27a   : > { %v10012_v57 = vpop.eup %10011  ;;  %v2599_v21 = vadd.f32 1.0, %v10010_v7  ;;  %v3347_v7 = vshll.u32 %v3262_v39, 16  ;;  %v2991_v17 = vshll.u32 %v2915_v30, 16  ;;  %v3266_v27 = vld [vmem:[#allocation2 + $0x68] sm:$0x1]  ;;  %v10744_v35 = vrot.slane %v2963_v26, 5 }
 0x27b   : > { %v10014_v28 = vpop.eup %10013  ;;  %v2600_v31 = vadd.f32 1.0, %v10012_v57  ;;  %v3521_v57 = vshrl.u32 %v10739_v40, 16  ;;  %v10746_v9 = vrot.slane %v3135_v34, 11  ;;  %v10748_v39 = vrot.slane %v2977_v38, 5  ;;  %v3080_v26 = vld [vmem:[#allocation2 + $0x60] sm:$0x8] }
 0x27c   : > { %v10016_v36 = vpop.eup %10015  ;;  %v2601_v37 = vadd.f32 1.0, %v10014_v28  ;;  %10025 = vrcp.f32 %v2599_v21  ;;  %v3375_v3 = vshll.u32 %v3266_v27, 16  ;;  %v10750_v30 = vrot.slane %v3148_v43, 11 }
 0x27d   : > { %v10018_v41 = vpop.eup %10017  ;;  %v2602_v42 = vadd.f32 1.0, %v10016_v36  ;;  %10027 = vrcp.f32 %v2600_v31  ;;  %v3264_v31 = vld [vmem:[#allocation2 + $0x5c] sm:$0x1]  ;;  %12255 = vst [vmem:[#allocation11_spill] sm:$0xff] %v10748_v39  ;;  %v10758_v34 = vrot.slane %v2991_v17, 5  ;;  %v3174_v17 = vshrl.u32 %v3080_v26, 16 }
 0x27e   : > { %v10020_v46 = vpop.eup %10019  ;;  %v2603_v47 = vadd.f32 1.0, %v10018_v41  ;;  %10029 = vrcp.f32 %v2601_v37  ;;  %v3005_v41 = vshll.u32 %v2917_v52, 16  ;;  %v3503_v37 = vshrl.u32 %v3420_v53, 16  ;;  %12256 = vst [vmem:[#allocation12_spill] sm:$0xff] %v10750_v30  ;;  %v9942_v39 = vld [vmem:[%s12212_s5 + $0x10] sm:$0xff]  }
 0x27f   : > { %v10022_v4 = vpop.eup %10021  ;;  %v2604_v56 = vadd.f32 1.0, %v10020_v46  ;;  %10031 = vrcp.f32 %v2602_v42  ;;  %v3516_v42 = vshrl.u32 %v3422_v20, 16  ;;  %v3361_v46 = vshll.u32 %v3264_v31, 16  ;;  %12259 = vst [vmem:[#allocation15_spill] sm:$0xff] %v10758_v34  ;;  %v2723_v20 = vld [vmem:[#allocation2 + $0x18] sm:$0x8] }
 0x280   : > { %v10024_v21 = vpop.eup %10023  ;;  %v2605_v28 = vadd.f32 1.0, %v10022_v4  ;;  %10033 = vrcp.f32 %v2603_v47  ;;  %v3078_v4 = vld [vmem:[#allocation2 + $0x54] sm:$0x8]  ;;  %v10752_v47 = vrot.slane %v3333_v48, 5  ;;  %v10756_v52 = vrot.slane %v3521_v57, 7 }
 0x281   : > { %v2606_v36 = vadd.f32 1.0, %v10024_v21  ;;  %10035 = vrcp.f32 %v2604_v56  ;;  %v10754_v56 = vrot.slane %v3347_v7, 5  ;;  %v10760_v53 = vrot.slane %v3005_v41, 5  ;;  %v2919_v48 = vld [vmem:[#allocation2 + $0x50] sm:$0x1] }
 0x282   : > { %10037 = vrcp.f32 %v2605_v28  ;;  %12257 = vst [vmem:[#allocation13_spill] sm:$0xff] %v10752_v47  ;;  %v10762_v38 = vrot.slane %v3503_v37, 11  ;;  %v10765_v43 = vrot.slane %v3516_v42, 11  ;;  %v2921_v28 = vld [vmem:[#allocation2 + $0x5c] sm:$0x1]  ;;  %v3161_v7 = vshrl.u32 %v3078_v4, 16 }
 0x283   : > { %10039 = vrcp.f32 %v2606_v36  ;;  %12258 = vst [vmem:[#allocation14_spill] sm:$0xff] %v10754_v56  ;;  %12260 = vst [vmem:[#allocation16_spill] sm:$0xff] %v10760_v53  ;;  %v10768_v27 = vrot.slane %v3361_v46, 5  ;;  %v10770_v36 = vrot.slane %v3375_v3, 5  ;;  %v10772_v41 = vld [vmem:[#allocation2 + $0x4] sm:$0xf] }
 0x284   : > { %12261 = vst [vmem:[#allocation17_spill] sm:$0xff] %v10762_v38  ;;  %v2725_v53 = vld [vmem:[#allocation2 + $0x24] sm:$0x8]  ;;  %v2719_v42 = vld [vmem:[#allocation2] sm:$0x8]  ;;  %v3019_v56 = vshll.u32 %v2919_v48, 16 }
 0x285   : > { %12262 = vst [vmem:[#allocation18_spill] sm:$0xff] %v10768_v27  ;;  %12263 = vst [vmem:[#allocation19_spill] sm:$0xff] %v10770_v36  ;;  %v3033_v47 = vshll.u32 %v2921_v28, 16  ;;  %v9939_v3 = vld [vmem:[%s12212_s5 + $0x48] sm:$0xff]   ;;  %v9941_v48 = vld [vmem:[%s12212_s5 + $0x50] sm:$0xff]   ;;  %v2764_v27 = vshrl.u32 %v2723_v20, 16 }
 0x286   : > { %v10026_v21 = vpop.eup %10025  ;;  %v9940_v46 = vld [vmem:[%s12212_s5 + $0x8] sm:$0xff]   ;;  %v2727_v28 = vld [vmem:[#allocation2 + $0x30] sm:$0x8]  ;;  %v2777_v30 = vshrl.u32 %v2725_v53, 16  ;;  %8445 = vmatprep.subr.bf16.mxu0 %v9939_v3  ;;  %v10798_v20 = vrot.slane %v3174_v17, 11 }
 0x287   : > { %v10028_v31 = vpop.eup %10027  ;;  %v2623_v57 = vmul.f32 %v10026_v21, %v10684_v10  ;;  %v2721_v10 = vld [vmem:[#allocation2 + $0xc] sm:$0x8]  ;;  %8446 = vmatpush3.bf16.msra.mxu0 %v9940_v46  ;;  %v10803_v46 = vld [vmem:[#allocation2 + $0x3c] sm:$0x8]  ;;  %v10816_v17 = vrot.slane %v2764_v27, 11 }
 0x288   : > { %v10030_v37 = vpop.eup %10029  ;;  %v2624_v33 = vmul.f32 %v10028_v31, %v10686_v12  ;;  %v10783_v31 = vrot.slane %v3161_v7, 11  ;;  %v2738_v7 = vshrl.u32 %v2719_v42, 16  ;;  %8447 = vmatprep.subr.bf16.mxu0 %v9941_v48  ;;  %v9944_v27 = vld [vmem:[%s12212_s5 + $0x18] sm:$0xff]  }
 0x289   : > { %v10032_v38 = vpop.eup %10031  ;;  %v2625_v34 = vmul.f32 %v10030_v37, %v10688_v23  ;;  %v2703_v4 = vpack.c.bf16 %v2623_v57, %v2623_v57  ;;  %v2743_v23 = vshrl.u32 %v10772_v41, 16 }
 0x28a   : > { %v10034_v26 = vpop.eup %10033  ;;  %v2626_v12 = vmul.f32 %v10032_v38, %v10690_v29  ;;  %v2704_v21 = vpack.c.bf16 %v2624_v33, %v2624_v33  ;;  %12264 = vst [vmem:[#allocation20_spill] sm:$0xff] %v10783_v31  ;;  %v2751_v31 = vshrl.u32 %v2721_v10, 16  ;;  %v2746_v10 = vshll.u32 %v10772_v41, 16 }
 0x28b   : > { %v10036_v57 = vpop.eup %10035  ;;  %v2627_v37 = vmul.f32 %v10034_v26, %v10692_v11  ;;  %v2705_v36 = vpack.c.bf16 %v2625_v34, %v2625_v34  ;;  %2711 = vst.msk [vmem:[#allocation2 + $0x10] sm:$0xf] %vm2638_vm2, %v2703_v4  ;;  %v2745_v42 = vrot.slane %v2743_v23, 7  ;;  %v10827_v23 = vrot.slane %v2738_v7, 11  ;;  %8448 = vmatpush3.bf16.msra.mxu0 %v9942_v39 }
 0x28c   : > { %v10038_v29 = vpop.eup %10037  ;;  %v2628_v33 = vmul.f32 %v10036_v57, %v10694_v50  ;;  %2712 = vst.msk [vmem:[#allocation2 + $0x1c] sm:$0xf] %vm2638_vm2, %v2704_v21  ;;  %v2706_v38 = vpack.c.bf16 %v2626_v12, %v2626_v12  ;;  %v2790_v50 = vshrl.u32 %v2727_v28, 16  ;;  %v10825_v21 = vrot.slane %v2777_v30, 11  ;;  %v10843_v57 = vld [vmem:[#allocation2 + $0x54] sm:$0x8] }
 0x28d   : > { %v10040_v11 = vpop.eup %10039  ;;  %v2629_v34 = vmul.f32 %v10038_v29, %v10697_v5  ;;  %2713 = vst.msk [vmem:[#allocation2 + $0x28] sm:$0xf] %vm2638_vm2, %v2705_v36  ;;  %v2707_v53 = vpack.c.bf16 %v2627_v37, %v2627_v37  ;;  %v10812_v36 = vrot.slane %v3019_v56, 5  ;;  %12269 = vst [vmem:[#allocation21_spill] sm:$0xff] %v10827_v23  ;;  %v10829_v48 = vrot.slane %v2751_v31, 11  ;;  %v9943_v56 = vld [vmem:[%s12212_s5 + $0x58] sm:$0xff]  }
 0x28e   : > { %v2630_v4 = vmul.f32 %v10040_v11, %v10702_v6  ;;  %v2708_v3 = vpack.c.bf16 %v2628_v33, %v2628_v33  ;;  %2714 = vst.msk [vmem:[#allocation2 + $0x34] sm:$0xf] %vm2638_vm2, %v2706_v38  ;;  %v10814_v6 = vrot.slane %v3033_v47, 5  ;;  %v10831_v47 = vld [vmem:[#allocation2 + $0x48] sm:$0x8]  ;;  %v10840_v28 = vrot.slane %v2790_v50, 11  ;;  %8449 = vmatprep.subr.bf16.mxu0 %v9943_v56 }
 0x28f   : > { %v2709_v26 = vpack.c.bf16 %v2629_v34, %v2629_v34  ;;  %2715 = vst.msk [vmem:[#allocation2 + $0x40] sm:$0xf] %vm2638_vm2, %v2707_v53  ;;  %12270 = vst [vmem:[#allocation22_spill] sm:$0xff] %v10829_v48  ;;  %v12273_v37 = vshll.u32 %v10739_v40, 16  ;;  %v10851_v33 = vor.u32 %v2746_v10, %v2745_v42  ;;  %8450 = vmatpush3.bf16.msra.mxu0 %v9944_v27 }
 0x290   : > { %v2710_v12 = vpack.c.bf16 %v2630_v4, %v2630_v4  ;;  %2716 = vst.msk [vmem:[#allocation2 + $0x4c] sm:$0xf] %vm2638_vm2, %v2708_v3  ;;  %12271 = vst [vmem:[#allocation23_spill] sm:$0xff] %v10840_v28 }
 0x291   : > { %2717 = vst.msk [vmem:[#allocation2 + $0x58] sm:$0xf] %vm2638_vm2, %v2709_v26  ;;  %12272 = vst [vmem:[#allocation24_spill] sm:$0xff] %v10843_v57  ;;  %v10849_v29 = vor.u32 %v12273_v37, %v10756_v52 }
 0x292   : > { %2718 = vst.msk [vmem:[#allocation2 + $0x64] sm:$0xf] %vm2638_vm2, %v2710_v12  ;;  %v9928_v39 = vld [vmem:[#allocation2 + $0x4] ss:$12 sps:$4 sm:$0xff]   ;;  %12274 = vst [vmem:[#allocation25_spill] sm:$0xff] %v10851_v33  ;;  %vm3061_vm2 = vcmask 785920  }
 0x293   : > { %v3067_v31 = vld [vmem:[#allocation2 + $0x10] sm:$0xf]  ;;  %v3409_v38 = vld [vmem:[#allocation2 + $0x1c] sm:$0xf]  ;;  %2889 = vrot.lane.b32.xlu0 %v9928_v39, %s10158_s0 }
 0x294   : > { %v9927_v7 = vld [vmem:[#allocation2 + $0x1c] ss:$12 sps:$4 sm:$0xff]   ;;  %v3430_v53 = vshrl.u32 %v3409_v38, 16  ;;  %v3433_v12 = vshll.u32 %v3409_v38, 16  ;;  %v3088_v39 = vshrl.u32 %v3067_v31, 16  ;;  %v3091_v52 = vshll.u32 %v3067_v31, 16 }
 0x295   : > { %v9929_v11 = vld [vmem:[#allocation2 + $0x1c] ss:$12 sps:$4 sm:$0xff]   ;;  %2891 = vrot.lane.b32.xlu1 %v9927_v7, %s10158_s0  ;;  %v3413_v40 = vld [vmem:[#allocation2 + $0x34] sm:$0xf]  ;;  %v9945_v38 = vld [vmem:[%s12212_s5 + $0x60] sm:$0xff]  }
 0x296   : > { %v3411_v34 = vld [vmem:[#allocation2 + $0x28] sm:$0xf]  ;;  %v3432_v26 = vrot.slane %v3430_v53, 7  ;;  %v3069_v27 = vld [vmem:[#allocation2 + $0x1c] sm:$0xf]  ;;  %v3090_v28 = vrot.slane %v3088_v39, 7  ;;  %8451 = vmatprep.subr.bf16.mxu0 %v9945_v38 }
 0x297   : > { %v3443_v4 = vshrl.u32 %v3411_v34, 16  ;;  %v3446_v56 = vshll.u32 %v3411_v34, 16  ;;  %3584 = vrot.lane.b32.xlu0 %v9929_v11, %s10159_s3  ;;  %v9930_v7 = vld [vmem:[#allocation2 + $0x34] ss:$12 sps:$4 sm:$0xff]   ;;  %v3101_v30 = vshrl.u32 %v3069_v27, 16  ;;  %v3104_v3 = vshll.u32 %v3069_v27, 16 }
 0x298   : > { %v3435_v50 = vor.u32 %v3433_v12, %v3432_v26  ;;  %v3415_v48 = vld [vmem:[#allocation2 + $0x40] sm:$0xf]  ;;  %v3456_v42 = vshrl.u32 %v3413_v40, 16  ;;  %v3459_v33 = vshll.u32 %v3413_v40, 16  ;;  %v3071_v11 = vld [vmem:[#allocation2 + $0x28] sm:$0xf]  ;;  %v3093_v26 = vor.u32 %v3091_v52, %v3090_v28 }
 0x299   : > { %v3445_v37 = vrot.slane %v3443_v4, 7  ;;  %v3103_v53 = vrot.slane %v3101_v30, 7  ;;  %v3469_v10 = vshrl.u32 %v3415_v48, 16  ;;  %v3472_v23 = vshll.u32 %v3415_v48, 16  ;;  %v9946_v31 = vld [vmem:[%s12212_s5 + $0x20] sm:$0xff]  }
 0x29a   : > { %v3436_v4 = vsel %vm10807_vm13, %v10641_v54, %v3435_v50  ;;  %v3458_v12 = vrot.slane %v3456_v42, 7  ;;  %v3073_v40 = vld [vmem:[#allocation2 + $0x34] sm:$0xf]  ;;  %v3114_v27 = vshrl.u32 %v3071_v11, 16  ;;  %v3117_v39 = vshll.u32 %v3071_v11, 16  ;;  %8452 = vmatpush3.bf16.msra.mxu0 %v9946_v31 }
 0x29b   : > { %v3448_v34 = vor.u32 %v3446_v56, %v3445_v37  ;;  %3586 = vrot.lane.b32.xlu0 %v9930_v7, %s10159_s3  ;;  %v3106_v48 = vor.u32 %v3104_v3, %v3103_v53  ;;  %v3471_v56 = vrot.slane %v3469_v10, 7  ;;  %v3251_v37 = vld [vmem:[#allocation2 + $0x10] sm:$0xf]  ;;  %v3094_v54 = vsel %vm10807_vm13, %v10649_v58, %v3093_v26  ;;  %v3253_v52 = vld [vmem:[#allocation2 + $0x1c] sm:$0xf] }
 0x29c   : > { %v3461_v28 = vor.u32 %v3459_v33, %v3458_v12  ;;  %v3116_v50 = vrot.slane %v3114_v27, 7  ;;  %v3127_v38 = vshrl.u32 %v3073_v40, 16  ;;  %v3130_v7 = vshll.u32 %v3073_v40, 16  ;;  %v3600_v33 = vld [vmem:[#allocation2 + $0x1c] sm:$0xf] }
 0x29d   : > { %v3449_v30 = vsel %vm10807_vm13, %v10643_v55, %v3448_v34  ;;  %v3107_v42 = vsel %vm10807_vm13, %v10651_v59, %v3106_v48  ;;  %v3474_v55 = vor.u32 %v3472_v23, %v3471_v56  ;;  %v3268_v58 = vshrl.u32 %v3251_v37, 16  ;;  %v3602_v31 = vld [vmem:[#allocation2 + $0x28] sm:$0xf]  ;;  %v3604_v40 = vld [vmem:[#allocation2 + $0x34] sm:$0xf] }
 0x29e   : > { %v8163_v57 = vcombine.low %v3436_v4, %v3449_v30  ;;  %v8143_v3 = vcombine.low %v3094_v54, %v3107_v42  ;;  %v3462_v10 = vsel %vm10807_vm13, %v10653_v60, %v3461_v28  ;;  %v3119_v34 = vor.u32 %v3117_v39, %v3116_v50 }
 0x29f   : > { %v3475_v53 = vsel %vm10807_vm13, %v10655_v61, %v3474_v55  ;;  %v3129_v11 = vrot.slane %v3127_v38, 7  ;;  %v3271_v59 = vshll.u32 %v3251_v37, 16  ;;  %v3282_v23 = vshrl.u32 %v3253_v52, 16  ;;  %v9948_v61 = vld [vmem:[%s12212_s5 + $0x68] sm:$0xff]  }
 0x2a0   : > { %3540 = vrot.lane.b32.xlu1 %v8163_v57, %s12232_s25  ;;  %v8164_v4 = vcombine.low %v3462_v10, %v3475_v53  ;;  %v3120_v57 = vsel %vm10807_vm13, %v10657_v62, %v3119_v34  ;;  %v3270_v26 = vrot.slane %v3268_v58, 4  ;;  %v3285_v12 = vshll.u32 %v3253_v52, 16  ;;  %v3606_v52 = vld [vmem:[#allocation2 + $0x40] sm:$0xf]  ;;  %8453 = vmatprep.subr.bf16.mxu0 %v9948_v61  ;;  %v2908_v61 = vld [vmem:[#allocation2 + $0x10] sm:$0xf] }
 0x2a1   : > { %v3132_v60 = vor.u32 %v3130_v7, %v3129_v11  ;;  %v3273_v27 = vrot.slane %v3271_v59, 5  ;;  %v3284_v30 = vrot.slane %v3282_v23, 4  ;;  %v3617_v48 = vshrl.u32 %v3600_v33, 16 }
 0x2a2   : > { %3542 = vrot.lane.b32.xlu0 %v8164_v4, %s12232_s25  ;;  %v3287_v56 = vrot.slane %v3285_v12, 5  ;;  %v3620_v39 = vshll.u32 %v3600_v33, 16  ;;  %v3631_v37 = vshrl.u32 %v3602_v31, 16  ;;  %v3634_v54 = vshll.u32 %v3602_v31, 16  ;;  %v9949_v31 = vld [vmem:[%s12212_s5 + $0x28] sm:$0xff]  }
 0x2a3   : > { %v3133_v62 = vsel %vm10807_vm13, %v10659_v63, %v3132_v60  ;;  %v3274_v28 = vor.u32 %v3273_v27, %v3270_v26  ;;  %v3619_v50 = vrot.slane %v3617_v48, 4  ;;  %v3645_v42 = vshrl.u32 %v3604_v40, 16  ;;  %v3610_v12 = vld [vmem:[#allocation2 + $0x58] sm:$0xf]  ;;  %8454 = vmatpush3.bf16.msra.mxu0 %v9949_v31 }
 0x2a4   : > { %3198 = vrot.lane.b32.xlu1 %v8143_v3, %s10159_s3  ;;  %v8144_v55 = vcombine.low %v3120_v57, %v3133_v62  ;;  %v3288_v38 = vor.u32 %v3287_v56, %v3284_v30  ;;  %v3622_v7 = vrot.slane %v3620_v39, 5  ;;  %v3633_v10 = vrot.slane %v3631_v37, 4  ;;  %v3608_v3 = vld [vmem:[#allocation2 + $0x4c] sm:$0xf] }
 0x2a5   : > { %v3275_v34 = vrot.slane %v3274_v28, 4  ;;  %v3636_v58 = vrot.slane %v3634_v54, 5  ;;  %v3647_v53 = vrot.slane %v3645_v42, 4  ;;  %v3648_v33 = vshll.u32 %v3604_v40, 16 }
 0x2a6   : > { %v3289_v11 = vrot.slane %v3288_v38, 4  ;;  %v3623_v59 = vor.u32 %v3622_v7, %v3619_v50  ;;  %v3659_v23 = vshrl.u32 %v3606_v52, 16  ;;  %v3662_v63 = vshll.u32 %v3606_v52, 16  ;;  %v3417_v52 = vld [vmem:[#allocation2 + $0x4c] sm:$0xf] }
 0x2a7   : > { %v3280_v4 = vsel %vm10821_vm14, %v3275_v34, %v10661_v0  ;;  %v3637_v57 = vor.u32 %v3636_v58, %v3633_v10  ;;  %v3650_v26 = vrot.slane %v3648_v33, 5  ;;  %v3673_v60 = vshrl.u32 %v3608_v3, 16  ;;  %v3419_v7 = vld [vmem:[#allocation2 + $0x58] sm:$0xf]  ;;  %v3255_v33 = vld [vmem:[#allocation2 + $0x28] sm:$0xf] }
 0x2a8   : > { %3200 = vrot.lane.b32.xlu1 %v8144_v55, %s10159_s3  ;;  %v3294_v40 = vsel %vm10821_vm14, %v3289_v11, %v10663_v1  ;;  %v3624_v27 = vrot.slane %v3623_v59, 4  ;;  %v3661_v30 = vrot.slane %v3659_v23, 4  ;;  %v3664_v48 = vrot.slane %v3662_v63, 5  ;;  %v9951_v23 = vld [vmem:[%s12212_s5 + $0x30] sm:$0xff]  }
 0x2a9   : > { %v8151_v56 = vcombine.low %v3280_v4, %v3294_v40  ;;  %v3638_v39 = vrot.slane %v3637_v57, 4  ;;  %v3651_v37 = vor.u32 %v3650_v26, %v3647_v53  ;;  %v3675_v54 = vrot.slane %v3673_v60, 4  ;;  %v3257_v40 = vld [vmem:[#allocation2 + $0x34] sm:$0xf] }
 0x2aa   : > { %v3629_v0 = vsel %vm10821_vm14, %v3624_v27, %v10666_v2  ;;  %v3665_v62 = vor.u32 %v3664_v48, %v3661_v30  ;;  %v3676_v28 = vshll.u32 %v3608_v3, 16  ;;  %v3687_v50 = vshrl.u32 %v3610_v12, 16  ;;  %v9950_v2 = vld [vmem:[%s12212_s5 + $0x70] sm:$0xff]  }
 0x2ab   : > { %3391 = vrot.lane.b32.xlu0 %v8151_v56, %s10158_s0  ;;  %v3643_v1 = vsel %vm10821_vm14, %v3638_v39, %v10711_v44  ;;  %v3652_v42 = vrot.slane %v3651_v37, 4  ;;  %v3690_v55 = vshll.u32 %v3610_v12, 16  ;;  %v2940_v38 = vshrl.u32 %v2908_v61, 16  ;;  %8455 = vmatprep.subr.bf16.mxu0 %v9950_v2 }
 0x2ac   : > { %v8171_v10 = vcombine.low %v3629_v0, %v3643_v1  ;;  %v3666_v34 = vrot.slane %v3665_v62, 4  ;;  %v3678_v58 = vrot.slane %v3676_v28, 5  ;;  %v3689_v53 = vrot.slane %v3687_v50, 4  ;;  %8456 = vmatpush3.bf16.msra.mxu0 %v9951_v23  ;;  %v3612_v50 = vld [vmem:[#allocation2 + $0x64] sm:$0xf] }
 0x2ad   : > { %v3657_v3 = vsel %vm10821_vm14, %v3652_v42, %v10713_v49  ;;  %v3692_v11 = vrot.slane %v3690_v55, 5  ;;  %v2942_v59 = vrot.slane %v2940_v38, 4  ;;  %v2943_v44 = vshll.u32 %v2908_v61, 16 }
 0x2ae   : > { %3744 = vst.msk [vmem:[#allocation4 + $0x10] sm:$0xff] %vm512_vm1, %v8171_v10  ;;  %v3671_v63 = vsel %vm10821_vm14, %v3666_v34, %v10715_v45  ;;  %v3679_v31 = vor.u32 %v3678_v58, %v3675_v54  ;;  %v3482_v4 = vshrl.u32 %v3417_v52, 16  ;;  %v3485_v57 = vshll.u32 %v3417_v52, 16  ;;  %v2910_v58 = vld [vmem:[#allocation2 + $0x1c] sm:$0xf] }
 0x2af   : > { %v8172_v26 = vcombine.low %v3657_v3, %v3671_v63  ;;  %v3693_v12 = vor.u32 %v3692_v11, %v3689_v53  ;;  %v2945_v49 = vrot.slane %v2943_v44, 5  ;;  %v3495_v60 = vshrl.u32 %v3419_v7, 16  ;;  %v3075_v11 = vld [vmem:[#allocation2 + $0x40] sm:$0xf]  ;;  %v9947_v63 = vld [vmem:[#allocation2 + $0x10] ss:$12 sps:$4 sm:$0xff]  }
 0x2b0   : > { %v3680_v27 = vrot.slane %v3679_v31, 4  ;;  %v3484_v30 = vrot.slane %v3482_v4, 7  ;;  %v3498_v48 = vshll.u32 %v3419_v7, 16  ;;  %v3296_v61 = vshrl.u32 %v3255_v33, 16  ;;  %3247 = vst.msk [vmem:[#allocation4 + $0x8] sm:$0xff] %vm512_vm1, %v9947_v63 }
 0x2b1   : > { %3745 = vst.msk [vmem:[#allocation4 + $0x28] sm:$0xff] %vm512_vm1, %v8172_v26  ;;  %v3694_v56 = vrot.slane %v3693_v12, 4  ;;  %v2946_v39 = vor.u32 %v2945_v49, %v2942_v59  ;;  %v3497_v37 = vrot.slane %v3495_v60, 7  ;;  %v3299_v45 = vshll.u32 %v3255_v33, 16  ;;  %v9933_v12 = vld [vmem:[#allocation2 + $0x34] ss:$12 sps:$4 sm:$0xff]  }
 0x2b2   : > { %v3685_v54 = vsel %vm10821_vm14, %v3680_v27, %v10717_v13  ;;  %v3487_v0 = vor.u32 %v3485_v57, %v3484_v30  ;;  %v3298_v62 = vrot.slane %v3296_v61, 4  ;;  %v3310_v28 = vshrl.u32 %v3257_v40, 16  ;;  %v2912_v13 = vld [vmem:[#allocation2 + $0x28] sm:$0xf] }
 0x2b3   : > { %v3699_v52 = vsel %vm10821_vm14, %v3694_v56, %v10719_v15  ;;  %v2947_v1 = vrot.slane %v2946_v39, 4  ;;  %v3500_v42 = vor.u32 %v3498_v48, %v3497_v37  ;;  %v3301_v55 = vrot.slane %v3299_v45, 5  ;;  %v3259_v56 = vld [vmem:[#allocation2 + $0x40] sm:$0xf]  ;;  %v9953_v39 = vld [vmem:[%s12212_s5 + $0x78] sm:$0xff]  }
 0x2b4   : > { %v8173_v38 = vcombine.low %v3685_v54, %v3699_v52  ;;  %v3488_v7 = vsel %vm10807_vm13, %v10727_v19, %v3487_v0  ;;  %v3312_v10 = vrot.slane %v3310_v28, 4  ;;  %v3313_v34 = vshll.u32 %v3257_v40, 16  ;;  %8457 = vmatprep.subr.bf16.mxu0 %v9953_v39 }
 0x2b5   : > { %v3750_v53 = vld [vmem:[#allocation4 + $0x10] sm:$0xff]  ;;  %v2952_v33 = vsel %vm10821_vm14, %v2947_v1, %v10725_v18  ;;  %v3501_v15 = vsel %vm10807_vm13, %v10729_v51, %v3500_v42  ;;  %v3302_v2 = vor.u32 %v3301_v55, %v3298_v62  ;;  %v3701_v3 = vshrl.u32 %v3612_v50, 16  ;;  %v9954_v62 = vld [vmem:[%s12212_s5 + $0x38] sm:$0xff]   ;;  %v3261_v1 = vld [vmem:[#allocation2 + $0x4c] sm:$0xf] }
 0x2b6   : > { %9019 = vmatprep.mubr.msk.bf16.mxu1 %vm512_vm1, %v3750_v53  ;;  %3746 = vst.msk [vmem:[#allocation4 + $0x40] sm:$0xff] %vm512_vm1, %v8173_v38  ;;  %v12275_v19 = vsel %vm10821_vm14, %v10721_v16, %v10723_v8  ;;  %v8165_v44 = vcombine.low %v3488_v7, %v3501_v15  ;;  %v3315_v23 = vrot.slane %v3313_v34, 5  ;;  %v3704_v18 = vshll.u32 %v3612_v50, 16  ;;  %v3077_v16 = vld [vmem:[#allocation2 + $0x4c] sm:$0xf]  ;;  %8458 = vmatpush3.bf16.msra.mxu0 %v9954_v62 }
 0x2b7   : > { %v8131_v59 = vcombine.low %v12275_v19, %v2952_v33  ;;  %v3303_v31 = vrot.slane %v3302_v2, 4  ;;  %v3703_v4 = vrot.slane %v3701_v3, 4  ;;  %v2954_v51 = vshrl.u32 %v2910_v58, 16  ;;  %v9952_v42 = vld [vmem:[#allocation2 + $0x28] ss:$12 sps:$4 sm:$0xff]  }
 0x2b8   : > { %v2957_v57 = vshll.u32 %v2910_v58, 16  ;;  %v3753_v26 = vld [vmem:[#allocation4 + $0x28] sm:$0xff]  ;;  %3544 = vrot.lane.b32.xlu0 %v8165_v44, %s12232_s25  ;;  %v3316_v49 = vor.u32 %v3315_v23, %v3312_v10  ;;  %v3706_v60 = vrot.slane %v3704_v18, 5  ;;  %v2968_v40 = vshrl.u32 %v2912_v13, 16  ;;  %3248 = vst.msk [vmem:[#allocation4 + $0x20] sm:$0xff] %vm512_vm1, %v9952_v42 }
 0x2b9   : > { %3049 = vrot.lane.b32.xlu1 %v8131_v59, %s12232_s25  ;;  %v2971_v27 = vshll.u32 %v2912_v13, 16  ;;  %9020 = vmatmul.mubr.msk.bf16.vlgmr.msra.gmra.mrb[4].mxu1 %vm512_vm1, %v3753_v26  ;;  %v3308_v8 = vsel %vm10821_vm14, %v3303_v31, %v10731_v22  ;;  %v2956_v30 = vrot.slane %v2954_v51, 4  ;;  %v3140_v61 = vshrl.u32 %v3075_v11, 16  ;;  %v9955_v15 = vld [vmem:[#allocation2 + $0x40] ss:$12 sps:$4 sm:$0xff]  }
 0x2ba   : > { %v2959_v48 = vrot.slane %v2957_v57, 5  ;;  %v3317_v37 = vrot.slane %v3316_v49, 4  ;;  %v3707_v45 = vor.u32 %v3706_v60, %v3703_v4  ;;  %v2970_v54 = vrot.slane %v2968_v40, 4  ;;  %v2914_v59 = vld [vmem:[#allocation2 + $0x34] sm:$0xf]  ;;  %3249 = vst.msk [vmem:[#allocation4 + $0x38] sm:$0xff] %vm512_vm1, %v9955_v15 }
 0x2bb   : > { %v2973_v0 = vrot.slane %v2971_v27, 5  ;;  %v3142_v50 = vrot.slane %v3140_v61, 7  ;;  %v3143_v52 = vshll.u32 %v3075_v11, 16  ;;  %v3153_v22 = vshrl.u32 %v3077_v16, 16  ;;  %v2916_v31 = vld [vmem:[#allocation2 + $0x40] sm:$0xf] }
 0x2bc   : > { %v2960_v28 = vor.u32 %v2959_v48, %v2956_v30  ;;  %v3322_v55 = vsel %vm10821_vm14, %v3317_v37, %v10733_v24  ;;  %v3708_v38 = vrot.slane %v3707_v45, 4  ;;  %v3156_v10 = vshll.u32 %v3077_v16, 16  ;;  %v12278_v4 = vld [vmem:[#allocation11_spill] sm:$0xff]  ;;  %v12279_v49 = vld [vmem:[#allocation12_spill] sm:$0xff] }
 0x2bd   : > { %2893 = vrot.lane.b32.xlu1 %v9933_v12, %s10158_s0  ;;  %v2974_v7 = vor.u32 %v2973_v0, %v2970_v54  ;;  %v3756_v34 = vld [vmem:[#allocation4 + $0x40] sm:$0xff]  ;;  %v8152_v58 = vcombine.low %v3308_v8, %v3322_v55  ;;  %v3145_v53 = vor.u32 %v3143_v52, %v3142_v50  ;;  %v3155_v33 = vrot.slane %v3153_v22, 7  ;;  %v3421_v27 = vld [vmem:[#allocation2 + $0x64] sm:$0xf]  ;;  %v3263_v61 = vld [vmem:[#allocation2 + $0x58] sm:$0xf] }
 0x2be   : > { %v2961_v13 = vrot.slane %v2960_v28, 4  ;;  %v12276_v2 = vmov 0.0|0.0   ;;  %9023 = vmatprep.mubr.msk.bf16.mxu1 %vm512_vm1, %v3756_v34  ;;  %v3713_v24 = vsel %vm10821_vm14, %v3708_v38, %v10741_v25  ;;  %v3324_v11 = vshrl.u32 %v3259_v56, 16  ;;  %v3265_v50 = vld [vmem:[#allocation2 + $0x64] sm:$0xf]  ;;  %v12280_v55 = vld [vmem:[#allocation13_spill] sm:$0xff] }
 0x2bf   : > { %9631 = vmatprep.subr.bf16.mxu0 %v12276_v2  ;;  %v2975_v3 = vrot.slane %v2974_v7, 4  ;;  %v3327_v19 = vshll.u32 %v3259_v56, 16  ;;  %3393 = vrot.lane.b32.xlu0 %v8152_v58, %s10158_s0  ;;  %v12277_v44 = vsel %vm10821_vm14, %v10735_v32, %v10737_v14  ;;  %v3146_v25 = vsel %vm10807_vm13, %v10746_v9, %v3145_v53  ;;  %v9956_v14 = vld [vmem:[#allocation2 + $0x58] ss:$12 sps:$4 sm:$0xff]   ;;  %v2918_v58 = vld [vmem:[#allocation2 + $0x4c] sm:$0xf] }
 0x2c0   : > { %v8174_v23 = vcombine.low %v3713_v24, %v12277_v44  ;;  %v2966_v18 = vsel %vm10821_vm14, %v2961_v13, %v10744_v35  ;;  %v3158_v63 = vor.u32 %v3156_v10, %v3155_v33  ;;  %v3326_v57 = vrot.slane %v3324_v11, 4  ;;  %v9934_v35 = vld [vmem:[#allocation2 + $0x4c] ss:$12 sps:$4 sm:$0xff]   ;;  %3250 = vst.msk [vmem:[#allocation4 + $0x50] sm:$0xff] %vm512_vm1, %v9956_v14  ;;  %v12281_v44 = vld [vmem:[#allocation14_spill] sm:$0xff] }
 0x2c1   : > { %v2980_v51 = vsel %vm10821_vm14, %v2975_v3, %v12278_v4  ;;  %v3329_v26 = vrot.slane %v3327_v19, 5  ;;  %v3338_v32 = vshrl.u32 %v3261_v1, 16  ;;  %v3341_v60 = vshll.u32 %v3261_v1, 16 }
 0x2c2   : > { %3747 = vst.msk [vmem:[#allocation4 + $0x58] sm:$0xff] %vm512_vm1, %v8174_v23  ;;  %v8132_v12 = vcombine.low %v2966_v18, %v2980_v51  ;;  %v3159_v9 = vsel %vm10807_vm13, %v12279_v49, %v3158_v63  ;;  %v2982_v40 = vshrl.u32 %v2914_v59, 16  ;;  %v2985_v48 = vshll.u32 %v2914_v59, 16  ;;  %v2920_v63 = vld [vmem:[#allocation2 + $0x58] sm:$0xf]  ;;  %v12285_v49 = vld [vmem:[#allocation16_spill] sm:$0xff] }
 0x2c3   : > { %v8145_v16 = vcombine.low %v3146_v25, %v3159_v9  ;;  %v3330_v8 = vor.u32 %v3329_v26, %v3326_v57  ;;  %v3340_v30 = vrot.slane %v3338_v32, 4  ;;  %3588 = vrot.lane.b32.xlu0 %v9934_v35, %s10159_s3  ;;  %v3343_v56 = vrot.slane %v3341_v60, 5  ;;  %v12282_v51 = vld [vmem:[#allocation15_spill] sm:$0xff]  ;;  %v12283_v26 = vld [vmem:[#allocation17_spill] sm:$0xff] }
 0x2c4   : > { %3051 = vrot.lane.b32.xlu1 %v8132_v12, %s12232_s25  ;;  %v2984_v39 = vrot.slane %v2982_v40, 4  ;;  %v2996_v37 = vshrl.u32 %v2916_v31, 16  ;;  %v2999_v45 = vshll.u32 %v2916_v31, 16  ;;  %v2987_v0 = vrot.slane %v2985_v48, 5  ;;  %v3079_v12 = vld [vmem:[#allocation2 + $0x58] sm:$0xf] }
 0x2c5   : > { %v3331_v54 = vrot.slane %v3330_v8, 4  ;;  %v3508_v62 = vshrl.u32 %v3421_v27, 16  ;;  %v3511_v28 = vshll.u32 %v3421_v27, 16  ;;  %v3344_v52 = vor.u32 %v3343_v56, %v3340_v30  ;;  %v3081_v8 = vld [vmem:[#allocation2 + $0x64] sm:$0xf] }
 0x2c6   : > { %v2998_v22 = vrot.slane %v2996_v37, 4  ;;  %v3001_v1 = vrot.slane %v2999_v45, 5  ;;  %v3352_v42 = vshrl.u32 %v3263_v61, 16  ;;  %v2988_v7 = vor.u32 %v2987_v0, %v2984_v39  ;;  %v2726_v0 = vld [vmem:[#allocation2 + $0x28] sm:$0xf] }
 0x2c7   : > { %v3336_v38 = vsel %vm10821_vm14, %v3331_v54, %v12280_v55  ;;  %v3510_v10 = vrot.slane %v3508_v62, 7  ;;  %v3355_v34 = vshll.u32 %v3263_v61, 16  ;;  %v3345_v13 = vrot.slane %v3344_v52, 4  ;;  %v12287_v62 = vld [vmem:[#allocation18_spill] sm:$0xff]  ;;  %v2724_v52 = vld [vmem:[#allocation2 + $0x1c] sm:$0xf] }
 0x2c8   : > { %3202 = vrot.lane.b32.xlu1 %v8145_v16, %s10159_s3  ;;  %v3002_v53 = vor.u32 %v3001_v1, %v2998_v22  ;;  %v3354_v33 = vrot.slane %v3352_v42, 4  ;;  %v3366_v15 = vshrl.u32 %v3265_v50, 16  ;;  %v2989_v3 = vrot.slane %v2988_v7, 4 }
 0x2c9   : > { %v3759_v24 = vld [vmem:[#allocation4 + $0x58] sm:$0xff]  ;;  %v3513_v11 = vor.u32 %v3511_v28, %v3510_v10  ;;  %v3357_v19 = vrot.slane %v3355_v34, 5  ;;  %v3369_v59 = vshll.u32 %v3265_v50, 16  ;;  %v3350_v23 = vsel %vm10821_vm14, %v3345_v13, %v12281_v44  ;;  %v12288_v13 = vld [vmem:[#allocation19_spill] sm:$0xff] }
 0x2ca   : > { %9024 = vmatmul.mubr.msk.bf16.gmra.mrb[8].mxu1 %vm512_vm1, %v3759_v24  ;;  %v3003_v18 = vrot.slane %v3002_v53, 4  ;;  %v3368_v25 = vrot.slane %v3366_v15, 4  ;;  %v3010_v31 = vshrl.u32 %v2918_v58, 16  ;;  %v8153_v4 = vcombine.low %v3336_v38, %v3350_v23  ;;  %v9935_v38 = vld [vmem:[#allocation2 + $0x4c] ss:$12 sps:$4 sm:$0xff]  }
 0x2cb   : > { %v2994_v57 = vsel %vm10821_vm14, %v2989_v3, %v12282_v51  ;;  %v3514_v32 = vsel %vm10807_vm13, %v12283_v26, %v3513_v11  ;;  %v3358_v14 = vor.u32 %v3357_v19, %v3354_v33  ;;  %v12284_v35 = vmov 0.0   ;;  %v2722_v3 = vld [vmem:[#allocation2 + $0x10] sm:$0xf] }
 0x2cc   : > { %9043 = vmatprep.mubr.msk.f32.mxu1 %vm10155_vm0, %v12284_v35  ;;  %v3008_v9 = vsel %vm10821_vm14, %v3003_v18, %v12285_v49  ;;  %v12286_v60 = vsel %vm10807_vm13, %v10765_v43, %v10849_v29  ;;  %v3371_v27 = vrot.slane %v3369_v59, 5  ;;  %v3012_v16 = vrot.slane %v3010_v31, 4  ;;  %3395 = vrot.lane.b32.xlu0 %v8153_v4, %s10158_s0  ;;  %v12289_v18 = vld [vmem:[#allocation20_spill] sm:$0xff] }
 0x2cd   : > { %v8166_v40 = vcombine.low %v3514_v32, %v12286_v60  ;;  %v8133_v30 = vcombine.low %v2994_v57, %v3008_v9  ;;  %v3359_v48 = vrot.slane %v3358_v14, 4  ;;  %v3013_v61 = vshll.u32 %v2918_v58, 16  ;;  %v2728_v32 = vld [vmem:[#allocation2 + $0x34] sm:$0xf]  ;;  %v2730_v9 = vld [vmem:[#allocation2 + $0x40] sm:$0xf] }
 0x2ce   : > { %v3024_v56 = vshrl.u32 %v2920_v63, 16  ;;  %v3372_v39 = vor.u32 %v3371_v27, %v3368_v25  ;;  %v3027_v37 = vshll.u32 %v2920_v63, 16  ;;  %v3166_v45 = vshrl.u32 %v3079_v12, 16 }
 0x2cf   : > { %v3169_v54 = vshll.u32 %v3079_v12, 16  ;;  %3053 = vrot.lane.b32.xlu1 %v8133_v30, %s12232_s25  ;;  %v3364_v43 = vsel %vm10821_vm14, %v3359_v48, %v12287_v62  ;;  %v3015_v29 = vrot.slane %v3013_v61, 5  ;;  %v3179_v50 = vshrl.u32 %v3081_v8, 16  ;;  %v9936_v12 = vld [vmem:[#allocation2 + $0x64] ss:$12 sps:$4 sm:$0xff]  }
 0x2d0   : > { %v3026_v28 = vrot.slane %v3024_v56, 4  ;;  %v3373_v22 = vrot.slane %v3372_v39, 4  ;;  %v3029_v1 = vrot.slane %v3027_v37, 5  ;;  %v3168_v42 = vrot.slane %v3166_v45, 7  ;;  %3546 = vrot.lane.b32.xlu0 %v8166_v40, %s12232_s25  ;;  %v2732_v48 = vld [vmem:[#allocation2 + $0x4c] sm:$0xf] }
 0x2d1   : > { %v3182_v55 = vshll.u32 %v3081_v8, 16  ;;  %v3016_v7 = vor.u32 %v3015_v29, %v3012_v16  ;;  %v3181_v10 = vrot.slane %v3179_v50, 7  ;;  %v2782_v34 = vshrl.u32 %v2726_v0, 16  ;;  %v2734_v61 = vld [vmem:[#allocation2 + $0x58] sm:$0xf]  ;;  %v12294_v50 = vld [vmem:[#allocation22_spill] sm:$0xff] }
 0x2d2   : > { %v2785_v58 = vshll.u32 %v2726_v0, 16  ;;  %v3378_v53 = vsel %vm10821_vm14, %v3373_v22, %v12288_v13  ;;  %v3030_v33 = vor.u32 %v3029_v1, %v3026_v28  ;;  %v3171_v15 = vor.u32 %v3169_v54, %v3168_v42  ;;  %v12295_v42 = vld [vmem:[#allocation21_spill] sm:$0xff] }
 0x2d3   : > { %v2769_v24 = vshrl.u32 %v2724_v52, 16  ;;  %2895 = vrot.lane.b32.xlu1 %v9935_v38, %s10158_s0  ;;  %v8154_v11 = vcombine.low %v3364_v43, %v3378_v53  ;;  %v3017_v19 = vrot.slane %v3016_v7, 4  ;;  %v3184_v59 = vor.u32 %v3182_v55, %v3181_v10  ;;  %v12296_v55 = vld [vmem:[#allocation25_spill] sm:$0xff]  ;;  %v12298_v53 = vld [vmem:[#allocation23_spill] sm:$0xff] }
 0x2d4   : > { %v2784_v44 = vrot.slane %v2782_v34, 7  ;;  %v3031_v23 = vrot.slane %v3030_v33, 4  ;;  %v3172_v25 = vsel %vm10807_vm13, %v12289_v18, %v3171_v15  ;;  %v2772_v31 = vshll.u32 %v2724_v52, 16 }
 0x2d5   : > { %v2771_v63 = vrot.slane %v2769_v24, 7  ;;  %3397 = vrot.lane.b32.xlu0 %v8154_v11, %s10158_s0  ;;  %v3022_v4 = vsel %vm10821_vm14, %v3017_v19, %v10812_v36  ;;  %v3185_v51 = vsel %vm10807_vm13, %v10798_v20, %v3184_v59  ;;  %v2756_v26 = vshrl.u32 %v2722_v3, 16 }
 0x2d6   : > { %v2787_v57 = vor.u32 %v2785_v58, %v2784_v44  ;;  %v3036_v14 = vsel %vm10821_vm14, %v3031_v23, %v10814_v6  ;;  %v12290_v60 = vshrl.u32 %v10803_v46, 16  ;;  %v12291_v27 = vshrl.u32 %v10831_v47, 16  ;;  %v12292_v46 = vld [vmem:[#allocation24_spill] sm:$0xff] }
 0x2d7   : > { %v2774_v49 = vor.u32 %v2772_v31, %v2771_v63  ;;  %v8134_v16 = vcombine.low %v3022_v4, %v3036_v14  ;;  %v2758_v8 = vrot.slane %v2756_v26, 7  ;;  %v2759_v30 = vshll.u32 %v2722_v3, 16 }
 0x2d8   : > { %v8120_v40 = vrot.slane %v12290_v60, 11  ;;  %v8121_v36 = vrot.slane %v12291_v27, 11  ;;  %v2788_v20 = vsel %vm10807_vm13, %v10825_v21, %v2787_v57  ;;  %v8146_v56 = vcombine.low %v3172_v25, %v3185_v51 }
 0x2d9   : > { %v2775_v6 = vsel %vm10807_vm13, %v10816_v17, %v2774_v49  ;;  %v2795_v39 = vshrl.u32 %v2728_v32, 16  ;;  %v12293_v37 = vshrl.u32 %v12292_v46, 16  ;;  %3055 = vrot.lane.b32.xlu1 %v8134_v16, %s12232_s25  ;;  %3590 = vrot.lane.b32.xlu0 %v9936_v12, %s10159_s3  ;;  %v2761_v54 = vor.u32 %v2759_v30, %v2758_v8 }
 0x2da   : > { %v8124_v47 = vcombine.low %v2775_v6, %v2788_v20  ;;  %v2798_v21 = vshll.u32 %v2728_v32, 16  ;;  %v2808_v0 = vshrl.u32 %v2730_v9, 16  ;;  %v2811_v43 = vshll.u32 %v2730_v9, 16 }
 0x2db   : > { %v8122_v45 = vrot.slane %v12293_v37, 11  ;;  %v2797_v62 = vrot.slane %v2795_v39, 7  ;;  %v2821_v29 = vshrl.u32 %v2732_v48, 16  ;;  %v2834_v28 = vshrl.u32 %v2734_v61, 16 }
 0x2dc   : > { %2858 = vst.msk [vmem:[#allocation4 + $0x18] sm:$0xff] %vm512_vm1, %v8124_v47  ;;  %v2762_v17 = vsel %vm10807_vm13, %v12294_v50, %v2761_v54  ;;  %v2810_v52 = vrot.slane %v2808_v0, 7  ;;  %v2824_v22 = vshll.u32 %v2732_v48, 16  ;;  %v2837_v1 = vshll.u32 %v2734_v61, 16 }
 0x2dd   : > { %v12297_v38 = vsel %vm10807_vm13, %v12295_v42, %v12296_v55  ;;  %v2800_v10 = vor.u32 %v2798_v21, %v2797_v62  ;;  %v2823_v34 = vrot.slane %v2821_v29, 7  ;;  %v2836_v58 = vrot.slane %v2834_v28, 7  ;;  %3204 = vrot.lane.b32.xlu1 %v8146_v56, %s10159_s3 }
 0x2de   : > { %v8123_v7 = vcombine.low %v12297_v38, %v2762_v17  ;;  %v2813_v13 = vor.u32 %v2811_v43, %v2810_v52  ;;  %v4054_v52 = vld [vmem:[%s12216_s9] sm:$0xff]  ;;  %v4057_v38 = vld [vmem:[%s12216_s9 + $0x18] sm:$0xff] }
 0x2df   : > { %v2801_v33 = vsel %vm10807_vm13, %v12298_v53, %v2800_v10  ;;  %v2826_v15 = vor.u32 %v2824_v22, %v2823_v34  ;;  %v2839_v24 = vor.u32 %v2837_v1, %v2836_v58  ;;  %v4055_v22 = vld [vmem:[%s12216_s9 + $0x8] sm:$0xff]  ;;  %v4056_v1 = vld [vmem:[%s12216_s9 + $0x10] sm:$0xff]  ;;  %v4121_v42 = vand.u32 4294901760, %v4054_v52  ;;  %v4058_v34 = vld [vmem:[%s12216_s9 + $0x20] sm:$0xff] }
 0x2e0   : > { %2857 = vst.msk [vmem:[#allocation4] sm:$0xff] %vm512_vm1, %v8123_v7  ;;  %v2814_v3 = vsel %vm10807_vm13, %v8120_v40, %v2813_v13  ;;  %v4124_v55 = vand.u32 4294901760, %v4055_v22  ;;  %v4127_v7 = vand.u32 4294901760, %v4056_v1  ;;  %v4130_v10 = vand.u32 4294901760, %v4057_v38  ;;  %v4059_v58 = vld [vmem:[%s12216_s9 + $0x28] sm:$0xff] }
 0x2e1   : > { %v8125_v11 = vcombine.low %v2801_v33, %v2814_v3  ;;  %v2827_v19 = vsel %vm10807_vm13, %v8121_v36, %v2826_v15  ;;  %v2840_v59 = vsel %vm10807_vm13, %v8122_v45, %v2839_v24  ;;  %v4133_v33 = vand.u32 4294901760, %v4058_v34  ;;  %v4060_v24 = vld [vmem:[%s12216_s9 + $0x30] sm:$0xff]  ;;  %v4061_v3 = vld [vmem:[%s12216_s9 + $0x38] sm:$0xff] }
 0x2e2   : > { %v8126_v44 = vcombine.low %v2827_v19, %v2840_v59  ;;  %v11153_v13 = vpack.c.bf16 %v4124_v55, %v4121_v42  ;;  %v11156_v53 = vpack.c.bf16 %v4130_v10, %v4127_v7  ;;  %v4136_v15 = vand.u32 4294901760, %v4059_v58 }
 0x2e3   : > { %2859 = vst.msk [vmem:[#allocation4 + $0x30] sm:$0xff] %vm512_vm1, %v8125_v11  ;;  %v4139_v19 = vand.u32 4294901760, %v4060_v24  ;;  %v4142_v59 = vand.u32 4294901760, %v4061_v3 }
 0x2e4   : > { %2860 = vst.msk [vmem:[#allocation4 + $0x48] sm:$0xff] %vm512_vm1, %v8126_v44  ;;  %9561 = vmatpush3.bf16.msra.mxu1 %v11153_v13  ;;  %v11168_v11 = vpack.c.bf16 %v4136_v15, %v4133_v33  ;;  %v4205_v44 = vsub.f32 %v4054_v52, %v4121_v42 }
 0x2e5   : > { %9562 = vmatprep.subr.bf16.mxu1 %v12276_v2 }
 0x2e8   : > { %9564 = vmatpush3.bf16.msra.mxu1 %v11156_v53 }
 0x2e9   : > { %9565 = vmatprep.subr.bf16.mxu1 %v12276_v2 }
 0x2ec   : > { %9567 = vmatpush3.bf16.msra.mxu1 %v11168_v11 }
 0x2ed   : > { %9568 = vmatprep.subr.bf16.mxu1 %v12276_v2 }
 0x305   : > { %v2890_v23 = vpop.permute.xlu0 %2889 }
 0x306   : > { %2902 = vst.msk [vmem:[#allocation4] sm:$0xff] %vm2901_vm15, %v2890_v23  ;;  %v4212_v23 = vsub.f32 %v4055_v22, %v4124_v55 }
 0x307   : > { %v2892_v18 = vpop.permute.xlu1 %2891 }
 0x308   : > { %2903 = vst.msk [vmem:[#allocation4 + $0x18] sm:$0xff] %vm2901_vm15, %v2892_v18  ;;  %v11175_v18 = vpack.c.bf16 %v4142_v59, %v4139_v19  ;;  %v11189_v22 = vpack.c.bf16 %v4212_v23, %v4205_v44 }
 0x309   : > { %v3585_v25 = vpop.permute.xlu0 %3584 }
 0x30a   : > { %9570 = vmatpush3.bf16.msra.mxu1 %v11175_v18 }
 0x30b   : > { %9571 = vmatprep.subr.bf16.mxu1 %v12276_v2 }
 0x30d   : > { %v3587_v63 = vpop.permute.xlu0 %3586 }
 0x312   : > { %v3541_v4 = vpop.permute.xlu1 %3540 }
 0x314   : > { %v3543_v31 = vpop.permute.xlu0 %3542 }
 0x316   : > { %v3199_v57 = vpop.permute.xlu1 %3198 }
 0x31a   : > { %v3201_v26 = vpop.permute.xlu1 %3200 }
 0x31d   : > { %v3392_v51 = vpop.permute.xlu0 %3391 }
 0x31e   : > { %3403 = vst.msk [vmem:[#allocation4 + $0x8] sm:$0xff] %vm2901_vm15, %v3392_v51 }
 0x31f   : > { %3552 = vst.msk [vmem:[#allocation4 + $0x8] sm:$0xff] %vm3061_vm2, %v3541_v4  ;;  %v4226_v4 = vsub.f32 %v4057_v38, %v4130_v10 }
 0x320   : > { %3596 = vst.msk [vmem:[#allocation4 + $0x8] sm:$0xff] %vm3210_vm3, %v3585_v25  ;;  %v4206_v25 = vand.u32 4294901760, %v4205_v44 }
 0x322   : > { %v4207_v51 = vsub.f32 %v4205_v44, %v4206_v25 }
 0x327   : > { %v3749_v32 = vld [vmem:[#allocation4 + $0x8] sm:$0xff] }
 0x328   : > { %3954 = vmatprep.mubr.bf16.mxu0 %v3749_v32  ;;  %v4227_v32 = vand.u32 4294901760, %v4226_v4 }
 0x32a   : > { %v3545_v12 = vpop.permute.xlu0 %3544 }
 0x32b   : > { %v3050_v14 = vpop.permute.xlu1 %3049 }
 0x32c   : > { %3062 = vst.msk [vmem:[#allocation4] sm:$0xff] %vm3061_vm2, %v3050_v14  ;;  %v4208_v14 = vand.u32 4294901760, %v4207_v51 }
 0x32d   : > { %3211 = vst.msk [vmem:[#allocation4] sm:$0xff] %vm3210_vm3, %v3199_v57 }
 0x32f   : > { %v2894_v49 = vpop.permute.xlu1 %2893 }
 0x330   : > { %2904 = vst.msk [vmem:[#allocation4 + $0x30] sm:$0xff] %vm2901_vm15, %v2894_v49 }
 0x331   : > { %v3394_v9 = vpop.permute.xlu0 %3393 }
 0x332   : > { %3404 = vst.msk [vmem:[#allocation4 + $0x20] sm:$0xff] %vm2901_vm15, %v3394_v9  ;;  %v4228_v9 = vsub.f32 %v4226_v4, %v4227_v32 }
 0x333   : > { %3553 = vst.msk [vmem:[#allocation4 + $0x20] sm:$0xff] %vm3061_vm2, %v3543_v31  ;;  %v4219_v31 = vsub.f32 %v4056_v1, %v4127_v7 }
 0x334   : > { %v3748_v60 = vld [vmem:[#allocation4] sm:$0xff]  ;;  %3597 = vst.msk [vmem:[#allocation4 + $0x20] sm:$0xff] %vm3210_vm3, %v3587_v63  ;;  %v4213_v63 = vand.u32 4294901760, %v4212_v23 }
 0x335   : > { %3955 = vmatmul.mubr.bf16.vlgmr.msra.gmra.mrb[4].mxu0 %v3748_v60  ;;  %v3589_v27 = vpop.permute.xlu0 %3588  ;;  %v4233_v60 = vsub.f32 %v4058_v34, %v4133_v33  ;;  %v11193_v38 = vpack.c.bf16 %v4226_v4, %v4219_v31 }
 0x336   : > { %v3052_v40 = vpop.permute.xlu1 %3051  ;;  %9633 = vmatpush3.bf16.msra.mxu0 %v11153_v13  ;;  %v4214_v57 = vsub.f32 %v4212_v23, %v4213_v63  ;;  %v11199_v34 = vpack.c.bf16 %v4213_v63, %v4206_v25 }
 0x337   : > { %3063 = vst.msk [vmem:[#allocation4 + $0x18] sm:$0xff] %vm3061_vm2, %v3052_v40  ;;  %9634 = vmatprep.subr.bf16.mxu0 %v12276_v2 }
 0x338   : > { %3212 = vst.msk [vmem:[#allocation4 + $0x18] sm:$0xff] %vm3210_vm3, %v3201_v26  ;;  %v4220_v26 = vand.u32 4294901760, %v4219_v31 }
 0x33a   : > { %v3203_v36 = vpop.permute.xlu1 %3202  ;;  %9636 = vmatpush3.bf16.msra.mxu0 %v11156_v53  ;;  %v4221_v49 = vsub.f32 %v4219_v31, %v4220_v26 }
 0x33b   : > { %v3752_v16 = vld [vmem:[#allocation4 + $0x20] sm:$0xff]  ;;  %9637 = vmatprep.subr.bf16.mxu0 %v12276_v2 }
 0x33c   : > { %3962 = vmatprep.mubr.bf16.mxu0 %v3752_v16  ;;  %v4229_v16 = vand.u32 4294901760, %v4228_v9 }
 0x33e   : > { %v3396_v20 = vpop.permute.xlu0 %3395  ;;  %9639 = vmatpush3.bf16.msra.mxu0 %v11168_v11 }
 0x33f   : > { %v3751_v8 = vld [vmem:[#allocation4 + $0x18] sm:$0xff]  ;;  %3405 = vst.msk [vmem:[#allocation4 + $0x38] sm:$0xff] %vm2901_vm15, %v3396_v20  ;;  %9640 = vmatprep.subr.bf16.mxu0 %v12276_v2  ;;  %v4234_v20 = vand.u32 4294901760, %v4233_v60 }
 0x340   : > { %3963 = vmatmul.mubr.bf16.gmra.mrb[8].mxu0 %v3751_v8  ;;  %3554 = vst.msk [vmem:[#allocation4 + $0x38] sm:$0xff] %vm3061_vm2, %v3545_v12  ;;  %v4215_v12 = vand.u32 4294901760, %v4214_v57 }
 0x341   : > { %v3054_v30 = vpop.permute.xlu1 %3053  ;;  %3598 = vst.msk [vmem:[#allocation4 + $0x38] sm:$0xff] %vm3210_vm3, %v3589_v27  ;;  %v4240_v27 = vsub.f32 %v4059_v58, %v4136_v15  ;;  %v11201_v58 = vpack.c.bf16 %v4227_v32, %v4220_v26 }
 0x342   : > { %3064 = vst.msk [vmem:[#allocation4 + $0x30] sm:$0xff] %vm3061_vm2, %v3054_v30  ;;  %v3547_v48 = vpop.permute.xlu0 %3546  ;;  %9642 = vmatpush3.bf16.msra.mxu0 %v11175_v18  ;;  %v11183_v40 = vpack.c.bf16 %v4215_v12, %v4208_v14 }
 0x343   : > { %3213 = vst.msk [vmem:[#allocation4 + $0x30] sm:$0xff] %vm3210_vm3, %v3203_v36  ;;  %9643 = vmatprep.subr.bf16.mxu0 %v12276_v2  ;;  %v4222_v36 = vand.u32 4294901760, %v4221_v49  ;;  %v4241_v8 = vand.u32 4294901760, %v4240_v27  ;;  %v11195_v7 = vpack.c.bf16 %v4240_v27, %v4233_v60 }
 0x345   : > { %v2896_v61 = vpop.permute.xlu1 %2895  ;;  %v11185_v30 = vpack.c.bf16 %v4229_v16, %v4222_v36  ;;  %v11203_v33 = vpack.c.bf16 %v4241_v8, %v4234_v20 }
 0x346   : > { %2905 = vst.msk [vmem:[#allocation4 + $0x48] sm:$0xff] %vm2901_vm15, %v2896_v61  ;;  %v4247_v61 = vsub.f32 %v4060_v24, %v4139_v19  ;;  %v11208_v24 = vld [vmem:[%s12213_s6] ss:$0 sm:$0xff] }
 0x347   : > { %v3398_v56 = vpop.permute.xlu0 %3397 }
 0x348   : > { %3406 = vst.msk [vmem:[#allocation4 + $0x50] sm:$0xff] %vm2901_vm15, %v3398_v56  ;;  %v3755_v6 = vld [vmem:[#allocation4 + $0x38] sm:$0xff]  ;;  %v4254_v56 = vsub.f32 %v4061_v3, %v4142_v59 }
 0x349   : > { %3555 = vst.msk [vmem:[#allocation4 + $0x50] sm:$0xff] %vm3061_vm2, %v3547_v48  ;;  %3970 = vmatprep.mubr.bf16.mxu0 %v3755_v6  ;;  %v4235_v48 = vsub.f32 %v4233_v60, %v4234_v20  ;;  %v4242_v6 = vsub.f32 %v4240_v27, %v4241_v8 }
 0x34a   : > { %v3754_v39 = vld [vmem:[#allocation4 + $0x30] sm:$0xff]  ;;  %v11197_v10 = vpack.c.bf16 %v4254_v56, %v4247_v61 }
 0x34b   : > { %v3056_v46 = vpop.permute.xlu1 %3055  ;;  %v3591_v37 = vpop.permute.xlu0 %3590  ;;  %3971 = vmatmul.mubr.bf16.gmra.mrb[12].mxu0 %v3754_v39  ;;  %v4236_v39 = vand.u32 4294901760, %v4235_v48 }
 0x34c   : > { %3065 = vst.msk [vmem:[#allocation4 + $0x48] sm:$0xff] %vm3061_vm2, %v3056_v46  ;;  %v4248_v46 = vand.u32 4294901760, %v4247_v61 }
 0x34d   : > { %3599 = vst.msk [vmem:[#allocation4 + $0x50] sm:$0xff] %vm3210_vm3, %v3591_v37  ;;  %v4255_v37 = vand.u32 4294901760, %v4254_v56 }
 0x34f   : > { %v3205_v45 = vpop.permute.xlu1 %3204  ;;  %v11210_v44 = vpack.c.bf16 %v4255_v37, %v4248_v46 }
 0x350   : > { %3214 = vst.msk [vmem:[#allocation4 + $0x48] sm:$0xff] %vm3210_vm3, %v3205_v45  ;;  %v4243_v45 = vand.u32 4294901760, %v4242_v6 }
 0x352   : > { %v11187_v52 = vpack.c.bf16 %v4243_v45, %v4236_v39 }
 0x354   : > { %v3758_v47 = vld [vmem:[#allocation4 + $0x50] sm:$0xff] }
 0x355   : > { %3978 = vmatprep.mubr.bf16.mxu0 %v3758_v47  ;;  %v4249_v47 = vsub.f32 %v4247_v61, %v4248_v46 }
 0x357   : > { %v3757_v54 = vld [vmem:[#allocation4 + $0x48] sm:$0xff]  ;;  %v4250_v1 = vand.u32 4294901760, %v4249_v47 }
 0x358   : > { %3979 = vmatmul.mubr.bf16.gmra.mrb[16].mxu0 %v3757_v54  ;;  %v4256_v54 = vsub.f32 %v4254_v56, %v4255_v37 }
 0x359   : > { %9157 = vmatprep.mubr.msk.f32.mxu0 %vm10155_vm0, %v12284_v35 }
 0x35a   : > { %v4257_v42 = vand.u32 4294901760, %v4256_v54 }
 0x35c   : > { %v11191_v55 = vpack.c.bf16 %v4257_v42, %v4250_v1 }
 0x38c   : > { %v11119_v21 = vpop.f32.mrb[4].mxu1 }
 0x38d   : > { %v11121_v0 = vpop.f32.mrb[5].mxu1 }
 0x38e   : > { %v11123_v62 = vpop.f32.mrb[6].mxu1 }
 0x38f   : > { %v11125_v43 = vpop.f32.mrb[7].mxu1 }
 0x39d   : > { %v11127_v29 = vpop.f32.mrb[8].mxu1 }
 0x39e   : > { %v11129_v28 = vpop.f32.mrb[9].mxu1 }
 0x39f   : > { %v11131_v50 = vpop.f32.mrb[10].mxu1 }
 0x3a0   : > { %v11133_v17 = vpop.f32.mrb[11].mxu1 }
 0x408   : > { %v8459_v15 = vpop.f32.mrb[4].mxu0 }
 0x409   : > { %v8460_v3 = vpop.f32.mrb[5].mxu0 }
 0x40a   : > { %v8461_v19 = vadd.f32 %v8460_v3, %v8459_v15  ;;  %v8462_v59 = vpop.f32.mrb[6].mxu0 }
 0x40b   : > { %v8463_v23 = vpop.f32.mrb[7].mxu0 }
 0x40c   : > { %v3957_v31 = vadd.f32 %v8461_v19, %v11208_v24  ;;  %v8464_v25 = vadd.f32 %v8463_v23, %v8462_v59 }
 0x40e   : > { %v11214_v63 = vadd.f32 %v11121_v0, %v3957_v31  ;;  %v3960_v4 = vadd.f32 %v8464_v25, %v11208_v24 }
 0x410   : > { %v11218_v51 = vadd.f32 %v11125_v43, %v3960_v4  ;;  %v4067_v37 = vsel %vm4066_vm5, %v11214_v63, 0.0 }
 0x412   : > { %v4089_v8 = vmul.f32 %v11218_v51, %v11218_v51  ;;  %v4068_v6 = vsel %vm4066_vm5, %v11218_v51, 0.0 }
 0x413   : > { %v8465_v57 = vpop.f32.mrb[8].mxu0  ;;  %v4069_v54 = vadd.f32 %v4068_v6, %v4067_v37 }
 0x414   : > { %v8466_v26 = vpop.f32.mrb[9].mxu0  ;;  %v4097_v45 = vsel %vm4066_vm5, %v4089_v8, 0.0 }
 0x415   : > { %v8467_v32 = vadd.f32 %v8466_v26, %v8465_v57  ;;  %v8468_v14 = vpop.f32.mrb[10].mxu0 }
 0x416   : > { %v8469_v12 = vpop.f32.mrb[11].mxu0 }
 0x417   : > { %v3965_v49 = vadd.f32 %v8467_v32, %v11208_v24  ;;  %v8470_v9 = vadd.f32 %v8469_v12, %v8468_v14 }
 0x419   : > { %v11222_v60 = vadd.f32 %v11119_v21, %v3965_v49  ;;  %v3968_v27 = vadd.f32 %v8470_v9, %v11208_v24  ;;  %v4088_v21 = vmul.f32 %v11214_v63, %v11214_v63 }
 0x41b   : > { %v11226_v0 = vadd.f32 %v11123_v62, %v3968_v27  ;;  %v4090_v62 = vmul.f32 %v11222_v60, %v11222_v60  ;;  %v4070_v47 = vsel %vm4066_vm5, %v11222_v60, 0.0  ;;  %v4096_v42 = vsel %vm4066_vm5, %v4088_v21, 0.0 }
 0x41c   : > { %v4098_v3 = vadd.f32 %v4097_v45, %v4096_v42  ;;  %v4071_v19 = vadd.f32 %v4070_v47, %v4069_v54 }
 0x41d   : > { %v4099_v15 = vsel %vm4066_vm5, %v4090_v62, 0.0  ;;  %v4072_v59 = vsel %vm4066_vm5, %v11226_v0, 0.0 }
 0x41e   : > { %v8471_v36 = vpop.f32.mrb[12].mxu0  ;;  %v4100_v31 = vadd.f32 %v4099_v15, %v4098_v3  ;;  %v4073_v57 = vadd.f32 %v4072_v59, %v4071_v19 }
 0x41f   : > { %v8472_v16 = vpop.f32.mrb[13].mxu0 }
 0x420   : > { %v8473_v43 = vadd.f32 %v8472_v16, %v8471_v36  ;;  %v8474_v20 = vpop.f32.mrb[14].mxu0 }
 0x421   : > { %v8475_v48 = vpop.f32.mrb[15].mxu0 }
 0x422   : > { %v3973_v61 = vadd.f32 %v8473_v43, %v11208_v24  ;;  %v8476_v56 = vadd.f32 %v8475_v48, %v8474_v20 }
 0x424   : > { %v11238_v39 = vadd.f32 %v11129_v28, %v3973_v61  ;;  %v3976_v46 = vadd.f32 %v8476_v56, %v11208_v24  ;;  %v4091_v28 = vmul.f32 %v11226_v0, %v11226_v0 }
 0x426   : > { %v11247_v1 = vadd.f32 %v11133_v17, %v3976_v46  ;;  %v4092_v23 = vmul.f32 %v11238_v39, %v11238_v39  ;;  %v4101_v25 = vsel %vm4066_vm5, %v4091_v28, 0.0  ;;  %v4074_v17 = vsel %vm4066_vm5, %v11238_v39, 0.0 }
 0x427   : > { %v4102_v9 = vadd.f32 %v4101_v25, %v4100_v31  ;;  %v4075_v27 = vadd.f32 %v4074_v17, %v4073_v57 }
 0x428   : > { %v4103_v32 = vsel %vm4066_vm5, %v4092_v23, 0.0  ;;  %v4093_v14 = vmul.f32 %v11247_v1, %v11247_v1  ;;  %v4076_v16 = vsel %vm4066_vm5, %v11247_v1, 0.0 }
 0x429   : > { %v4104_v8 = vadd.f32 %v4103_v32, %v4102_v9  ;;  %v4077_v21 = vadd.f32 %v4076_v16, %v4075_v27 }
 0x42a   : > { %v4105_v48 = vsel %vm4066_vm5, %v4093_v14, 0.0 }
 0x42b   : > { %v8477_v4 = vpop.f32.mrb[16].mxu0  ;;  %v4106_v37 = vadd.f32 %v4105_v48, %v4104_v8 }
 0x42c   : > { %v8478_v26 = vpop.f32.mrb[17].mxu0 }
 0x42d   : > { %v8479_v12 = vadd.f32 %v8478_v26, %v8477_v4  ;;  %v8480_v49 = vpop.f32.mrb[18].mxu0 }
 0x42e   : > { %v8481_v36 = vpop.f32.mrb[19].mxu0 }
 0x42f   : > { %v3981_v43 = vadd.f32 %v8479_v12, %v11208_v24  ;;  %v8482_v20 = vadd.f32 %v8481_v36, %v8480_v49 }
 0x431   : > { %v11268_v61 = vadd.f32 %v11127_v29, %v3981_v43  ;;  %v3984_v56 = vadd.f32 %v8482_v20, %v11208_v24 }
 0x433   : > { %v4078_v6 = vsel %vm4066_vm5, %v11268_v61, 0.0  ;;  %v4094_v62 = vmul.f32 %v11268_v61, %v11268_v61  ;;  %v11276_v46 = vadd.f32 %v11131_v50, %v3984_v56 }
 0x434   : > { %v4079_v45 = vadd.f32 %v4078_v6, %v4077_v21 }
 0x435   : > { %v4107_v47 = vsel %vm4066_vm5, %v4094_v62, 0.0  ;;  %v4080_v29 = vsel %vm4066_vm5, %v11276_v46, 0.0  ;;  %v4095_v24 = vmul.f32 %v11276_v46, %v11276_v46 }
 0x436   : > { %v4108_v54 = vadd.f32 %v4107_v47, %v4106_v37  ;;  %v4081_v42 = vadd.f32 %v4080_v29, %v4079_v45 }
 0x437   : > { %v4109_v15 = vsel %vm4066_vm5, %v4095_v24, 0.0 }
 0x438   : > { %v4082_v28 = vrot.slane %v4081_v42, 4  ;;  %v4110_v3 = vadd.f32 %v4109_v15, %v4108_v54 }
 0x43a   : > { %v4083_v19 = vadd.f32 %v4082_v28, %v4081_v42  ;;  %v4111_v59 = vrot.slane %v4110_v3, 4 }
 0x43c   : > { %v4084_v50 = vrot.slane %v4083_v19, 2  ;;  %v4112_v23 = vadd.f32 %v4111_v59, %v4110_v3 }
 0x43e   : > { %v4085_v31 = vadd.f32 %v4084_v50, %v4083_v19  ;;  %v4113_v25 = vrot.slane %v4112_v23, 2 }
 0x440   : > { %v4086_v17 = vrot.slane %v4085_v31, 1  ;;  %v4114_v4 = vadd.f32 %v4113_v25, %v4112_v23 }
 0x442   : > { %v4087_v57 = vadd.f32 %v4086_v17, %v4085_v31  ;;  %v4115_v26 = vrot.slane %v4114_v4, 1 }
 0x444   : > { %v4116_v32 = vadd.f32 %v4115_v26, %v4114_v4  ;;  %v4118_v14 = vsel %vm4066_vm5, %v4087_v57, 0 }
 0x445   : > { %v11285_v12 = vand.u32 4294901760, %v4118_v14 }
 0x446   : > { %v4658_v49 = vsel %vm4066_vm5, %v4116_v32, 0 }
 0x447   : > { %v11289_v9 = vsub.f32 %v4118_v14, %v11285_v12  ;;  %v11291_v27 = vand.u32 4294901760, %v4658_v49 }
 0x449   : > { %v4195_v36 = vand.u32 4294901760, %v11289_v9  ;;  %v11295_v16 = vsub.f32 %v4658_v49, %v11291_v27 }
 0x44b   : > { %v4196_v43 = vsub.f32 %v11289_v9, %v4195_v36  ;;  %v4735_v20 = vand.u32 4294901760, %v11295_v16 }
 0x44d   : > { %v4197_v8 = vand.u32 4294901760, %v4196_v43  ;;  %v4736_v48 = vsub.f32 %v11295_v16, %v4735_v20 }
 0x44f   : > { %9044 = vmatmul.mubr.f32.vlgmr.msra.gmra.mrb[12].mxu1 %v4197_v8  ;;  %v4737_v56 = vand.u32 4294901760, %v4736_v48 }
 0x450   : > { %9573 = vmatpush3.bf16.msra.mxu1 %v11183_v40  ;;  %9062 = vmatprep.mubr.msk.f32.mxu1 %vm10155_vm0, %v12284_v35 }
 0x451   : > { %9158 = vmatmul.mubr.f32.vlgmr.msra.gmra.mrb[20].mxu0 %v4737_v56  ;;  %9574 = vmatprep.subr.bf16.mxu1 %v12276_v2 }
 0x452   : > { %9645 = vmatpush3.bf16.msra.mxu0 %v11183_v40  ;;  %9176 = vmatprep.mubr.msk.f32.mxu0 %vm10155_vm0, %v12284_v35 }
 0x453   : > { %9646 = vmatprep.subr.bf16.mxu0 %v12276_v2 }
 0x454   : > { %9576 = vmatpush3.bf16.msra.mxu1 %v11185_v30 }
 0x455   : > { %9577 = vmatprep.subr.bf16.mxu1 %v12276_v2 }
 0x456   : > { %9648 = vmatpush3.bf16.msra.mxu0 %v11185_v30  ;;  %v4065_v30 = vld [vmem:[%s12217_s10 + $0x18] sm:$0xff] }
 0x457   : > { %9649 = vmatprep.subr.bf16.mxu0 %v12276_v2 }
 0x458   : > { %9579 = vmatpush3.bf16.msra.mxu1 %v11187_v52 }
 0x459   : > { %9580 = vmatprep.subr.bf16.mxu1 %v12276_v2 }
 0x45a   : > { %9651 = vmatpush3.bf16.msra.mxu0 %v11187_v52 }
 0x45b   : > { %9652 = vmatprep.subr.bf16.mxu0 %v12276_v2 }
 0x45c   : > { %9582 = vmatpush3.bf16.msra.mxu1 %v11191_v55 }
 0x45d   : > { %9583 = vmatprep.subr.bf16.mxu1 %v12276_v2 }
 0x45e   : > { %9654 = vmatpush3.bf16.msra.mxu0 %v11191_v55 }
 0x45f   : > { %9063 = vmatmul.mubr.f32.vlgmr.msra.gmra.mrb[12].mxu1 %v11285_v12  ;;  %9655 = vmatprep.subr.bf16.mxu0 %v12276_v2 }
 0x460   : > { %9585 = vmatpush3.bf16.msra.mxu1 %v11189_v22  ;;  %9081 = vmatprep.mubr.msk.f32.mxu1 %vm10155_vm0, %v12284_v35 }
 0x461   : > { %9177 = vmatmul.mubr.f32.vlgmr.msra.gmra.mrb[20].mxu0 %v11291_v27  ;;  %9586 = vmatprep.subr.bf16.mxu1 %v12276_v2 }
 0x462   : > { %9657 = vmatpush3.bf16.msra.mxu0 %v11189_v22  ;;  %9195 = vmatprep.mubr.msk.f32.mxu0 %vm10155_vm0, %v12284_v35  ;;  %v5218_v22 = vand.u32 4294901760, %v4065_v30 }
 0x463   : > { %9658 = vmatprep.subr.bf16.mxu0 %v12276_v2 }
 0x464   : > { %9588 = vmatpush3.bf16.msra.mxu1 %v11193_v38 }
 0x465   : > { %9589 = vmatprep.subr.bf16.mxu1 %v12276_v2 }
 0x466   : > { %9660 = vmatpush3.bf16.msra.mxu0 %v11193_v38 }
 0x467   : > { %9661 = vmatprep.subr.bf16.mxu0 %v12276_v2 }
 0x468   : > { %9591 = vmatpush3.bf16.msra.mxu1 %v11195_v7 }
 0x469   : > { %9592 = vmatprep.subr.bf16.mxu1 %v12276_v2 }
 0x46a   : > { %9663 = vmatpush3.bf16.msra.mxu0 %v11195_v7 }
 0x46b   : > { %9664 = vmatprep.subr.bf16.mxu0 %v12276_v2 }
 0x46c   : > { %9594 = vmatpush3.bf16.msra.mxu1 %v11197_v10 }
 0x46d   : > { %9595 = vmatprep.subr.bf16.mxu1 %v12276_v2 }
 0x46e   : > { %9666 = vmatpush3.bf16.msra.mxu0 %v11197_v10 }
 0x46f   : > { %9082 = vmatmul.mubr.f32.vlgmr.msra.gmra.mrb[12].mxu1 %v11289_v9  ;;  %9667 = vmatprep.subr.bf16.mxu0 %v12276_v2 }
 0x470   : > { %9597 = vmatpush3.bf16.msra.mxu1 %v11153_v13  ;;  %9100 = vmatprep.mubr.msk.f32.mxu1 %vm10155_vm0, %v12284_v35 }
 0x471   : > { %9196 = vmatmul.mubr.f32.vlgmr.msra.gmra.mrb[20].mxu0 %v11295_v16  ;;  %9598 = vmatprep.subr.bf16.mxu1 %v12276_v2 }
 0x472   : > { %9669 = vmatpush3.bf16.msra.mxu0 %v11153_v13  ;;  %9214 = vmatprep.mubr.msk.f32.mxu0 %vm10155_vm0, %v12284_v35 }
 0x473   : > { %9670 = vmatprep.subr.bf16.mxu0 %v12276_v2 }
 0x474   : > { %9600 = vmatpush3.bf16.msra.mxu1 %v11156_v53 }
 0x475   : > { %9601 = vmatprep.subr.bf16.mxu1 %v12276_v2 }
 0x476   : > { %9672 = vmatpush3.bf16.msra.mxu0 %v11156_v53 }
 0x477   : > { %9673 = vmatprep.subr.bf16.mxu0 %v12276_v2 }
 0x478   : > { %9603 = vmatpush3.bf16.msra.mxu1 %v11168_v11 }
 0x479   : > { %9604 = vmatprep.subr.bf16.mxu1 %v12276_v2 }
 0x47a   : > { %9675 = vmatpush3.bf16.msra.mxu0 %v11168_v11 }
 0x47b   : > { %9676 = vmatprep.subr.bf16.mxu0 %v12276_v2 }
 0x47c   : > { %9606 = vmatpush3.bf16.msra.mxu1 %v11175_v18 }
 0x47d   : > { %9607 = vmatprep.subr.bf16.mxu1 %v12276_v2 }
 0x47e   : > { %9678 = vmatpush3.bf16.msra.mxu0 %v11175_v18 }
 0x47f   : > { %9101 = vmatmul.mubr.f32.vlgmr.msra.gmra.mrb[12].mxu1 %v4195_v36  ;;  %9679 = vmatprep.subr.bf16.mxu0 %v12276_v2 }
 0x480   : > { %9609 = vmatpush3.bf16.msra.mxu1 %v11199_v34  ;;  %9119 = vmatprep.mubr.msk.f32.mxu1 %vm10155_vm0, %v12284_v35 }
 0x481   : > { %9215 = vmatmul.mubr.f32.vlgmr.msra.gmra.mrb[20].mxu0 %v4735_v20  ;;  %9610 = vmatprep.subr.bf16.mxu1 %v12276_v2 }
 0x482   : > { %9681 = vmatpush3.bf16.msra.mxu0 %v11199_v34  ;;  %9233 = vmatprep.mubr.msk.f32.mxu0 %vm10155_vm0, %v12284_v35 }
 0x483   : > { %9682 = vmatprep.subr.bf16.mxu0 %v12276_v2 }
 0x484   : > { %9612 = vmatpush3.bf16.msra.mxu1 %v11201_v58 }
 0x485   : > { %9613 = vmatprep.subr.bf16.mxu1 %v12276_v2 }
 0x486   : > { %9684 = vmatpush3.bf16.msra.mxu0 %v11201_v58 }
 0x487   : > { %9685 = vmatprep.subr.bf16.mxu0 %v12276_v2 }
 0x488   : > { %9615 = vmatpush3.bf16.msra.mxu1 %v11203_v33 }
 0x489   : > { %9616 = vmatprep.subr.bf16.mxu1 %v12276_v2 }
 0x48a   : > { %9687 = vmatpush3.bf16.msra.mxu0 %v11203_v33 }
 0x48b   : > { %9688 = vmatprep.subr.bf16.mxu0 %v12276_v2 }
 0x48c   : > { %9618 = vmatpush3.bf16.msra.mxu1 %v11210_v44 }
 0x48d   : > { %9619 = vmatprep.subr.bf16.mxu1 %v12276_v2 }
 0x48e   : > { %9690 = vmatpush3.bf16.msra.mxu0 %v11210_v44  ;;  %v5310_v44 = vsub.f32 %v4065_v30, %v5218_v22  ;;  %v6311_v30 = vld [vmem:[#allocation3 + $0xc] sm:$0x8] }
 0x48f   : > { %9120 = vmatmul.mubr.f32.vlgmr.msra.gmra.mrb[12].mxu1 %v11285_v12  ;;  %9691 = vmatprep.subr.bf16.mxu0 %v12276_v2 }
 0x490   : > { %9621 = vmatpush3.bf16.msra.mxu1 %v11153_v13  ;;  %9138 = vmatprep.mubr.msk.f32.mxu1 %vm10155_vm0, %v12284_v35  ;;  %v5311_v37 = vand.u32 4294901760, %v5310_v44 }
 0x491   : > { %9234 = vmatmul.mubr.f32.vlgmr.msra.gmra.mrb[20].mxu0 %v11291_v27  ;;  %9622 = vmatprep.subr.bf16.mxu1 %v12276_v2 }
 0x492   : > { %9693 = vmatpush3.bf16.msra.mxu0 %v11153_v13  ;;  %9252 = vmatprep.mubr.msk.f32.mxu0 %vm10155_vm0, %v12284_v35  ;;  %v4062_v13 = vld [vmem:[%s12217_s10] sm:$0xff]  ;;  %v5312_v24 = vsub.f32 %v5310_v44, %v5311_v37 }
 0x493   : > { %9694 = vmatprep.subr.bf16.mxu0 %v12276_v2 }
 0x494   : > { %9624 = vmatpush3.bf16.msra.mxu1 %v11156_v53  ;;  %v5313_v15 = vand.u32 4294901760, %v5312_v24  ;;  %v6341_v24 = vld [vmem:[#allocation3 + $0x2c] sm:$0x1] }
 0x495   : > { %9625 = vmatprep.subr.bf16.mxu1 %v12276_v2 }
 0x496   : > { %9696 = vmatpush3.bf16.msra.mxu0 %v11156_v53  ;;  %v4063_v53 = vld [vmem:[%s12217_s10 + $0x8] sm:$0xff] }
 0x497   : > { %9697 = vmatprep.subr.bf16.mxu0 %v12276_v2  ;;  %v5212_v40 = vand.u32 4294901760, %v4063_v53 }
 0x498   : > { %9627 = vmatpush3.bf16.msra.mxu1 %v11168_v11 }
 0x499   : > { %9628 = vmatprep.subr.bf16.mxu1 %v12276_v2  ;;  %v5296_v7 = vsub.f32 %v4063_v53, %v5212_v40 }
 0x49a   : > { %9699 = vmatpush3.bf16.msra.mxu0 %v11168_v11  ;;  %v4064_v11 = vld [vmem:[%s12217_s10 + $0x10] sm:$0xff] }
 0x49b   : > { %9700 = vmatprep.subr.bf16.mxu0 %v12276_v2  ;;  %v5215_v52 = vand.u32 4294901760, %v4064_v11  ;;  %v5297_v58 = vand.u32 4294901760, %v5296_v7 }
 0x49c   : > { %9630 = vmatpush3.bf16.msra.mxu1 %v11175_v18 }
 0x49d   : > { %9703 = vmatprep.subr.bf16.mxu1 %v12276_v2  ;;  %v11434_v10 = vpack.c.bf16 %v5218_v22, %v5215_v52  ;;  %v5303_v33 = vsub.f32 %v4064_v11, %v5215_v52  ;;  %v5298_v6 = vsub.f32 %v5296_v7, %v5297_v58  ;;  %v6314_v52 = vld [vmem:[#allocation3 + $0x18] sm:$0x8] }
 0x49e   : > { %9702 = vmatpush3.bf16.msra.mxu0 %v11175_v18  ;;  %v5209_v18 = vand.u32 4294901760, %v4062_v13 }
 0x49f   : > { %9139 = vmatmul.mubr.f32.vlgmr.msra.gmra.mrb[12].mxu1 %v11285_v12  ;;  %9739 = vmatprep.subr.bf16.mxu0 %v12276_v2  ;;  %v5304_v62 = vand.u32 4294901760, %v5303_v33  ;;  %v5299_v47 = vand.u32 4294901760, %v5298_v6  ;;  %v9719_v19 = vpack.c.bf16 %v5310_v44, %v5303_v33  ;;  %v6326_v44 = vld [vmem:[#allocation3 + $0x48] sm:$0x8] }
 0x4a0   : > { %9263 = vmatprep.mubr.msk.f32.mxu1 %vm10155_vm0, %v12284_v35  ;;  %v11432_v55 = vpack.c.bf16 %v5212_v40, %v5209_v18  ;;  %v5289_v38 = vsub.f32 %v4062_v13, %v5209_v18  ;;  %v9958_v18 = vld [vmem:[%s12218_s11 + $0x100] sm:$0xff]   ;;  %v9960_v40 = vld [vmem:[%s12218_s11 + $0x108] sm:$0xff]  }
 0x4a1   : > { %9253 = vmatmul.mubr.f32.vlgmr.msra.gmra.mrb[20].mxu0 %v11291_v27  ;;  %v5305_v29 = vsub.f32 %v5303_v33, %v5304_v62  ;;  %v11446_v50 = vpack.c.bf16 %v5311_v37, %v5304_v62  ;;  %v6323_v33 = vld [vmem:[#allocation3 + $0x3c] sm:$0x8]  ;;  %v6335_v62 = vld [vmem:[#allocation3 + $0x14] sm:$0x1] }
 0x4a2   : > { %9329 = vmatprep.mubr.msk.f32.mxu0 %vm10155_vm0, %v12284_v35  ;;  %9705 = vmatpush3.bf16.msra.mxu1 %v11432_v55  ;;  %v5290_v34 = vand.u32 4294901760, %v5289_v38  ;;  %v9716_v28 = vpack.c.bf16 %v5296_v7, %v5289_v38  ;;  %v6320_v7 = vld [vmem:[#allocation3 + $0x30] sm:$0x8] }
 0x4a3   : > { %9741 = vmatpush3.bf16.msra.mxu0 %v11432_v55  ;;  %9706 = vmatprep.subr.bf16.mxu1 %v12276_v2  ;;  %v5306_v42 = vand.u32 4294901760, %v5305_v29 }
 0x4a4   : > { %9742 = vmatprep.subr.bf16.mxu0 %v12276_v2  ;;  %v5291_v21 = vsub.f32 %v5289_v38, %v5290_v34  ;;  %v11444_v59 = vpack.c.bf16 %v5297_v58, %v5290_v34  ;;  %v6317_v38 = vld [vmem:[#allocation3 + $0x24] sm:$0x8] }
 0x4a5   : > { %v9713_v3 = vpack.c.bf16 %v5313_v15, %v5306_v42  ;;  %v9964_v58 = vld [vmem:[%s12218_s11 + $0x118] sm:$0xff]   ;;  %v6344_v42 = vld [vmem:[#allocation3 + $0x38] sm:$0x1] }
 0x4a6   : > { %9708 = vmatpush3.bf16.msra.mxu1 %v11434_v10  ;;  %v5292_v45 = vand.u32 4294901760, %v5291_v21  ;;  %v6347_v15 = vld [vmem:[#allocation3 + $0x44] sm:$0x1] }
 0x4a7   : > { %9744 = vmatpush3.bf16.msra.mxu0 %v11434_v10  ;;  %9709 = vmatprep.subr.bf16.mxu1 %v12276_v2 }
 0x4a8   : > { %9745 = vmatprep.subr.bf16.mxu0 %v12276_v2  ;;  %v9710_v54 = vpack.c.bf16 %v5299_v47, %v5292_v45  ;;  %v6338_v47 = vld [vmem:[#allocation3 + $0x20] sm:$0x1] }
 0x572   : > { %v4653_v23 = vpop.f32.mrb[12].mxu1 }
 0x573   : > { %v5198_v31 = vmul.f32 0.0078125, %v4653_v23  ;;  %v9140_v25 = vpop.f32.mrb[13].mxu1 }
 0x574   : > { %v5193_v17 = vpop.f32.mrb[20].mxu0  ;;  %v6332_v25 = vld [vmem:[#allocation3 + $0x60] sm:$0x8] }
 0x575   : > { %v5200_v4 = vmul.f32 %v5198_v31, %v5198_v31  ;;  %v5206_v57 = vsel %vm512_vm1, %v5198_v31, 0  ;;  %v5199_v26 = vmul.f32 0.0078125, %v5193_v17  ;;  %v9254_v32 = vpop.f32.mrb[21].mxu0  ;;  %v6329_v31 = vld [vmem:[#allocation3 + $0x54] sm:$0x8] }
 0x576   : > { %v5277_v14 = vand.u32 4294901760, %v5206_v57  ;;  %v6356_v32 = vld [vmem:[#allocation3 + $0x68] sm:$0x1] }
 0x577   : > { %v5201_v12 = vsub.f32 %v5199_v26, %v5200_v4  ;;  %v6307_v26 = vld [vmem:[#allocation3 + $0x74] sm:$0x1] }
 0x578   : > { %v5278_v49 = vsub.f32 %v5206_v57, %v5277_v14  ;;  %v6292_v57 = vld [vmem:[#allocation3] sm:$0x8] }
 0x579   : > { %v5202_v9 = vmax.f32 %v5201_v12, 0.0 }
 0x57a   : > { %v5279_v27 = vand.u32 4294901760, %v5278_v49 }
 0x57b   : > { %v5203_v36 = vadd.f32 1e-05, %v5202_v9  ;;  %v6299_v9 = vld [vmem:[#allocation3 + $0x8] sm:$0x1] }
 0x57c   : > { %v5280_v16 = vsub.f32 %v5278_v49, %v5279_v27 }
 0x57d   : > { %10041 = vrsqrt.f32 %v5203_v36  ;;  %v9966_v36 = vld [vmem:[%s12220_s13] sm:$0xff]  }
 0x57e   : > { %v5281_v43 = vand.u32 4294901760, %v5280_v16 }
 0x580   : > { %9264 = vmatmul.mubr.f32.vlgmr.msra.gmra.mrb[14].mxu1 %v5281_v43 }
 0x581   : > { %9711 = vmatpush3.bf16.msra.mxu1 %v9710_v54  ;;  %9274 = vmatprep.mubr.msk.f32.mxu1 %vm10155_vm0, %v12284_v35 }
 0x582   : > { %9712 = vmatprep.subr.bf16.mxu1 %v12276_v2 }
 0x585   : > { %9714 = vmatpush3.bf16.msra.mxu1 %v9713_v3 }
 0x586   : > { %9715 = vmatprep.subr.bf16.mxu1 %v12276_v2 }
 0x587   : > { %v10042_v20 = vpop.eup %10041 }
 0x588   : > { %9275 = vmatmul.mubr.f32.vlgmr.msra.gmra.mrb[14].mxu1 %v5277_v14  ;;  %v5694_v8 = vsel %vm512_vm1, %v10042_v20, 0  ;;  %v6303_v20 = vld [vmem:[#allocation3 + $0x6c] sm:$0x8] }
 0x589   : > { %9717 = vmatpush3.bf16.msra.mxu1 %v9716_v28  ;;  %9285 = vmatprep.mubr.msk.f32.mxu1 %vm10155_vm0, %v12284_v35  ;;  %v5765_v48 = vand.u32 4294901760, %v5694_v8 }
 0x58a   : > { %9718 = vmatprep.subr.bf16.mxu1 %v12276_v2 }
 0x58b   : > { %v5766_v56 = vsub.f32 %v5694_v8, %v5765_v48  ;;  %v9971_v8 = vld [vmem:[%s12218_s11 + $0x40] sm:$0xff]  }
 0x58d   : > { %9720 = vmatpush3.bf16.msra.mxu1 %v9719_v19  ;;  %v5767_v13 = vand.u32 4294901760, %v5766_v56 }
 0x58e   : > { %9721 = vmatprep.subr.bf16.mxu1 %v12276_v2 }
 0x58f   : > { %v5768_v53 = vsub.f32 %v5766_v56, %v5767_v13 }
 0x590   : > { %9286 = vmatmul.mubr.f32.vlgmr.msra.gmra.mrb[14].mxu1 %v5278_v49 }
 0x591   : > { %9723 = vmatpush3.bf16.msra.mxu1 %v11432_v55  ;;  %v5769_v11 = vand.u32 4294901760, %v5768_v53  ;;  %9296 = vmatprep.mubr.msk.f32.mxu1 %vm10155_vm0, %v12284_v35 }
 0x592   : > { %9724 = vmatprep.subr.bf16.mxu1 %v12276_v2 }
 0x593   : > { %9330 = vmatmul.mubr.f32.vlgmr.msra.gmra.mrb[22].mxu0 %v5769_v11 }
 0x594   : > { %9747 = vmatpush3.bf16.msra.mxu0 %v9710_v54  ;;  %9340 = vmatprep.mubr.msk.f32.mxu0 %vm10155_vm0, %v12284_v35 }
 0x595   : > { %9726 = vmatpush3.bf16.msra.mxu1 %v11434_v10  ;;  %9748 = vmatprep.subr.bf16.mxu0 %v12276_v2 }
 0x596   : > { %9727 = vmatprep.subr.bf16.mxu1 %v12276_v2 }
 0x598   : > { %9750 = vmatpush3.bf16.msra.mxu0 %v9713_v3  ;;  %9297 = vmatmul.mubr.f32.vlgmr.msra.gmra.mrb[14].mxu1 %v5279_v27 }
 0x599   : > { %9729 = vmatpush3.bf16.msra.mxu1 %v11444_v59  ;;  %9751 = vmatprep.subr.bf16.mxu0 %v12276_v2 }
 0x59a   : > { %9730 = vmatprep.subr.bf16.mxu1 %v12276_v2  ;;  %9307 = vmatprep.mubr.msk.f32.mxu1 %vm10155_vm0, %v12284_v35 }
 0x59b   : > { %9341 = vmatmul.mubr.f32.vlgmr.msra.gmra.mrb[22].mxu0 %v5765_v48 }
 0x59c   : > { %9753 = vmatpush3.bf16.msra.mxu0 %v9716_v28  ;;  %9351 = vmatprep.mubr.msk.f32.mxu0 %vm10155_vm0, %v12284_v35 }
 0x59d   : > { %9732 = vmatpush3.bf16.msra.mxu1 %v11446_v50  ;;  %9754 = vmatprep.subr.bf16.mxu0 %v12276_v2 }
 0x59e   : > { %9733 = vmatprep.subr.bf16.mxu1 %v12276_v2 }
 0x5a0   : > { %9756 = vmatpush3.bf16.msra.mxu0 %v9719_v19  ;;  %9308 = vmatmul.mubr.f32.vlgmr.msra.gmra.mrb[14].mxu1 %v5277_v14  ;;  %v6350_v19 = vld [vmem:[#allocation3 + $0x50] sm:$0x1] }
 0x5a1   : > { %9735 = vmatpush3.bf16.msra.mxu1 %v11432_v55  ;;  %9757 = vmatprep.subr.bf16.mxu0 %v12276_v2 }
 0x5a2   : > { %9736 = vmatprep.subr.bf16.mxu1 %v12276_v2  ;;  %9318 = vmatprep.mubr.msk.f32.mxu1 %vm10155_vm0, %v12284_v35 }
 0x5a3   : > { %9352 = vmatmul.mubr.f32.vlgmr.msra.gmra.mrb[22].mxu0 %v5766_v56  ;;  %v9973_v56 = vld [vmem:[%s12218_s11 + $0x48] sm:$0xff]  }
 0x5a4   : > { %9759 = vmatpush3.bf16.msra.mxu0 %v11432_v55  ;;  %9362 = vmatprep.mubr.msk.f32.mxu0 %vm10155_vm0, %v12284_v35 }
 0x5a5   : > { %9738 = vmatpush3.bf16.msra.mxu1 %v11434_v10  ;;  %9760 = vmatprep.subr.bf16.mxu0 %v12276_v2 }
 0x5a6   : > { %8657 = vmatprep.subr.bf16.mxu1 %v9971_v8 }
 0x5a8   : > { %9762 = vmatpush3.bf16.msra.mxu0 %v11434_v10  ;;  %9319 = vmatmul.mubr.f32.vlgmr.msra.gmra.mrb[14].mxu1 %v5277_v14 }
 0x5a9   : > { %9763 = vmatprep.subr.bf16.mxu0 %v12276_v2 }
 0x5ab   : > { %9363 = vmatmul.mubr.f32.vlgmr.msra.gmra.mrb[22].mxu0 %v5767_v13 }
 0x5ac   : > { %9765 = vmatpush3.bf16.msra.mxu0 %v11444_v59  ;;  %9373 = vmatprep.mubr.msk.f32.mxu0 %vm10155_vm0, %v12284_v35  ;;  %v6353_v59 = vld [vmem:[#allocation3 + $0x5c] sm:$0x1] }
 0x5ad   : > { %9766 = vmatprep.subr.bf16.mxu0 %v12276_v2 }
 0x5b0   : > { %9768 = vmatpush3.bf16.msra.mxu0 %v11446_v50 }
 0x5b1   : > { %9769 = vmatprep.subr.bf16.mxu0 %v12276_v2 }
 0x5b3   : > { %9374 = vmatmul.mubr.f32.vlgmr.msra.gmra.mrb[22].mxu0 %v5765_v48 }
 0x5b4   : > { %9771 = vmatpush3.bf16.msra.mxu0 %v11432_v55  ;;  %9384 = vmatprep.mubr.msk.f32.mxu0 %vm10155_vm0, %v12284_v35  ;;  %vm11507_vm0 = vmand %vm6290_vm8, %vm2633_vm4  ;;  %v9962_v55 = vld [vmem:[%s12218_s11 + $0x110] sm:$0xff]   ;;  %vm6297_vm4 = vcmask 516096  }
 0x5b5   : > { %9772 = vmatprep.subr.bf16.mxu0 %v12276_v2  ;;  %v6312_v2 = vsel %vm11507_vm0, 0, %v6311_v30  ;;  %v6315_v22 = vsel %vm11507_vm0, 0, %v6314_v52  ;;  %v6321_v34 = vsel %vm11507_vm0, 0, %v6320_v7  ;;  %v6324_v21 = vsel %vm11507_vm0, 0, %v6323_v33  ;;  %vm11530_vm9 = vmand %vm6297_vm4, %vm2641_vm6  ;;  %v9974_v30 = vld [vmem:[%s12218_s11 + $0x8] sm:$0xff]   ;;  %v9976_v35 = vld [vmem:[%s12218_s11 + $0x10] sm:$0xff]  }
 0x5b6   : > { %6313 = vst [vmem:[#allocation3 + $0xc] sm:$0x8] %v6312_v2  ;;  %6316 = vst [vmem:[#allocation3 + $0x18] sm:$0x8] %v6315_v22  ;;  %v6327_v6 = vsel %vm11507_vm0, 0, %v6326_v44  ;;  %v6336_v45 = vsel %vm11530_vm9, 0, %v6335_v62 }
 0x5b7   : > { %6322 = vst [vmem:[#allocation3 + $0x30] sm:$0x8] %v6321_v34  ;;  %6325 = vst [vmem:[#allocation3 + $0x3c] sm:$0x8] %v6324_v21  ;;  %v6339_v29 = vsel %vm11530_vm9, 0, %v6338_v47  ;;  %v6342_v54 = vsel %vm11530_vm9, 0, %v6341_v24 }
 0x5b8   : > { %9774 = vmatpush3.bf16.msra.mxu0 %v11434_v10  ;;  %v6318_v10 = vsel %vm11507_vm0, 0, %v6317_v38  ;;  %6328 = vst [vmem:[#allocation3 + $0x48] sm:$0x8] %v6327_v6  ;;  %6337 = vst [vmem:[#allocation3 + $0x14] sm:$0x1] %v6336_v45  ;;  %v6345_v28 = vsel %vm11530_vm9, 0, %v6344_v42 }
 0x5b9   : > { %9387 = vmatprep.subr.bf16.mxu0 %v9958_v18  ;;  %6319 = vst [vmem:[#allocation3 + $0x24] sm:$0x8] %v6318_v10  ;;  %6340 = vst [vmem:[#allocation3 + $0x20] sm:$0x1] %v6339_v29  ;;  %v6348_v3 = vsel %vm11530_vm9, 0, %v6347_v15  ;;  %v6351_v50 = vsel %vm11530_vm9, 0, %v6350_v19 }
 0x5ba   : > { %6343 = vst [vmem:[#allocation3 + $0x2c] sm:$0x1] %v6342_v54  ;;  %6346 = vst [vmem:[#allocation3 + $0x38] sm:$0x1] %v6345_v28  ;;  %v6354_v23 = vsel %vm11530_vm9, 0, %v6353_v59  ;;  %v6330_v17 = vsel %vm11507_vm0, 0, %v6329_v31 }
 0x5bb   : > { %9385 = vmatmul.mubr.f32.vlgmr.msra.gmra.mrb[22].mxu0 %v5765_v48  ;;  %6349 = vst [vmem:[#allocation3 + $0x44] sm:$0x1] %v6348_v3  ;;  %6352 = vst [vmem:[#allocation3 + $0x50] sm:$0x1] %v6351_v50  ;;  %v6333_v4 = vsel %vm11507_vm0, 0, %v6332_v25  ;;  %v6293_v14 = vsel %vm11507_vm0, 0, %v6292_v57 }
 0x5bc   : > { %9388 = vmatpush3.bf16.msra.mxu0 %v9958_v18  ;;  %6355 = vst [vmem:[#allocation3 + $0x5c] sm:$0x1] %v6354_v23  ;;  %6331 = vst [vmem:[#allocation3 + $0x54] sm:$0x8] %v6330_v17  ;;  %v6308_v12 = vsel %vm11530_vm9, 0, %v6307_v26  ;;  %v6357_v49 = vsel %vm11530_vm9, 0, %v6356_v32 }
 0x5bd   : > { %9389 = vmatprep.subr.bf16.mxu0 %v9960_v40  ;;  %6334 = vst [vmem:[#allocation3 + $0x60] sm:$0x8] %v6333_v4  ;;  %6294 = vst [vmem:[#allocation3] sm:$0x8] %v6293_v14  ;;  %v6300_v27 = vsel %vm11530_vm9, 0, %v6299_v9  ;;  %v9972_v48 = vld [vmem:[%s12218_s11] sm:$0xff]  }
 0x5be   : > { %6309 = vst [vmem:[#allocation3 + $0x74] sm:$0x1] %v6308_v12  ;;  %6358 = vst [vmem:[#allocation3 + $0x68] sm:$0x1] %v6357_v49  ;;  %v6708_v13 = vld [vmem:[#allocation3 + $0xc] sm:$0x8]  ;;  %8658 = vmatpush3.bf16.msra.mxu1 %v9972_v48 }
 0x5bf   : > { %6301 = vst [vmem:[#allocation3 + $0x8] sm:$0x1] %v6300_v27  ;;  %v6710_v53 = vld [vmem:[#allocation3 + $0x18] sm:$0x8]  ;;  %v6714_v18 = vld [vmem:[#allocation3 + $0x30] sm:$0x8]  ;;  %8659 = vmatprep.subr.bf16.mxu1 %v9973_v56 }
 0x5c0   : > { %9390 = vmatpush3.bf16.msra.mxu0 %v9960_v40  ;;  %v6712_v11 = vld [vmem:[#allocation3 + $0x24] sm:$0x8]  ;;  %v6716_v40 = vld [vmem:[#allocation3 + $0x3c] sm:$0x8]  ;;  %v6304_v52 = vsel %vm11507_vm0, 0, %v6303_v20  ;;  %v6725_v10 = vshrl.u32 %v6708_v13, 16 }
 0x5c1   : > { %9391 = vmatprep.subr.bf16.mxu0 %v9962_v55  ;;  %v6718_v2 = vld [vmem:[#allocation3 + $0x48] sm:$0x8]  ;;  %v6893_v22 = vld [vmem:[#allocation3 + $0x14] sm:$0x1]  ;;  %6305 = vst [vmem:[#allocation3 + $0x6c] sm:$0x8] %v6304_v52 }
 0x5c2   : > { %v6895_v38 = vld [vmem:[#allocation3 + $0x20] sm:$0x1]  ;;  %v6738_v34 = vshrl.u32 %v6710_v53, 16  ;;  %v6764_v33 = vshrl.u32 %v6714_v18, 16  ;;  %v6777_v44 = vshrl.u32 %v6716_v40, 16  ;;  %v6790_v21 = vshrl.u32 %v6718_v2, 16  ;;  %8660 = vmatpush3.bf16.msra.mxu1 %v9974_v30 }
 0x5c3   : > { %v7234_v7 = vld [vmem:[#allocation3 + $0x20] sm:$0x1]  ;;  %v6918_v6 = vshll.u32 %v6893_v22, 16  ;;  %v12303_v62 = vld [vmem:[#allocation10_spill] sm:$0xff]  ;;  %v6932_v45 = vshll.u32 %v6895_v38, 16  ;;  %v11587_v54 = vrot.slane %v6725_v10, 11 }
 0x5c4   : > { %9392 = vmatpush3.bf16.msra.mxu0 %v9962_v55  ;;  %v9975_v55 = vld [vmem:[%s12218_s11 + $0x50] sm:$0xff]   ;;  %v7259_v47 = vshll.u32 %v7234_v7, 16  ;;  %v9977_v29 = vld [vmem:[%s12218_s11 + $0x58] sm:$0xff]   ;;  %v7236_v24 = vld [vmem:[#allocation3 + $0x2c] sm:$0x1]  ;;  %v11589_v42 = vrot.slane %v6738_v34, 11 }
 0x5c5   : > { %9393 = vmatprep.subr.bf16.mxu0 %v9964_v58  ;;  %8661 = vmatprep.subr.bf16.mxu1 %v9975_v55  ;;  %v11593_v28 = vrot.slane %v6764_v33, 11  ;;  %v11595_v3 = vrot.slane %v6777_v44, 11  ;;  %v11597_v19 = vrot.slane %v6790_v21, 11  ;;  %v11599_v59 = vrot.slane %v6918_v6, 5  ;;  %v9978_v50 = vld [vmem:[%s12218_s11 + $0x18] sm:$0xff]   ;;  %v9979_v57 = vld [vmem:[%s12218_s11 + $0x60] sm:$0xff]  }
 0x5c6   : > { %8662 = vmatpush3.bf16.msra.mxu1 %v9976_v35  ;;  %v11605_v25 = vrot.slane %v6932_v45, 5  ;;  %v11607_v17 = vrot.slane %v7259_v47, 5  ;;  %v7273_v4 = vshll.u32 %v7236_v24, 16  ;;  %v7238_v53 = vld [vmem:[#allocation3 + $0x38] sm:$0x1] }
 0x5c7   : > { %8663 = vmatprep.subr.bf16.mxu1 %v9977_v29  ;;  %v7240_v38 = vld [vmem:[#allocation3 + $0x44] sm:$0x1]  ;;  %v6897_v7 = vld [vmem:[#allocation3 + $0x2c] sm:$0x1]  ;;  %v7287_v33 = vshll.u32 %v7238_v53, 16 }
 0x5c8   : > { %9394 = vmatpush3.bf16.msra.mxu0 %v9964_v58  ;;  %v6751_v58 = vshrl.u32 %v6712_v11, 16  ;;  %v6899_v44 = vld [vmem:[#allocation3 + $0x38] sm:$0x1]  ;;  %v6901_v21 = vld [vmem:[#allocation3 + $0x44] sm:$0x1]  ;;  %v7301_v29 = vshll.u32 %v7240_v38, 16 }
 0x5c9   : > { %9403 = vmatprep.subr.bf16.mxu0 %v9966_v36  ;;  %v6946_v24 = vshll.u32 %v6897_v7, 16 }
 0x5ca   : > { %v11591_v15 = vrot.slane %v6751_v58, 11  ;;  %8664 = vmatpush3.bf16.msra.mxu1 %v9978_v50  ;;  %v11638_v58 = vrot.slane %v7273_v4, 5 }
 0x5cb   : > { %8665 = vmatprep.subr.bf16.mxu1 %v9979_v57  ;;  %v7242_v57 = vld [vmem:[#allocation3 + $0x50] sm:$0x1] }
 0x67b   : > { %v5689_v16 = vpop.f32.mrb[14].mxu1 }
 0x67c   : > { %v9320_v43 = vpop.f32.mrb[15].mxu1  ;;  %v6184_v37 = vrot.slane %v5689_v16, %v12303_v62  ;;  %v8198_v16 = vld [vmem:[%s12214_s7] ss:$0 sm:$0xff] }
 0x67e   : > { %v6185_v23 = vsub.f32 %v11214_v63, %v6184_v37  ;;  %v6186_v26 = vsub.f32 %v11218_v51, %v6184_v37  ;;  %v6187_v32 = vsub.f32 %v11222_v60, %v6184_v37  ;;  %v6188_v14 = vsub.f32 %v11226_v0, %v6184_v37  ;;  %v8199_v0 = vld [vmem:[%s12215_s8] ss:$0 sm:$0xff] }
 0x67f   : > { %v6189_v49 = vsub.f32 %v11238_v39, %v6184_v37  ;;  %v6190_v9 = vsub.f32 %v11247_v1, %v6184_v37  ;;  %v6191_v27 = vsub.f32 %v11268_v61, %v6184_v37  ;;  %v6192_v36 = vsub.f32 %v11276_v46, %v6184_v37 }
 0x68e   : > { %v6177_v31 = vpop.f32.mrb[22].mxu0 }
 0x68f   : > { %v6196_v12 = vrot.slane %v6177_v31, %v12303_v62  ;;  %v9386_v63 = vpop.f32.mrb[23].mxu0  ;;  %v6974_v31 = vshll.u32 %v6901_v21, 16  ;;  %v6560_v21 = vld [vmem:[#allocation3 + $0x4] sm:$0xf] }
 0x691   : > { %v6197_v51 = vmul.f32 %v6196_v12, %v6185_v23  ;;  %v6198_v43 = vmul.f32 %v6196_v12, %v6186_v26  ;;  %v6199_v60 = vmul.f32 %v6196_v12, %v6187_v32  ;;  %v6200_v20 = vmul.f32 %v6196_v12, %v6188_v14  ;;  %v7244_v26 = vld [vmem:[#allocation3 + $0x5c] sm:$0x1]  ;;  %v6720_v14 = vld [vmem:[#allocation3 + $0x54] sm:$0x8] }
 0x692   : > { %v6201_v39 = vmul.f32 %v6196_v12, %v6189_v49  ;;  %v6202_v8 = vmul.f32 %v6196_v12, %v6190_v9  ;;  %v6203_v1 = vmul.f32 %v6196_v12, %v6191_v27  ;;  %v6204_v48 = vmul.f32 %v6196_v12, %v6192_v36  ;;  %v6903_v12 = vld [vmem:[#allocation3 + $0x50] sm:$0x1]  ;;  %v6722_v49 = vld [vmem:[#allocation3 + $0x60] sm:$0x8]  ;;  %v7246_v9 = vld [vmem:[#allocation3 + $0x68] sm:$0x1] }
 0x693   : > { %v6211_v61 = vmul.f32 %v8198_v16, %v6197_v51  ;;  %v6212_v46 = vmul.f32 %v8198_v16, %v6198_v43  ;;  %v6213_v56 = vmul.f32 %v8198_v16, %v6199_v60  ;;  %v6214_v13 = vmul.f32 %v8198_v16, %v6200_v20  ;;  %v7247_v51 = vld [vmem:[#allocation3 + $0x70] sm:$0xf]  ;;  %v7248_v20 = vld [vmem:[#allocation3 + $0x74] sm:$0x1] }
 0x694   : > { %v6215_v11 = vmul.f32 %v8198_v16, %v6201_v39  ;;  %v6216_v18 = vmul.f32 %v8198_v16, %v6202_v8  ;;  %v6217_v40 = vmul.f32 %v8198_v16, %v6203_v1  ;;  %v6218_v30 = vmul.f32 %v8198_v16, %v6204_v48  ;;  %v6907_v48 = vld [vmem:[#allocation3 + $0x68] sm:$0x1] }
 0x695   : > { %v11626_v52 = vadd.f32 %v8199_v0, %v6211_v61  ;;  %v11628_v2 = vadd.f32 %v8199_v0, %v6212_v46  ;;  %v11630_v22 = vadd.f32 %v8199_v0, %v6213_v56  ;;  %v11632_v55 = vadd.f32 %v8199_v0, %v6214_v13  ;;  %v6375_v13 = vld [vmem:[#allocation3] sm:$0x8] }
 0x696   : > { %v11634_v10 = vadd.f32 %v8199_v0, %v6215_v11  ;;  %v11636_v34 = vadd.f32 %v8199_v0, %v6216_v18  ;;  %v11640_v6 = vadd.f32 %v8199_v0, %v6217_v40  ;;  %v11645_v45 = vadd.f32 %v8199_v0, %v6218_v30  ;;  %v6905_v0 = vld [vmem:[#allocation3 + $0x5c] sm:$0x1]  ;;  %v11662_v30 = vld [vmem:[#allocation3 + $0x4] sm:$0xf] }
 0x697   : > { %v8200_v35 = vmul.f32 -1.442695, %v11626_v52  ;;  %v8201_v62 = vmul.f32 -1.442695, %v11628_v2  ;;  %v8202_v37 = vmul.f32 -1.442695, %v11630_v22 }
 0x698   : > { %v8203_v47 = vmul.f32 -1.442695, %v11632_v55  ;;  %v8204_v50 = vmul.f32 -1.442695, %v11634_v10  ;;  %v6960_v23 = vshll.u32 %v6899_v44, 16  ;;  %v11652_v27 = vrot.slane %v7287_v33, 5 }
 0x699   : > { %10043 = vpow2.f32 %v8200_v35  ;;  %v8205_v4 = vmul.f32 -1.442695, %v11636_v34  ;;  %v8206_v32 = vmul.f32 -1.442695, %v11640_v6  ;;  %v8207_v63 = vmul.f32 -1.442695, %v11645_v45 }
 0x69a   : > { %10045 = vpow2.f32 %v8201_v62  ;;  %v11654_v36 = vrot.slane %v7301_v29, 5  ;;  %v7315_v16 = vshll.u32 %v7242_v57, 16  ;;  %v7329_v43 = vshll.u32 %v7244_v26, 16 }
 0x69b   : > { %10047 = vpow2.f32 %v8202_v37  ;;  %v6803_v60 = vshrl.u32 %v6720_v14, 16  ;;  %v6816_v39 = vshrl.u32 %v6722_v49, 16  ;;  %v6988_v8 = vshll.u32 %v6903_v12, 16 }
 0x69c   : > { %10049 = vpow2.f32 %v8203_v47  ;;  %v7343_v1 = vshll.u32 %v7246_v9, 16  ;;  %v11656_v61 = vrot.slane %v6946_v24, 5  ;;  %v7348_v46 = vshrl.u32 %v7247_v51, 16 }
 0x69d   : > { %10051 = vpow2.f32 %v8204_v50  ;;  %v7351_v56 = vshll.u32 %v7247_v51, 16  ;;  %v11658_v53 = vrot.slane %v6960_v23, 5  ;;  %v11660_v11 = vrot.slane %v6974_v31, 5 }
 0x69e   : > { %10053 = vpow2.f32 %v8205_v4  ;;  %v7357_v18 = vshll.u32 %v7248_v20, 16  ;;  %v7002_v40 = vshll.u32 %v6905_v0, 16  ;;  %v11664_v38 = vrot.slane %v7315_v16, 5  ;;  %v6377_v4 = vld [vmem:[#allocation3 + $0xc] sm:$0x8] }
 0x69f   : > { %10055 = vpow2.f32 %v8206_v32  ;;  %v11666_v7 = vrot.slane %v7329_v43, 5  ;;  %v11668_v33 = vrot.slane %v6803_v60, 11  ;;  %v7016_v44 = vshll.u32 %v6907_v48, 16 }
 0x6a0   : > { %10057 = vpow2.f32 %v8207_v63  ;;  %v11670_v62 = vrot.slane %v6816_v39, 11  ;;  %v11672_v37 = vrot.slane %v6988_v8, 5  ;;  %v11674_v47 = vrot.slane %v7343_v1, 5  ;;  %v6379_v63 = vld [vmem:[#allocation3 + $0x18] sm:$0x8] }
 0x6a1   : > { %v6392_v29 = vshrl.u32 %v6375_v13, 16  ;;  %v7350_v23 = vrot.slane %v7348_v46, 4  ;;  %v7353_v31 = vrot.slane %v7351_v56, 5  ;;  %v6397_v57 = vshrl.u32 %v11662_v30, 16  ;;  %v6381_v8 = vld [vmem:[#allocation3 + $0x24] sm:$0x8] }
 0x6a2   : > { %12304 = vst [vmem:[#allocation11_spill] sm:$0xff] %v11674_v47  ;;  %v11677_v14 = vrot.slane %v7357_v18, 5  ;;  %v11679_v12 = vrot.slane %v7002_v40, 5  ;;  %v6577_v49 = vshrl.u32 %v6560_v21, 16  ;;  %v11681_v51 = vrot.slane %v7016_v44, 5 }
 0x6a3   : > { %v10044_v35 = vpop.eup %10043  ;;  %v6580_v43 = vshll.u32 %v6560_v21, 16  ;;  %v11683_v0 = vrot.slane %v6392_v29, 11  ;;  %v6405_v39 = vshrl.u32 %v6377_v4, 16  ;;  %v6418_v46 = vshrl.u32 %v6379_v63, 16  ;;  %v6561_v56 = vld [vmem:[#allocation3 + $0x8] sm:$0x1] }
 0x6a4   : > { %v10046_v24 = vpop.eup %10045  ;;  %v6257_v50 = vadd.f32 1.0, %v10044_v35  ;;  %12305 = vst [vmem:[#allocation12_spill] sm:$0xff] %v11679_v12  ;;  %12306 = vst [vmem:[#allocation13_spill] sm:$0xff] %v11681_v51  ;;  %v6563_v13 = vld [vmem:[#allocation3 + $0x14] sm:$0x1]  ;;  %v6579_v35 = vrot.slane %v6577_v49, 4 }
 0x6a5   : > { %v10048_v26 = vpop.eup %10047  ;;  %v6258_v32 = vadd.f32 1.0, %v10046_v24  ;;  %v6383_v44 = vld [vmem:[#allocation3 + $0x30] sm:$0x8]  ;;  %v6385_v24 = vld [vmem:[#allocation3 + $0x3c] sm:$0x8]  ;;  %v6582_v29 = vrot.slane %v6580_v43, 5 }
 0x6a6   : > { %v10050_v9 = vpop.eup %10049  ;;  %v6259_v16 = vadd.f32 1.0, %v10048_v26  ;;  %10059 = vrcp.f32 %v6257_v50  ;;  %v7354_v26 = vor.u32 %v7353_v31, %v7350_v23  ;;  %v6567_v4 = vld [vmem:[#allocation3 + $0x2c] sm:$0x1]  ;;  %v6600_v63 = vshll.u32 %v6563_v13, 16 }
 0x6a7   : > { %v10052_v60 = vpop.eup %10051  ;;  %v6260_v20 = vadd.f32 1.0, %v10050_v9  ;;  %10061 = vrcp.f32 %v6258_v32  ;;  %v6565_v32 = vld [vmem:[#allocation3 + $0x20] sm:$0x1]  ;;  %v6444_v51 = vshrl.u32 %v6383_v44, 16  ;;  %v6457_v12 = vshrl.u32 %v6385_v24, 16 }
 0x6a8   : > { %v10054_v1 = vpop.eup %10053  ;;  %v6261_v48 = vadd.f32 1.0, %v10052_v60  ;;  %10063 = vrcp.f32 %v6259_v16  ;;  %v6431_v60 = vshrl.u32 %v6381_v8, 16  ;;  %v6586_v16 = vshll.u32 %v6561_v56, 16  ;;  %v6569_v44 = vld [vmem:[#allocation3 + $0x38] sm:$0x1] }
 0x6a9   : > { %v10056_v18 = vpop.eup %10055  ;;  %v6262_v40 = vadd.f32 1.0, %v10054_v1  ;;  %10065 = vrcp.f32 %v6260_v20  ;;  %v6387_v1 = vld [vmem:[#allocation3 + $0x48] sm:$0x8]  ;;  %v11685_v49 = vrot.slane %v6397_v57, 7  ;;  %v6614_v20 = vshll.u32 %v6565_v32, 16 }
 0x6aa   : > { %v10058_v21 = vpop.eup %10057  ;;  %v6263_v50 = vadd.f32 1.0, %v10056_v18  ;;  %10067 = vrcp.f32 %v6261_v48  ;;  %v6628_v47 = vshll.u32 %v6567_v4, 16  ;;  %v6389_v18 = vld [vmem:[#allocation3 + $0x54] sm:$0x8]  ;;  %v11687_v48 = vrot.slane %v7354_v26, 4 }
 0x6ab   : > { %v6264_v9 = vadd.f32 1.0, %v10058_v21  ;;  %10069 = vrcp.f32 %v6262_v40  ;;  %v11690_v31 = vrot.slane %v6405_v39, 11  ;;  %v6583_v43 = vor.u32 %v6582_v29, %v6579_v35  ;;  %v6571_v32 = vld [vmem:[#allocation3 + $0x44] sm:$0x1]  ;;  %v9981_v29 = vld [vmem:[%s12218_s11 + $0x68] sm:$0xff]  }
 0x6ac   : > { %10071 = vrcp.f32 %v6263_v50  ;;  %v11692_v8 = vrot.slane %v6418_v46, 11  ;;  %v11694_v56 = vrot.slane %v6431_v60, 11  ;;  %v11696_v13 = vrot.slane %v6586_v16, 5  ;;  %v9980_v46 = vld [vmem:[%s12218_s11 + $0x20] sm:$0xff]  }
 0x6ad   : > { %10073 = vrcp.f32 %v6264_v9  ;;  %v6470_v40 = vshrl.u32 %v6387_v1, 16  ;;  %v11698_v24 = vrot.slane %v6600_v63, 5  ;;  %v11700_v21 = vrot.slane %v6444_v51, 11  ;;  %v6573_v51 = vld [vmem:[#allocation3 + $0x50] sm:$0x1]  ;;  %8666 = vmatpush3.bf16.msra.mxu1 %v9980_v46 }
 0x6ae   : > { %12307 = vst [vmem:[#allocation14_spill] sm:$0xff] %v11694_v56  ;;  %v11702_v50 = vrot.slane %v6457_v12, 11  ;;  %v6483_v26 = vshrl.u32 %v6389_v18, 16  ;;  %v11711_v4 = vrot.slane %v6614_v20, 5  ;;  %v11713_v9 = vrot.slane %v6628_v47, 5  ;;  %8667 = vmatprep.subr.bf16.mxu1 %v9981_v29 }
 0x6af   : > { %12308 = vst [vmem:[#allocation15_spill] sm:$0xff] %v11698_v24  ;;  %12309 = vst [vmem:[#allocation17_spill] sm:$0xff] %v11700_v21  ;;  %v11716_v16 = vrot.slane %v6583_v43, 4  ;;  %v6642_v63 = vshll.u32 %v6569_v44, 16  ;;  %v7049_v1 = vld [vmem:[#allocation3 + $0x18] sm:$0x8] }
 0x6b0   : > { %v10060_v57 = vpop.eup %10059  ;;  %12310 = vst [vmem:[#allocation16_spill] sm:$0xff] %v11702_v50  ;;  %12311 = vst [vmem:[#allocation18_spill] sm:$0xff] %v11711_v4  ;;  %v11719_v50 = vrot.slane %v6470_v40, 11  ;;  %v6656_v20 = vshll.u32 %v6571_v32, 16  ;;  %v7051_v4 = vld [vmem:[#allocation3 + $0x24] sm:$0x8] }
 0x6b1   : > { %v10062_v39 = vpop.eup %10061  ;;  %v6281_v35 = vmul.f32 %v10060_v57, %v11626_v52  ;;  %12312 = vst [vmem:[#allocation19_spill] sm:$0xff] %v11713_v9  ;;  %v6575_v52 = vld [vmem:[#allocation3 + $0x5c] sm:$0x1]  ;;  %v7053_v47 = vld [vmem:[#allocation3 + $0x30] sm:$0x8]  ;;  %v6670_v43 = vshll.u32 %v6573_v51, 16 }
 0x6b2   : > { %v10064_v12 = vpop.eup %10063  ;;  %v6282_v60 = vmul.f32 %v10062_v39, %v11628_v2  ;;  %v11722_v2 = vrot.slane %v6483_v26, 11  ;;  %v7055_v44 = vld [vmem:[#allocation3 + $0x3c] sm:$0x8]  ;;  %v11724_v39 = vld [vmem:[#allocation3 + $0x70] sm:$0xf]  ;;  %v7079_v51 = vshrl.u32 %v7051_v4, 16 }
 0x6b3   : > { %v10066_v18 = vpop.eup %10065  ;;  %v6283_v57 = vmul.f32 %v10064_v12, %v11630_v22  ;;  %v6359_v23 = vpack.c.bf16 %v6281_v35, %v6281_v35  ;;  %v9982_v32 = vld [vmem:[%s12218_s11 + $0x28] sm:$0xff]   ;;  %v6684_v35 = vshll.u32 %v6575_v52, 16  ;;  %v7092_v12 = vshrl.u32 %v7053_v47, 16 }
 0x6b4   : > { %v10068_v9 = vpop.eup %10067  ;;  %v6284_v21 = vmul.f32 %v10066_v18, %v11632_v55  ;;  %v6360_v24 = vpack.c.bf16 %v6282_v60, %v6282_v60  ;;  %v7066_v55 = vshrl.u32 %v7049_v1, 16  ;;  %8668 = vmatpush3.bf16.msra.mxu1 %v9982_v32  ;;  %v7162_v18 = vshrl.u32 %v11724_v39, 16 }
 0x6b5   : > { %v10070_v56 = vpop.eup %10069  ;;  %v6285_v22 = vmul.f32 %v10068_v9, %v11634_v10  ;;  %6367 = vst.msk [vmem:[#allocation3 + $0x10] sm:$0xf] %vm6295_vm7, %v6359_v23  ;;  %v6361_v40 = vpack.c.bf16 %v6283_v57, %v6283_v57  ;;  %v7105_v9 = vshrl.u32 %v7055_v44, 16  ;;  %v11745_v4 = vrot.slane %v6670_v43, 5  ;;  %v9984_v43 = vld [vmem:[%s12218_s11 + $0x30] sm:$0xff]  }
 0x6b6   : > { %v10072_v46 = vpop.eup %10071  ;;  %v6286_v26 = vmul.f32 %v10070_v56, %v11636_v34  ;;  %6368 = vst.msk [vmem:[#allocation3 + $0x1c] sm:$0xf] %vm6295_vm7, %v6360_v24  ;;  %v6362_v29 = vpack.c.bf16 %v6284_v21, %v6284_v21  ;;  %v11738_v56 = vrot.slane %v6642_v63, 5  ;;  %v11740_v24 = vrot.slane %v6656_v20, 5  ;;  %v11742_v21 = vld [vmem:[#allocation3 + $0x48] sm:$0x8] }
 0x6b7   : > { %v10074_v60 = vpop.eup %10073  ;;  %v6287_v10 = vmul.f32 %v10072_v46, %v11640_v6  ;;  %6369 = vst.msk [vmem:[#allocation3 + $0x28] sm:$0xf] %vm6295_vm7, %v6361_v40  ;;  %v6363_v23 = vpack.c.bf16 %v6285_v22, %v6285_v22  ;;  %12315 = vst [vmem:[#allocation22_spill] sm:$0xff] %v11742_v21  ;;  %v11747_v1 = vrot.slane %v6684_v35, 5  ;;  %v11749_v57 = vrot.slane %v7066_v55, 11  ;;  %v9983_v20 = vld [vmem:[%s12218_s11 + $0x70] sm:$0xff]  }
 0x6b8   : > { %v6288_v52 = vmul.f32 %v10074_v60, %v11645_v45  ;;  %6370 = vst.msk [vmem:[#allocation3 + $0x34] sm:$0xf] %vm6295_vm7, %v6362_v29  ;;  %v6364_v34 = vpack.c.bf16 %v6286_v26, %v6286_v26  ;;  %12313 = vst [vmem:[#allocation20_spill] sm:$0xff] %v11738_v56  ;;  %v12319_v45 = vshll.u32 %v11662_v30, 16  ;;  %v11763_v44 = vrot.slane %v7079_v51, 11  ;;  %8669 = vmatprep.subr.bf16.mxu1 %v9983_v20 }
 0x6b9   : > { %12314 = vst [vmem:[#allocation24_spill] sm:$0xff] %v11740_v24  ;;  %6371 = vst.msk [vmem:[#allocation3 + $0x40] sm:$0xf] %vm6295_vm7, %v6363_v23  ;;  %v6365_v6 = vpack.c.bf16 %v6287_v10, %v6287_v10  ;;  %v11765_v22 = vrot.slane %v7092_v12, 11  ;;  %v7063_v40 = vld [vmem:[#allocation3 + $0x6c] sm:$0x8]  ;;  %8670 = vmatpush3.bf16.msra.mxu1 %v9984_v43 }
 0x6ba   : > { %12316 = vst [vmem:[#allocation21_spill] sm:$0xff] %v11745_v4  ;;  %12317 = vst [vmem:[#allocation25_spill] sm:$0xff] %v11747_v1  ;;  %v6366_v47 = vpack.c.bf16 %v6288_v52, %v6288_v52  ;;  %v11755_v63 = vor.u32 %v12319_v45, %v11685_v49  ;;  %v11768_v32 = vrot.slane %v7105_v9, 11  ;;  %v11770_v30 = vld [vmem:[#allocation3 + $0x54] sm:$0x8]  ;;  %v7164_v35 = vrot.slane %v7162_v18, 7 }
 0x6bb   : > { %12318 = vst [vmem:[#allocation23_spill] sm:$0xff] %v11749_v57  ;;  %6372 = vst.msk [vmem:[#allocation3 + $0x4c] sm:$0xf] %vm6295_vm7, %v6364_v34  ;;  %v7165_v55 = vshll.u32 %v11724_v39, 16  ;;  %v11775_v29 = vld [vmem:[#allocation3 + $0x60] sm:$0x8] }
 0x6bc   : > { %12320 = vst [vmem:[#allocation10_spill] sm:$0xff] %v11763_v44  ;;  %12321 = vst [vmem:[#allocation26_spill] sm:$0xff] %v11765_v22  ;;  %v9957_v46 = vld [vmem:[#allocation3 + $0x4] ss:$12 sps:$4 sm:$0xff]   ;;  %v7157_v60 = vshrl.u32 %v7063_v40, 16  ;;  %v11779_v9 = vld [vmem:[%s10335_s30] sm:$0xff] }
 0x6bd   : > { %6373 = vst.msk [vmem:[#allocation3 + $0x58] sm:$0xf] %vm6295_vm7, %v6365_v6  ;;  %12322 = vst [vmem:[#allocation27_spill] sm:$0xff] %v11768_v32  ;;  %v6709_v26 = vld [vmem:[#allocation3 + $0x10] sm:$0xf]  ;;  %6543 = vrot.lane.b32.xlu1 %v9957_v46, %s12325_s26  ;;  %v11787_v34 = vld [vmem:[%s10335_s30 + $0x10] sm:$0xff] }
 0x6be   : > { %12323 = vst [vmem:[#allocation28_spill] sm:$0xff] %v11770_v30  ;;  %6374 = vst.msk [vmem:[#allocation3 + $0x64] sm:$0xf] %vm6295_vm7, %v6366_v47  ;;  %v6711_v51 = vld [vmem:[#allocation3 + $0x1c] sm:$0xf]  ;;  %v6730_v12 = vshrl.u32 %v6709_v26, 16 }
 0x6bf   : > { %12324 = vst [vmem:[#allocation29_spill] sm:$0xff] %v11775_v29  ;;  %v9959_v10 = vld [vmem:[#allocation3 + $0x1c] ss:$12 sps:$4 sm:$0xff]   ;;  %v6733_v23 = vshll.u32 %v6709_v26, 16  ;;  %v6743_v39 = vshrl.u32 %v6711_v51, 16  ;;  %v11782_v18 = vld [vmem:[%s10335_s30 + $0x8] sm:$0xff] }
 0x6c0   : > { %v11790_v6 = vld [vmem:[%s10335_s30 + $0x18] sm:$0xff]  ;;  %v6732_v45 = vrot.slane %v6730_v12, 7  ;;  %v6713_v20 = vld [vmem:[#allocation3 + $0x28] sm:$0xf]  ;;  %v11802_v46 = vld [vmem:[%s10335_s30 + $0x28] sm:$0xff]  ;;  %v6746_v52 = vshll.u32 %v6711_v51, 16 }
 0x6c1   : > { %v11799_v40 = vld [vmem:[%s10335_s30 + $0x20] sm:$0xff]  ;;  %v9985_v12 = vld [vmem:[%s12218_s11 + $0x78] sm:$0xff]   ;;  %v6745_v47 = vrot.slane %v6743_v39, 7  ;;  %v6756_v32 = vshrl.u32 %v6713_v20, 16  ;;  %v6715_v21 = vld [vmem:[#allocation3 + $0x34] sm:$0xf]  ;;  %6545 = vrot.lane.b32.xlu1 %v9959_v10, %s12325_s26  ;;  %v11839_v10 = vor.u32 %v7165_v55, %v7164_v35 }
 0x6c2   : > { %v6735_v22 = vor.u32 %v6733_v23, %v6732_v45  ;;  %v11815_v1 = vld [vmem:[%s10335_s30 + $0x30] sm:$0xff]  ;;  %v11818_v4 = vld [vmem:[%s10335_s30 + $0x38] sm:$0xff]  ;;  %8671 = vmatprep.subr.bf16.mxu1 %v9985_v12  ;;  %v6759_v30 = vshll.u32 %v6713_v20, 16  ;;  %v6769_v44 = vshrl.u32 %v6715_v21, 16  ;;  %v9987_v26 = vld [vmem:[%s12218_s11 + $0xc0] sm:$0xff]   ;;  %v6772_v49 = vshll.u32 %v6715_v21, 16 }
 0x6c3   : > { %12326 = vst [vmem:[#allocation30_spill] sm:$0xff] %v11815_v1  ;;  %12327 = vst [vmem:[#allocation31_spill] sm:$0xff] %v11818_v4  ;;  %v9986_v51 = vld [vmem:[%s12218_s11 + $0x38] sm:$0xff]   ;;  %v6748_v39 = vor.u32 %v6746_v52, %v6745_v47  ;;  %v6758_v43 = vrot.slane %v6756_v32, 7  ;;  %v6719_v4 = vld [vmem:[#allocation3 + $0x4c] sm:$0xf] }
 0x6c4   : > { %v9961_v45 = vld [vmem:[#allocation3 + $0x34] ss:$12 sps:$4 sm:$0xff]   ;;  %v6736_v12 = vsel %vm10807_vm13, %v11587_v54, %v6735_v22  ;;  %8672 = vmatpush3.bf16.msra.mxu1 %v9986_v51  ;;  %v11837_v23 = vrot.slane %v7157_v60, 11  ;;  %v6771_v47 = vrot.slane %v6769_v44, 7  ;;  %v6892_v29 = vld [vmem:[#allocation3 + $0x10] sm:$0xf] }
 0x6c5   : > { %v6717_v1 = vld [vmem:[#allocation3 + $0x40] sm:$0xf]  ;;  %v6749_v32 = vsel %vm10807_vm13, %v11589_v42, %v6748_v39  ;;  %v6761_v52 = vor.u32 %v6759_v30, %v6758_v43  ;;  %v6894_v57 = vld [vmem:[#allocation3 + $0x1c] sm:$0xf]  ;;  %8697 = vmatprep.subr.bf16.mxu1 %v9987_v26  ;;  %v6795_v21 = vshrl.u32 %v6719_v4, 16  ;;  %v6798_v22 = vshll.u32 %v6719_v4, 16  ;;  %6547 = vrot.lane.b32.xlu1 %v9961_v45, %s12325_s26 }
 0x6c6   : > { %v6782_v20 = vshrl.u32 %v6717_v1, 16  ;;  %v8236_v24 = vcombine.low %v6736_v12, %v6749_v32  ;;  %v6785_v54 = vshll.u32 %v6717_v1, 16  ;;  %v7233_v56 = vld [vmem:[#allocation3 + $0x1c] sm:$0xf]  ;;  %v6774_v55 = vor.u32 %v6772_v49, %v6771_v47  ;;  %v9963_v1 = vld [vmem:[#allocation3 + $0x4c] ss:$12 sps:$4 sm:$0xff]  }
 0x6c7   : > { %v6762_v35 = vsel %vm10807_vm13, %v11591_v15, %v6761_v52  ;;  %v6909_v42 = vshrl.u32 %v6892_v29, 16  ;;  %v6797_v44 = vrot.slane %v6795_v21, 7  ;;  %v6912_v30 = vshll.u32 %v6892_v29, 16  ;;  %v7235_v45 = vld [vmem:[#allocation3 + $0x28] sm:$0xf]  ;;  %v12356_v41 = vld [vmem:[#allocation26_spill] sm:$0xff] }
 0x6c8   : > { %v6784_v60 = vrot.slane %v6782_v20, 7  ;;  %6840 = vrot.lane.b32.xlu0 %v8236_v24, %s12325_s26  ;;  %v6923_v43 = vshrl.u32 %v6894_v57, 16  ;;  %v6926_v26 = vshll.u32 %v6894_v57, 16  ;;  %v6775_v4 = vsel %vm10807_vm13, %v11593_v28, %v6774_v55  ;;  %v7237_v47 = vld [vmem:[#allocation3 + $0x34] sm:$0xf] }
 0x6c9   : > { %v6911_v39 = vrot.slane %v6909_v42, 4  ;;  %v7250_v12 = vshrl.u32 %v7233_v56, 16  ;;  %v8237_v32 = vcombine.low %v6762_v35, %v6775_v4  ;;  %v6800_v15 = vor.u32 %v6798_v22, %v6797_v44  ;;  %6549 = vrot.lane.b32.xlu1 %v9963_v1, %s12325_s26  ;;  %v7239_v35 = vld [vmem:[#allocation3 + $0x40] sm:$0xf]  ;;  %v7241_v4 = vld [vmem:[#allocation3 + $0x4c] sm:$0xf] }
 0x6ca   : > { %v6787_v51 = vor.u32 %v6785_v54, %v6784_v60  ;;  %v6914_v49 = vrot.slane %v6912_v30, 5  ;;  %v6925_v52 = vrot.slane %v6923_v43, 4  ;;  %v6928_v57 = vrot.slane %v6926_v26, 5 }
 0x6cb   : > { %v7252_v29 = vrot.slane %v7250_v12, 4  ;;  %v7253_v20 = vshll.u32 %v7233_v56, 16  ;;  %v6801_v28 = vsel %vm10807_vm13, %v11597_v19, %v6800_v15  ;;  %v7264_v21 = vshrl.u32 %v7235_v45, 16  ;;  %v7243_v15 = vld [vmem:[#allocation3 + $0x58] sm:$0xf] }
 0x6cc   : > { %v6788_v24 = vsel %vm10807_vm13, %v11595_v3, %v6787_v51  ;;  %6842 = vrot.lane.b32.xlu0 %v8237_v32, %s12325_s26  ;;  %v6915_v54 = vor.u32 %v6914_v49, %v6911_v39  ;;  %v7267_v22 = vshll.u32 %v7235_v45, 16  ;;  %v6929_v60 = vor.u32 %v6928_v57, %v6925_v52 }
 0x6cd   : > { %v8238_v55 = vcombine.low %v6788_v24, %v6801_v28  ;;  %v7255_v42 = vrot.slane %v7253_v20, 5  ;;  %v7278_v44 = vshrl.u32 %v7237_v47, 16  ;;  %v7266_v43 = vrot.slane %v7264_v21, 4 }
 0x6ce   : > { %v6916_v30 = vrot.slane %v6915_v54, 4  ;;  %v7269_v3 = vrot.slane %v7267_v22, 5  ;;  %v7281_v26 = vshll.u32 %v7237_v47, 16  ;;  %v6930_v56 = vrot.slane %v6929_v60, 4  ;;  %v6721_v54 = vld [vmem:[#allocation3 + $0x58] sm:$0xf] }
 0x6cf   : > { %v7256_v1 = vor.u32 %v7255_v42, %v7252_v29  ;;  %v7280_v51 = vrot.slane %v7278_v44, 4  ;;  %v7292_v12 = vshrl.u32 %v7239_v35, 16  ;;  %v7295_v32 = vshll.u32 %v7239_v35, 16 }
 0x6d0   : > { %6844 = vrot.lane.b32.xlu0 %v8238_v55, %s12325_s26  ;;  %v6921_v19 = vsel %vm10821_vm14, %v6916_v30, %v11599_v59  ;;  %v7270_v39 = vor.u32 %v7269_v3, %v7266_v43  ;;  %v7283_v45 = vrot.slane %v7281_v26, 5  ;;  %v6935_v49 = vsel %vm10821_vm14, %v6930_v56, %v11605_v25  ;;  %v6723_v55 = vld [vmem:[#allocation3 + $0x64] sm:$0xf]  ;;  %v6896_v56 = vld [vmem:[#allocation3 + $0x28] sm:$0xf] }
 0x6d1   : > { %v7257_v52 = vrot.slane %v7256_v1, 4  ;;  %v7294_v47 = vrot.slane %v7292_v12, 4  ;;  %v7306_v24 = vshrl.u32 %v7241_v4, 16  ;;  %v8244_v57 = vcombine.low %v6921_v19, %v6935_v49 }
 0x6d2   : > { %v7271_v29 = vrot.slane %v7270_v39, 4  ;;  %v7284_v20 = vor.u32 %v7283_v45, %v7280_v51  ;;  %v7297_v28 = vrot.slane %v7295_v32, 5  ;;  %v7309_v22 = vshll.u32 %v7241_v4, 16  ;;  %v6898_v45 = vld [vmem:[#allocation3 + $0x34] sm:$0xf] }
 0x6d3   : > { %v7262_v59 = vsel %vm10821_vm14, %v7257_v52, %v11607_v17  ;;  %v7308_v21 = vrot.slane %v7306_v24, 4  ;;  %v7320_v35 = vshrl.u32 %v7243_v15, 16  ;;  %7032 = vrot.lane.b32.xlu1 %v8244_v57, %s12325_s26  ;;  %v7323_v44 = vshll.u32 %v7243_v15, 16 }
 0x6d4   : > { %v7276_v25 = vsel %vm10821_vm14, %v7271_v29, %v11638_v58  ;;  %v7285_v60 = vrot.slane %v7284_v20, 4  ;;  %v7298_v42 = vor.u32 %v7297_v28, %v7294_v47  ;;  %v7311_v43 = vrot.slane %v7309_v22, 5  ;;  %v6900_v29 = vld [vmem:[#allocation3 + $0x40] sm:$0xf] }
 0x6d5   : > { %v8264_v30 = vcombine.low %v7262_v59, %v7276_v25  ;;  %v7322_v3 = vrot.slane %v7320_v35, 4  ;;  %v6808_v26 = vshrl.u32 %v6721_v54, 16  ;;  %v7325_v1 = vrot.slane %v7323_v44, 5 }
 0x6d6   : > { %v7290_v17 = vsel %vm10821_vm14, %v7285_v60, %v11652_v27  ;;  %v7299_v4 = vrot.slane %v7298_v42, 4  ;;  %v6811_v51 = vshll.u32 %v6721_v54, 16  ;;  %v7312_v12 = vor.u32 %v7311_v43, %v7308_v21 }
 0x6d7   : > { %7377 = vst.msk [vmem:[#allocation5 + $0x20] sm:$0xff] %vm4066_vm5, %v8264_v30  ;;  %v6810_v19 = vrot.slane %v6808_v26, 7  ;;  %v6821_v58 = vshrl.u32 %v6723_v55, 16  ;;  %v6824_v39 = vshll.u32 %v6723_v55, 16  ;;  %v7326_v15 = vor.u32 %v7325_v1, %v7322_v3  ;;  %v6902_v55 = vld [vmem:[#allocation3 + $0x4c] sm:$0xf] }
 0x6d8   : > { %v7304_v32 = vsel %vm10821_vm14, %v7299_v4, %v11654_v36  ;;  %v6937_v49 = vshrl.u32 %v6896_v56, 16  ;;  %v6940_v52 = vshll.u32 %v6896_v56, 16  ;;  %v7313_v24 = vrot.slane %v7312_v12, 4  ;;  %v7245_v30 = vld [vmem:[#allocation3 + $0x64] sm:$0xf] }
 0x6d9   : > { %v8265_v47 = vcombine.low %v7290_v17, %v7304_v32  ;;  %v6813_v27 = vor.u32 %v6811_v51, %v6810_v19  ;;  %v6823_v57 = vrot.slane %v6821_v58, 7  ;;  %v7327_v20 = vrot.slane %v7326_v15, 4  ;;  %v6904_v56 = vld [vmem:[#allocation3 + $0x58] sm:$0xf]  ;;  %v6906_v12 = vld [vmem:[#allocation3 + $0x64] sm:$0xf] }
 0x6da   : > { %v6939_v28 = vrot.slane %v6937_v49, 4  ;;  %v6942_v54 = vrot.slane %v6940_v52, 5  ;;  %v6951_v59 = vshrl.u32 %v6898_v45, 16  ;;  %v7318_v21 = vsel %vm10821_vm14, %v7313_v24, %v11664_v38  ;;  %v6378_v52 = vld [vmem:[#allocation3 + $0x10] sm:$0xf] }
 0x6db   : > { %7378 = vst.msk [vmem:[#allocation5 + $0x48] sm:$0xff] %vm4066_vm5, %v8265_v47  ;;  %v6814_v36 = vsel %vm10807_vm13, %v11668_v33, %v6813_v27  ;;  %v6826_v22 = vor.u32 %v6824_v39, %v6823_v57  ;;  %v6954_v35 = vshll.u32 %v6898_v45, 16  ;;  %v7332_v25 = vsel %vm10821_vm14, %v7327_v20, %v11666_v7  ;;  %v9965_v45 = vld [vmem:[#allocation3 + $0x1c] ss:$12 sps:$4 sm:$0xff]  }
 0x6dc   : > { %v6943_v60 = vor.u32 %v6942_v54, %v6939_v28  ;;  %v6953_v42 = vrot.slane %v6951_v59, 4  ;;  %v6965_v44 = vshrl.u32 %v6900_v29, 16  ;;  %v8266_v43 = vcombine.low %v7318_v21, %v7332_v25  ;;  %v9988_v20 = vld [vmem:[#allocation3 + $0x10] ss:$12 sps:$4 sm:$0xff]  }
 0x6dd   : > { %v6827_v38 = vsel %vm10807_vm13, %v11670_v62, %v6826_v22  ;;  %v6956_v3 = vrot.slane %v6954_v35, 5  ;;  %v6968_v26 = vshll.u32 %v6900_v29, 16  ;;  %v6979_v51 = vshrl.u32 %v6902_v55, 16  ;;  %v9968_v29 = vld [vmem:[%s12220_s13 + $0x8] sm:$0xff]   ;;  %v6380_v25 = vld [vmem:[#allocation3 + $0x1c] sm:$0xf] }
 0x6de   : > { %v7385_v33 = vld [vmem:[#allocation5 + $0x20] sm:$0xff]  ;;  %v8239_v17 = vcombine.low %v6814_v36, %v6827_v38  ;;  %v6944_v4 = vrot.slane %v6943_v60, 4  ;;  %v6967_v1 = vrot.slane %v6965_v44, 4  ;;  %7379 = vst.msk [vmem:[#allocation5 + $0x70] sm:$0xff] %vm4066_vm5, %v8266_v43  ;;  %v6982_v58 = vshll.u32 %v6902_v55, 16  ;;  %6888 = vst.msk [vmem:[#allocation5 + $0x10] sm:$0xff] %vm4066_vm5, %v9988_v20 }
 0x6df   : > { %9395 = vmatprep.mubr.msk.bf16.mxu0 %vm4066_vm5, %v7385_v33  ;;  %v6957_v7 = vor.u32 %v6956_v3, %v6953_v42  ;;  %v6970_v19 = vrot.slane %v6968_v26, 5  ;;  %v7334_v39 = vshrl.u32 %v7245_v30, 16  ;;  %v6981_v32 = vrot.slane %v6979_v51, 4  ;;  %v10089_v44 = vld [vmem:[%s12220_s13] sm:$0xff]  }
 0x6e0   : > { %6846 = vrot.lane.b32.xlu0 %v8239_v17, %s12325_s26  ;;  %v6949_v62 = vsel %vm10821_vm14, %v6944_v4, %v11656_v61  ;;  %v7337_v15 = vshll.u32 %v7245_v30, 16  ;;  %v6993_v49 = vshrl.u32 %v6904_v56, 16  ;;  %v6984_v27 = vrot.slane %v6982_v58, 5  ;;  %v9967_v30 = vld [vmem:[#allocation3 + $0x34] ss:$12 sps:$4 sm:$0xff]  }
 0x6e1   : > { %v6958_v47 = vrot.slane %v6957_v7, 4  ;;  %v6971_v24 = vor.u32 %v6970_v19, %v6967_v1  ;;  %v7336_v57 = vrot.slane %v7334_v39, 4  ;;  %v6996_v21 = vshll.u32 %v6904_v56, 16  ;;  %v9990_v33 = vld [vmem:[#allocation3 + $0x28] ss:$12 sps:$4 sm:$0xff]  }
 0x6e2   : > { %v7390_v28 = vld [vmem:[#allocation5 + $0x48] sm:$0xff]  ;;  %v7339_v54 = vrot.slane %v7337_v15, 5  ;;  %v6995_v59 = vrot.slane %v6993_v49, 4  ;;  %v7007_v36 = vshrl.u32 %v6906_v12, 16  ;;  %v6985_v35 = vor.u32 %v6984_v27, %v6981_v32  ;;  %6889 = vst.msk [vmem:[#allocation5 + $0x38] sm:$0xff] %vm4066_vm5, %v9990_v33 }
 0x6e3   : > { %9396 = vmatmul.mubr.msk.bf16.vlgmr.msra.gmra.mrb[24].mxu0 %vm4066_vm5, %v7390_v28  ;;  %v6963_v61 = vsel %vm10821_vm14, %v6958_v47, %v11658_v53  ;;  %v6972_v22 = vrot.slane %v6971_v24, 4  ;;  %v7010_v55 = vshll.u32 %v6906_v12, 16  ;;  %v6998_v43 = vrot.slane %v6996_v21, 5  ;;  %v6382_v12 = vld [vmem:[#allocation3 + $0x28] sm:$0xf]  ;;  %v12328_v32 = vld [vmem:[#allocation11_spill] sm:$0xff] }
 0x6e4   : > { %v8245_v60 = vcombine.low %v6949_v62, %v6963_v61  ;;  %7217 = vrot.lane.b32.xlu0 %v9965_v45, %s12325_s26  ;;  %v7340_v42 = vor.u32 %v7339_v54, %v7336_v57  ;;  %9404 = vmatpush3.bf16.msra.mxu0 %v10089_v44  ;;  %v7009_v38 = vrot.slane %v7007_v36, 4  ;;  %v6986_v3 = vrot.slane %v6985_v35, 4  ;;  %v6562_v62 = vld [vmem:[#allocation3 + $0x10] sm:$0xf]  ;;  %v9993_v24 = vld [vmem:[#allocation3 + $0x40] ss:$12 sps:$4 sm:$0xff]  }
 0x6e5   : > { %v6977_v53 = vsel %vm10821_vm14, %v6972_v22, %v11660_v11  ;;  %v7012_v26 = vrot.slane %v7010_v55, 5  ;;  %9405 = vmatprep.subr.bf16.mxu0 %v9968_v29  ;;  %v6410_v56 = vshrl.u32 %v6378_v52, 16  ;;  %v7395_v17 = vld [vmem:[#allocation5 + $0x70] sm:$0xff]  ;;  %v6999_v1 = vor.u32 %v6998_v43, %v6995_v59  ;;  %v6384_v54 = vld [vmem:[#allocation3 + $0x34] sm:$0xf]  ;;  %6890 = vst.msk [vmem:[#allocation5 + $0x60] sm:$0xff] %vm4066_vm5, %v9993_v24 }
 0x6e6   : > { %7034 = vrot.lane.b32.xlu1 %v8245_v60, %s12325_s26  ;;  %v7341_v4 = vrot.slane %v7340_v42, 4  ;;  %v6413_v51 = vshll.u32 %v6378_v52, 16  ;;  %v6423_v7 = vshrl.u32 %v6380_v25, 16  ;;  %9399 = vmatprep.mubr.msk.bf16.mxu0 %vm4066_vm5, %v7395_v17  ;;  %v6991_v19 = vsel %vm10821_vm14, %v6986_v3, %v11672_v37  ;;  %v9969_v52 = vld [vmem:[#allocation3 + $0x4c] ss:$12 sps:$4 sm:$0xff]  }
 0x6e7   : > { %v7013_v11 = vor.u32 %v7012_v26, %v7009_v38  ;;  %v6412_v58 = vrot.slane %v6410_v56, 7  ;;  %v6426_v39 = vshll.u32 %v6380_v25, 16  ;;  %v8246_v45 = vcombine.low %v6977_v53, %v6991_v19  ;;  %v6386_v59 = vld [vmem:[#allocation3 + $0x40] sm:$0xf]  ;;  %v12330_v21 = vld [vmem:[#allocation12_spill] sm:$0xff] }
 0x6e8   : > { %v7346_v15 = vsel %vm10821_vm14, %v7341_v4, %v12328_v32  ;;  %7219 = vrot.lane.b32.xlu0 %v9967_v30, %s12325_s26  ;;  %v7000_v49 = vrot.slane %v6999_v1, 4  ;;  %9406 = vmatpush3.bf16.msra.mxu0 %v9968_v29  ;;  %v6425_v47 = vrot.slane %v6423_v7, 7  ;;  %v12329_v37 = vsel %vm10821_vm14, %v11687_v48, %v11677_v14  ;;  %v12331_v14 = vld [vmem:[#allocation13_spill] sm:$0xff]  ;;  %v6564_v60 = vld [vmem:[#allocation3 + $0x1c] sm:$0xf] }
 0x6e9   : > { %v8267_v27 = vcombine.low %v7346_v15, %v12329_v37  ;;  %v7014_v57 = vrot.slane %v7013_v11, 4  ;;  %v6415_v20 = vor.u32 %v6413_v51, %v6412_v58  ;;  %v6436_v28 = vshrl.u32 %v6382_v12, 16  ;;  %v9996_v42 = vld [vmem:[#allocation3 + $0x58] ss:$12 sps:$4 sm:$0xff]   ;;  %v6566_v3 = vld [vmem:[#allocation3 + $0x28] sm:$0xf] }
 0x6ea   : > { %7036 = vrot.lane.b32.xlu1 %v8246_v45, %s12325_s26  ;;  %v7005_v29 = vsel %vm10821_vm14, %v7000_v49, %v12330_v21  ;;  %v6428_v36 = vor.u32 %v6426_v39, %v6425_v47  ;;  %v6439_v61 = vshll.u32 %v6382_v12, 16  ;;  %v6591_v22 = vshrl.u32 %v6562_v62, 16  ;;  %6891 = vst.msk [vmem:[#allocation5 + $0x88] sm:$0xff] %vm4066_vm5, %v9996_v42  ;;  %v9970_v17 = vld [vmem:[#allocation3 + $0x64] ss:$12 sps:$4 sm:$0xff]   ;;  %v12333_v51 = vld [vmem:[#allocation14_spill] sm:$0xff] }
 0x6eb   : > { %7380 = vst.msk [vmem:[#allocation5 + $0x98] sm:$0xff] %vm4066_vm5, %v8267_v27  ;;  %v7019_v48 = vsel %vm10821_vm14, %v7014_v57, %v12331_v14  ;;  %v6416_v35 = vsel %vm10807_vm13, %v11690_v31, %v6415_v20  ;;  %v6438_v55 = vrot.slane %v6436_v28, 7  ;;  %v6594_v25 = vshll.u32 %v6562_v62, 16  ;;  %v6388_v11 = vld [vmem:[#allocation3 + $0x4c] sm:$0xf]  ;;  %v12334_v28 = vld [vmem:[#allocation15_spill] sm:$0xff] }
 0x6ec   : > { %v8247_v44 = vcombine.low %v7005_v29, %v7019_v48  ;;  %7221 = vrot.lane.b32.xlu0 %v9969_v52, %s12325_s26  ;;  %v12332_v30 = vsel %vm10807_vm13, %v11683_v0, %v11755_v63  ;;  %v6429_v38 = vsel %vm10807_vm13, %v11692_v8, %v6428_v36  ;;  %v6593_v53 = vrot.slane %v6591_v22, 4  ;;  %v6390_v32 = vld [vmem:[#allocation3 + $0x58] sm:$0xf]  ;;  %v6570_v42 = vld [vmem:[#allocation3 + $0x40] sm:$0xf] }
 0x6ed   : > { %v8216_v43 = vcombine.low %v12332_v30, %v6416_v35  ;;  %v6441_v31 = vor.u32 %v6439_v61, %v6438_v55  ;;  %v6596_v26 = vrot.slane %v6594_v25, 5  ;;  %v6449_v56 = vshrl.u32 %v6384_v54, 16  ;;  %v6568_v61 = vld [vmem:[#allocation3 + $0x34] sm:$0xf]  ;;  %v12338_v35 = vld [vmem:[#allocation16_spill] sm:$0xff] }
 0x6ee   : > { %v6452_v33 = vshll.u32 %v6384_v54, 16  ;;  %7038 = vrot.lane.b32.xlu1 %v8247_v44, %s12325_s26  ;;  %v6462_v4 = vshrl.u32 %v6386_v59, 16  ;;  %v6465_v0 = vshll.u32 %v6386_v59, 16  ;;  %v6605_v63 = vshrl.u32 %v6564_v60, 16  ;;  %v12335_v59 = vld [vmem:[#allocation17_spill] sm:$0xff] }
 0x6ef   : > { %6511 = vst.msk [vmem:[#allocation5] sm:$0xff] %vm4066_vm5, %v8216_v43  ;;  %v6608_v1 = vshll.u32 %v6564_v60, 16  ;;  %v6442_v8 = vsel %vm10807_vm13, %v12333_v51, %v6441_v31  ;;  %v6597_v12 = vor.u32 %v6596_v26, %v6593_v53  ;;  %v6451_v7 = vrot.slane %v6449_v56, 7  ;;  %v12340_v51 = vld [vmem:[#allocation19_spill] sm:$0xff] }
 0x6f0   : > { %v6619_v19 = vshrl.u32 %v6566_v3, 16  ;;  %7223 = vrot.lane.b32.xlu0 %v9970_v17, %s12325_s26  ;;  %v8217_v58 = vcombine.low %v6429_v38, %v6442_v8  ;;  %v6464_v39 = vrot.slane %v6462_v4, 7  ;;  %v6607_v62 = vrot.slane %v6605_v63, 4  ;;  %v6574_v63 = vld [vmem:[#allocation3 + $0x58] sm:$0xf]  ;;  %s8102_s26 = sshll.u32 %s485_s23, 6 }
 0x6f1   : > { %v6610_v45 = vrot.slane %v6608_v1, 5  ;;  %v6598_v15 = vrot.slane %v6597_v12, 4  ;;  %v6454_v49 = vor.u32 %v6452_v33, %v6451_v7  ;;  %v6622_v47 = vshll.u32 %v6566_v3, 16  ;;  %s12132_s3 = scalar_lea.vmem [#allocation6], %s8102_s26  ;;  %s10161_s26 = smov [#allocation6]  }
 0x6f2   : > { %v6621_v52 = vrot.slane %v6619_v19, 4  ;;  %v7400_v24 = vld [vmem:[#allocation5 + $0x98] sm:$0xff]  ;;  %6512 = vst.msk [vmem:[#allocation5 + $0x28] sm:$0xff] %vm4066_vm5, %v8217_v58  ;;  %v6467_v37 = vor.u32 %v6465_v0, %v6464_v39  ;;  %v6475_v57 = vshrl.u32 %v6388_v11, 16  ;;  %v6478_v20 = vshll.u32 %v6388_v11, 16  ;;  %s8036_s30 = sshll.u32 %s12132_s3, 4  ;;  %s12157_s30 = int_to_ptr.vmem [resolvable:$true] %s8036_s30 }
 0x6f3   : > { %v6611_v27 = vor.u32 %v6610_v45, %v6607_v62  ;;  %9400 = vmatmul.mubr.msk.bf16.gmra.mrb[28].mxu0 %vm4066_vm5, %v7400_v24  ;;  %v6603_v54 = vsel %vm10821_vm14, %v6598_v15, %v12334_v28  ;;  %v6455_v21 = vsel %vm10807_vm13, %v12335_v59, %v6454_v49  ;;  %v6624_v29 = vrot.slane %v6622_v47, 5  ;;  %v7050_v11 = vld [vmem:[#allocation3 + $0x1c] sm:$0xf]  ;;  %v7052_v58 = vld [vmem:[#allocation3 + $0x28] sm:$0xf]  ;;  %s10090_s17 = scalar_lea.vmem %s12157_s30, 1024 }
 0x6f4   : > { %v6488_v36 = vshrl.u32 %v6390_v32, 16  ;;  %v12336_v22 = vpack.c.bf16 %v11782_v18, %v11779_v9  ;;  %v12337_v14 = vsel %vm10821_vm14, %v11716_v16, %v11696_v13  ;;  %v6468_v55 = vsel %vm10807_vm13, %v12338_v35, %v6467_v37  ;;  %v6572_v9 = vld [vmem:[#allocation3 + $0x4c] sm:$0xf]  ;;  %v12339_v18 = vld [vmem:[#allocation18_spill] sm:$0xff]  ;;  %p10091_p11 = scmp.ne.s32.totalorder %s12157_s30, %s10090_s17  ;;  %s10094_s27 = sshll.u32 %s10161_s26, 4  ;;  %s10095_s27 = int_to_ptr.vmem [resolvable:$false] %s10094_s27 }
 0x6f5   : > { %v8224_v48 = vcombine.low %v12337_v14, %v6603_v54  ;;  %v6612_v25 = vrot.slane %v6611_v27, 4  ;;  %v6477_v60 = vrot.slane %v6475_v57, 7  ;;  %v8218_v44 = vcombine.low %v6455_v21, %v6468_v55  ;;  %v12343_v59 = vld [vmem:[#allocation20_spill] sm:$0xff]  ;;  %s10096_s0 = scalar_lea.vmem %s10095_s27, 2048  ;;  %p10097_p0 = scmp.lt.s32.totalorder %s12157_s30, %s10095_s27 }
 0x6f6   : > { %9407 = vmatprep.mubr.msk.bf16.mxu0 %vm512_vm1, %v12336_v22  ;;  %v6625_v30 = vor.u32 %v6624_v29, %v6621_v52  ;;  %v6490_v43 = vrot.slane %v6488_v36, 7  ;;  %v6491_v38 = vshll.u32 %v6390_v32, 16  ;;  %v6633_v16 = vshrl.u32 %v6568_v61, 16  ;;  %v7056_v36 = vld [vmem:[#allocation3 + $0x40] sm:$0xf]  ;;  %p10092_p12 = pnand %p10091_p11, %p10282_p5  ;;  %p10098_p1 = scmp.lt.s32.totalorder %s10096_s0, %s10090_s17 }
 0x6f7   : > { %6704 = vst.msk [vmem:[#allocation5 + $0x8] sm:$0xff] %vm4066_vm5, %v8224_v48  ;;  %v6617_v53 = vsel %vm10821_vm14, %v6612_v25, %v12339_v18  ;;  %v6480_v13 = vor.u32 %v6478_v20, %v6477_v60  ;;  %v6636_v3 = vshll.u32 %v6568_v61, 16  ;;  %6513 = vst.msk [vmem:[#allocation5 + $0x50] sm:$0xff] %vm4066_vm5, %v8218_v44  ;;  %v6647_v56 = vshrl.u32 %v6570_v42, 16  ;;  %v12344_v61 = vld [vmem:[#allocation24_spill] sm:$0xff]  ;;  %v12345_v18 = vld [vmem:[#allocation23_spill] sm:$0xff] }
 0x6f8   : > { %v6626_v31 = vrot.slane %v6625_v30, 4  ;;  %v6493_v26 = vor.u32 %v6491_v38, %v6490_v43  ;;  %v6650_v33 = vshll.u32 %v6570_v42, 16  ;;  %v6635_v4 = vrot.slane %v6633_v16, 4  ;;  %v7058_v55 = vld [vmem:[#allocation3 + $0x4c] sm:$0xf]  ;;  %p10093_p13 = pneg %p10092_p12  ;;  %p10099_p2 = por %p10098_p1, %p10097_p0 }
 0x6f9   : > { %v6481_v17 = vsel %vm10807_vm13, %v11719_v50, %v6480_v13  ;;  %v6638_v0 = vrot.slane %v6636_v3, 5  ;;  %v6661_v1 = vshrl.u32 %v6572_v9, 16  ;;  %v6649_v7 = vrot.slane %v6647_v56, 4  ;;  %v12346_v13 = vld [vmem:[#allocation10_spill] sm:$0xff]  ;;  %v7062_v56 = vld [vmem:[#allocation3 + $0x64] sm:$0xf] }
 0x6fa   : > { %v6631_v8 = vsel %vm10821_vm14, %v6626_v31, %v12340_v51  ;;  %v6494_v12 = vsel %vm10807_vm13, %v11722_v2, %v6493_v26  ;;  %v6652_v19 = vrot.slane %v6650_v33, 5  ;;  %v12341_v32 = vpack.c.bf16 %v11790_v6, %v11787_v34  ;;  %v7054_v34 = vld [vmem:[#allocation3 + $0x34] sm:$0xf]  ;;  %v7060_v31 = vld [vmem:[#allocation3 + $0x58] sm:$0xf]  ;;  %v12347_v33 = vld [vmem:[#allocation31_spill] sm:$0xff]  ;;  %p10100_p3 = pnand %p10099_p2, %p10093_p13 }
 0x6fb   : > { %v8225_v39 = vcombine.low %v6617_v53, %v6631_v8  ;;  %v8219_v62 = vcombine.low %v6481_v17, %v6494_v12  ;;  %v6639_v45 = vor.u32 %v6638_v0, %v6635_v4  ;;  %v6663_v50 = vrot.slane %v6661_v1, 4  ;;  %v12348_v17 = vld [vmem:[#allocation30_spill] sm:$0xff]  ;;  %v12350_v0 = vld [vmem:[#allocation21_spill] sm:$0xff] }
 0x6fc   : > { %9408 = vmatmul.mubr.msk.bf16.vlgmr.msra.gmra.mrb[24].mxu0 %vm512_vm1, %v12341_v32  ;;  %v6653_v15 = vor.u32 %v6652_v19, %v6649_v7  ;;  %v6664_v49 = vshll.u32 %v6572_v9, 16  ;;  %v6675_v52 = vshrl.u32 %v6574_v63, 16  ;;  %v6678_v47 = vshll.u32 %v6574_v63, 16  ;;  %v12351_v1 = vld [vmem:[#allocation25_spill] sm:$0xff] }
 0x6fd   : > { %v12342_v2 = vpack.c.bf16 %v11802_v46, %v11799_v40  ;;  %6705 = vst.msk [vmem:[#allocation5 + $0x30] sm:$0xff] %vm4066_vm5, %v8225_v39  ;;  %6514 = vst.msk [vmem:[#allocation5 + $0x78] sm:$0xff] %vm4066_vm5, %v8219_v62  ;;  %v6640_v24 = vrot.slane %v6639_v45, 4  ;;  %v7071_v37 = vshrl.u32 %v7050_v11, 16  ;;  %v7074_v27 = vshll.u32 %v7050_v11, 16  ;;  %v12352_v39 = vld [vmem:[#allocation22_spill] sm:$0xff] }
 0x6fe   : > { %v7084_v57 = vshrl.u32 %v7052_v58, 16  ;;  %v6654_v6 = vrot.slane %v6653_v15, 4  ;;  %v6666_v20 = vrot.slane %v6664_v49, 5  ;;  %v6677_v28 = vrot.slane %v6675_v52, 4 }
 0x6ff   : > { %9411 = vmatprep.mubr.msk.bf16.mxu0 %vm512_vm1, %v12342_v2  ;;  %v6680_v54 = vrot.slane %v6678_v47, 5  ;;  %v6645_v21 = vsel %vm10821_vm14, %v6640_v24, %v12343_v59  ;;  %v7073_v40 = vrot.slane %v7071_v37, 7  ;;  %v7087_v29 = vshll.u32 %v7052_v58, 16  ;;  %v12357_v37 = vld [vmem:[#allocation29_spill] sm:$0xff] }
 0x700   : > { %v7086_v46 = vrot.slane %v7084_v57, 7  ;;  %v6659_v22 = vsel %vm10821_vm14, %v6654_v6, %v12344_v61  ;;  %v6667_v14 = vor.u32 %v6666_v20, %v6663_v50  ;;  %v7097_v35 = vshrl.u32 %v7054_v34, 16  ;;  %v12354_v50 = vld [vmem:[#allocation28_spill] sm:$0xff] }
 0x701   : > { %v6681_v48 = vor.u32 %v6680_v54, %v6677_v28  ;;  %v8226_v25 = vcombine.low %v6645_v21, %v6659_v22  ;;  %v7076_v60 = vor.u32 %v7074_v27, %v7073_v40  ;;  %v7100_v44 = vshll.u32 %v7054_v34, 16  ;;  %v12359_v54 = vld [vmem:[#allocation27_spill] sm:$0xff] }
 0x702   : > { %v7089_v42 = vor.u32 %v7087_v29, %v7086_v46  ;;  %v6668_v30 = vrot.slane %v6667_v14, 4  ;;  %v7099_v38 = vrot.slane %v7097_v35, 7  ;;  %v7110_v9 = vshrl.u32 %v7056_v36, 16 }
 0x703   : > { %v6682_v43 = vrot.slane %v6681_v48, 4  ;;  %6706 = vst.msk [vmem:[#allocation5 + $0x58] sm:$0xff] %vm4066_vm5, %v8226_v25  ;;  %v7077_v53 = vsel %vm10807_vm13, %v12345_v18, %v7076_v60  ;;  %v7113_v3 = vshll.u32 %v7056_v36, 16  ;;  %v7123_v26 = vshrl.u32 %v7058_v55, 16  ;;  %v9989_v60 = vld [vmem:[%s12218_s11 + $0x80] sm:$0xff]  }
 0x704   : > { %v7090_v16 = vsel %vm10807_vm13, %v12346_v13, %v7089_v42  ;;  %v12349_v4 = vpack.c.bf16 %v12347_v33, %v12348_v17  ;;  %v6673_v63 = vsel %vm10821_vm14, %v6668_v30, %v12350_v0  ;;  %v7102_v12 = vor.u32 %v7100_v44, %v7099_v38  ;;  %v9991_v30 = vld [vmem:[%s12218_s11 + $0xc8] sm:$0xff]   ;;  %v9995_v13 = vld [vmem:[%s12218_s11 + $0x90] sm:$0xff]   ;;  %v10000_v33 = vld [vmem:[%s12218_s11 + $0xa0] sm:$0xff]  }
 0x705   : > { %v6687_v51 = vsel %vm10821_vm14, %v6682_v43, %v12351_v1  ;;  %v8256_v8 = vcombine.low %v7077_v53, %v7090_v16  ;;  %v7112_v19 = vrot.slane %v7110_v9, 7  ;;  %v7125_v11 = vrot.slane %v7123_v26, 7  ;;  %v9992_v38 = vld [vmem:[%s12218_s11 + $0x88] sm:$0xff]   ;;  %v9994_v53 = vld [vmem:[%s12218_s11 + $0xd0] sm:$0xff]   ;;  %v9997_v16 = vld [vmem:[%s12218_s11 + $0xd8] sm:$0xff]  }
 0x706   : > { %9412 = vmatmul.mubr.msk.bf16.gmra.mrb[28].mxu0 %vm512_vm1, %v12349_v4  ;;  %v8227_v7 = vcombine.low %v6673_v63, %v6687_v51  ;;  %v7126_v58 = vshll.u32 %v7058_v55, 16  ;;  %v12353_v62 = vshrl.u32 %v12352_v39, 16  ;;  %v12355_v32 = vshrl.u32 %v12354_v50, 16  ;;  %v9998_v26 = vld [vmem:[%s12218_s11 + $0x98] sm:$0xff]   ;;  %v10001_v4 = vld [vmem:[%s12218_s11 + $0xe8] sm:$0xff]   ;;  %v10003_v51 = vld [vmem:[%s12218_s11 + $0xf0] sm:$0xff]  }
 0x707   : > { %7185 = vst.msk [vmem:[#allocation5 + $0x18] sm:$0xff] %vm4066_vm5, %v8256_v8  ;;  %v7136_v49 = vshrl.u32 %v7060_v31, 16  ;;  %v7149_v52 = vshrl.u32 %v7062_v56, 16  ;;  %v7103_v47 = vsel %vm10807_vm13, %v12356_v41, %v7102_v12  ;;  %v7115_v2 = vor.u32 %v7113_v3, %v7112_v19  ;;  %v10002_v63 = vld [vmem:[%s12218_s11 + $0xa8] sm:$0xff]   ;;  %v10004_v12 = vld [vmem:[%s12218_s11 + $0xb0] sm:$0xff]  }
 0x708   : > { %v8252_v45 = vrot.slane %v12353_v62, 11  ;;  %v8253_v15 = vrot.slane %v12355_v32, 11  ;;  %6707 = vst.msk [vmem:[#allocation5 + $0x80] sm:$0xff] %vm4066_vm5, %v8227_v7  ;;  %v7128_v24 = vor.u32 %v7126_v58, %v7125_v11  ;;  %v12358_v27 = vshrl.u32 %v12357_v37, 16  ;;  %v10005_v11 = vld [vmem:[%s12218_s11 + $0xf8] sm:$0xff]  }
 0x709   : > { %v7138_v34 = vrot.slane %v7136_v49, 7  ;;  %v7139_v6 = vshll.u32 %v7060_v31, 16  ;;  %v7151_v20 = vrot.slane %v7149_v52, 7  ;;  %v7152_v28 = vshll.u32 %v7062_v56, 16  ;;  %v9999_v56 = vld [vmem:[%s12218_s11 + $0xe0] sm:$0xff]   ;;  %v10006_v62 = vld [vmem:[%s12218_s11 + $0xb8] sm:$0xff]  }
 0x70a   : > { %v8254_v57 = vrot.slane %v12358_v27, 11  ;;  %v7116_v59 = vsel %vm10807_vm13, %v12359_v54, %v7115_v2  ;;  %v7168_v21 = vsel %vm10807_vm13, %v11837_v23, %v11839_v10  ;;  %v7129_v46 = vsel %vm10807_vm13, %v8252_v45, %v7128_v24 }
 0x70b   : > { %v8257_v40 = vcombine.low %v7103_v47, %v7116_v59  ;;  %v7141_v29 = vor.u32 %v7139_v6, %v7138_v34  ;;  %v7154_v36 = vor.u32 %v7152_v28, %v7151_v20  ;;  %vm6555_vm1 = vcmask 1048064  }
 0x70d   : > { %7186 = vst.msk [vmem:[#allocation5 + $0x40] sm:$0xff] %vm4066_vm5, %v8257_v40  ;;  %v7142_v61 = vsel %vm10807_vm13, %v8253_v15, %v7141_v29  ;;  %v7155_v22 = vsel %vm10807_vm13, %v8254_v57, %v7154_v36 }
 0x70e   : > { %v8258_v14 = vcombine.low %v7129_v46, %v7142_v61  ;;  %v8259_v48 = vcombine.low %v7155_v22, %v7168_v21 }
 0x710   : > { %7187 = vst.msk [vmem:[#allocation5 + $0x68] sm:$0xff] %vm4066_vm5, %v8258_v14  ;;  %7188 = vst.msk [vmem:[#allocation5 + $0x90] sm:$0xff] %vm4066_vm5, %v8259_v48 }
 0x72f   : > { %v6544_v23 = vpop.permute.xlu1 %6543 }
 0x730   : > { %6556 = vst.msk [vmem:[#allocation5] sm:$0xff] %vm6555_vm1, %v6544_v23 }
 0x733   : > { %v6546_v10 = vpop.permute.xlu1 %6545 }
 0x734   : > { %6557 = vst.msk [vmem:[#allocation5 + $0x28] sm:$0xff] %vm6555_vm1, %v6546_v10 }
 0x737   : > { %v6548_v35 = vpop.permute.xlu1 %6547  ;;  %v7381_v43 = vld [vmem:[#allocation5] sm:$0xff] }
 0x738   : > { %6558 = vst.msk [vmem:[#allocation5 + $0x50] sm:$0xff] %vm6555_vm1, %v6548_v35 }
 0x73a   : > { %v6841_v55 = vpop.permute.xlu0 %6840 }
 0x73b   : > { %6852 = vst.msk [vmem:[#allocation5 + $0x8] sm:$0xff] %vm6555_vm1, %v6841_v55  ;;  %v6550_v5 = vpop.permute.xlu1 %6549  ;;  %v7386_v3 = vld [vmem:[#allocation5 + $0x28] sm:$0xff] }
 0x73c   : > { %6559 = vst.msk [vmem:[#allocation5 + $0x78] sm:$0xff] %vm6555_vm1, %v6550_v5 }
 0x73e   : > { %v6843_v25 = vpop.permute.xlu0 %6842 }
 0x73f   : > { %6853 = vst.msk [vmem:[#allocation5 + $0x30] sm:$0xff] %vm6555_vm1, %v6843_v25  ;;  %v7391_v0 = vld [vmem:[#allocation5 + $0x50] sm:$0xff] }
 0x742   : > { %v6845_v42 = vpop.permute.xlu0 %6844  ;;  %v7382_v44 = vld [vmem:[#allocation5 + $0x8] sm:$0xff] }
 0x743   : > { %6854 = vst.msk [vmem:[#allocation5 + $0x58] sm:$0xff] %vm6555_vm1, %v6845_v42  ;;  %7739 = vmatprep.mubr.bf16.mxu1 %v7382_v44  ;;  %v7396_v58 = vld [vmem:[#allocation5 + $0x78] sm:$0xff] }
 0x744   : > { %7740 = vmatmul.mubr.bf16.vlgmr.msra.gmra.mrb[16].mxu1 %v7381_v43 }
 0x745   : > { %8698 = vmatpush3.bf16.msra.mxu1 %v9989_v60  ;;  %v7033_v9 = vpop.permute.xlu1 %7032 }
 0x746   : > { %v7387_v18 = vld [vmem:[#allocation5 + $0x30] sm:$0xff]  ;;  %8699 = vmatprep.subr.bf16.mxu1 %v9991_v30  ;;  %7044 = vst.msk [vmem:[#allocation5 + $0x10] sm:$0xff] %vm6555_vm1, %v7033_v9 }
 0x747   : > { %7747 = vmatprep.mubr.bf16.mxu1 %v7387_v18 }
 0x749   : > { %8700 = vmatpush3.bf16.msra.mxu1 %v9992_v38 }
 0x74a   : > { %8701 = vmatprep.subr.bf16.mxu1 %v9994_v53  ;;  %v7392_v31 = vld [vmem:[#allocation5 + $0x58] sm:$0xff] }
 0x74c   : > { %7748 = vmatmul.mubr.bf16.gmra.mrb[20].mxu1 %v7386_v3 }
 0x74d   : > { %8702 = vmatpush3.bf16.msra.mxu1 %v9995_v13  ;;  %7755 = vmatprep.mubr.bf16.mxu1 %v7392_v31  ;;  %v7383_v49 = vld [vmem:[#allocation5 + $0x10] sm:$0xff] }
 0x74e   : > { %8703 = vmatprep.subr.bf16.mxu1 %v9997_v16  ;;  %v8268_v13 = vld [vmem:[%s12219_s12] ss:$0 sm:$0xff] }
 0x751   : > { %8704 = vmatpush3.bf16.msra.mxu1 %v9998_v26 }
 0x752   : > { %v6847_v17 = vpop.permute.xlu0 %6846  ;;  %8705 = vmatprep.subr.bf16.mxu1 %v9999_v56 }
 0x753   : > { %6855 = vst.msk [vmem:[#allocation5 + $0x80] sm:$0xff] %vm6555_vm1, %v6847_v17 }
 0x754   : > { %7756 = vmatmul.mubr.bf16.gmra.mrb[24].mxu1 %v7391_v0 }
 0x755   : > { %8706 = vmatpush3.bf16.msra.mxu1 %v10000_v33 }
 0x756   : > { %v7218_v1 = vpop.permute.xlu0 %7217  ;;  %8707 = vmatprep.subr.bf16.mxu1 %v10001_v4 }
 0x757   : > { %7229 = vst.msk [vmem:[#allocation5 + $0x18] sm:$0xff] %vm6555_vm1, %v7218_v1 }
 0x758   : > { %v7035_v8 = vpop.permute.xlu1 %7034 }
 0x759   : > { %7045 = vst.msk [vmem:[#allocation5 + $0x38] sm:$0xff] %vm6555_vm1, %v7035_v8  ;;  %8708 = vmatpush3.bf16.msra.mxu1 %v10002_v63  ;;  %v8309_v63 = vld [vmem:[%s12221_s14] ss:$0 sm:$0xff] }
 0x75a   : > { %v7220_v7 = vpop.permute.xlu0 %7219  ;;  %v7397_v19 = vld [vmem:[#allocation5 + $0x80] sm:$0xff]  ;;  %8709 = vmatprep.subr.bf16.mxu1 %v10003_v51 }
 0x75b   : > { %7230 = vst.msk [vmem:[#allocation5 + $0x40] sm:$0xff] %vm6555_vm1, %v7220_v7  ;;  %7763 = vmatprep.mubr.bf16.mxu1 %v7397_v19 }
 0x75c   : > { %v7037_v39 = vpop.permute.xlu1 %7036  ;;  %7764 = vmatmul.mubr.bf16.gmra.mrb[28].mxu1 %v7396_v58 }
 0x75d   : > { %7046 = vst.msk [vmem:[#allocation5 + $0x60] sm:$0xff] %vm6555_vm1, %v7037_v39  ;;  %8710 = vmatpush3.bf16.msra.mxu1 %v10004_v12 }
 0x75e   : > { %v7222_v45 = vpop.permute.xlu0 %7221  ;;  %v7384_v50 = vld [vmem:[#allocation5 + $0x18] sm:$0xff]  ;;  %8711 = vmatprep.subr.bf16.mxu1 %v10005_v11 }
 0x75f   : > { %7231 = vst.msk [vmem:[#allocation5 + $0x68] sm:$0xff] %vm6555_vm1, %v7222_v45  ;;  %7804 = vmatprep.mubr.bf16.mxu1 %v7384_v50 }
 0x760   : > { %v7039_v32 = vpop.permute.xlu1 %7038  ;;  %v7388_v41 = vld [vmem:[#allocation5 + $0x38] sm:$0xff] }
 0x761   : > { %7047 = vst.msk [vmem:[#allocation5 + $0x88] sm:$0xff] %vm6555_vm1, %v7039_v32  ;;  %8712 = vmatpush3.bf16.msra.mxu1 %v10006_v62 }
 0x762   : > { %v7224_v15 = vpop.permute.xlu0 %7223  ;;  %v7389_v52 = vld [vmem:[#allocation5 + $0x40] sm:$0xff] }
 0x763   : > { %7232 = vst.msk [vmem:[#allocation5 + $0x90] sm:$0xff] %vm6555_vm1, %v7224_v15 }
 0x764   : > { %7805 = vmatmul.mubr.bf16.vlgmr.msra.gmra.mrb[32].mxu1 %v7383_v49  ;;  %v7393_v2 = vld [vmem:[#allocation5 + $0x60] sm:$0xff] }
 0x765   : > { %7812 = vmatprep.mubr.bf16.mxu1 %v7389_v52 }
 0x766   : > { %v7394_v47 = vld [vmem:[#allocation5 + $0x68] sm:$0xff] }
 0x768   : > { %v7398_v37 = vld [vmem:[#allocation5 + $0x88] sm:$0xff] }
 0x76a   : > { %v7399_v24 = vld [vmem:[#allocation5 + $0x90] sm:$0xff] }
 0x76c   : > { %7813 = vmatmul.mubr.bf16.gmra.mrb[36].mxu1 %v7388_v41 }
 0x76d   : > { %7820 = vmatprep.mubr.bf16.mxu1 %v7394_v47 }
 0x774   : > { %7821 = vmatmul.mubr.bf16.gmra.mrb[40].mxu1 %v7393_v2 }
 0x775   : > { %7828 = vmatprep.mubr.bf16.mxu1 %v7399_v24 }
 0x77c   : > { %7829 = vmatmul.mubr.bf16.gmra.mrb[44].mxu1 %v7398_v37 }
 0x7cf   : > { %v9409_v27 = vpop.f32.mrb[24].mxu0 }
 0x7d0   : > { %v7975_v57 = vpop.f32.mrb[25].mxu0 }
 0x7d1   : > { %v12113_v34 = vpop.f32.mrb[26].mxu0 }
 0x7d2   : > { %v7978_v6 = vpop.f32.mrb[27].mxu0 }
 0x7d9   : > { %v12115_v20 = vpop.f32.mrb[28].mxu0 }
 0x7da   : > { %v12117_v28 = vpop.f32.mrb[29].mxu0 }
 0x7db   : > { %v12119_v54 = vpop.f32.mrb[30].mxu0 }
 0x7dc   : > { %v12121_v59 = vpop.f32.mrb[31].mxu0 }
 0x817   : > { %v8673_v21 = vpop.f32.mrb[16].mxu1 }
 0x818   : > { %v8674_v40 = vpop.f32.mrb[17].mxu1 }
 0x819   : > { %v8675_v46 = vadd.f32 %v8674_v40, %v8673_v21  ;;  %v8676_v29 = vpop.f32.mrb[18].mxu1 }
 0x81a   : > { %v8677_v36 = vpop.f32.mrb[19].mxu1 }
 0x81b   : > { %v8678_v61 = vadd.f32 %v8677_v36, %v8676_v29  ;;  %v7742_v31 = vadd.f32 %v8675_v46, %v8268_v13 }
 0x81d   : > { %v7745_v17 = vadd.f32 %v8678_v61, %v8268_v13 }
 0x81f   : > { %v8679_v22 = vpop.f32.mrb[20].mxu1 }
 0x820   : > { %v8680_v14 = vpop.f32.mrb[21].mxu1 }
 0x821   : > { %v8681_v48 = vadd.f32 %v8680_v14, %v8679_v22  ;;  %v8682_v23 = vpop.f32.mrb[22].mxu1 }
 0x822   : > { %v8683_v10 = vpop.f32.mrb[23].mxu1 }
 0x823   : > { %v8684_v35 = vadd.f32 %v8683_v10, %v8682_v23  ;;  %v7750_v11 = vadd.f32 %v8681_v48, %v8268_v13 }
 0x825   : > { %v7753_v50 = vadd.f32 %v8684_v35, %v8268_v13 }
 0x827   : > { %v8685_v55 = vpop.f32.mrb[24].mxu1 }
 0x828   : > { %v8686_v5 = vpop.f32.mrb[25].mxu1 }
 0x829   : > { %v8687_v25 = vadd.f32 %v8686_v5, %v8685_v55  ;;  %v8688_v60 = vpop.f32.mrb[26].mxu1 }
 0x82a   : > { %v8689_v42 = vpop.f32.mrb[27].mxu1 }
 0x82b   : > { %v8690_v44 = vadd.f32 %v8689_v42, %v8688_v60  ;;  %v7758_v37 = vadd.f32 %v8687_v25, %v8268_v13 }
 0x82d   : > { %v7761_v46 = vadd.f32 %v8690_v44, %v8268_v13 }
 0x82f   : > { %v8691_v30 = vpop.f32.mrb[28].mxu1 }
 0x830   : > { %v8692_v43 = vpop.f32.mrb[29].mxu1 }
 0x831   : > { %v8693_v38 = vadd.f32 %v8692_v43, %v8691_v30  ;;  %v8694_v9 = vpop.f32.mrb[30].mxu1 }
 0x832   : > { %v8695_v18 = vpop.f32.mrb[31].mxu1 }
 0x833   : > { %v8696_v53 = vadd.f32 %v8695_v18, %v8694_v9  ;;  %v7766_v10 = vadd.f32 %v8693_v38, %v8268_v13 }
 0x835   : > { %v7769_v25 = vadd.f32 %v8696_v53, %v8268_v13 }
 0x837   : > { %v8713_v16 = vpop.f32.mrb[32].mxu1 }
 0x838   : > { %v8714_v3 = vpop.f32.mrb[33].mxu1 }
 0x839   : > { %v8715_v26 = vadd.f32 %v8714_v3, %v8713_v16  ;;  %v8716_v56 = vpop.f32.mrb[34].mxu1 }
 0x83a   : > { %v8717_v33 = vpop.f32.mrb[35].mxu1 }
 0x83b   : > { %v7807_v4 = vadd.f32 %v8715_v26, %v7742_v31  ;;  %v8718_v0 = vadd.f32 %v8717_v33, %v8716_v56 }
 0x83d   : > { %v9777_v1 = vadd.f32 %v7975_v57, %v7807_v4  ;;  %v7810_v51 = vadd.f32 %v8718_v0, %v7745_v17 }
 0x83f   : > { %v9778_v8 = vadd.f32 %v9777_v1, %v8309_v63  ;;  %v9781_v12 = vadd.f32 %v8309_v63, %v7810_v51  ;;  %v8719_v7 = vpop.f32.mrb[36].mxu1 }
 0x840   : > { %v8720_v19 = vpop.f32.mrb[37].mxu1 }
 0x841   : > { %8014 = vst.msk [vmem:[%s12132_s3] sm:$0xff] %vm4066_vm5, %v9778_v8  ;;  %v9782_v58 = vadd.f32 %v9781_v12, %v7978_v6  ;;  %v8721_v39 = vadd.f32 %v8720_v19, %v8719_v7  ;;  %v8722_v62 = vpop.f32.mrb[38].mxu1 }
 0x842   : > { %v8723_v45 = vpop.f32.mrb[39].mxu1 }
 0x843   : > { %8015 = vst.msk [vmem:[%s12132_s3 + $0x8] sm:$0xff] %vm4066_vm5, %v9782_v58  ;;  %v7815_v32 = vadd.f32 %v8721_v39, %v7750_v11  ;;  %v8724_v15 = vadd.f32 %v8723_v45, %v8722_v62 }
 0x845   : > { %v9775_v49 = vadd.f32 %v9409_v27, %v7815_v32  ;;  %v7818_v52 = vadd.f32 %v8724_v15, %v7753_v50 }
 0x847   : > { %v9776_v41 = vadd.f32 %v9775_v49, %v8309_v63  ;;  %v9779_v47 = vadd.f32 %v8309_v63, %v7818_v52  ;;  %v8725_v2 = vpop.f32.mrb[40].mxu1 }
 0x848   : > { %v8726_v24 = vpop.f32.mrb[41].mxu1 }
 0x849   : > { %8016 = vst.msk [vmem:[%s12132_s3 + $0x10] sm:$0xff] %vm4066_vm5, %v9776_v41  ;;  %v9780_v57 = vadd.f32 %v9779_v47, %v12113_v34  ;;  %v8727_v6 = vadd.f32 %v8726_v24, %v8725_v2  ;;  %v8728_v21 = vpop.f32.mrb[42].mxu1 }
 0x84a   : > { %v8729_v40 = vpop.f32.mrb[43].mxu1 }
 0x84b   : > { %8017 = vst.msk [vmem:[%s12132_s3 + $0x18] sm:$0xff] %vm4066_vm5, %v9780_v57  ;;  %v7823_v29 = vadd.f32 %v8727_v6, %v7758_v37  ;;  %v8730_v27 = vadd.f32 %v8729_v40, %v8728_v21 }
 0x84d   : > { %v9785_v36 = vadd.f32 %v8309_v63, %v7823_v29  ;;  %v7826_v61 = vadd.f32 %v8730_v27, %v7761_v46 }
 0x84f   : > { %v9786_v22 = vadd.f32 %v9785_v36, %v12117_v28  ;;  %v9789_v14 = vadd.f32 %v8309_v63, %v7826_v61  ;;  %v8731_v48 = vpop.f32.mrb[44].mxu1 }
 0x850   : > { %v8732_v23 = vpop.f32.mrb[45].mxu1 }
 0x851   : > { %8018 = vst.msk [vmem:[%s12132_s3 + $0x20] sm:$0xff] %vm4066_vm5, %v9786_v22  ;;  %v9790_v34 = vadd.f32 %v9789_v14, %v12121_v59  ;;  %v8733_v35 = vadd.f32 %v8732_v23, %v8731_v48  ;;  %v8734_v55 = vpop.f32.mrb[46].mxu1 }
 0x852   : > { %v8735_v5 = vpop.f32.mrb[47].mxu1 }
 0x853   : > { %8019 = vst.msk [vmem:[%s12132_s3 + $0x28] sm:$0xff] %vm4066_vm5, %v9790_v34  ;;  %v7831_v28 = vadd.f32 %v8733_v35, %v7766_v10  ;;  %v8736_v60 = vadd.f32 %v8735_v5, %v8734_v55 }
 0x855   : > { %v9783_v42 = vadd.f32 %v8309_v63, %v7831_v28  ;;  %v7834_v44 = vadd.f32 %v8736_v60, %v7769_v25 }
 0x857   : > { %v9784_v30 = vadd.f32 %v9783_v42, %v12115_v20  ;;  %v9787_v43 = vadd.f32 %v8309_v63, %v7834_v44 }
 0x859   : > { %8020 = vst.msk [vmem:[%s12132_s3 + $0x30] sm:$0xff] %vm4066_vm5, %v9784_v30  ;;  %v9788_v59 = vadd.f32 %v9787_v43, %v12119_v54 }
 0x85b   : > { %8021 = vst.msk [vmem:[%s12132_s3 + $0x38] sm:$0xff] %vm4066_vm5, %v9788_v59 }
 0x85c   : > { %10103 = shalt.err (!%p10100_p3)
}
 0x85d   : > { %s10104_s23 = scalar_lea.hbm %s12155_s16, 1024  ;;  %s10108_s2 = scalar_lea.hbm %s12222_s15, 2048 }
 0x85e   : > { %p10105_p4 = scmp.ne.s32.totalorder %s12155_s16, %s10104_s23  ;;  %p10109_p9 = scmp.lt.u32.totalorder %s12155_s16, %s12222_s15 }
 0x85f   : > { %p10110_p10 = scmp.lt.u32.totalorder %s10108_s2, %s10104_s23  ;;  %p10112_p12 = scmp.lt.u32.totalorder %s10104_s23, %s12155_s16 }
 0x860   : > { %p10106_p7 = pnand %p10105_p4, %p10282_p5 }
 0x861   : > { %p10111_p11 = por %p10110_p10, %p10109_p9 }
 0x862   : > { %p10107_p8 = pneg %p10106_p7 }
 0x863   : > { %p10113_p13 = por %p10112_p12, %p10111_p11 }
 0x865   : > { %p10114_p0 = pnand %p10113_p13, %p10107_p8 }
 0x867   : > { %10117 = shalt.err (!%p10114_p0)
}
 0x868   : > { %s10162_s17 = smov 128   ;;  %s10163_s27 = smov 8  }
 0x869   : > { %9879 = dma.vmem_to_hbm [thread:$0]  (%p10282_p5), %s12157_s30, 1024, %s12155_s16, %s12166_s22, %s10162_s17, %s10162_s17, %s10163_s27  }
 0x86a PF: > { %p9885_p1 = scmp.ge.s32.totalorder %s10152_s21, 2  ;;  %s8051_s0 = sand.u32 1, %s10140_s18  }
 0x86b   : > { %s8052_s23 = scalar_lea.sflag [#allocation7], %s8051_s0 }
 0x86c   : > { %p9882_p2 = pnand %p9885_p1, %p10286_p6 }
 0x86e   : > { %10135 = dma.done.wait (!%p9882_p2), %s8052_s23, 1024  }
 0x86f   : > { %10137 = vsyncadd (!%p9882_p2), %s8052_s23, 4294966272  ;;  %s12360_s3 = sld [smem:[#allocation9_spill]]  ;;  %p25_p3 = scmp.ge.s32.totalorder %s10269_s24, 4  }
 0x870   : > { %s12361_s18 = smov %s10144_s19  ;;  %s12362_s19 = smov %s10148_s20 }
 0x871   : > { %s12364_s21 = smov %s10269_s24  ;;  %27 = sbr.rel (!%p25_p3) target bundleno = 8 (0x8), region = 121 }
 0x875   : > { %s12363_s20 = smov %s12360_s3 }
 0x878   :  { %8057 = vsyncpa [#allocation7], 1 }
 0x879   :  { %8059 = vsyncpa [#allocation7 + $0x1], 1 }

// kernel: tpu_custom_call.1
= control target key start
LH: loop header
LB: loop body
LE: loop exit
PB: predicated region body
PF: predicated region fallthrough
CT: control target
= control target key end

     0   :  { %s12207_s0 = inlined_call_operand.vmem [shape: f32[2,8,8,32], index: 0, kind: input, shape index: {}]   ;;  %s12208_s1 = inlined_call_operand.vmem [shape: f32[1,32], index: 1, kind: input, shape index: {}]   ;;  %s12209_s2 = inlined_call_operand.vmem [shape: f32[1,32], index: 2, kind: input, shape index: {}]   ;;  %s12210_s3 = inlined_call_operand.vmem [shape: f32[32,32], index: 3, kind: input, shape index: {}]   ;;  %s12211_s4 = inlined_call_operand.vmem [shape: f32[32,32], index: 4, kind: input, shape index: {}]   ;;  %s12212_s5 = inlined_call_operand.vmem [shape: bf16[288,64], index: 5, kind: input, shape index: {}]   ;;  %s12213_s6 = inlined_call_operand.vmem [shape: f32[1,64], index: 6, kind: input, shape index: {}]   ;;  %s12214_s7 = inlined_call_operand.vmem [shape: f32[1,64], index: 7, kind: input, shape index: {}]   ;;  %s12215_s8 = inlined_call_operand.vmem [shape: f32[1,64], index: 8, kind: input, shape index: {}]   ;;  %s12216_s9 = inlined_call_operand.vmem [shape: f32[64,32], index: 9, kind: input, shape index: {}]   ;;  %s12217_s10 = inlined_call_operand.vmem [shape: f32[32,64], index: 10, kind: input, shape index: {}]   ;;  %s12218_s11 = inlined_call_operand.vmem [shape: bf16[576,64], index: 11, kind: input, shape index: {}]   ;;  %s12219_s12 = inlined_call_operand.vmem [shape: f32[1,64], index: 12, kind: input, shape index: {}]   ;;  %s12220_s13 = inlined_call_operand.vmem [shape: bf16[32,64], index: 13, kind: input, shape index: {}]   ;;  %s12221_s14 = inlined_call_operand.vmem [shape: f32[1,64], index: 14, kind: input, shape index: {}]   ;;  %s12222_s15 = inlined_call_operand.hbm [shape: f32[2,8,8,64], index: 15, kind: output, shape index: {}]  }
   0x1   :  { %12239 = sst [smem:[#allocation32_spill]] %s12207_s0 }
   0x2   :  { %12240 = sst [smem:[#allocation33_spill]] %s12208_s1 }
   0x3   :  { %12241 = sst [smem:[#allocation34_spill]] %s12209_s2 }
   0x4   :  { %12242 = sst [smem:[#allocation35_spill]] %s12210_s3 }
   0x5   :  { %20 = vsyncpa [#allocation7], 0 }
   0x6   :  { %22 = vsyncpa [#allocation7 + $0x1], 0  ;;  %s10244_s18 = smov 0   ;;  %s10246_s19 = smov 0  }
   0x7   :  { %s10248_s20 = smov 0   ;;  %s10250_s21 = smov 0  }
   0x8 LB: > { %s10265_s22 = sadd.s32 4294967295, %s10152_s21   ;;  %s8098_s23 = sadd.s32 4294967294, %s10152_s21   ;;  %s10152_s21 = sphi %s10250_s21, %s12364_s21   ;;  %s10148_s20 = sphi %s10248_s20, %s12363_s20   ;;  %s10144_s19 = sphi %s10246_s19, %s12362_s19   ;;  %s10140_s18 = sphi %s10244_s18, %s12361_s18  }
   0x9   : > { %s10269_s24 = sadd.s32 1, %s10152_s21   ;;  %s355_s25 = sadd.s32 1, %s10148_s20 }
   0xa   : > { %s352_s26 = ssub.s32 %s10152_s21, %s10269_s24  ;;  %p365_p0 = scmp.ne.s32.totalorder %s10148_s20, %s10144_s19 }
   0xb   : > { %p353_p1 = scmp.eq.s32.totalorder %s352_s26, 0  ;;  %p366_p2 = scmp.eq.s32.totalorder %s10265_s22, 1 }
   0xc   : > { %p371_p3 = scmp.ne.s32.totalorder %s10144_s19, %s10140_s18  ;;  %p372_p4 = scmp.eq.s32.totalorder %s8098_s23, 1 }
   0xd   : > { %s10280_s27 = scalar_select %p353_p1, %s10148_s20, %s355_s25  }
   0xe   : > { %p10282_p5 = por %p366_p2, %p365_p0  ;;  %p10286_p6 = por %p372_p4, %p371_p3 }
   0xf   : > { %12243 = sst [smem:[#allocation9_spill]] %s10280_s27  ;;  %p8101_p7 = scmp.ge.s32.totalorder %s10152_s21, 1 }
  0x10   : > { %p440_p8 = scmp.lt.s32.totalorder %s10152_s21, 3 }
  0x12   : > { %p441_p9 = pnand %p8101_p7, %p440_p8 }
  0x14   : > { %444 = sbr.rel (%p441_p9) target bundleno = 2154 (0x86a), region = 80 }
  0x1b   : > { %s12246_s3 = sld [smem:[#allocation35_spill]]  ;;  %v12225_v3 = vmov 0.0|0.0   ;;  %p488_p10 = scmp.lt.s32.totalorder %s10265_s22, 1  ;;  %vm10155_vm0 = vmmov 0   ;;  %v12223_v9 = vmov 0.0   ;;  %vm512_vm1 = vcmask 261120  }
  0x1c   : > { %9415 = vmatprep.subr.bf16.mxu0 %v12225_v3  ;;  %9451 = vmatprep.subr.bf16.mxu1 %v12225_v3  ;;  %s12247_s0 = sld [smem:[#allocation32_spill]]  ;;  %vm2638_vm2 = vcmask 257024   ;;  %vm2632_vm3 = vcmask 257027   ;;  %vm2633_vm4 = vsmask.f32 7950  ;;  %vm6295_vm7 = vcmask 519168  }
  0x1d   : > { %8759 = vmatprep.mubr.msk.f32.mxu0 %vm10155_vm0, %v12223_v9  ;;  %8825 = vmatprep.mubr.msk.f32.mxu1 %vm10155_vm0, %v12223_v9  ;;  %s489_s17 = scalar_select %p488_p10, %s10265_s22, 1  ;;  %vm10574_vm5 = vmand %vm2632_vm3, %vm2633_vm4  ;;  %vm2641_vm6 = vsmask.f32 256  ;;  %vm2640_vm8 = vcmask 253952   ;;  %vm2735_vm10 = vsmask.f32 4368 }
  0x1e   : > { %vm10591_vm9 = vmand %vm2640_vm8, %vm2641_vm6  ;;  %s12253_s1 = sld [smem:[#allocation33_spill]]  ;;  %s12254_s2 = sld [smem:[#allocation34_spill]]  ;;  %vm2922_vm11 = vsmask.f32 3328  ;;  %vm2923_vm12 = vsmask.f32 7440 }
  0x1f   : > { %s8321_s23 = sshll.u32 %s489_s17, 6  ;;  %vm10807_vm13 = vmor %vm2641_vm6, %vm2735_vm10  ;;  %s12232_s25 = smov 64   ;;  %vm2901_vm15 = vcmask 523520   ;;  %vm3210_vm3 = vcmask 1048320   ;;  %vm6290_vm8 = vcmask 519171  }
  0x20   : > { %vm10821_vm14 = vmor %vm2922_vm11, %vm2923_vm12  ;;  %s12325_s26 = smov 64  }
  0x21   : > { %v504_v0 = vld [vmem:[%s12246_s3] sm:$0xff]  ;;  %v505_v1 = vld [vmem:[%s12246_s3 + $0x8] sm:$0xff]  ;;  %v10301_v2 = vld [vmem:[%s12246_s3 + $0x10] sm:$0xff] }
  0x22   : > { %v567_v4 = vand.u32 4294901760, %v504_v0  ;;  %v570_v5 = vand.u32 4294901760, %v505_v1  ;;  %v10308_v6 = vld [vmem:[%s12246_s3 + $0x18] sm:$0xff]  ;;  %v573_v7 = vand.u32 4294901760, %v10301_v2  ;;  %s10335_s30 = scalar_lea.vmem %s12247_s0, %s8321_s23  ;;  %s10158_s0 = smov 32  }
  0x23   : > { %v576_v8 = vand.u32 4294901760, %v10308_v6  ;;  %v494_v13 = vld [vmem:[%s10335_s30] sm:$0xff]  ;;  %v495_v14 = vld [vmem:[%s10335_s30 + $0x8] sm:$0xff]  ;;  %v496_v15 = vld [vmem:[%s10335_s30 + $0x10] sm:$0xff]  ;;  %s10159_s3 = smov 96   ;;  %s485_s23 = sand.u32 1, %s10144_s19  }
  0x24   : > { %v10317_v10 = vpack.c.bf16 %v570_v5, %v567_v4  ;;  %v10328_v12 = vsub.f32 %v504_v0, %v567_v4  ;;  %v497_v16 = vld [vmem:[%s10335_s30 + $0x18] sm:$0xff]  ;;  %v498_v17 = vld [vmem:[%s10335_s30 + $0x20] sm:$0xff]  ;;  %v499_v18 = vld [vmem:[%s10335_s30 + $0x28] sm:$0xff]  ;;  %v513_v19 = vsel %vm512_vm1, %v494_v13, 0.0  ;;  %v514_v20 = vsel %vm512_vm1, %v495_v14, 0.0 }
  0x25   : > { %v10326_v11 = vpack.c.bf16 %v576_v8, %v573_v7  ;;  %v516_v21 = vsel %vm512_vm1, %v496_v15, 0.0  ;;  %v515_v22 = vadd.f32 %v514_v20, %v513_v19  ;;  %v534_v24 = vmul.f32 %v494_v13, %v494_v13  ;;  %v10351_v25 = vld [vmem:[%s10335_s30 + $0x30] sm:$0xff]  ;;  %v10360_v30 = vld [vmem:[%s10335_s30 + $0x38] sm:$0xff] }
  0x26   : > { %9417 = vmatpush3.bf16.msra.mxu0 %v10317_v10  ;;  %9453 = vmatpush3.bf16.msra.mxu1 %v10317_v10  ;;  %v648_v23 = vand.u32 4294901760, %v10328_v12  ;;  %v518_v26 = vsel %vm512_vm1, %v497_v16, 0.0  ;;  %v520_v27 = vsel %vm512_vm1, %v498_v17, 0.0  ;;  %v522_v28 = vsel %vm512_vm1, %v499_v18, 0.0 }
  0x27   : > { %9418 = vmatprep.subr.bf16.mxu0 %v12225_v3  ;;  %9454 = vmatprep.subr.bf16.mxu1 %v12225_v3  ;;  %v10356_v29 = vsub.f32 %v505_v1, %v570_v5  ;;  %v517_v31 = vadd.f32 %v516_v21, %v515_v22  ;;  %v535_v32 = vmul.f32 %v495_v14, %v495_v14  ;;  %v542_v37 = vsel %vm512_vm1, %v534_v24, 0.0 }
  0x28   : > { %v536_v33 = vmul.f32 %v496_v15, %v496_v15  ;;  %v537_v34 = vmul.f32 %v497_v16, %v497_v16  ;;  %v538_v35 = vmul.f32 %v498_v17, %v498_v17  ;;  %v539_v39 = vmul.f32 %v499_v18, %v499_v18 }
  0x29   : > { %v519_v36 = vadd.f32 %v518_v26, %v517_v31  ;;  %v543_v38 = vsel %vm512_vm1, %v535_v32, 0.0  ;;  %v540_v40 = vmul.f32 %v10351_v25, %v10351_v25  ;;  %v524_v44 = vsel %vm512_vm1, %v10351_v25, 0.0 }
  0x2a   : > { %9420 = vmatpush3.bf16.msra.mxu0 %v10326_v11  ;;  %9456 = vmatpush3.bf16.msra.mxu1 %v10326_v11  ;;  %v544_v41 = vadd.f32 %v543_v38, %v542_v37  ;;  %v545_v42 = vsel %vm512_vm1, %v536_v33, 0.0  ;;  %v655_v45 = vand.u32 4294901760, %v10356_v29  ;;  %v547_v46 = vsel %vm512_vm1, %v537_v34, 0.0 }
  0x2b   : > { %9421 = vmatprep.subr.bf16.mxu0 %v12225_v3  ;;  %9457 = vmatprep.subr.bf16.mxu1 %v12225_v3  ;;  %v521_v43 = vadd.f32 %v520_v27, %v519_v36  ;;  %v526_v47 = vsel %vm512_vm1, %v10360_v30, 0.0  ;;  %v549_v49 = vsel %vm512_vm1, %v538_v35, 0.0  ;;  %v551_v52 = vsel %vm512_vm1, %v539_v39, 0.0 }
  0x2c   : > { %v546_v48 = vadd.f32 %v545_v42, %v544_v41  ;;  %v553_v53 = vsel %vm512_vm1, %v540_v40, 0.0  ;;  %v541_v55 = vmul.f32 %v10360_v30, %v10360_v30  ;;  %v10382_v61 = vsub.f32 %v10301_v2, %v573_v7 }
  0x2d   : > { %v523_v50 = vadd.f32 %v522_v28, %v521_v43  ;;  %v10387_v63 = vsub.f32 %v10308_v6, %v576_v8  ;;  %v649_v5 = vsub.f32 %v10328_v12, %v648_v23  ;;  %v656_v2 = vsub.f32 %v10356_v29, %v655_v45 }
  0x2e   : > { %v548_v51 = vadd.f32 %v547_v46, %v546_v48  ;;  %v555_v60 = vsel %vm512_vm1, %v541_v55, 0.0  ;;  %v662_v13 = vand.u32 4294901760, %v10382_v61  ;;  %v9428_v46 = vpack.c.bf16 %v10356_v29, %v10328_v12  ;;  %v509_v12 = vld [vmem:[%s12211_s4 + $0x8] sm:$0xff] }
  0x2f   : > { %v525_v54 = vadd.f32 %v524_v44, %v523_v50  ;;  %v669_v14 = vand.u32 4294901760, %v10387_v63  ;;  %v650_v8 = vand.u32 4294901760, %v649_v5  ;;  %v657_v18 = vand.u32 4294901760, %v656_v2 }
  0x30   : > { %v550_v56 = vadd.f32 %v549_v49, %v548_v51  ;;  %v663_v17 = vsub.f32 %v10382_v61, %v662_v13  ;;  %v9440_v48 = vpack.c.bf16 %v655_v45, %v648_v23  ;;  %v1554_v29 = vand.u32 4294901760, %v509_v12  ;;  %v510_v51 = vld [vmem:[%s12211_s4 + $0x10] sm:$0xff] }
  0x31   : > { %v527_v57 = vadd.f32 %v526_v47, %v525_v54  ;;  %v670_v28 = vsub.f32 %v10387_v63, %v669_v14  ;;  %v9422_v38 = vpack.c.bf16 %v657_v18, %v650_v8  ;;  %v9431_v47 = vpack.c.bf16 %v10387_v63, %v10382_v61 }
  0x32   : > { %v552_v58 = vadd.f32 %v551_v52, %v550_v56  ;;  %v664_v24 = vand.u32 4294901760, %v663_v17  ;;  %v9443_v49 = vpack.c.bf16 %v669_v14, %v662_v13  ;;  %v1638_v50 = vsub.f32 %v509_v12, %v1554_v29  ;;  %v511_v52 = vld [vmem:[%s12211_s4 + $0x18] sm:$0xff]  ;;  %v2655_v12 = vld [vmem:[#allocation2 + $0xc] sm:$0x8] }
  0x33   : > { %v528_v59 = vrot.slane %v527_v57, 4  ;;  %v671_v36 = vand.u32 4294901760, %v670_v28  ;;  %v1560_v54 = vand.u32 4294901760, %v511_v52 }
  0x34   : > { %v554_v62 = vadd.f32 %v553_v53, %v552_v58  ;;  %v1557_v53 = vand.u32 4294901760, %v510_v51  ;;  %v1639_v56 = vand.u32 4294901760, %v1638_v50 }
  0x35   : > { %v529_v0 = vadd.f32 %v528_v59, %v527_v57  ;;  %v9425_v43 = vpack.c.bf16 %v671_v36, %v664_v24  ;;  %v1652_v61 = vsub.f32 %v511_v52, %v1560_v54  ;;  %v2679_v52 = vld [vmem:[#allocation2 + $0x14] sm:$0x1] }
  0x36   : > { %v556_v1 = vadd.f32 %v555_v60, %v554_v62  ;;  %v10499_v57 = vpack.c.bf16 %v1560_v54, %v1557_v53  ;;  %v1640_v59 = vsub.f32 %v1638_v50, %v1639_v56  ;;  %v1645_v60 = vsub.f32 %v510_v51, %v1557_v53  ;;  %v2682_v54 = vld [vmem:[#allocation2 + $0x20] sm:$0x1] }
  0x37   : > { %v530_v4 = vrot.slane %v529_v0, 2  ;;  %v2680_v53 = vsel %vm10591_vm9, 0, %v2679_v52 }
  0x38   : > { %v557_v7 = vrot.slane %v556_v1, 4  ;;  %v1641_v63 = vand.u32 4294901760, %v1640_v59  ;;  %2681 = vst [vmem:[#allocation2 + $0x14] sm:$0x1] %v2680_v53 }
  0x39   : > { %v531_v15 = vadd.f32 %v530_v4, %v529_v0  ;;  %v1646_v0 = vand.u32 4294901760, %v1645_v60 }
  0x3a   : > { %v558_v16 = vadd.f32 %v557_v7, %v556_v1  ;;  %v1653_v1 = vand.u32 4294901760, %v1652_v61 }
  0x3b   : > { %v532_v6 = vrot.slane %v531_v15, 1  ;;  %v1647_v5 = vsub.f32 %v1645_v60, %v1646_v0 }
  0x3c   : > { %v559_v19 = vrot.slane %v558_v16, 2  ;;  %v1654_v13 = vsub.f32 %v1652_v61, %v1653_v1  ;;  %v10509_v8 = vpack.c.bf16 %v1653_v1, %v1646_v0  ;;  %v2694_v0 = vld [vmem:[#allocation2 + $0x50] sm:$0x1]  ;;  %v2697_v1 = vld [vmem:[#allocation2 + $0x5c] sm:$0x1] }
  0x3d   : > { %v533_v20 = vadd.f32 %v532_v6, %v531_v15  ;;  %v1648_v2 = vand.u32 4294901760, %v1647_v5  ;;  %v2698_v5 = vsel %vm10591_vm9, 0, %v2697_v1 }
  0x3e   : > { %v560_v21 = vadd.f32 %v559_v19, %v558_v16  ;;  %v1655_v7 = vand.u32 4294901760, %v1654_v13  ;;  %v10505_v16 = vpack.c.bf16 %v1652_v61, %v1645_v60  ;;  %v2691_v61 = vld [vmem:[#allocation2 + $0x44] sm:$0x1]  ;;  %2699 = vst [vmem:[#allocation2 + $0x5c] sm:$0x1] %v2698_v5 }
  0x3f   : > { %v564_v22 = vsel %vm512_vm1, %v533_v20, 0  ;;  %v2643_v13 = vld [vmem:[#allocation2 + $0x8] sm:$0x1] }
  0x40   : > { %v10401_v26 = vand.u32 4294901760, %v564_v22  ;;  %v561_v27 = vrot.slane %v560_v21, 1  ;;  %v9497_v14 = vpack.c.bf16 %v1655_v7, %v1648_v2  ;;  %v2670_v2 = vld [vmem:[#allocation2 + $0x48] sm:$0x8]  ;;  %v2644_v7 = vsel %vm10591_vm9, 0, %v2643_v13 }
  0x41   : > { %2645 = vst [vmem:[#allocation2 + $0x8] sm:$0x1] %v2644_v7 }
  0x42   : > { %v636_v31 = vsub.f32 %v564_v22, %v10401_v26  ;;  %v562_v32 = vadd.f32 %v561_v27, %v560_v21 }
  0x44   : > { %v637_v33 = vand.u32 4294901760, %v636_v31  ;;  %v1052_v34 = vsel %vm512_vm1, %v562_v32, 0 }
  0x45   : > { %v10408_v35 = vand.u32 4294901760, %v1052_v34 }
  0x46   : > { %v638_v37 = vsub.f32 %v636_v31, %v637_v33 }
  0x47   : > { %v1124_v39 = vsub.f32 %v1052_v34, %v10408_v35 }
  0x48   : > { %v639_v40 = vand.u32 4294901760, %v638_v37 }
  0x49   : > { %v1125_v41 = vand.u32 4294901760, %v1124_v39 }
  0x4a   : > { %8760 = vmatmul.mubr.f32.vlgmr.msra.gmra.mrb[0].mxu0 %v639_v40 }
  0x4b   : > { %9423 = vmatpush3.bf16.msra.mxu0 %v9422_v38  ;;  %v1126_v42 = vsub.f32 %v1124_v39, %v1125_v41  ;;  %8770 = vmatprep.mubr.msk.f32.mxu0 %vm10155_vm0, %v12223_v9 }
  0x4c   : > { %9424 = vmatprep.subr.bf16.mxu0 %v12225_v3 }
  0x4d   : > { %v1127_v44 = vand.u32 4294901760, %v1126_v42 }
  0x4f   : > { %8826 = vmatmul.mubr.f32.vlgmr.msra.gmra.mrb[0].mxu1 %v1127_v44  ;;  %9426 = vmatpush3.bf16.msra.mxu0 %v9425_v43  ;;  %v10157_v44 = vmov 0  }
  0x50   : > { %9459 = vmatpush3.bf16.msra.mxu1 %v9422_v38  ;;  %9427 = vmatprep.subr.bf16.mxu0 %v12225_v3  ;;  %2639 = vst.msk [vmem:[#allocation2 + $0x4] sm:$0xf] %vm2638_vm2, %v10157_v44  ;;  %2650 = vst.msk [vmem:[#allocation2 + $0x70] sm:$0xf] %vm2638_vm2, %v10157_v44 }
  0x51   : > { %9460 = vmatprep.subr.bf16.mxu1 %v12225_v3  ;;  %8836 = vmatprep.mubr.msk.f32.mxu1 %vm10155_vm0, %v12223_v9  ;;  %6306 = vst.msk [vmem:[#allocation3 + $0x70] sm:$0xf] %vm6295_vm7, %v10157_v44  ;;  %6296 = vst.msk [vmem:[#allocation3 + $0x4] sm:$0xf] %vm6295_vm7, %v10157_v44 }
  0x52   : > { %8771 = vmatmul.mubr.f32.vlgmr.msra.gmra.mrb[0].mxu0 %v10401_v26 }
  0x53   : > { %9429 = vmatpush3.bf16.msra.mxu0 %v9428_v46  ;;  %8781 = vmatprep.mubr.msk.f32.mxu0 %vm10155_vm0, %v12223_v9 }
  0x54   : > { %9462 = vmatpush3.bf16.msra.mxu1 %v9425_v43  ;;  %9430 = vmatprep.subr.bf16.mxu0 %v12225_v3 }
  0x55   : > { %9463 = vmatprep.subr.bf16.mxu1 %v12225_v3 }
  0x57   : > { %8837 = vmatmul.mubr.f32.vlgmr.msra.gmra.mrb[0].mxu1 %v10408_v35  ;;  %9432 = vmatpush3.bf16.msra.mxu0 %v9431_v47 }
  0x58   : > { %9465 = vmatpush3.bf16.msra.mxu1 %v9428_v46  ;;  %9433 = vmatprep.subr.bf16.mxu0 %v12225_v3 }
  0x59   : > { %9466 = vmatprep.subr.bf16.mxu1 %v12225_v3  ;;  %8847 = vmatprep.mubr.msk.f32.mxu1 %vm10155_vm0, %v12223_v9 }
  0x5a   : > { %8782 = vmatmul.mubr.f32.vlgmr.msra.gmra.mrb[0].mxu0 %v636_v31 }
  0x5b   : > { %9435 = vmatpush3.bf16.msra.mxu0 %v10317_v10  ;;  %8792 = vmatprep.mubr.msk.f32.mxu0 %vm10155_vm0, %v12223_v9 }
  0x5c   : > { %9468 = vmatpush3.bf16.msra.mxu1 %v9431_v47  ;;  %9436 = vmatprep.subr.bf16.mxu0 %v12225_v3  ;;  %v2658_v47 = vld [vmem:[#allocation2 + $0x18] sm:$0x8] }
  0x5d   : > { %9469 = vmatprep.subr.bf16.mxu1 %v12225_v3 }
  0x5f   : > { %8848 = vmatmul.mubr.f32.vlgmr.msra.gmra.mrb[0].mxu1 %v1124_v39  ;;  %9438 = vmatpush3.bf16.msra.mxu0 %v10326_v11 }
  0x60   : > { %9471 = vmatpush3.bf16.msra.mxu1 %v10317_v10  ;;  %9439 = vmatprep.subr.bf16.mxu0 %v12225_v3 }
  0x61   : > { %9472 = vmatprep.subr.bf16.mxu1 %v12225_v3  ;;  %8858 = vmatprep.mubr.msk.f32.mxu1 %vm10155_vm0, %v12223_v9 }
  0x62   : > { %8793 = vmatmul.mubr.f32.vlgmr.msra.gmra.mrb[0].mxu0 %v637_v33 }
  0x63   : > { %9441 = vmatpush3.bf16.msra.mxu0 %v9440_v48  ;;  %8803 = vmatprep.mubr.msk.f32.mxu0 %vm10155_vm0, %v12223_v9 }
  0x64   : > { %9474 = vmatpush3.bf16.msra.mxu1 %v10326_v11  ;;  %9442 = vmatprep.subr.bf16.mxu0 %v12225_v3 }
  0x65   : > { %9475 = vmatprep.subr.bf16.mxu1 %v12225_v3 }
  0x67   : > { %8859 = vmatmul.mubr.f32.vlgmr.msra.gmra.mrb[0].mxu1 %v1125_v41  ;;  %9444 = vmatpush3.bf16.msra.mxu0 %v9443_v49 }
  0x68   : > { %9477 = vmatpush3.bf16.msra.mxu1 %v9440_v48  ;;  %9445 = vmatprep.subr.bf16.mxu0 %v12225_v3  ;;  %v2661_v48 = vld [vmem:[#allocation2 + $0x24] sm:$0x8] }
  0x69   : > { %9478 = vmatprep.subr.bf16.mxu1 %v12225_v3  ;;  %8869 = vmatprep.mubr.msk.f32.mxu1 %vm10155_vm0, %v12223_v9 }
  0x6a   : > { %8804 = vmatmul.mubr.f32.vlgmr.msra.gmra.mrb[0].mxu0 %v10401_v26 }
  0x6b   : > { %9447 = vmatpush3.bf16.msra.mxu0 %v10317_v10  ;;  %8814 = vmatprep.mubr.msk.f32.mxu0 %vm10155_vm0, %v12223_v9 }
  0x6c   : > { %9480 = vmatpush3.bf16.msra.mxu1 %v9443_v49  ;;  %9448 = vmatprep.subr.bf16.mxu0 %v12225_v3  ;;  %v2659_v49 = vsel %vm10574_vm5, 0, %v2658_v47 }
  0x6d   : > { %9481 = vmatprep.subr.bf16.mxu1 %v12225_v3  ;;  %2660 = vst [vmem:[#allocation2 + $0x18] sm:$0x8] %v2659_v49  ;;  %v9938_v49 = vld [vmem:[%s12212_s5] sm:$0xff]  }
  0x6f   : > { %8870 = vmatmul.mubr.f32.vlgmr.msra.gmra.mrb[0].mxu1 %v10408_v35  ;;  %9450 = vmatpush3.bf16.msra.mxu0 %v10326_v11 }
  0x70   : > { %9483 = vmatpush3.bf16.msra.mxu1 %v10317_v10  ;;  %8880 = vmatprep.mubr.msk.f32.mxu1 %vm10155_vm0, %v12223_v9  ;;  %v508_v10 = vld [vmem:[%s12211_s4] sm:$0xff] }
  0x71   : > { %9484 = vmatprep.subr.bf16.mxu1 %v12225_v3  ;;  %9487 = vmatprep.subr.bf16.mxu0 %v12225_v3  ;;  %v1551_v23 = vand.u32 4294901760, %v508_v10 }
  0x72   : > { %8815 = vmatmul.mubr.f32.vlgmr.msra.gmra.mrb[0].mxu0 %v10401_v26 }
  0x73   : > { %8891 = vmatprep.mubr.msk.f32.mxu0 %vm10155_vm0, %v12223_v9  ;;  %v10487_v45 = vpack.c.bf16 %v1554_v29, %v1551_v23  ;;  %v2664_v29 = vld [vmem:[#allocation2 + $0x30] sm:$0x8] }
  0x74   : > { %9486 = vmatpush3.bf16.msra.mxu1 %v10326_v11  ;;  %v1631_v11 = vsub.f32 %v508_v10, %v1551_v23  ;;  %v2662_v10 = vsel %vm10574_vm5, 0, %v2661_v48  ;;  %v2656_v23 = vsel %vm10574_vm5, 0, %v2655_v12  ;;  %v9937_v48 = vld [vmem:[%s12212_s5 + $0x40] sm:$0xff]  }
  0x75   : > { %9523 = vmatprep.subr.bf16.mxu1 %v12225_v3  ;;  %9489 = vmatpush3.bf16.msra.mxu0 %v10487_v45  ;;  %2663 = vst [vmem:[#allocation2 + $0x24] sm:$0x8] %v2662_v10  ;;  %2657 = vst [vmem:[#allocation2 + $0xc] sm:$0x8] %v2656_v23 }
  0x76   : > { %v1632_v55 = vand.u32 4294901760, %v1631_v11  ;;  %9490 = vmatprep.subr.bf16.mxu0 %v12225_v3  ;;  %v9500_v15 = vpack.c.bf16 %v1638_v50, %v1631_v11 }
  0x77   : > { %8881 = vmatmul.mubr.f32.vlgmr.msra.gmra.mrb[0].mxu1 %v10408_v35 }
  0x78   : > { %8957 = vmatprep.mubr.msk.f32.mxu1 %vm10155_vm0, %v12223_v9  ;;  %9525 = vmatpush3.bf16.msra.mxu1 %v10487_v45  ;;  %v1633_v58 = vsub.f32 %v1631_v11, %v1632_v55  ;;  %v10507_v6 = vpack.c.bf16 %v1639_v56, %v1632_v55  ;;  %v2665_v11 = vsel %vm10574_vm5, 0, %v2664_v29  ;;  %v2683_v55 = vsel %vm10591_vm9, 0, %v2682_v54  ;;  %v9931_v56 = vld [vmem:[%s12212_s5 + $0x80] sm:$0xff]  }
  0x79   : > { %9526 = vmatprep.subr.bf16.mxu1 %v12225_v3  ;;  %9492 = vmatpush3.bf16.msra.mxu0 %v10499_v57  ;;  %2666 = vst [vmem:[#allocation2 + $0x30] sm:$0x8] %v2665_v11  ;;  %2684 = vst [vmem:[#allocation2 + $0x20] sm:$0x1] %v2683_v55 }
  0x7a   : > { %v1634_v62 = vand.u32 4294901760, %v1633_v58  ;;  %9493 = vmatprep.subr.bf16.mxu0 %v12225_v3  ;;  %v2688_v58 = vld [vmem:[#allocation2 + $0x38] sm:$0x1] }
  0x7b   : > { %v2689_v60 = vsel %vm10591_vm9, 0, %v2688_v58 }
  0x7c   : > { %9528 = vmatpush3.bf16.msra.mxu1 %v10499_v57  ;;  %v9494_v4 = vpack.c.bf16 %v1641_v63, %v1634_v62  ;;  %2690 = vst [vmem:[#allocation2 + $0x38] sm:$0x1] %v2689_v60  ;;  %v9932_v62 = vld [vmem:[%s12212_s5 + $0x88] sm:$0xff]   ;;  %v2692_v63 = vsel %vm10591_vm9, 0, %v2691_v61 }
  0x7d   : > { %9529 = vmatprep.subr.bf16.mxu1 %v12225_v3  ;;  %2693 = vst [vmem:[#allocation2 + $0x44] sm:$0x1] %v2692_v63 }
  0x80   : > { %v3601_v47 = vld [vmem:[#allocation2 + $0x20] sm:$0x1] }
  0x81   : > { %v3626_v53 = vshll.u32 %v3601_v47, 16 }
 0x145   : > { %v1047_v17 = vpop.f32.mrb[0].mxu0 }
 0x146   : > { %v1540_v18 = vmul.f32 0.015625, %v1047_v17  ;;  %v8816_v19 = vpop.f32.mrb[1].mxu0  ;;  %v2700_v17 = vld [vmem:[#allocation2 + $0x68] sm:$0x1] }
 0x147   : > { %v2647_v19 = vld [vmem:[#allocation2 + $0x6c] sm:$0x8] }
 0x148   : > { %v1548_v20 = vsel %vm512_vm1, %v1540_v18, 0  ;;  %v1542_v21 = vmul.f32 %v1540_v18, %v1540_v18  ;;  %v2701_v18 = vsel %vm10591_vm9, 0, %v2700_v17  ;;  %v10078_v17 = vld [vmem:[%s10335_s30 + $0x18] sm:$0xff] }
 0x149   : > { %v10512_v22 = vand.u32 4294901760, %v1548_v20  ;;  %2702 = vst [vmem:[#allocation2 + $0x68] sm:$0x1] %v2701_v18 }
 0x14a   : > { %v1535_v24 = vpop.f32.mrb[0].mxu1 }
 0x14b   : > { %v1620_v26 = vsub.f32 %v1548_v20, %v10512_v22  ;;  %v1541_v27 = vmul.f32 0.015625, %v1535_v24  ;;  %v8882_v28 = vpop.f32.mrb[1].mxu1  ;;  %v2676_v20 = vld [vmem:[#allocation2 + $0x60] sm:$0x8] }
 0x14c   : > { %v2635_v24 = vld [vmem:[#allocation2] sm:$0x8] }
 0x14d   : > { %v1621_v31 = vand.u32 4294901760, %v1620_v26  ;;  %v1543_v32 = vsub.f32 %v1541_v27, %v1542_v21  ;;  %v2648_v21 = vsel %vm10574_vm5, 0, %v2647_v19 }
 0x14e   : > { %2649 = vst [vmem:[#allocation2 + $0x6c] sm:$0x8] %v2648_v21  ;;  %v10079_v21 = vld [vmem:[%s10335_s30 + $0x20] sm:$0xff] }
 0x14f   : > { %v1544_v33 = vmax.f32 %v1543_v32, 0.0  ;;  %v1622_v34 = vsub.f32 %v1620_v26, %v1621_v31 }
 0x151   : > { %v1545_v35 = vadd.f32 1e-05, %v1544_v33  ;;  %v1623_v36 = vand.u32 4294901760, %v1622_v34  ;;  %v3408_v34 = vld [vmem:[#allocation2 + $0x18] sm:$0x8] }
 0x152   : > { %v3425_v44 = vshrl.u32 %v3408_v34, 16 }
 0x153   : > { %10007 = vrsqrt.f32 %v1545_v35  ;;  %8892 = vmatmul.mubr.f32.vlgmr.msra.gmra.mrb[2].mxu0 %v1623_v36  ;;  %v3410_v35 = vld [vmem:[#allocation2 + $0x24] sm:$0x8]  ;;  %v3066_v36 = vld [vmem:[#allocation2 + $0xc] sm:$0x8] }
 0x154   : > { %9495 = vmatpush3.bf16.msra.mxu0 %v9494_v4  ;;  %8902 = vmatprep.mubr.msk.f32.mxu0 %vm10155_vm0, %v12223_v9  ;;  %v3438_v46 = vshrl.u32 %v3410_v35, 16  ;;  %v3083_v10 = vshrl.u32 %v3066_v36, 16  ;;  %v10641_v54 = vrot.slane %v3425_v44, 11  ;;  %v3605_v44 = vld [vmem:[#allocation2 + $0x38] sm:$0x1] }
 0x155   : > { %9496 = vmatprep.subr.bf16.mxu0 %v12225_v3 }
 0x156   : > { %v10643_v55 = vrot.slane %v3438_v46, 11  ;;  %v10649_v58 = vrot.slane %v3083_v10, 11 }
 0x158   : > { %9498 = vmatpush3.bf16.msra.mxu0 %v9497_v14 }
 0x159   : > { %9499 = vmatprep.subr.bf16.mxu0 %v12225_v3 }
 0x15b   : > { %8903 = vmatmul.mubr.f32.vlgmr.msra.gmra.mrb[2].mxu0 %v10512_v22 }
 0x15c   : > { %9501 = vmatpush3.bf16.msra.mxu0 %v9500_v15  ;;  %8913 = vmatprep.mubr.msk.f32.mxu0 %vm10155_vm0, %v12223_v9 }
 0x15d   : > { %v10008_v37 = vpop.eup %10007  ;;  %9502 = vmatprep.subr.bf16.mxu0 %v12225_v3 }
 0x15e   : > { %v2036_v38 = vsel %vm512_vm1, %v10008_v37, 0  ;;  %v3068_v37 = vld [vmem:[#allocation2 + $0x18] sm:$0x8] }
 0x15f   : > { %v2107_v39 = vand.u32 4294901760, %v2036_v38  ;;  %v3096_v12 = vshrl.u32 %v3068_v37, 16  ;;  %v8106_v37 = vld [vmem:[%s12254_s2] ss:$0 sm:$0xff] }
 0x160   : > { %9504 = vmatpush3.bf16.msra.mxu0 %v10505_v16 }
 0x161   : > { %9505 = vmatprep.subr.bf16.mxu0 %v12225_v3  ;;  %v2108_v40 = vsub.f32 %v2036_v38, %v2107_v39  ;;  %v3412_v38 = vld [vmem:[#allocation2 + $0x30] sm:$0x8] }
 0x162   : > { %v3451_v23 = vshrl.u32 %v3412_v38, 16 }
 0x163   : > { %8914 = vmatmul.mubr.f32.vlgmr.msra.gmra.mrb[2].mxu0 %v1620_v26  ;;  %v2109_v41 = vand.u32 4294901760, %v2108_v40  ;;  %v2636_v26 = vsel %vm10574_vm5, 0, %v2635_v24  ;;  %v10080_v24 = vld [vmem:[%s10335_s30 + $0x28] sm:$0xff] }
 0x164   : > { %9507 = vmatpush3.bf16.msra.mxu0 %v10487_v45  ;;  %8924 = vmatprep.mubr.msk.f32.mxu0 %vm10155_vm0, %v12223_v9  ;;  %2637 = vst [vmem:[#allocation2] sm:$0x8] %v2636_v26  ;;  %v10653_v60 = vrot.slane %v3451_v23, 11 }
 0x165   : > { %v2110_v42 = vsub.f32 %v2108_v40, %v2109_v41  ;;  %9508 = vmatprep.subr.bf16.mxu0 %v12225_v3 }
 0x167   : > { %v2111_v43 = vand.u32 4294901760, %v2110_v42  ;;  %v3252_v42 = vld [vmem:[#allocation2 + $0x14] sm:$0x1] }
 0x168   : > { %9510 = vmatpush3.bf16.msra.mxu0 %v10499_v57 }
 0x169   : > { %8958 = vmatmul.mubr.f32.vlgmr.msra.gmra.mrb[2].mxu1 %v2111_v43  ;;  %9511 = vmatprep.subr.bf16.mxu0 %v12225_v3  ;;  %v3254_v43 = vld [vmem:[#allocation2 + $0x20] sm:$0x1] }
 0x16a   : > { %9531 = vmatpush3.bf16.msra.mxu1 %v9494_v4  ;;  %8968 = vmatprep.mubr.msk.f32.mxu1 %vm10155_vm0, %v12223_v9  ;;  %v2695_v4 = vsel %vm10591_vm9, 0, %v2694_v0  ;;  %v3291_v51 = vshll.u32 %v3254_v43, 16 }
 0x16b   : > { %9532 = vmatprep.subr.bf16.mxu1 %v12225_v3  ;;  %8925 = vmatmul.mubr.f32.vlgmr.msra.gmra.mrb[2].mxu0 %v1621_v31  ;;  %2696 = vst [vmem:[#allocation2 + $0x50] sm:$0x1] %v2695_v4  ;;  %v2523_v31 = vlaneseq  ;;  %v10075_v4 = vld [vmem:[%s10335_s30] sm:$0xff] }
 0x16c   : > { %9513 = vmatpush3.bf16.msra.mxu0 %v10507_v6  ;;  %8935 = vmatprep.mubr.msk.f32.mxu0 %vm10155_vm0, %v12223_v9  ;;  %v10663_v1 = vrot.slane %v3291_v51, 5  ;;  %v3654_v51 = vshll.u32 %v3605_v44, 16 }
 0x16d   : > { %9514 = vmatprep.subr.bf16.mxu0 %v12225_v3  ;;  %v2524_v32 = vshrl.u32 %v2523_v31, 7  ;;  %v8105_v31 = vld [vmem:[%s12253_s1] ss:$0 sm:$0xff]  ;;  %s8322_s1 = sshll.u32 %s10265_s22, 10  ;;  %s12166_s22 = scalar_lea.sflag [#allocation7], %s485_s23 }
 0x16e   : > { %9534 = vmatpush3.bf16.msra.mxu1 %v9497_v14  ;;  %v2671_v14 = vsel %vm10574_vm5, 0, %v2670_v2  ;;  %v10666_v2 = vrot.slane %v3626_v53, 5  ;;  %s12155_s16 = scalar_lea.hbm %s12222_s15, %s8322_s1 }
 0x16f   : > { %9535 = vmatprep.subr.bf16.mxu1 %v12225_v3  ;;  %2672 = vst [vmem:[#allocation2 + $0x48] sm:$0x8] %v2671_v14  ;;  %v10632_v33 = vsub.s32 0, %v2524_v32 }
 0x170   : > { %9516 = vmatpush3.bf16.msra.mxu0 %v10509_v8 }
 0x171   : > { %8969 = vmatmul.mubr.f32.vlgmr.msra.gmra.mrb[2].mxu1 %v2107_v39  ;;  %9517 = vmatprep.subr.bf16.mxu0 %v12225_v3  ;;  %12252 = vst [vmem:[#allocation10_spill] sm:$0xff] %v10632_v33 }
 0x172   : > { %9537 = vmatpush3.bf16.msra.mxu1 %v9500_v15  ;;  %8979 = vmatprep.mubr.msk.f32.mxu1 %vm10155_vm0, %v12223_v9  ;;  %v2673_v15 = vld [vmem:[#allocation2 + $0x54] sm:$0x8] }
 0x173   : > { %9538 = vmatprep.subr.bf16.mxu1 %v12225_v3  ;;  %8936 = vmatmul.mubr.f32.vlgmr.msra.gmra.mrb[2].mxu0 %v10512_v22 }
 0x174   : > { %9519 = vmatpush3.bf16.msra.mxu0 %v10487_v45  ;;  %8946 = vmatprep.mubr.msk.f32.mxu0 %vm10155_vm0, %v12223_v9 }
 0x175   : > { %9520 = vmatprep.subr.bf16.mxu0 %v12225_v3 }
 0x176   : > { %9540 = vmatpush3.bf16.msra.mxu1 %v10505_v16  ;;  %v2674_v16 = vsel %vm10574_vm5, 0, %v2673_v15  ;;  %v10076_v15 = vld [vmem:[%s10335_s30 + $0x8] sm:$0xff] }
 0x177   : > { %9541 = vmatprep.subr.bf16.mxu1 %v12225_v3  ;;  %2675 = vst [vmem:[#allocation2 + $0x54] sm:$0x8] %v2674_v16 }
 0x178   : > { %9522 = vmatpush3.bf16.msra.mxu0 %v10499_v57 }
 0x179   : > { %8980 = vmatmul.mubr.f32.vlgmr.msra.gmra.mrb[2].mxu1 %v2108_v40  ;;  %v3070_v40 = vld [vmem:[#allocation2 + $0x24] sm:$0x8]  ;;  %8443 = vmatprep.subr.bf16.mxu0 %v9937_v48 }
 0x17a   : > { %9543 = vmatpush3.bf16.msra.mxu1 %v10487_v45  ;;  %8990 = vmatprep.mubr.msk.f32.mxu1 %vm10155_vm0, %v12223_v9 }
 0x17b   : > { %9544 = vmatprep.subr.bf16.mxu1 %v12225_v3  ;;  %8947 = vmatmul.mubr.f32.vlgmr.msra.gmra.mrb[2].mxu0 %v10512_v22  ;;  %v2677_v22 = vsel %vm10574_vm5, 0, %v2676_v20 }
 0x17c   : > { %2678 = vst [vmem:[#allocation2 + $0x60] sm:$0x8] %v2677_v22  ;;  %8444 = vmatpush3.bf16.msra.mxu0 %v9938_v49 }
 0x17e   : > { %9546 = vmatpush3.bf16.msra.mxu1 %v10499_v57 }
 0x17f   : > { %9547 = vmatprep.subr.bf16.mxu1 %v12225_v3 }
 0x181   : > { %8991 = vmatmul.mubr.f32.vlgmr.msra.gmra.mrb[2].mxu1 %v2109_v41  ;;  %v3072_v41 = vld [vmem:[#allocation2 + $0x30] sm:$0x8] }
 0x182   : > { %9549 = vmatpush3.bf16.msra.mxu1 %v10507_v6  ;;  %9001 = vmatprep.mubr.msk.f32.mxu1 %vm10155_vm0, %v12223_v9  ;;  %v2651_v6 = vld [vmem:[#allocation2 + $0x74] sm:$0x1]  ;;  %v3122_v11 = vshrl.u32 %v3072_v41, 16 }
 0x183   : > { %9550 = vmatprep.subr.bf16.mxu1 %v12225_v3 }
 0x184   : > { %v10659_v63 = vrot.slane %v3122_v11, 11 }
 0x186   : > { %9552 = vmatpush3.bf16.msra.mxu1 %v10509_v8  ;;  %v2652_v8 = vsel %vm10591_vm9, 0, %v2651_v6  ;;  %v10077_v6 = vld [vmem:[%s10335_s30 + $0x10] sm:$0xff] }
 0x187   : > { %9553 = vmatprep.subr.bf16.mxu1 %v12225_v3  ;;  %2653 = vst [vmem:[#allocation2 + $0x74] sm:$0x1] %v2652_v8 }
 0x189   : > { %9002 = vmatmul.mubr.f32.vlgmr.msra.gmra.mrb[2].mxu1 %v2107_v39 }
 0x18a   : > { %9555 = vmatpush3.bf16.msra.mxu1 %v10487_v45  ;;  %9012 = vmatprep.mubr.msk.f32.mxu1 %vm10155_vm0, %v12223_v9  ;;  %v2667_v45 = vld [vmem:[#allocation2 + $0x3c] sm:$0x8] }
 0x18b   : > { %9556 = vmatprep.subr.bf16.mxu1 %v12225_v3  ;;  %v2668_v50 = vsel %vm10574_vm5, 0, %v2667_v45  ;;  %v3109_v45 = vshrl.u32 %v3070_v40, 16  ;;  %vm4066_vm5 = vcmask 523264  }
 0x18c   : > { %2669 = vst [vmem:[#allocation2 + $0x3c] sm:$0x8] %v2668_v50  ;;  %v3277_v50 = vshll.u32 %v3252_v42, 16 }
 0x18e   : > { %9558 = vmatpush3.bf16.msra.mxu1 %v10499_v57  ;;  %v2685_v57 = vld [vmem:[#allocation2 + $0x2c] sm:$0x1]  ;;  %v10661_v0 = vrot.slane %v3277_v50, 5 }
 0x18f   : > { %9015 = vmatprep.subr.bf16.mxu1 %v9931_v56  ;;  %v2686_v59 = vsel %vm10591_vm9, 0, %v2685_v57  ;;  %v10647_v57 = vld [vmem:[#allocation2 + $0x4] sm:$0xf] }
 0x190   : > { %2687 = vst [vmem:[#allocation2 + $0x2c] sm:$0x1] %v2686_v59  ;;  %v10651_v59 = vrot.slane %v3096_v12, 11  ;;  %v2926_v14 = vshrl.u32 %v10647_v57, 16  ;;  %v2929_v53 = vshll.u32 %v10647_v57, 16 }
 0x191   : > { %9013 = vmatmul.mubr.f32.vlgmr.msra.gmra.mrb[2].mxu1 %v2107_v39 }
 0x192   : > { %9016 = vmatpush3.bf16.msra.mxu1 %v9931_v56 }
 0x193   : > { %9017 = vmatprep.subr.bf16.mxu1 %v9932_v62  ;;  %v3414_v39 = vld [vmem:[#allocation2 + $0x3c] sm:$0x8] }
 0x194   : > { %v3464_v29 = vshrl.u32 %v3414_v39, 16 }
 0x196   : > { %9018 = vmatpush3.bf16.msra.mxu1 %v9932_v62  ;;  %v10655_v61 = vrot.slane %v3464_v29, 11  ;;  %v10657_v62 = vrot.slane %v3109_v45, 11  ;;  %v3607_v45 = vld [vmem:[#allocation2 + $0x44] sm:$0x1] }
 0x197   : > { %9559 = vmatprep.subr.bf16.mxu1 %v12225_v3  ;;  %v10645_v56 = vld [vmem:[#allocation2 + $0x2c] sm:$0x1] }
 0x198   : > { %v3640_v7 = vshll.u32 %v10645_v56, 16  ;;  %v3074_v56 = vld [vmem:[#allocation2 + $0x3c] sm:$0x8] }
 0x19a   : > { %v10711_v44 = vrot.slane %v3640_v7, 5 }
 0x24e   : > { %v2031_v27 = vpop.f32.mrb[2].mxu0 }
 0x24f   : > { %v8948_v28 = vpop.f32.mrb[3].mxu0  ;;  %v2526_v52 = vrot.slane %v2031_v27, %v10632_v33 }
 0x251   : > { %v2527_v5 = vsub.f32 %v10075_v4, %v2526_v52  ;;  %v2528_v16 = vsub.f32 %v10076_v15, %v2526_v52  ;;  %v2529_v8 = vsub.f32 %v10077_v6, %v2526_v52  ;;  %v2530_v18 = vsub.f32 %v10078_v17, %v2526_v52  ;;  %v3614_v4 = vld [vmem:[#allocation2 + $0x70] sm:$0xf] }
 0x252   : > { %v2531_v22 = vsub.f32 %v10079_v21, %v2526_v52  ;;  %v2532_v26 = vsub.f32 %v10080_v24, %v2526_v52  ;;  %v2533_v27 = vsub.f32 %v10351_v25, %v2526_v52  ;;  %v2534_v28 = vsub.f32 %v10360_v30, %v2526_v52  ;;  %v3609_v52 = vld [vmem:[#allocation2 + $0x50] sm:$0x1] }
 0x253   : > { %v3668_v17 = vshll.u32 %v3607_v45, 16  ;;  %v3718_v57 = vshll.u32 %v3614_v4, 16  ;;  %v3682_v24 = vshll.u32 %v3609_v52, 16 }
 0x255   : > { %v10715_v45 = vrot.slane %v3668_v17, 5 }
 0x264   : > { %v2519_v13 = vpop.f32.mrb[2].mxu1 }
 0x265   : > { %v2538_v19 = vrot.slane %v2519_v13, %v10632_v33  ;;  %v9014_v20 = vpop.f32.mrb[3].mxu1 }
 0x266   : > { %v3715_v20 = vshrl.u32 %v3614_v4, 16  ;;  %v2911_v4 = vld [vmem:[#allocation2 + $0x20] sm:$0x1] }
 0x267   : > { %v2539_v32 = vmul.f32 %v2538_v19, %v2527_v5  ;;  %v2540_v34 = vmul.f32 %v2538_v19, %v2528_v16  ;;  %v2541_v35 = vmul.f32 %v2538_v19, %v2529_v8  ;;  %v2542_v36 = vmul.f32 %v2538_v19, %v2530_v18 }
 0x268   : > { %v2543_v38 = vmul.f32 %v2538_v19, %v2531_v22  ;;  %v2544_v39 = vmul.f32 %v2538_v19, %v2532_v26  ;;  %v2545_v40 = vmul.f32 %v2538_v19, %v2533_v27  ;;  %v2546_v41 = vmul.f32 %v2538_v19, %v2534_v28  ;;  %v3611_v22 = vld [vmem:[#allocation2 + $0x5c] sm:$0x1]  ;;  %v2907_v28 = vld [vmem:[#allocation2 + $0x8] sm:$0x1] }
 0x269   : > { %v2553_v42 = vmul.f32 %v8105_v31, %v2539_v32  ;;  %v2554_v25 = vmul.f32 %v8105_v31, %v2540_v34  ;;  %v2555_v43 = vmul.f32 %v8105_v31, %v2541_v35  ;;  %v2556_v30 = vmul.f32 %v8105_v31, %v2542_v36  ;;  %v3418_v34 = vld [vmem:[#allocation2 + $0x54] sm:$0x8]  ;;  %v3256_v35 = vld [vmem:[#allocation2 + $0x2c] sm:$0x1]  ;;  %v3258_v36 = vld [vmem:[#allocation2 + $0x38] sm:$0x1] }
 0x26a   : > { %v2557_v46 = vmul.f32 %v8105_v31, %v2543_v38  ;;  %v2558_v47 = vmul.f32 %v8105_v31, %v2544_v39  ;;  %v2559_v48 = vmul.f32 %v8105_v31, %v2545_v40  ;;  %v2560_v49 = vmul.f32 %v8105_v31, %v2546_v41  ;;  %v2909_v31 = vld [vmem:[#allocation2 + $0x14] sm:$0x1] }
 0x26b   : > { %v10684_v10 = vadd.f32 %v8106_v37, %v2553_v42  ;;  %v10686_v12 = vadd.f32 %v8106_v37, %v2554_v25  ;;  %v10688_v23 = vadd.f32 %v8106_v37, %v2555_v43  ;;  %v10690_v29 = vadd.f32 %v8106_v37, %v2556_v30  ;;  %v3615_v42 = vld [vmem:[#allocation2 + $0x74] sm:$0x1] }
 0x26c   : > { %v10692_v11 = vadd.f32 %v8106_v37, %v2557_v46  ;;  %v10694_v50 = vadd.f32 %v8106_v37, %v2558_v47  ;;  %v10697_v5 = vadd.f32 %v8106_v37, %v2559_v48  ;;  %v10702_v6 = vadd.f32 %v8106_v37, %v2560_v49  ;;  %v3613_v48 = vld [vmem:[#allocation2 + $0x68] sm:$0x1] }
 0x26d   : > { %v8107_v13 = vmul.f32 -1.442695, %v10684_v10  ;;  %v8108_v15 = vmul.f32 -1.442695, %v10686_v12  ;;  %v8109_v16 = vmul.f32 -1.442695, %v10688_v23 }
 0x26e   : > { %v8110_v8 = vmul.f32 -1.442695, %v10690_v29  ;;  %v2928_v18 = vrot.slane %v2926_v14, 4  ;;  %v8111_v19 = vmul.f32 -1.442695, %v10692_v11  ;;  %v2931_v26 = vrot.slane %v2929_v53, 5 }
 0x26f   : > { %10009 = vpow2.f32 %v8107_v13  ;;  %v8112_v21 = vmul.f32 -1.442695, %v10694_v50  ;;  %v8113_v27 = vmul.f32 -1.442695, %v10697_v5  ;;  %v8114_v32 = vmul.f32 -1.442695, %v10702_v6 }
 0x270   : > { %10011 = vpow2.f32 %v8108_v15  ;;  %v3416_v14 = vld [vmem:[#allocation2 + $0x48] sm:$0x8]  ;;  %v3717_v37 = vrot.slane %v3715_v20, 4  ;;  %v3720_v38 = vrot.slane %v3718_v57, 5  ;;  %v3696_v39 = vshll.u32 %v3611_v22, 16 }
 0x271   : > { %10013 = vpow2.f32 %v8109_v16  ;;  %v2932_v40 = vor.u32 %v2931_v26, %v2928_v18  ;;  %v2935_v41 = vshll.u32 %v2907_v28, 16  ;;  %v2949_v25 = vshll.u32 %v2909_v31, 16  ;;  %v2913_v20 = vld [vmem:[#allocation2 + $0x2c] sm:$0x1] }
 0x272   : > { %10015 = vpow2.f32 %v8110_v8  ;;  %v3477_v43 = vshrl.u32 %v3416_v14, 16  ;;  %v3490_v30 = vshrl.u32 %v3418_v34, 16  ;;  %v3305_v46 = vshll.u32 %v3256_v35, 16  ;;  %v3260_v35 = vld [vmem:[#allocation2 + $0x44] sm:$0x1] }
 0x273   : > { %10017 = vpow2.f32 %v8111_v19  ;;  %v3319_v47 = vshll.u32 %v3258_v36, 16  ;;  %v10713_v49 = vrot.slane %v3654_v51, 5  ;;  %v3721_v52 = vor.u32 %v3720_v38, %v3717_v37 }
 0x274   : > { %10019 = vpow2.f32 %v8112_v21  ;;  %v3724_v53 = vshll.u32 %v3615_v42, 16  ;;  %v10717_v13 = vrot.slane %v3682_v24, 5  ;;  %v10719_v15 = vrot.slane %v3696_v39, 5  ;;  %v3262_v39 = vld [vmem:[#allocation2 + $0x50] sm:$0x1] }
 0x275   : > { %10021 = vpow2.f32 %v8113_v27  ;;  %v10721_v16 = vrot.slane %v2932_v40, 4  ;;  %v10723_v8 = vrot.slane %v2935_v41, 5  ;;  %v10725_v18 = vrot.slane %v2949_v25, 5  ;;  %v3076_v27 = vld [vmem:[#allocation2 + $0x48] sm:$0x8] }
 0x276   : > { %10023 = vpow2.f32 %v8114_v32  ;;  %v10727_v19 = vrot.slane %v3477_v43, 11  ;;  %v10729_v51 = vrot.slane %v3490_v30, 11  ;;  %v3710_v17 = vshll.u32 %v3613_v48, 16  ;;  %v10739_v40 = vld [vmem:[#allocation2 + $0x70] sm:$0xf] }
 0x277   : > { %v10731_v22 = vrot.slane %v3305_v46, 5  ;;  %v10733_v24 = vrot.slane %v3319_v47, 5  ;;  %v2963_v26 = vshll.u32 %v2911_v4, 16  ;;  %v10735_v32 = vrot.slane %v3721_v52, 4  ;;  %v2915_v30 = vld [vmem:[#allocation2 + $0x38] sm:$0x1] }
 0x278   : > { %v10737_v14 = vrot.slane %v3724_v53, 5  ;;  %v3135_v34 = vshrl.u32 %v3074_v56, 16  ;;  %v2977_v38 = vshll.u32 %v2913_v20, 16  ;;  %v10741_v25 = vrot.slane %v3710_v17, 5  ;;  %v2917_v52 = vld [vmem:[#allocation2 + $0x44] sm:$0x1] }
 0x279   : > { %v10010_v7 = vpop.eup %10009  ;;  %v3148_v43 = vshrl.u32 %v3076_v27, 16  ;;  %v3333_v48 = vshll.u32 %v3260_v35, 16  ;;  %v3420_v53 = vld [vmem:[#allocation2 + $0x60] sm:$0x8]  ;;  %v3422_v20 = vld [vmem:[#allocation2 + $0x6c] sm:$0x8] }
 0x27a   : > { %v10012_v57 = vpop.eup %10011  ;;  %v2599_v21 = vadd.f32 1.0, %v10010_v7  ;;  %v3347_v7 = vshll.u32 %v3262_v39, 16  ;;  %v2991_v17 = vshll.u32 %v2915_v30, 16  ;;  %v3266_v27 = vld [vmem:[#allocation2 + $0x68] sm:$0x1]  ;;  %v10744_v35 = vrot.slane %v2963_v26, 5 }
 0x27b   : > { %v10014_v28 = vpop.eup %10013  ;;  %v2600_v31 = vadd.f32 1.0, %v10012_v57  ;;  %v3521_v57 = vshrl.u32 %v10739_v40, 16  ;;  %v10746_v9 = vrot.slane %v3135_v34, 11  ;;  %v10748_v39 = vrot.slane %v2977_v38, 5  ;;  %v3080_v26 = vld [vmem:[#allocation2 + $0x60] sm:$0x8] }
 0x27c   : > { %v10016_v36 = vpop.eup %10015  ;;  %v2601_v37 = vadd.f32 1.0, %v10014_v28  ;;  %10025 = vrcp.f32 %v2599_v21  ;;  %v3375_v3 = vshll.u32 %v3266_v27, 16  ;;  %v10750_v30 = vrot.slane %v3148_v43, 11 }
 0x27d   : > { %v10018_v41 = vpop.eup %10017  ;;  %v2602_v42 = vadd.f32 1.0, %v10016_v36  ;;  %10027 = vrcp.f32 %v2600_v31  ;;  %v3264_v31 = vld [vmem:[#allocation2 + $0x5c] sm:$0x1]  ;;  %12255 = vst [vmem:[#allocation11_spill] sm:$0xff] %v10748_v39  ;;  %v10758_v34 = vrot.slane %v2991_v17, 5  ;;  %v3174_v17 = vshrl.u32 %v3080_v26, 16 }
 0x27e   : > { %v10020_v46 = vpop.eup %10019  ;;  %v2603_v47 = vadd.f32 1.0, %v10018_v41  ;;  %10029 = vrcp.f32 %v2601_v37  ;;  %v3005_v41 = vshll.u32 %v2917_v52, 16  ;;  %v3503_v37 = vshrl.u32 %v3420_v53, 16  ;;  %12256 = vst [vmem:[#allocation12_spill] sm:$0xff] %v10750_v30  ;;  %v9942_v39 = vld [vmem:[%s12212_s5 + $0x10] sm:$0xff]  }
 0x27f   : > { %v10022_v4 = vpop.eup %10021  ;;  %v2604_v56 = vadd.f32 1.0, %v10020_v46  ;;  %10031 = vrcp.f32 %v2602_v42  ;;  %v3516_v42 = vshrl.u32 %v3422_v20, 16  ;;  %v3361_v46 = vshll.u32 %v3264_v31, 16  ;;  %12259 = vst [vmem:[#allocation15_spill] sm:$0xff] %v10758_v34  ;;  %v2723_v20 = vld [vmem:[#allocation2 + $0x18] sm:$0x8] }
 0x280   : > { %v10024_v21 = vpop.eup %10023  ;;  %v2605_v28 = vadd.f32 1.0, %v10022_v4  ;;  %10033 = vrcp.f32 %v2603_v47  ;;  %v3078_v4 = vld [vmem:[#allocation2 + $0x54] sm:$0x8]  ;;  %v10752_v47 = vrot.slane %v3333_v48, 5  ;;  %v10756_v52 = vrot.slane %v3521_v57, 7 }
 0x281   : > { %v2606_v36 = vadd.f32 1.0, %v10024_v21  ;;  %10035 = vrcp.f32 %v2604_v56  ;;  %v10754_v56 = vrot.slane %v3347_v7, 5  ;;  %v10760_v53 = vrot.slane %v3005_v41, 5  ;;  %v2919_v48 = vld [vmem:[#allocation2 + $0x50] sm:$0x1] }
 0x282   : > { %10037 = vrcp.f32 %v2605_v28  ;;  %12257 = vst [vmem:[#allocation13_spill] sm:$0xff] %v10752_v47  ;;  %v10762_v38 = vrot.slane %v3503_v37, 11  ;;  %v10765_v43 = vrot.slane %v3516_v42, 11  ;;  %v2921_v28 = vld [vmem:[#allocation2 + $0x5c] sm:$0x1]  ;;  %v3161_v7 = vshrl.u32 %v3078_v4, 16 }
 0x283   : > { %10039 = vrcp.f32 %v2606_v36  ;;  %12258 = vst [vmem:[#allocation14_spill] sm:$0xff] %v10754_v56  ;;  %12260 = vst [vmem:[#allocation16_spill] sm:$0xff] %v10760_v53  ;;  %v10768_v27 = vrot.slane %v3361_v46, 5  ;;  %v10770_v36 = vrot.slane %v3375_v3, 5  ;;  %v10772_v41 = vld [vmem:[#allocation2 + $0x4] sm:$0xf] }
 0x284   : > { %12261 = vst [vmem:[#allocation17_spill] sm:$0xff] %v10762_v38  ;;  %v2725_v53 = vld [vmem:[#allocation2 + $0x24] sm:$0x8]  ;;  %v2719_v42 = vld [vmem:[#allocation2] sm:$0x8]  ;;  %v3019_v56 = vshll.u32 %v2919_v48, 16 }
 0x285   : > { %12262 = vst [vmem:[#allocation18_spill] sm:$0xff] %v10768_v27  ;;  %12263 = vst [vmem:[#allocation19_spill] sm:$0xff] %v10770_v36  ;;  %v3033_v47 = vshll.u32 %v2921_v28, 16  ;;  %v9939_v3 = vld [vmem:[%s12212_s5 + $0x48] sm:$0xff]   ;;  %v9941_v48 = vld [vmem:[%s12212_s5 + $0x50] sm:$0xff]   ;;  %v2764_v27 = vshrl.u32 %v2723_v20, 16 }
 0x286   : > { %v10026_v21 = vpop.eup %10025  ;;  %v9940_v46 = vld [vmem:[%s12212_s5 + $0x8] sm:$0xff]   ;;  %v2727_v28 = vld [vmem:[#allocation2 + $0x30] sm:$0x8]  ;;  %v2777_v30 = vshrl.u32 %v2725_v53, 16  ;;  %8445 = vmatprep.subr.bf16.mxu0 %v9939_v3  ;;  %v10798_v20 = vrot.slane %v3174_v17, 11 }
 0x287   : > { %v10028_v31 = vpop.eup %10027  ;;  %v2623_v57 = vmul.f32 %v10026_v21, %v10684_v10  ;;  %v2721_v10 = vld [vmem:[#allocation2 + $0xc] sm:$0x8]  ;;  %8446 = vmatpush3.bf16.msra.mxu0 %v9940_v46  ;;  %v10803_v46 = vld [vmem:[#allocation2 + $0x3c] sm:$0x8]  ;;  %v10816_v17 = vrot.slane %v2764_v27, 11 }
 0x288   : > { %v10030_v37 = vpop.eup %10029  ;;  %v2624_v33 = vmul.f32 %v10028_v31, %v10686_v12  ;;  %v10783_v31 = vrot.slane %v3161_v7, 11  ;;  %v2738_v7 = vshrl.u32 %v2719_v42, 16  ;;  %8447 = vmatprep.subr.bf16.mxu0 %v9941_v48  ;;  %v9944_v27 = vld [vmem:[%s12212_s5 + $0x18] sm:$0xff]  }
 0x289   : > { %v10032_v38 = vpop.eup %10031  ;;  %v2625_v34 = vmul.f32 %v10030_v37, %v10688_v23  ;;  %v2703_v4 = vpack.c.bf16 %v2623_v57, %v2623_v57  ;;  %v2743_v23 = vshrl.u32 %v10772_v41, 16 }
 0x28a   : > { %v10034_v26 = vpop.eup %10033  ;;  %v2626_v12 = vmul.f32 %v10032_v38, %v10690_v29  ;;  %v2704_v21 = vpack.c.bf16 %v2624_v33, %v2624_v33  ;;  %12264 = vst [vmem:[#allocation20_spill] sm:$0xff] %v10783_v31  ;;  %v2751_v31 = vshrl.u32 %v2721_v10, 16  ;;  %v2746_v10 = vshll.u32 %v10772_v41, 16 }
 0x28b   : > { %v10036_v57 = vpop.eup %10035  ;;  %v2627_v37 = vmul.f32 %v10034_v26, %v10692_v11  ;;  %v2705_v36 = vpack.c.bf16 %v2625_v34, %v2625_v34  ;;  %2711 = vst.msk [vmem:[#allocation2 + $0x10] sm:$0xf] %vm2638_vm2, %v2703_v4  ;;  %v2745_v42 = vrot.slane %v2743_v23, 7  ;;  %v10827_v23 = vrot.slane %v2738_v7, 11  ;;  %8448 = vmatpush3.bf16.msra.mxu0 %v9942_v39 }
 0x28c   : > { %v10038_v29 = vpop.eup %10037  ;;  %v2628_v33 = vmul.f32 %v10036_v57, %v10694_v50  ;;  %2712 = vst.msk [vmem:[#allocation2 + $0x1c] sm:$0xf] %vm2638_vm2, %v2704_v21  ;;  %v2706_v38 = vpack.c.bf16 %v2626_v12, %v2626_v12  ;;  %v2790_v50 = vshrl.u32 %v2727_v28, 16  ;;  %v10825_v21 = vrot.slane %v2777_v30, 11  ;;  %v10843_v57 = vld [vmem:[#allocation2 + $0x54] sm:$0x8] }
 0x28d   : > { %v10040_v11 = vpop.eup %10039  ;;  %v2629_v34 = vmul.f32 %v10038_v29, %v10697_v5  ;;  %2713 = vst.msk [vmem:[#allocation2 + $0x28] sm:$0xf] %vm2638_vm2, %v2705_v36  ;;  %v2707_v53 = vpack.c.bf16 %v2627_v37, %v2627_v37  ;;  %v10812_v36 = vrot.slane %v3019_v56, 5  ;;  %12269 = vst [vmem:[#allocation21_spill] sm:$0xff] %v10827_v23  ;;  %v10829_v48 = vrot.slane %v2751_v31, 11  ;;  %v9943_v56 = vld [vmem:[%s12212_s5 + $0x58] sm:$0xff]  }
 0x28e   : > { %v2630_v4 = vmul.f32 %v10040_v11, %v10702_v6  ;;  %v2708_v3 = vpack.c.bf16 %v2628_v33, %v2628_v33  ;;  %2714 = vst.msk [vmem:[#allocation2 + $0x34] sm:$0xf] %vm2638_vm2, %v2706_v38  ;;  %v10814_v6 = vrot.slane %v3033_v47, 5  ;;  %v10831_v47 = vld [vmem:[#allocation2 + $0x48] sm:$0x8]  ;;  %v10840_v28 = vrot.slane %v2790_v50, 11  ;;  %8449 = vmatprep.subr.bf16.mxu0 %v9943_v56 }
 0x28f   : > { %v2709_v26 = vpack.c.bf16 %v2629_v34, %v2629_v34  ;;  %2715 = vst.msk [vmem:[#allocation2 + $0x40] sm:$0xf] %vm2638_vm2, %v2707_v53  ;;  %12270 = vst [vmem:[#allocation22_spill] sm:$0xff] %v10829_v48  ;;  %v12273_v37 = vshll.u32 %v10739_v40, 16  ;;  %v10851_v33 = vor.u32 %v2746_v10, %v2745_v42  ;;  %8450 = vmatpush3.bf16.msra.mxu0 %v9944_v27 }
 0x290   : > { %v2710_v12 = vpack.c.bf16 %v2630_v4, %v2630_v4  ;;  %2716 = vst.msk [vmem:[#allocation2 + $0x4c] sm:$0xf] %vm2638_vm2, %v2708_v3  ;;  %12271 = vst [vmem:[#allocation23_spill] sm:$0xff] %v10840_v28 }
 0x291   : > { %2717 = vst.msk [vmem:[#allocation2 + $0x58] sm:$0xf] %vm2638_vm2, %v2709_v26  ;;  %12272 = vst [vmem:[#allocation24_spill] sm:$0xff] %v10843_v57  ;;  %v10849_v29 = vor.u32 %v12273_v37, %v10756_v52 }
 0x292   : > { %2718 = vst.msk [vmem:[#allocation2 + $0x64] sm:$0xf] %vm2638_vm2, %v2710_v12  ;;  %v9928_v39 = vld [vmem:[#allocation2 + $0x4] ss:$12 sps:$4 sm:$0xff]   ;;  %12274 = vst [vmem:[#allocation25_spill] sm:$0xff] %v10851_v33  ;;  %vm3061_vm2 = vcmask 785920  }
 0x293   : > { %v3067_v31 = vld [vmem:[#allocation2 + $0x10] sm:$0xf]  ;;  %v3409_v38 = vld [vmem:[#allocation2 + $0x1c] sm:$0xf]  ;;  %2889 = vrot.lane.b32.xlu0 %v9928_v39, %s10158_s0 }
 0x294   : > { %v9927_v7 = vld [vmem:[#allocation2 + $0x1c] ss:$12 sps:$4 sm:$0xff]   ;;  %v3430_v53 = vshrl.u32 %v3409_v38, 16  ;;  %v3433_v12 = vshll.u32 %v3409_v38, 16  ;;  %v3088_v39 = vshrl.u32 %v3067_v31, 16  ;;  %v3091_v52 = vshll.u32 %v3067_v31, 16 }
 0x295   : > { %v9929_v11 = vld [vmem:[#allocation2 + $0x1c] ss:$12 sps:$4 sm:$0xff]   ;;  %2891 = vrot.lane.b32.xlu1 %v9927_v7, %s10158_s0  ;;  %v3413_v40 = vld [vmem:[#allocation2 + $0x34] sm:$0xf]  ;;  %v9945_v38 = vld [vmem:[%s12212_s5 + $0x60] sm:$0xff]  }
 0x296   : > { %v3411_v34 = vld [vmem:[#allocation2 + $0x28] sm:$0xf]  ;;  %v3432_v26 = vrot.slane %v3430_v53, 7  ;;  %v3069_v27 = vld [vmem:[#allocation2 + $0x1c] sm:$0xf]  ;;  %v3090_v28 = vrot.slane %v3088_v39, 7  ;;  %8451 = vmatprep.subr.bf16.mxu0 %v9945_v38 }
 0x297   : > { %v3443_v4 = vshrl.u32 %v3411_v34, 16  ;;  %v3446_v56 = vshll.u32 %v3411_v34, 16  ;;  %3584 = vrot.lane.b32.xlu0 %v9929_v11, %s10159_s3  ;;  %v9930_v7 = vld [vmem:[#allocation2 + $0x34] ss:$12 sps:$4 sm:$0xff]   ;;  %v3101_v30 = vshrl.u32 %v3069_v27, 16  ;;  %v3104_v3 = vshll.u32 %v3069_v27, 16 }
 0x298   : > { %v3435_v50 = vor.u32 %v3433_v12, %v3432_v26  ;;  %v3415_v48 = vld [vmem:[#allocation2 + $0x40] sm:$0xf]  ;;  %v3456_v42 = vshrl.u32 %v3413_v40, 16  ;;  %v3459_v33 = vshll.u32 %v3413_v40, 16  ;;  %v3071_v11 = vld [vmem:[#allocation2 + $0x28] sm:$0xf]  ;;  %v3093_v26 = vor.u32 %v3091_v52, %v3090_v28 }
 0x299   : > { %v3445_v37 = vrot.slane %v3443_v4, 7  ;;  %v3103_v53 = vrot.slane %v3101_v30, 7  ;;  %v3469_v10 = vshrl.u32 %v3415_v48, 16  ;;  %v3472_v23 = vshll.u32 %v3415_v48, 16  ;;  %v9946_v31 = vld [vmem:[%s12212_s5 + $0x20] sm:$0xff]  }
 0x29a   : > { %v3436_v4 = vsel %vm10807_vm13, %v10641_v54, %v3435_v50  ;;  %v3458_v12 = vrot.slane %v3456_v42, 7  ;;  %v3073_v40 = vld [vmem:[#allocation2 + $0x34] sm:$0xf]  ;;  %v3114_v27 = vshrl.u32 %v3071_v11, 16  ;;  %v3117_v39 = vshll.u32 %v3071_v11, 16  ;;  %8452 = vmatpush3.bf16.msra.mxu0 %v9946_v31 }
 0x29b   : > { %v3448_v34 = vor.u32 %v3446_v56, %v3445_v37  ;;  %3586 = vrot.lane.b32.xlu0 %v9930_v7, %s10159_s3  ;;  %v3106_v48 = vor.u32 %v3104_v3, %v3103_v53  ;;  %v3471_v56 = vrot.slane %v3469_v10, 7  ;;  %v3251_v37 = vld [vmem:[#allocation2 + $0x10] sm:$0xf]  ;;  %v3094_v54 = vsel %vm10807_vm13, %v10649_v58, %v3093_v26  ;;  %v3253_v52 = vld [vmem:[#allocation2 + $0x1c] sm:$0xf] }
 0x29c   : > { %v3461_v28 = vor.u32 %v3459_v33, %v3458_v12  ;;  %v3116_v50 = vrot.slane %v3114_v27, 7  ;;  %v3127_v38 = vshrl.u32 %v3073_v40, 16  ;;  %v3130_v7 = vshll.u32 %v3073_v40, 16  ;;  %v3600_v33 = vld [vmem:[#allocation2 + $0x1c] sm:$0xf] }
 0x29d   : > { %v3449_v30 = vsel %vm10807_vm13, %v10643_v55, %v3448_v34  ;;  %v3107_v42 = vsel %vm10807_vm13, %v10651_v59, %v3106_v48  ;;  %v3474_v55 = vor.u32 %v3472_v23, %v3471_v56  ;;  %v3268_v58 = vshrl.u32 %v3251_v37, 16  ;;  %v3602_v31 = vld [vmem:[#allocation2 + $0x28] sm:$0xf]  ;;  %v3604_v40 = vld [vmem:[#allocation2 + $0x34] sm:$0xf] }
 0x29e   : > { %v8163_v57 = vcombine.low %v3436_v4, %v3449_v30  ;;  %v8143_v3 = vcombine.low %v3094_v54, %v3107_v42  ;;  %v3462_v10 = vsel %vm10807_vm13, %v10653_v60, %v3461_v28  ;;  %v3119_v34 = vor.u32 %v3117_v39, %v3116_v50 }
 0x29f   : > { %v3475_v53 = vsel %vm10807_vm13, %v10655_v61, %v3474_v55  ;;  %v3129_v11 = vrot.slane %v3127_v38, 7  ;;  %v3271_v59 = vshll.u32 %v3251_v37, 16  ;;  %v3282_v23 = vshrl.u32 %v3253_v52, 16  ;;  %v9948_v61 = vld [vmem:[%s12212_s5 + $0x68] sm:$0xff]  }
 0x2a0   : > { %3540 = vrot.lane.b32.xlu1 %v8163_v57, %s12232_s25  ;;  %v8164_v4 = vcombine.low %v3462_v10, %v3475_v53  ;;  %v3120_v57 = vsel %vm10807_vm13, %v10657_v62, %v3119_v34  ;;  %v3270_v26 = vrot.slane %v3268_v58, 4  ;;  %v3285_v12 = vshll.u32 %v3253_v52, 16  ;;  %v3606_v52 = vld [vmem:[#allocation2 + $0x40] sm:$0xf]  ;;  %8453 = vmatprep.subr.bf16.mxu0 %v9948_v61  ;;  %v2908_v61 = vld [vmem:[#allocation2 + $0x10] sm:$0xf] }
 0x2a1   : > { %v3132_v60 = vor.u32 %v3130_v7, %v3129_v11  ;;  %v3273_v27 = vrot.slane %v3271_v59, 5  ;;  %v3284_v30 = vrot.slane %v3282_v23, 4  ;;  %v3617_v48 = vshrl.u32 %v3600_v33, 16 }
 0x2a2   : > { %3542 = vrot.lane.b32.xlu0 %v8164_v4, %s12232_s25  ;;  %v3287_v56 = vrot.slane %v3285_v12, 5  ;;  %v3620_v39 = vshll.u32 %v3600_v33, 16  ;;  %v3631_v37 = vshrl.u32 %v3602_v31, 16  ;;  %v3634_v54 = vshll.u32 %v3602_v31, 16  ;;  %v9949_v31 = vld [vmem:[%s12212_s5 + $0x28] sm:$0xff]  }
 0x2a3   : > { %v3133_v62 = vsel %vm10807_vm13, %v10659_v63, %v3132_v60  ;;  %v3274_v28 = vor.u32 %v3273_v27, %v3270_v26  ;;  %v3619_v50 = vrot.slane %v3617_v48, 4  ;;  %v3645_v42 = vshrl.u32 %v3604_v40, 16  ;;  %v3610_v12 = vld [vmem:[#allocation2 + $0x58] sm:$0xf]  ;;  %8454 = vmatpush3.bf16.msra.mxu0 %v9949_v31 }
 0x2a4   : > { %3198 = vrot.lane.b32.xlu1 %v8143_v3, %s10159_s3  ;;  %v8144_v55 = vcombine.low %v3120_v57, %v3133_v62  ;;  %v3288_v38 = vor.u32 %v3287_v56, %v3284_v30  ;;  %v3622_v7 = vrot.slane %v3620_v39, 5  ;;  %v3633_v10 = vrot.slane %v3631_v37, 4  ;;  %v3608_v3 = vld [vmem:[#allocation2 + $0x4c] sm:$0xf] }
 0x2a5   : > { %v3275_v34 = vrot.slane %v3274_v28, 4  ;;  %v3636_v58 = vrot.slane %v3634_v54, 5  ;;  %v3647_v53 = vrot.slane %v3645_v42, 4  ;;  %v3648_v33 = vshll.u32 %v3604_v40, 16 }
 0x2a6   : > { %v3289_v11 = vrot.slane %v3288_v38, 4  ;;  %v3623_v59 = vor.u32 %v3622_v7, %v3619_v50  ;;  %v3659_v23 = vshrl.u32 %v3606_v52, 16  ;;  %v3662_v63 = vshll.u32 %v3606_v52, 16  ;;  %v3417_v52 = vld [vmem:[#allocation2 + $0x4c] sm:$0xf] }
 0x2a7   : > { %v3280_v4 = vsel %vm10821_vm14, %v3275_v34, %v10661_v0  ;;  %v3637_v57 = vor.u32 %v3636_v58, %v3633_v10  ;;  %v3650_v26 = vrot.slane %v3648_v33, 5  ;;  %v3673_v60 = vshrl.u32 %v3608_v3, 16  ;;  %v3419_v7 = vld [vmem:[#allocation2 + $0x58] sm:$0xf]  ;;  %v3255_v33 = vld [vmem:[#allocation2 + $0x28] sm:$0xf] }
 0x2a8   : > { %3200 = vrot.lane.b32.xlu1 %v8144_v55, %s10159_s3  ;;  %v3294_v40 = vsel %vm10821_vm14, %v3289_v11, %v10663_v1  ;;  %v3624_v27 = vrot.slane %v3623_v59, 4  ;;  %v3661_v30 = vrot.slane %v3659_v23, 4  ;;  %v3664_v48 = vrot.slane %v3662_v63, 5  ;;  %v9951_v23 = vld [vmem:[%s12212_s5 + $0x30] sm:$0xff]  }
 0x2a9   : > { %v8151_v56 = vcombine.low %v3280_v4, %v3294_v40  ;;  %v3638_v39 = vrot.slane %v3637_v57, 4  ;;  %v3651_v37 = vor.u32 %v3650_v26, %v3647_v53  ;;  %v3675_v54 = vrot.slane %v3673_v60, 4  ;;  %v3257_v40 = vld [vmem:[#allocation2 + $0x34] sm:$0xf] }
 0x2aa   : > { %v3629_v0 = vsel %vm10821_vm14, %v3624_v27, %v10666_v2  ;;  %v3665_v62 = vor.u32 %v3664_v48, %v3661_v30  ;;  %v3676_v28 = vshll.u32 %v3608_v3, 16  ;;  %v3687_v50 = vshrl.u32 %v3610_v12, 16  ;;  %v9950_v2 = vld [vmem:[%s12212_s5 + $0x70] sm:$0xff]  }
 0x2ab   : > { %3391 = vrot.lane.b32.xlu0 %v8151_v56, %s10158_s0  ;;  %v3643_v1 = vsel %vm10821_vm14, %v3638_v39, %v10711_v44  ;;  %v3652_v42 = vrot.slane %v3651_v37, 4  ;;  %v3690_v55 = vshll.u32 %v3610_v12, 16  ;;  %v2940_v38 = vshrl.u32 %v2908_v61, 16  ;;  %8455 = vmatprep.subr.bf16.mxu0 %v9950_v2 }
 0x2ac   : > { %v8171_v10 = vcombine.low %v3629_v0, %v3643_v1  ;;  %v3666_v34 = vrot.slane %v3665_v62, 4  ;;  %v3678_v58 = vrot.slane %v3676_v28, 5  ;;  %v3689_v53 = vrot.slane %v3687_v50, 4  ;;  %8456 = vmatpush3.bf16.msra.mxu0 %v9951_v23  ;;  %v3612_v50 = vld [vmem:[#allocation2 + $0x64] sm:$0xf] }
 0x2ad   : > { %v3657_v3 = vsel %vm10821_vm14, %v3652_v42, %v10713_v49  ;;  %v3692_v11 = vrot.slane %v3690_v55, 5  ;;  %v2942_v59 = vrot.slane %v2940_v38, 4  ;;  %v2943_v44 = vshll.u32 %v2908_v61, 16 }
 0x2ae   : > { %3744 = vst.msk [vmem:[#allocation4 + $0x10] sm:$0xff] %vm512_vm1, %v8171_v10  ;;  %v3671_v63 = vsel %vm10821_vm14, %v3666_v34, %v10715_v45  ;;  %v3679_v31 = vor.u32 %v3678_v58, %v3675_v54  ;;  %v3482_v4 = vshrl.u32 %v3417_v52, 16  ;;  %v3485_v57 = vshll.u32 %v3417_v52, 16  ;;  %v2910_v58 = vld [vmem:[#allocation2 + $0x1c] sm:$0xf] }
 0x2af   : > { %v8172_v26 = vcombine.low %v3657_v3, %v3671_v63  ;;  %v3693_v12 = vor.u32 %v3692_v11, %v3689_v53  ;;  %v2945_v49 = vrot.slane %v2943_v44, 5  ;;  %v3495_v60 = vshrl.u32 %v3419_v7, 16  ;;  %v3075_v11 = vld [vmem:[#allocation2 + $0x40] sm:$0xf]  ;;  %v9947_v63 = vld [vmem:[#allocation2 + $0x10] ss:$12 sps:$4 sm:$0xff]  }
 0x2b0   : > { %v3680_v27 = vrot.slane %v3679_v31, 4  ;;  %v3484_v30 = vrot.slane %v3482_v4, 7  ;;  %v3498_v48 = vshll.u32 %v3419_v7, 16  ;;  %v3296_v61 = vshrl.u32 %v3255_v33, 16  ;;  %3247 = vst.msk [vmem:[#allocation4 + $0x8] sm:$0xff] %vm512_vm1, %v9947_v63 }
 0x2b1   : > { %3745 = vst.msk [vmem:[#allocation4 + $0x28] sm:$0xff] %vm512_vm1, %v8172_v26  ;;  %v3694_v56 = vrot.slane %v3693_v12, 4  ;;  %v2946_v39 = vor.u32 %v2945_v49, %v2942_v59  ;;  %v3497_v37 = vrot.slane %v3495_v60, 7  ;;  %v3299_v45 = vshll.u32 %v3255_v33, 16  ;;  %v9933_v12 = vld [vmem:[#allocation2 + $0x34] ss:$12 sps:$4 sm:$0xff]  }
 0x2b2   : > { %v3685_v54 = vsel %vm10821_vm14, %v3680_v27, %v10717_v13  ;;  %v3487_v0 = vor.u32 %v3485_v57, %v3484_v30  ;;  %v3298_v62 = vrot.slane %v3296_v61, 4  ;;  %v3310_v28 = vshrl.u32 %v3257_v40, 16  ;;  %v2912_v13 = vld [vmem:[#allocation2 + $0x28] sm:$0xf] }
 0x2b3   : > { %v3699_v52 = vsel %vm10821_vm14, %v3694_v56, %v10719_v15  ;;  %v2947_v1 = vrot.slane %v2946_v39, 4  ;;  %v3500_v42 = vor.u32 %v3498_v48, %v3497_v37  ;;  %v3301_v55 = vrot.slane %v3299_v45, 5  ;;  %v3259_v56 = vld [vmem:[#allocation2 + $0x40] sm:$0xf]  ;;  %v9953_v39 = vld [vmem:[%s12212_s5 + $0x78] sm:$0xff]  }
 0x2b4   : > { %v8173_v38 = vcombine.low %v3685_v54, %v3699_v52  ;;  %v3488_v7 = vsel %vm10807_vm13, %v10727_v19, %v3487_v0  ;;  %v3312_v10 = vrot.slane %v3310_v28, 4  ;;  %v3313_v34 = vshll.u32 %v3257_v40, 16  ;;  %8457 = vmatprep.subr.bf16.mxu0 %v9953_v39 }
 0x2b5   : > { %v3750_v53 = vld [vmem:[#allocation4 + $0x10] sm:$0xff]  ;;  %v2952_v33 = vsel %vm10821_vm14, %v2947_v1, %v10725_v18  ;;  %v3501_v15 = vsel %vm10807_vm13, %v10729_v51, %v3500_v42  ;;  %v3302_v2 = vor.u32 %v3301_v55, %v3298_v62  ;;  %v3701_v3 = vshrl.u32 %v3612_v50, 16  ;;  %v9954_v62 = vld [vmem:[%s12212_s5 + $0x38] sm:$0xff]   ;;  %v3261_v1 = vld [vmem:[#allocation2 + $0x4c] sm:$0xf] }
 0x2b6   : > { %9019 = vmatprep.mubr.msk.bf16.mxu1 %vm512_vm1, %v3750_v53  ;;  %3746 = vst.msk [vmem:[#allocation4 + $0x40] sm:$0xff] %vm512_vm1, %v8173_v38  ;;  %v12275_v19 = vsel %vm10821_vm14, %v10721_v16, %v10723_v8  ;;  %v8165_v44 = vcombine.low %v3488_v7, %v3501_v15  ;;  %v3315_v23 = vrot.slane %v3313_v34, 5  ;;  %v3704_v18 = vshll.u32 %v3612_v50, 16  ;;  %v3077_v16 = vld [vmem:[#allocation2 + $0x4c] sm:$0xf]  ;;  %8458 = vmatpush3.bf16.msra.mxu0 %v9954_v62 }
 0x2b7   : > { %v8131_v59 = vcombine.low %v12275_v19, %v2952_v33  ;;  %v3303_v31 = vrot.slane %v3302_v2, 4  ;;  %v3703_v4 = vrot.slane %v3701_v3, 4  ;;  %v2954_v51 = vshrl.u32 %v2910_v58, 16  ;;  %v9952_v42 = vld [vmem:[#allocation2 + $0x28] ss:$12 sps:$4 sm:$0xff]  }
 0x2b8   : > { %v2957_v57 = vshll.u32 %v2910_v58, 16  ;;  %v3753_v26 = vld [vmem:[#allocation4 + $0x28] sm:$0xff]  ;;  %3544 = vrot.lane.b32.xlu0 %v8165_v44, %s12232_s25  ;;  %v3316_v49 = vor.u32 %v3315_v23, %v3312_v10  ;;  %v3706_v60 = vrot.slane %v3704_v18, 5  ;;  %v2968_v40 = vshrl.u32 %v2912_v13, 16  ;;  %3248 = vst.msk [vmem:[#allocation4 + $0x20] sm:$0xff] %vm512_vm1, %v9952_v42 }
 0x2b9   : > { %3049 = vrot.lane.b32.xlu1 %v8131_v59, %s12232_s25  ;;  %v2971_v27 = vshll.u32 %v2912_v13, 16  ;;  %9020 = vmatmul.mubr.msk.bf16.vlgmr.msra.gmra.mrb[4].mxu1 %vm512_vm1, %v3753_v26  ;;  %v3308_v8 = vsel %vm10821_vm14, %v3303_v31, %v10731_v22  ;;  %v2956_v30 = vrot.slane %v2954_v51, 4  ;;  %v3140_v61 = vshrl.u32 %v3075_v11, 16  ;;  %v9955_v15 = vld [vmem:[#allocation2 + $0x40] ss:$12 sps:$4 sm:$0xff]  }
 0x2ba   : > { %v2959_v48 = vrot.slane %v2957_v57, 5  ;;  %v3317_v37 = vrot.slane %v3316_v49, 4  ;;  %v3707_v45 = vor.u32 %v3706_v60, %v3703_v4  ;;  %v2970_v54 = vrot.slane %v2968_v40, 4  ;;  %v2914_v59 = vld [vmem:[#allocation2 + $0x34] sm:$0xf]  ;;  %3249 = vst.msk [vmem:[#allocation4 + $0x38] sm:$0xff] %vm512_vm1, %v9955_v15 }
 0x2bb   : > { %v2973_v0 = vrot.slane %v2971_v27, 5  ;;  %v3142_v50 = vrot.slane %v3140_v61, 7  ;;  %v3143_v52 = vshll.u32 %v3075_v11, 16  ;;  %v3153_v22 = vshrl.u32 %v3077_v16, 16  ;;  %v2916_v31 = vld [vmem:[#allocation2 + $0x40] sm:$0xf] }
 0x2bc   : > { %v2960_v28 = vor.u32 %v2959_v48, %v2956_v30  ;;  %v3322_v55 = vsel %vm10821_vm14, %v3317_v37, %v10733_v24  ;;  %v3708_v38 = vrot.slane %v3707_v45, 4  ;;  %v3156_v10 = vshll.u32 %v3077_v16, 16  ;;  %v12278_v4 = vld [vmem:[#allocation11_spill] sm:$0xff]  ;;  %v12279_v49 = vld [vmem:[#allocation12_spill] sm:$0xff] }
 0x2bd   : > { %2893 = vrot.lane.b32.xlu1 %v9933_v12, %s10158_s0  ;;  %v2974_v7 = vor.u32 %v2973_v0, %v2970_v54  ;;  %v3756_v34 = vld [vmem:[#allocation4 + $0x40] sm:$0xff]  ;;  %v8152_v58 = vcombine.low %v3308_v8, %v3322_v55  ;;  %v3145_v53 = vor.u32 %v3143_v52, %v3142_v50  ;;  %v3155_v33 = vrot.slane %v3153_v22, 7  ;;  %v3421_v27 = vld [vmem:[#allocation2 + $0x64] sm:$0xf]  ;;  %v3263_v61 = vld [vmem:[#allocation2 + $0x58] sm:$0xf] }
 0x2be   : > { %v2961_v13 = vrot.slane %v2960_v28, 4  ;;  %v12276_v2 = vmov 0.0|0.0   ;;  %9023 = vmatprep.mubr.msk.bf16.mxu1 %vm512_vm1, %v3756_v34  ;;  %v3713_v24 = vsel %vm10821_vm14, %v3708_v38, %v10741_v25  ;;  %v3324_v11 = vshrl.u32 %v3259_v56, 16  ;;  %v3265_v50 = vld [vmem:[#allocation2 + $0x64] sm:$0xf]  ;;  %v12280_v55 = vld [vmem:[#allocation13_spill] sm:$0xff] }
 0x2bf   : > { %9631 = vmatprep.subr.bf16.mxu0 %v12276_v2  ;;  %v2975_v3 = vrot.slane %v2974_v7, 4  ;;  %v3327_v19 = vshll.u32 %v3259_v56, 16  ;;  %3393 = vrot.lane.b32.xlu0 %v8152_v58, %s10158_s0  ;;  %v12277_v44 = vsel %vm10821_vm14, %v10735_v32, %v10737_v14  ;;  %v3146_v25 = vsel %vm10807_vm13, %v10746_v9, %v3145_v53  ;;  %v9956_v14 = vld [vmem:[#allocation2 + $0x58] ss:$12 sps:$4 sm:$0xff]   ;;  %v2918_v58 = vld [vmem:[#allocation2 + $0x4c] sm:$0xf] }
 0x2c0   : > { %v8174_v23 = vcombine.low %v3713_v24, %v12277_v44  ;;  %v2966_v18 = vsel %vm10821_vm14, %v2961_v13, %v10744_v35  ;;  %v3158_v63 = vor.u32 %v3156_v10, %v3155_v33  ;;  %v3326_v57 = vrot.slane %v3324_v11, 4  ;;  %v9934_v35 = vld [vmem:[#allocation2 + $0x4c] ss:$12 sps:$4 sm:$0xff]   ;;  %3250 = vst.msk [vmem:[#allocation4 + $0x50] sm:$0xff] %vm512_vm1, %v9956_v14  ;;  %v12281_v44 = vld [vmem:[#allocation14_spill] sm:$0xff] }
 0x2c1   : > { %v2980_v51 = vsel %vm10821_vm14, %v2975_v3, %v12278_v4  ;;  %v3329_v26 = vrot.slane %v3327_v19, 5  ;;  %v3338_v32 = vshrl.u32 %v3261_v1, 16  ;;  %v3341_v60 = vshll.u32 %v3261_v1, 16 }
 0x2c2   : > { %3747 = vst.msk [vmem:[#allocation4 + $0x58] sm:$0xff] %vm512_vm1, %v8174_v23  ;;  %v8132_v12 = vcombine.low %v2966_v18, %v2980_v51  ;;  %v3159_v9 = vsel %vm10807_vm13, %v12279_v49, %v3158_v63  ;;  %v2982_v40 = vshrl.u32 %v2914_v59, 16  ;;  %v2985_v48 = vshll.u32 %v2914_v59, 16  ;;  %v2920_v63 = vld [vmem:[#allocation2 + $0x58] sm:$0xf]  ;;  %v12285_v49 = vld [vmem:[#allocation16_spill] sm:$0xff] }
 0x2c3   : > { %v8145_v16 = vcombine.low %v3146_v25, %v3159_v9  ;;  %v3330_v8 = vor.u32 %v3329_v26, %v3326_v57  ;;  %v3340_v30 = vrot.slane %v3338_v32, 4  ;;  %3588 = vrot.lane.b32.xlu0 %v9934_v35, %s10159_s3  ;;  %v3343_v56 = vrot.slane %v3341_v60, 5  ;;  %v12282_v51 = vld [vmem:[#allocation15_spill] sm:$0xff]  ;;  %v12283_v26 = vld [vmem:[#allocation17_spill] sm:$0xff] }
 0x2c4   : > { %3051 = vrot.lane.b32.xlu1 %v8132_v12, %s12232_s25  ;;  %v2984_v39 = vrot.slane %v2982_v40, 4  ;;  %v2996_v37 = vshrl.u32 %v2916_v31, 16  ;;  %v2999_v45 = vshll.u32 %v2916_v31, 16  ;;  %v2987_v0 = vrot.slane %v2985_v48, 5  ;;  %v3079_v12 = vld [vmem:[#allocation2 + $0x58] sm:$0xf] }
 0x2c5   : > { %v3331_v54 = vrot.slane %v3330_v8, 4  ;;  %v3508_v62 = vshrl.u32 %v3421_v27, 16  ;;  %v3511_v28 = vshll.u32 %v3421_v27, 16  ;;  %v3344_v52 = vor.u32 %v3343_v56, %v3340_v30  ;;  %v3081_v8 = vld [vmem:[#allocation2 + $0x64] sm:$0xf] }
 0x2c6   : > { %v2998_v22 = vrot.slane %v2996_v37, 4  ;;  %v3001_v1 = vrot.slane %v2999_v45, 5  ;;  %v3352_v42 = vshrl.u32 %v3263_v61, 16  ;;  %v2988_v7 = vor.u32 %v2987_v0, %v2984_v39  ;;  %v2726_v0 = vld [vmem:[#allocation2 + $0x28] sm:$0xf] }
 0x2c7   : > { %v3336_v38 = vsel %vm10821_vm14, %v3331_v54, %v12280_v55  ;;  %v3510_v10 = vrot.slane %v3508_v62, 7  ;;  %v3355_v34 = vshll.u32 %v3263_v61, 16  ;;  %v3345_v13 = vrot.slane %v3344_v52, 4  ;;  %v12287_v62 = vld [vmem:[#allocation18_spill] sm:$0xff]  ;;  %v2724_v52 = vld [vmem:[#allocation2 + $0x1c] sm:$0xf] }
 0x2c8   : > { %3202 = vrot.lane.b32.xlu1 %v8145_v16, %s10159_s3  ;;  %v3002_v53 = vor.u32 %v3001_v1, %v2998_v22  ;;  %v3354_v33 = vrot.slane %v3352_v42, 4  ;;  %v3366_v15 = vshrl.u32 %v3265_v50, 16  ;;  %v2989_v3 = vrot.slane %v2988_v7, 4 }
 0x2c9   : > { %v3759_v24 = vld [vmem:[#allocation4 + $0x58] sm:$0xff]  ;;  %v3513_v11 = vor.u32 %v3511_v28, %v3510_v10  ;;  %v3357_v19 = vrot.slane %v3355_v34, 5  ;;  %v3369_v59 = vshll.u32 %v3265_v50, 16  ;;  %v3350_v23 = vsel %vm10821_vm14, %v3345_v13, %v12281_v44  ;;  %v12288_v13 = vld [vmem:[#allocation19_spill] sm:$0xff] }
 0x2ca   : > { %9024 = vmatmul.mubr.msk.bf16.gmra.mrb[8].mxu1 %vm512_vm1, %v3759_v24  ;;  %v3003_v18 = vrot.slane %v3002_v53, 4  ;;  %v3368_v25 = vrot.slane %v3366_v15, 4  ;;  %v3010_v31 = vshrl.u32 %v2918_v58, 16  ;;  %v8153_v4 = vcombine.low %v3336_v38, %v3350_v23  ;;  %v9935_v38 = vld [vmem:[#allocation2 + $0x4c] ss:$12 sps:$4 sm:$0xff]  }
 0x2cb   : > { %v2994_v57 = vsel %vm10821_vm14, %v2989_v3, %v12282_v51  ;;  %v3514_v32 = vsel %vm10807_vm13, %v12283_v26, %v3513_v11  ;;  %v3358_v14 = vor.u32 %v3357_v19, %v3354_v33  ;;  %v12284_v35 = vmov 0.0   ;;  %v2722_v3 = vld [vmem:[#allocation2 + $0x10] sm:$0xf] }
 0x2cc   : > { %9043 = vmatprep.mubr.msk.f32.mxu1 %vm10155_vm0, %v12284_v35  ;;  %v3008_v9 = vsel %vm10821_vm14, %v3003_v18, %v12285_v49  ;;  %v12286_v60 = vsel %vm10807_vm13, %v10765_v43, %v10849_v29  ;;  %v3371_v27 = vrot.slane %v3369_v59, 5  ;;  %v3012_v16 = vrot.slane %v3010_v31, 4  ;;  %3395 = vrot.lane.b32.xlu0 %v8153_v4, %s10158_s0  ;;  %v12289_v18 = vld [vmem:[#allocation20_spill] sm:$0xff] }
 0x2cd   : > { %v8166_v40 = vcombine.low %v3514_v32, %v12286_v60  ;;  %v8133_v30 = vcombine.low %v2994_v57, %v3008_v9  ;;  %v3359_v48 = vrot.slane %v3358_v14, 4  ;;  %v3013_v61 = vshll.u32 %v2918_v58, 16  ;;  %v2728_v32 = vld [vmem:[#allocation2 + $0x34] sm:$0xf]  ;;  %v2730_v9 = vld [vmem:[#allocation2 + $0x40] sm:$0xf] }
 0x2ce   : > { %v3024_v56 = vshrl.u32 %v2920_v63, 16  ;;  %v3372_v39 = vor.u32 %v3371_v27, %v3368_v25  ;;  %v3027_v37 = vshll.u32 %v2920_v63, 16  ;;  %v3166_v45 = vshrl.u32 %v3079_v12, 16 }
 0x2cf   : > { %v3169_v54 = vshll.u32 %v3079_v12, 16  ;;  %3053 = vrot.lane.b32.xlu1 %v8133_v30, %s12232_s25  ;;  %v3364_v43 = vsel %vm10821_vm14, %v3359_v48, %v12287_v62  ;;  %v3015_v29 = vrot.slane %v3013_v61, 5  ;;  %v3179_v50 = vshrl.u32 %v3081_v8, 16  ;;  %v9936_v12 = vld [vmem:[#allocation2 + $0x64] ss:$12 sps:$4 sm:$0xff]  }
 0x2d0   : > { %v3026_v28 = vrot.slane %v3024_v56, 4  ;;  %v3373_v22 = vrot.slane %v3372_v39, 4  ;;  %v3029_v1 = vrot.slane %v3027_v37, 5  ;;  %v3168_v42 = vrot.slane %v3166_v45, 7  ;;  %3546 = vrot.lane.b32.xlu0 %v8166_v40, %s12232_s25  ;;  %v2732_v48 = vld [vmem:[#allocation2 + $0x4c] sm:$0xf] }
 0x2d1   : > { %v3182_v55 = vshll.u32 %v3081_v8, 16  ;;  %v3016_v7 = vor.u32 %v3015_v29, %v3012_v16  ;;  %v3181_v10 = vrot.slane %v3179_v50, 7  ;;  %v2782_v34 = vshrl.u32 %v2726_v0, 16  ;;  %v2734_v61 = vld [vmem:[#allocation2 + $0x58] sm:$0xf]  ;;  %v12294_v50 = vld [vmem:[#allocation22_spill] sm:$0xff] }
 0x2d2   : > { %v2785_v58 = vshll.u32 %v2726_v0, 16  ;;  %v3378_v53 = vsel %vm10821_vm14, %v3373_v22, %v12288_v13  ;;  %v3030_v33 = vor.u32 %v3029_v1, %v3026_v28  ;;  %v3171_v15 = vor.u32 %v3169_v54, %v3168_v42  ;;  %v12295_v42 = vld [vmem:[#allocation21_spill] sm:$0xff] }
 0x2d3   : > { %v2769_v24 = vshrl.u32 %v2724_v52, 16  ;;  %2895 = vrot.lane.b32.xlu1 %v9935_v38, %s10158_s0  ;;  %v8154_v11 = vcombine.low %v3364_v43, %v3378_v53  ;;  %v3017_v19 = vrot.slane %v3016_v7, 4  ;;  %v3184_v59 = vor.u32 %v3182_v55, %v3181_v10  ;;  %v12296_v55 = vld [vmem:[#allocation25_spill] sm:$0xff]  ;;  %v12298_v53 = vld [vmem:[#allocation23_spill] sm:$0xff] }
 0x2d4   : > { %v2784_v44 = vrot.slane %v2782_v34, 7  ;;  %v3031_v23 = vrot.slane %v3030_v33, 4  ;;  %v3172_v25 = vsel %vm10807_vm13, %v12289_v18, %v3171_v15  ;;  %v2772_v31 = vshll.u32 %v2724_v52, 16 }
 0x2d5   : > { %v2771_v63 = vrot.slane %v2769_v24, 7  ;;  %3397 = vrot.lane.b32.xlu0 %v8154_v11, %s10158_s0  ;;  %v3022_v4 = vsel %vm10821_vm14, %v3017_v19, %v10812_v36  ;;  %v3185_v51 = vsel %vm10807_vm13, %v10798_v20, %v3184_v59  ;;  %v2756_v26 = vshrl.u32 %v2722_v3, 16 }
 0x2d6   : > { %v2787_v57 = vor.u32 %v2785_v58, %v2784_v44  ;;  %v3036_v14 = vsel %vm10821_vm14, %v3031_v23, %v10814_v6  ;;  %v12290_v60 = vshrl.u32 %v10803_v46, 16  ;;  %v12291_v27 = vshrl.u32 %v10831_v47, 16  ;;  %v12292_v46 = vld [vmem:[#allocation24_spill] sm:$0xff] }
 0x2d7   : > { %v2774_v49 = vor.u32 %v2772_v31, %v2771_v63  ;;  %v8134_v16 = vcombine.low %v3022_v4, %v3036_v14  ;;  %v2758_v8 = vrot.slane %v2756_v26, 7  ;;  %v2759_v30 = vshll.u32 %v2722_v3, 16 }
 0x2d8   : > { %v8120_v40 = vrot.slane %v12290_v60, 11  ;;  %v8121_v36 = vrot.slane %v12291_v27, 11  ;;  %v2788_v20 = vsel %vm10807_vm13, %v10825_v21, %v2787_v57  ;;  %v8146_v56 = vcombine.low %v3172_v25, %v3185_v51 }
 0x2d9   : > { %v2775_v6 = vsel %vm10807_vm13, %v10816_v17, %v2774_v49  ;;  %v2795_v39 = vshrl.u32 %v2728_v32, 16  ;;  %v12293_v37 = vshrl.u32 %v12292_v46, 16  ;;  %3055 = vrot.lane.b32.xlu1 %v8134_v16, %s12232_s25  ;;  %3590 = vrot.lane.b32.xlu0 %v9936_v12, %s10159_s3  ;;  %v2761_v54 = vor.u32 %v2759_v30, %v2758_v8 }
 0x2da   : > { %v8124_v47 = vcombine.low %v2775_v6, %v2788_v20  ;;  %v2798_v21 = vshll.u32 %v2728_v32, 16  ;;  %v2808_v0 = vshrl.u32 %v2730_v9, 16  ;;  %v2811_v43 = vshll.u32 %v2730_v9, 16 }
 0x2db   : > { %v8122_v45 = vrot.slane %v12293_v37, 11  ;;  %v2797_v62 = vrot.slane %v2795_v39, 7  ;;  %v2821_v29 = vshrl.u32 %v2732_v48, 16  ;;  %v2834_v28 = vshrl.u32 %v2734_v61, 16 }
 0x2dc   : > { %2858 = vst.msk [vmem:[#allocation4 + $0x18] sm:$0xff] %vm512_vm1, %v8124_v47  ;;  %v2762_v17 = vsel %vm10807_vm13, %v12294_v50, %v2761_v54  ;;  %v2810_v52 = vrot.slane %v2808_v0, 7  ;;  %v2824_v22 = vshll.u32 %v2732_v48, 16  ;;  %v2837_v1 = vshll.u32 %v2734_v61, 16 }
 0x2dd   : > { %v12297_v38 = vsel %vm10807_vm13, %v12295_v42, %v12296_v55  ;;  %v2800_v10 = vor.u32 %v2798_v21, %v2797_v62  ;;  %v2823_v34 = vrot.slane %v2821_v29, 7  ;;  %v2836_v58 = vrot.slane %v2834_v28, 7  ;;  %3204 = vrot.lane.b32.xlu1 %v8146_v56, %s10159_s3 }
 0x2de   : > { %v8123_v7 = vcombine.low %v12297_v38, %v2762_v17  ;;  %v2813_v13 = vor.u32 %v2811_v43, %v2810_v52  ;;  %v4054_v52 = vld [vmem:[%s12216_s9] sm:$0xff]  ;;  %v4057_v38 = vld [vmem:[%s12216_s9 + $0x18] sm:$0xff] }
 0x2df   : > { %v2801_v33 = vsel %vm10807_vm13, %v12298_v53, %v2800_v10  ;;  %v2826_v15 = vor.u32 %v2824_v22, %v2823_v34  ;;  %v2839_v24 = vor.u32 %v2837_v1, %v2836_v58  ;;  %v4055_v22 = vld [vmem:[%s12216_s9 + $0x8] sm:$0xff]  ;;  %v4056_v1 = vld [vmem:[%s12216_s9 + $0x10] sm:$0xff]  ;;  %v4121_v42 = vand.u32 4294901760, %v4054_v52  ;;  %v4058_v34 = vld [vmem:[%s12216_s9 + $0x20] sm:$0xff] }
 0x2e0   : > { %2857 = vst.msk [vmem:[#allocation4] sm:$0xff] %vm512_vm1, %v8123_v7  ;;  %v2814_v3 = vsel %vm10807_vm13, %v8120_v40, %v2813_v13  ;;  %v4124_v55 = vand.u32 4294901760, %v4055_v22  ;;  %v4127_v7 = vand.u32 4294901760, %v4056_v1  ;;  %v4130_v10 = vand.u32 4294901760, %v4057_v38  ;;  %v4059_v58 = vld [vmem:[%s12216_s9 + $0x28] sm:$0xff] }
 0x2e1   : > { %v8125_v11 = vcombine.low %v2801_v33, %v2814_v3  ;;  %v2827_v19 = vsel %vm10807_vm13, %v8121_v36, %v2826_v15  ;;  %v2840_v59 = vsel %vm10807_vm13, %v8122_v45, %v2839_v24  ;;  %v4133_v33 = vand.u32 4294901760, %v4058_v34  ;;  %v4060_v24 = vld [vmem:[%s12216_s9 + $0x30] sm:$0xff]  ;;  %v4061_v3 = vld [vmem:[%s12216_s9 + $0x38] sm:$0xff] }
 0x2e2   : > { %v8126_v44 = vcombine.low %v2827_v19, %v2840_v59  ;;  %v11153_v13 = vpack.c.bf16 %v4124_v55, %v4121_v42  ;;  %v11156_v53 = vpack.c.bf16 %v4130_v10, %v4127_v7  ;;  %v4136_v15 = vand.u32 4294901760, %v4059_v58 }
 0x2e3   : > { %2859 = vst.msk [vmem:[#allocation4 + $0x30] sm:$0xff] %vm512_vm1, %v8125_v11  ;;  %v4139_v19 = vand.u32 4294901760, %v4060_v24  ;;  %v4142_v59 = vand.u32 4294901760, %v4061_v3 }
 0x2e4   : > { %2860 = vst.msk [vmem:[#allocation4 + $0x48] sm:$0xff] %vm512_vm1, %v8126_v44  ;;  %9561 = vmatpush3.bf16.msra.mxu1 %v11153_v13  ;;  %v11168_v11 = vpack.c.bf16 %v4136_v15, %v4133_v33  ;;  %v4205_v44 = vsub.f32 %v4054_v52, %v4121_v42 }
 0x2e5   : > { %9562 = vmatprep.subr.bf16.mxu1 %v12276_v2 }
 0x2e8   : > { %9564 = vmatpush3.bf16.msra.mxu1 %v11156_v53 }
 0x2e9   : > { %9565 = vmatprep.subr.bf16.mxu1 %v12276_v2 }
 0x2ec   : > { %9567 = vmatpush3.bf16.msra.mxu1 %v11168_v11 }
 0x2ed   : > { %9568 = vmatprep.subr.bf16.mxu1 %v12276_v2 }
 0x305   : > { %v2890_v23 = vpop.permute.xlu0 %2889 }
 0x306   : > { %2902 = vst.msk [vmem:[#allocation4] sm:$0xff] %vm2901_vm15, %v2890_v23  ;;  %v4212_v23 = vsub.f32 %v4055_v22, %v4124_v55 }
 0x307   : > { %v2892_v18 = vpop.permute.xlu1 %2891 }
 0x308   : > { %2903 = vst.msk [vmem:[#allocation4 + $0x18] sm:$0xff] %vm2901_vm15, %v2892_v18  ;;  %v11175_v18 = vpack.c.bf16 %v4142_v59, %v4139_v19  ;;  %v11189_v22 = vpack.c.bf16 %v4212_v23, %v4205_v44 }
 0x309   : > { %v3585_v25 = vpop.permute.xlu0 %3584 }
 0x30a   : > { %9570 = vmatpush3.bf16.msra.mxu1 %v11175_v18 }
 0x30b   : > { %9571 = vmatprep.subr.bf16.mxu1 %v12276_v2 }
 0x30d   : > { %v3587_v63 = vpop.permute.xlu0 %3586 }
 0x312   : > { %v3541_v4 = vpop.permute.xlu1 %3540 }
 0x314   : > { %v3543_v31 = vpop.permute.xlu0 %3542 }
 0x316   : > { %v3199_v57 = vpop.permute.xlu1 %3198 }
 0x31a   : > { %v3201_v26 = vpop.permute.xlu1 %3200 }
 0x31d   : > { %v3392_v51 = vpop.permute.xlu0 %3391 }
 0x31e   : > { %3403 = vst.msk [vmem:[#allocation4 + $0x8] sm:$0xff] %vm2901_vm15, %v3392_v51 }
 0x31f   : > { %3552 = vst.msk [vmem:[#allocation4 + $0x8] sm:$0xff] %vm3061_vm2, %v3541_v4  ;;  %v4226_v4 = vsub.f32 %v4057_v38, %v4130_v10 }
 0x320   : > { %3596 = vst.msk [vmem:[#allocation4 + $0x8] sm:$0xff] %vm3210_vm3, %v3585_v25  ;;  %v4206_v25 = vand.u32 4294901760, %v4205_v44 }
 0x322   : > { %v4207_v51 = vsub.f32 %v4205_v44, %v4206_v25 }
 0x327   : > { %v3749_v32 = vld [vmem:[#allocation4 + $0x8] sm:$0xff] }
 0x328   : > { %3954 = vmatprep.mubr.bf16.mxu0 %v3749_v32  ;;  %v4227_v32 = vand.u32 4294901760, %v4226_v4 }
 0x32a   : > { %v3545_v12 = vpop.permute.xlu0 %3544 }
 0x32b   : > { %v3050_v14 = vpop.permute.xlu1 %3049 }
 0x32c   : > { %3062 = vst.msk [vmem:[#allocation4] sm:$0xff] %vm3061_vm2, %v3050_v14  ;;  %v4208_v14 = vand.u32 4294901760, %v4207_v51 }
 0x32d   : > { %3211 = vst.msk [vmem:[#allocation4] sm:$0xff] %vm3210_vm3, %v3199_v57 }
 0x32f   : > { %v2894_v49 = vpop.permute.xlu1 %2893 }
 0x330   : > { %2904 = vst.msk [vmem:[#allocation4 + $0x30] sm:$0xff] %vm2901_vm15, %v2894_v49 }
 0x331   : > { %v3394_v9 = vpop.permute.xlu0 %3393 }
 0x332   : > { %3404 = vst.msk [vmem:[#allocation4 + $0x20] sm:$0xff] %vm2901_vm15, %v3394_v9  ;;  %v4228_v9 = vsub.f32 %v4226_v4, %v4227_v32 }
 0x333   : > { %3553 = vst.msk [vmem:[#allocation4 + $0x20] sm:$0xff] %vm3061_vm2, %v3543_v31  ;;  %v4219_v31 = vsub.f32 %v4056_v1, %v4127_v7 }
 0x334   : > { %v3748_v60 = vld [vmem:[#allocation4] sm:$0xff]  ;;  %3597 = vst.msk [vmem:[#allocation4 + $0x20] sm:$0xff] %vm3210_vm3, %v3587_v63  ;;  %v4213_v63 = vand.u32 4294901760, %v4212_v23 }
 0x335   : > { %3955 = vmatmul.mubr.bf16.vlgmr.msra.gmra.mrb[4].mxu0 %v3748_v60  ;;  %v3589_v27 = vpop.permute.xlu0 %3588  ;;  %v4233_v60 = vsub.f32 %v4058_v34, %v4133_v33  ;;  %v11193_v38 = vpack.c.bf16 %v4226_v4, %v4219_v31 }
 0x336   : > { %v3052_v40 = vpop.permute.xlu1 %3051  ;;  %9633 = vmatpush3.bf16.msra.mxu0 %v11153_v13  ;;  %v4214_v57 = vsub.f32 %v4212_v23, %v4213_v63  ;;  %v11199_v34 = vpack.c.bf16 %v4213_v63, %v4206_v25 }
 0x337   : > { %3063 = vst.msk [vmem:[#allocation4 + $0x18] sm:$0xff] %vm3061_vm2, %v3052_v40  ;;  %9634 = vmatprep.subr.bf16.mxu0 %v12276_v2 }
 0x338   : > { %3212 = vst.msk [vmem:[#allocation4 + $0x18] sm:$0xff] %vm3210_vm3, %v3201_v26  ;;  %v4220_v26 = vand.u32 4294901760, %v4219_v31 }
 0x33a   : > { %v3203_v36 = vpop.permute.xlu1 %3202  ;;  %9636 = vmatpush3.bf16.msra.mxu0 %v11156_v53  ;;  %v4221_v49 = vsub.f32 %v4219_v31, %v4220_v26 }
 0x33b   : > { %v3752_v16 = vld [vmem:[#allocation4 + $0x20] sm:$0xff]  ;;  %9637 = vmatprep.subr.bf16.mxu0 %v12276_v2 }
 0x33c   : > { %3962 = vmatprep.mubr.bf16.mxu0 %v3752_v16  ;;  %v4229_v16 = vand.u32 4294901760, %v4228_v9 }
 0x33e   : > { %v3396_v20 = vpop.permute.xlu0 %3395  ;;  %9639 = vmatpush3.bf16.msra.mxu0 %v11168_v11 }
 0x33f   : > { %v3751_v8 = vld [vmem:[#allocation4 + $0x18] sm:$0xff]  ;;  %3405 = vst.msk [vmem:[#allocation4 + $0x38] sm:$0xff] %vm2901_vm15, %v3396_v20  ;;  %9640 = vmatprep.subr.bf16.mxu0 %v12276_v2  ;;  %v4234_v20 = vand.u32 4294901760, %v4233_v60 }
 0x340   : > { %3963 = vmatmul.mubr.bf16.gmra.mrb[8].mxu0 %v3751_v8  ;;  %3554 = vst.msk [vmem:[#allocation4 + $0x38] sm:$0xff] %vm3061_vm2, %v3545_v12  ;;  %v4215_v12 = vand.u32 4294901760, %v4214_v57 }
 0x341   : > { %v3054_v30 = vpop.permute.xlu1 %3053  ;;  %3598 = vst.msk [vmem:[#allocation4 + $0x38] sm:$0xff] %vm3210_vm3, %v3589_v27  ;;  %v4240_v27 = vsub.f32 %v4059_v58, %v4136_v15  ;;  %v11201_v58 = vpack.c.bf16 %v4227_v32, %v4220_v26 }
 0x342   : > { %3064 = vst.msk [vmem:[#allocation4 + $0x30] sm:$0xff] %vm3061_vm2, %v3054_v30  ;;  %v3547_v48 = vpop.permute.xlu0 %3546  ;;  %9642 = vmatpush3.bf16.msra.mxu0 %v11175_v18  ;;  %v11183_v40 = vpack.c.bf16 %v4215_v12, %v4208_v14 }
 0x343   : > { %3213 = vst.msk [vmem:[#allocation4 + $0x30] sm:$0xff] %vm3210_vm3, %v3203_v36  ;;  %9643 = vmatprep.subr.bf16.mxu0 %v12276_v2  ;;  %v4222_v36 = vand.u32 4294901760, %v4221_v49  ;;  %v4241_v8 = vand.u32 4294901760, %v4240_v27  ;;  %v11195_v7 = vpack.c.bf16 %v4240_v27, %v4233_v60 }
 0x345   : > { %v2896_v61 = vpop.permute.xlu1 %2895  ;;  %v11185_v30 = vpack.c.bf16 %v4229_v16, %v4222_v36  ;;  %v11203_v33 = vpack.c.bf16 %v4241_v8, %v4234_v20 }
 0x346   : > { %2905 = vst.msk [vmem:[#allocation4 + $0x48] sm:$0xff] %vm2901_vm15, %v2896_v61  ;;  %v4247_v61 = vsub.f32 %v4060_v24, %v4139_v19  ;;  %v11208_v24 = vld [vmem:[%s12213_s6] ss:$0 sm:$0xff] }
 0x347   : > { %v3398_v56 = vpop.permute.xlu0 %3397 }
 0x348   : > { %3406 = vst.msk [vmem:[#allocation4 + $0x50] sm:$0xff] %vm2901_vm15, %v3398_v56  ;;  %v3755_v6 = vld [vmem:[#allocation4 + $0x38] sm:$0xff]  ;;  %v4254_v56 = vsub.f32 %v4061_v3, %v4142_v59 }
 0x349   : > { %3555 = vst.msk [vmem:[#allocation4 + $0x50] sm:$0xff] %vm3061_vm2, %v3547_v48  ;;  %3970 = vmatprep.mubr.bf16.mxu0 %v3755_v6  ;;  %v4235_v48 = vsub.f32 %v4233_v60, %v4234_v20  ;;  %v4242_v6 = vsub.f32 %v4240_v27, %v4241_v8 }
 0x34a   : > { %v3754_v39 = vld [vmem:[#allocation4 + $0x30] sm:$0xff]  ;;  %v11197_v10 = vpack.c.bf16 %v4254_v56, %v4247_v61 }
 0x34b   : > { %v3056_v46 = vpop.permute.xlu1 %3055  ;;  %v3591_v37 = vpop.permute.xlu0 %3590  ;;  %3971 = vmatmul.mubr.bf16.gmra.mrb[12].mxu0 %v3754_v39  ;;  %v4236_v39 = vand.u32 4294901760, %v4235_v48 }
 0x34c   : > { %3065 = vst.msk [vmem:[#allocation4 + $0x48] sm:$0xff] %vm3061_vm2, %v3056_v46  ;;  %v4248_v46 = vand.u32 4294901760, %v4247_v61 }
 0x34d   : > { %3599 = vst.msk [vmem:[#allocation4 + $0x50] sm:$0xff] %vm3210_vm3, %v3591_v37  ;;  %v4255_v37 = vand.u32 4294901760, %v4254_v56 }
 0x34f   : > { %v3205_v45 = vpop.permute.xlu1 %3204  ;;  %v11210_v44 = vpack.c.bf16 %v4255_v37, %v4248_v46 }
 0x350   : > { %3214 = vst.msk [vmem:[#allocation4 + $0x48] sm:$0xff] %vm3210_vm3, %v3205_v45  ;;  %v4243_v45 = vand.u32 4294901760, %v4242_v6 }
 0x352   : > { %v11187_v52 = vpack.c.bf16 %v4243_v45, %v4236_v39 }
 0x354   : > { %v3758_v47 = vld [vmem:[#allocation4 + $0x50] sm:$0xff] }
 0x355   : > { %3978 = vmatprep.mubr.bf16.mxu0 %v3758_v47  ;;  %v4249_v47 = vsub.f32 %v4247_v61, %v4248_v46 }
 0x357   : > { %v3757_v54 = vld [vmem:[#allocation4 + $0x48] sm:$0xff]  ;;  %v4250_v1 = vand.u32 4294901760, %v4249_v47 }
 0x358   : > { %3979 = vmatmul.mubr.bf16.gmra.mrb[16].mxu0 %v3757_v54  ;;  %v4256_v54 = vsub.f32 %v4254_v56, %v4255_v37 }
 0x359   : > { %9157 = vmatprep.mubr.msk.f32.mxu0 %vm10155_vm0, %v12284_v35 }
 0x35a   : > { %v4257_v42 = vand.u32 4294901760, %v4256_v54 }
 0x35c   : > { %v11191_v55 = vpack.c.bf16 %v4257_v42, %v4250_v1 }
 0x38c   : > { %v11119_v21 = vpop.f32.mrb[4].mxu1 }
 0x38d   : > { %v11121_v0 = vpop.f32.mrb[5].mxu1 }
 0x38e   : > { %v11123_v62 = vpop.f32.mrb[6].mxu1 }
 0x38f   : > { %v11125_v43 = vpop.f32.mrb[7].mxu1 }
 0x39d   : > { %v11127_v29 = vpop.f32.mrb[8].mxu1 }
 0x39e   : > { %v11129_v28 = vpop.f32.mrb[9].mxu1 }
 0x39f   : > { %v11131_v50 = vpop.f32.mrb[10].mxu1 }
 0x3a0   : > { %v11133_v17 = vpop.f32.mrb[11].mxu1 }
 0x408   : > { %v8459_v15 = vpop.f32.mrb[4].mxu0 }
 0x409   : > { %v8460_v3 = vpop.f32.mrb[5].mxu0 }
 0x40a   : > { %v8461_v19 = vadd.f32 %v8460_v3, %v8459_v15  ;;  %v8462_v59 = vpop.f32.mrb[6].mxu0 }
 0x40b   : > { %v8463_v23 = vpop.f32.mrb[7].mxu0 }
 0x40c   : > { %v3957_v31 = vadd.f32 %v8461_v19, %v11208_v24  ;;  %v8464_v25 = vadd.f32 %v8463_v23, %v8462_v59 }
 0x40e   : > { %v11214_v63 = vadd.f32 %v11121_v0, %v3957_v31  ;;  %v3960_v4 = vadd.f32 %v8464_v25, %v11208_v24 }
 0x410   : > { %v11218_v51 = vadd.f32 %v11125_v43, %v3960_v4  ;;  %v4067_v37 = vsel %vm4066_vm5, %v11214_v63, 0.0 }
 0x412   : > { %v4089_v8 = vmul.f32 %v11218_v51, %v11218_v51  ;;  %v4068_v6 = vsel %vm4066_vm5, %v11218_v51, 0.0 }
 0x413   : > { %v8465_v57 = vpop.f32.mrb[8].mxu0  ;;  %v4069_v54 = vadd.f32 %v4068_v6, %v4067_v37 }
 0x414   : > { %v8466_v26 = vpop.f32.mrb[9].mxu0  ;;  %v4097_v45 = vsel %vm4066_vm5, %v4089_v8, 0.0 }
 0x415   : > { %v8467_v32 = vadd.f32 %v8466_v26, %v8465_v57  ;;  %v8468_v14 = vpop.f32.mrb[10].mxu0 }
 0x416   : > { %v8469_v12 = vpop.f32.mrb[11].mxu0 }
 0x417   : > { %v3965_v49 = vadd.f32 %v8467_v32, %v11208_v24  ;;  %v8470_v9 = vadd.f32 %v8469_v12, %v8468_v14 }
 0x419   : > { %v11222_v60 = vadd.f32 %v11119_v21, %v3965_v49  ;;  %v3968_v27 = vadd.f32 %v8470_v9, %v11208_v24  ;;  %v4088_v21 = vmul.f32 %v11214_v63, %v11214_v63 }
 0x41b   : > { %v11226_v0 = vadd.f32 %v11123_v62, %v3968_v27  ;;  %v4090_v62 = vmul.f32 %v11222_v60, %v11222_v60  ;;  %v4070_v47 = vsel %vm4066_vm5, %v11222_v60, 0.0  ;;  %v4096_v42 = vsel %vm4066_vm5, %v4088_v21, 0.0 }
 0x41c   : > { %v4098_v3 = vadd.f32 %v4097_v45, %v4096_v42  ;;  %v4071_v19 = vadd.f32 %v4070_v47, %v4069_v54 }
 0x41d   : > { %v4099_v15 = vsel %vm4066_vm5, %v4090_v62, 0.0  ;;  %v4072_v59 = vsel %vm4066_vm5, %v11226_v0, 0.0 }
 0x41e   : > { %v8471_v36 = vpop.f32.mrb[12].mxu0  ;;  %v4100_v31 = vadd.f32 %v4099_v15, %v4098_v3  ;;  %v4073_v57 = vadd.f32 %v4072_v59, %v4071_v19 }
 0x41f   : > { %v8472_v16 = vpop.f32.mrb[13].mxu0 }
 0x420   : > { %v8473_v43 = vadd.f32 %v8472_v16, %v8471_v36  ;;  %v8474_v20 = vpop.f32.mrb[14].mxu0 }
 0x421   : > { %v8475_v48 = vpop.f32.mrb[15].mxu0 }
 0x422   : > { %v3973_v61 = vadd.f32 %v8473_v43, %v11208_v24  ;;  %v8476_v56 = vadd.f32 %v8475_v48, %v8474_v20 }
 0x424   : > { %v11238_v39 = vadd.f32 %v11129_v28, %v3973_v61  ;;  %v3976_v46 = vadd.f32 %v8476_v56, %v11208_v24  ;;  %v4091_v28 = vmul.f32 %v11226_v0, %v11226_v0 }
 0x426   : > { %v11247_v1 = vadd.f32 %v11133_v17, %v3976_v46  ;;  %v4092_v23 = vmul.f32 %v11238_v39, %v11238_v39  ;;  %v4101_v25 = vsel %vm4066_vm5, %v4091_v28, 0.0  ;;  %v4074_v17 = vsel %vm4066_vm5, %v11238_v39, 0.0 }
 0x427   : > { %v4102_v9 = vadd.f32 %v4101_v25, %v4100_v31  ;;  %v4075_v27 = vadd.f32 %v4074_v17, %v4073_v57 }
 0x428   : > { %v4103_v32 = vsel %vm4066_vm5, %v4092_v23, 0.0  ;;  %v4093_v14 = vmul.f32 %v11247_v1, %v11247_v1  ;;  %v4076_v16 = vsel %vm4066_vm5, %v11247_v1, 0.0 }
 0x429   : > { %v4104_v8 = vadd.f32 %v4103_v32, %v4102_v9  ;;  %v4077_v21 = vadd.f32 %v4076_v16, %v4075_v27 }
 0x42a   : > { %v4105_v48 = vsel %vm4066_vm5, %v4093_v14, 0.0 }
 0x42b   : > { %v8477_v4 = vpop.f32.mrb[16].mxu0  ;;  %v4106_v37 = vadd.f32 %v4105_v48, %v4104_v8 }
 0x42c   : > { %v8478_v26 = vpop.f32.mrb[17].mxu0 }
 0x42d   : > { %v8479_v12 = vadd.f32 %v8478_v26, %v8477_v4  ;;  %v8480_v49 = vpop.f32.mrb[18].mxu0 }
 0x42e   : > { %v8481_v36 = vpop.f32.mrb[19].mxu0 }
 0x42f   : > { %v3981_v43 = vadd.f32 %v8479_v12, %v11208_v24  ;;  %v8482_v20 = vadd.f32 %v8481_v36, %v8480_v49 }
 0x431   : > { %v11268_v61 = vadd.f32 %v11127_v29, %v3981_v43  ;;  %v3984_v56 = vadd.f32 %v8482_v20, %v11208_v24 }
 0x433   : > { %v4078_v6 = vsel %vm4066_vm5, %v11268_v61, 0.0  ;;  %v4094_v62 = vmul.f32 %v11268_v61, %v11268_v61  ;;  %v11276_v46 = vadd.f32 %v11131_v50, %v3984_v56 }
 0x434   : > { %v4079_v45 = vadd.f32 %v4078_v6, %v4077_v21 }
 0x435   : > { %v4107_v47 = vsel %vm4066_vm5, %v4094_v62, 0.0  ;;  %v4080_v29 = vsel %vm4066_vm5, %v11276_v46, 0.0  ;;  %v4095_v24 = vmul.f32 %v11276_v46, %v11276_v46 }
 0x436   : > { %v4108_v54 = vadd.f32 %v4107_v47, %v4106_v37  ;;  %v4081_v42 = vadd.f32 %v4080_v29, %v4079_v45 }
 0x437   : > { %v4109_v15 = vsel %vm4066_vm5, %v4095_v24, 0.0 }
 0x438   : > { %v4082_v28 = vrot.slane %v4081_v42, 4  ;;  %v4110_v3 = vadd.f32 %v4109_v15, %v4108_v54 }
 0x43a   : > { %v4083_v19 = vadd.f32 %v4082_v28, %v4081_v42  ;;  %v4111_v59 = vrot.slane %v4110_v3, 4 }
 0x43c   : > { %v4084_v50 = vrot.slane %v4083_v19, 2  ;;  %v4112_v23 = vadd.f32 %v4111_v59, %v4110_v3 }
 0x43e   : > { %v4085_v31 = vadd.f32 %v4084_v50, %v4083_v19  ;;  %v4113_v25 = vrot.slane %v4112_v23, 2 }
 0x440   : > { %v4086_v17 = vrot.slane %v4085_v31, 1  ;;  %v4114_v4 = vadd.f32 %v4113_v25, %v4112_v23 }
 0x442   : > { %v4087_v57 = vadd.f32 %v4086_v17, %v4085_v31  ;;  %v4115_v26 = vrot.slane %v4114_v4, 1 }
 0x444   : > { %v4116_v32 = vadd.f32 %v4115_v26, %v4114_v4  ;;  %v4118_v14 = vsel %vm4066_vm5, %v4087_v57, 0 }
 0x445   : > { %v11285_v12 = vand.u32 4294901760, %v4118_v14 }
 0x446   : > { %v4658_v49 = vsel %vm4066_vm5, %v4116_v32, 0 }
 0x447   : > { %v11289_v9 = vsub.f32 %v4118_v14, %v11285_v12  ;;  %v11291_v27 = vand.u32 4294901760, %v4658_v49 }
 0x449   : > { %v4195_v36 = vand.u32 4294901760, %v11289_v9  ;;  %v11295_v16 = vsub.f32 %v4658_v49, %v11291_v27 }
 0x44b   : > { %v4196_v43 = vsub.f32 %v11289_v9, %v4195_v36  ;;  %v4735_v20 = vand.u32 4294901760, %v11295_v16 }
 0x44d   : > { %v4197_v8 = vand.u32 4294901760, %v4196_v43  ;;  %v4736_v48 = vsub.f32 %v11295_v16, %v4735_v20 }
 0x44f   : > { %9044 = vmatmul.mubr.f32.vlgmr.msra.gmra.mrb[12].mxu1 %v4197_v8  ;;  %v4737_v56 = vand.u32 4294901760, %v4736_v48 }
 0x450   : > { %9573 = vmatpush3.bf16.msra.mxu1 %v11183_v40  ;;  %9062 = vmatprep.mubr.msk.f32.mxu1 %vm10155_vm0, %v12284_v35 }
 0x451   : > { %9158 = vmatmul.mubr.f32.vlgmr.msra.gmra.mrb[20].mxu0 %v4737_v56  ;;  %9574 = vmatprep.subr.bf16.mxu1 %v12276_v2 }
 0x452   : > { %9645 = vmatpush3.bf16.msra.mxu0 %v11183_v40  ;;  %9176 = vmatprep.mubr.msk.f32.mxu0 %vm10155_vm0, %v12284_v35 }
 0x453   : > { %9646 = vmatprep.subr.bf16.mxu0 %v12276_v2 }
 0x454   : > { %9576 = vmatpush3.bf16.msra.mxu1 %v11185_v30 }
 0x455   : > { %9577 = vmatprep.subr.bf16.mxu1 %v12276_v2 }
 0x456   : > { %9648 = vmatpush3.bf16.msra.mxu0 %v11185_v30  ;;  %v4065_v30 = vld [vmem:[%s12217_s10 + $0x18] sm:$0xff] }
 0x457   : > { %9649 = vmatprep.subr.bf16.mxu0 %v12276_v2 }
 0x458   : > { %9579 = vmatpush3.bf16.msra.mxu1 %v11187_v52 }
 0x459   : > { %9580 = vmatprep.subr.bf16.mxu1 %v12276_v2 }
 0x45a   : > { %9651 = vmatpush3.bf16.msra.mxu0 %v11187_v52 }
 0x45b   : > { %9652 = vmatprep.subr.bf16.mxu0 %v12276_v2 }
 0x45c   : > { %9582 = vmatpush3.bf16.msra.mxu1 %v11191_v55 }
 0x45d   : > { %9583 = vmatprep.subr.bf16.mxu1 %v12276_v2 }
 0x45e   : > { %9654 = vmatpush3.bf16.msra.mxu0 %v11191_v55 }
 0x45f   : > { %9063 = vmatmul.mubr.f32.vlgmr.msra.gmra.mrb[12].mxu1 %v11285_v12  ;;  %9655 = vmatprep.subr.bf16.mxu0 %v12276_v2 }
 0x460   : > { %9585 = vmatpush3.bf16.msra.mxu1 %v11189_v22  ;;  %9081 = vmatprep.mubr.msk.f32.mxu1 %vm10155_vm0, %v12284_v35 }
 0x461   : > { %9177 = vmatmul.mubr.f32.vlgmr.msra.gmra.mrb[20].mxu0 %v11291_v27  ;;  %9586 = vmatprep.subr.bf16.mxu1 %v12276_v2 }
 0x462   : > { %9657 = vmatpush3.bf16.msra.mxu0 %v11189_v22  ;;  %9195 = vmatprep.mubr.msk.f32.mxu0 %vm10155_vm0, %v12284_v35  ;;  %v5218_v22 = vand.u32 4294901760, %v4065_v30 }
 0x463   : > { %9658 = vmatprep.subr.bf16.mxu0 %v12276_v2 }
 0x464   : > { %9588 = vmatpush3.bf16.msra.mxu1 %v11193_v38 }
 0x465   : > { %9589 = vmatprep.subr.bf16.mxu1 %v12276_v2 }
 0x466   : > { %9660 = vmatpush3.bf16.msra.mxu0 %v11193_v38 }
 0x467   : > { %9661 = vmatprep.subr.bf16.mxu0 %v12276_v2 }
 0x468   : > { %9591 = vmatpush3.bf16.msra.mxu1 %v11195_v7 }
 0x469   : > { %9592 = vmatprep.subr.bf16.mxu1 %v12276_v2 }
 0x46a   : > { %9663 = vmatpush3.bf16.msra.mxu0 %v11195_v7 }
 0x46b   : > { %9664 = vmatprep.subr.bf16.mxu0 %v12276_v2 }
 0x46c   : > { %9594 = vmatpush3.bf16.msra.mxu1 %v11197_v10 }
 0x46d   : > { %9595 = vmatprep.subr.bf16.mxu1 %v12276_v2 }
 0x46e   : > { %9666 = vmatpush3.bf16.msra.mxu0 %v11197_v10 }
 0x46f   : > { %9082 = vmatmul.mubr.f32.vlgmr.msra.gmra.mrb[12].mxu1 %v11289_v9  ;;  %9667 = vmatprep.subr.bf16.mxu0 %v12276_v2 }
 0x470   : > { %9597 = vmatpush3.bf16.msra.mxu1 %v11153_v13  ;;  %9100 = vmatprep.mubr.msk.f32.mxu1 %vm10155_vm0, %v12284_v35 }
 0x471   : > { %9196 = vmatmul.mubr.f32.vlgmr.msra.gmra.mrb[20].mxu0 %v11295_v16  ;;  %9598 = vmatprep.subr.bf16.mxu1 %v12276_v2 }
 0x472   : > { %9669 = vmatpush3.bf16.msra.mxu0 %v11153_v13  ;;  %9214 = vmatprep.mubr.msk.f32.mxu0 %vm10155_vm0, %v12284_v35 }
 0x473   : > { %9670 = vmatprep.subr.bf16.mxu0 %v12276_v2 }
 0x474   : > { %9600 = vmatpush3.bf16.msra.mxu1 %v11156_v53 }
 0x475   : > { %9601 = vmatprep.subr.bf16.mxu1 %v12276_v2 }
 0x476   : > { %9672 = vmatpush3.bf16.msra.mxu0 %v11156_v53 }
 0x477   : > { %9673 = vmatprep.subr.bf16.mxu0 %v12276_v2 }
 0x478   : > { %9603 = vmatpush3.bf16.msra.mxu1 %v11168_v11 }
 0x479   : > { %9604 = vmatprep.subr.bf16.mxu1 %v12276_v2 }
 0x47a   : > { %9675 = vmatpush3.bf16.msra.mxu0 %v11168_v11 }
 0x47b   : > { %9676 = vmatprep.subr.bf16.mxu0 %v12276_v2 }
 0x47c   : > { %9606 = vmatpush3.bf16.msra.mxu1 %v11175_v18 }
 0x47d   : > { %9607 = vmatprep.subr.bf16.mxu1 %v12276_v2 }
 0x47e   : > { %9678 = vmatpush3.bf16.msra.mxu0 %v11175_v18 }
 0x47f   : > { %9101 = vmatmul.mubr.f32.vlgmr.msra.gmra.mrb[12].mxu1 %v4195_v36  ;;  %9679 = vmatprep.subr.bf16.mxu0 %v12276_v2 }
 0x480   : > { %9609 = vmatpush3.bf16.msra.mxu1 %v11199_v34  ;;  %9119 = vmatprep.mubr.msk.f32.mxu1 %vm10155_vm0, %v12284_v35 }
 0x481   : > { %9215 = vmatmul.mubr.f32.vlgmr.msra.gmra.mrb[20].mxu0 %v4735_v20  ;;  %9610 = vmatprep.subr.bf16.mxu1 %v12276_v2 }
 0x482   : > { %9681 = vmatpush3.bf16.msra.mxu0 %v11199_v34  ;;  %9233 = vmatprep.mubr.msk.f32.mxu0 %vm10155_vm0, %v12284_v35 }
 0x483   : > { %9682 = vmatprep.subr.bf16.mxu0 %v12276_v2 }
 0x484   : > { %9612 = vmatpush3.bf16.msra.mxu1 %v11201_v58 }
 0x485   : > { %9613 = vmatprep.subr.bf16.mxu1 %v12276_v2 }
 0x486   : > { %9684 = vmatpush3.bf16.msra.mxu0 %v11201_v58 }
 0x487   : > { %9685 = vmatprep.subr.bf16.mxu0 %v12276_v2 }
 0x488   : > { %9615 = vmatpush3.bf16.msra.mxu1 %v11203_v33 }
 0x489   : > { %9616 = vmatprep.subr.bf16.mxu1 %v12276_v2 }
 0x48a   : > { %9687 = vmatpush3.bf16.msra.mxu0 %v11203_v33 }
 0x48b   : > { %9688 = vmatprep.subr.bf16.mxu0 %v12276_v2 }
 0x48c   : > { %9618 = vmatpush3.bf16.msra.mxu1 %v11210_v44 }
 0x48d   : > { %9619 = vmatprep.subr.bf16.mxu1 %v12276_v2 }
 0x48e   : > { %9690 = vmatpush3.bf16.msra.mxu0 %v11210_v44  ;;  %v5310_v44 = vsub.f32 %v4065_v30, %v5218_v22  ;;  %v6311_v30 = vld [vmem:[#allocation3 + $0xc] sm:$0x8] }
 0x48f   : > { %9120 = vmatmul.mubr.f32.vlgmr.msra.gmra.mrb[12].mxu1 %v11285_v12  ;;  %9691 = vmatprep.subr.bf16.mxu0 %v12276_v2 }
 0x490   : > { %9621 = vmatpush3.bf16.msra.mxu1 %v11153_v13  ;;  %9138 = vmatprep.mubr.msk.f32.mxu1 %vm10155_vm0, %v12284_v35  ;;  %v5311_v37 = vand.u32 4294901760, %v5310_v44 }
 0x491   : > { %9234 = vmatmul.mubr.f32.vlgmr.msra.gmra.mrb[20].mxu0 %v11291_v27  ;;  %9622 = vmatprep.subr.bf16.mxu1 %v12276_v2 }
 0x492   : > { %9693 = vmatpush3.bf16.msra.mxu0 %v11153_v13  ;;  %9252 = vmatprep.mubr.msk.f32.mxu0 %vm10155_vm0, %v12284_v35  ;;  %v4062_v13 = vld [vmem:[%s12217_s10] sm:$0xff]  ;;  %v5312_v24 = vsub.f32 %v5310_v44, %v5311_v37 }
 0x493   : > { %9694 = vmatprep.subr.bf16.mxu0 %v12276_v2 }
 0x494   : > { %9624 = vmatpush3.bf16.msra.mxu1 %v11156_v53  ;;  %v5313_v15 = vand.u32 4294901760, %v5312_v24  ;;  %v6341_v24 = vld [vmem:[#allocation3 + $0x2c] sm:$0x1] }
 0x495   : > { %9625 = vmatprep.subr.bf16.mxu1 %v12276_v2 }
 0x496   : > { %9696 = vmatpush3.bf16.msra.mxu0 %v11156_v53  ;;  %v4063_v53 = vld [vmem:[%s12217_s10 + $0x8] sm:$0xff] }
 0x497   : > { %9697 = vmatprep.subr.bf16.mxu0 %v12276_v2  ;;  %v5212_v40 = vand.u32 4294901760, %v4063_v53 }
 0x498   : > { %9627 = vmatpush3.bf16.msra.mxu1 %v11168_v11 }
 0x499   : > { %9628 = vmatprep.subr.bf16.mxu1 %v12276_v2  ;;  %v5296_v7 = vsub.f32 %v4063_v53, %v5212_v40 }
 0x49a   : > { %9699 = vmatpush3.bf16.msra.mxu0 %v11168_v11  ;;  %v4064_v11 = vld [vmem:[%s12217_s10 + $0x10] sm:$0xff] }
 0x49b   : > { %9700 = vmatprep.subr.bf16.mxu0 %v12276_v2  ;;  %v5215_v52 = vand.u32 4294901760, %v4064_v11  ;;  %v5297_v58 = vand.u32 4294901760, %v5296_v7 }
 0x49c   : > { %9630 = vmatpush3.bf16.msra.mxu1 %v11175_v18 }
 0x49d   : > { %9703 = vmatprep.subr.bf16.mxu1 %v12276_v2  ;;  %v11434_v10 = vpack.c.bf16 %v5218_v22, %v5215_v52  ;;  %v5303_v33 = vsub.f32 %v4064_v11, %v5215_v52  ;;  %v5298_v6 = vsub.f32 %v5296_v7, %v5297_v58  ;;  %v6314_v52 = vld [vmem:[#allocation3 + $0x18] sm:$0x8] }
 0x49e   : > { %9702 = vmatpush3.bf16.msra.mxu0 %v11175_v18  ;;  %v5209_v18 = vand.u32 4294901760, %v4062_v13 }
 0x49f   : > { %9139 = vmatmul.mubr.f32.vlgmr.msra.gmra.mrb[12].mxu1 %v11285_v12  ;;  %9739 = vmatprep.subr.bf16.mxu0 %v12276_v2  ;;  %v5304_v62 = vand.u32 4294901760, %v5303_v33  ;;  %v5299_v47 = vand.u32 4294901760, %v5298_v6  ;;  %v9719_v19 = vpack.c.bf16 %v5310_v44, %v5303_v33  ;;  %v6326_v44 = vld [vmem:[#allocation3 + $0x48] sm:$0x8] }
 0x4a0   : > { %9263 = vmatprep.mubr.msk.f32.mxu1 %vm10155_vm0, %v12284_v35  ;;  %v11432_v55 = vpack.c.bf16 %v5212_v40, %v5209_v18  ;;  %v5289_v38 = vsub.f32 %v4062_v13, %v5209_v18  ;;  %v9958_v18 = vld [vmem:[%s12218_s11 + $0x100] sm:$0xff]   ;;  %v9960_v40 = vld [vmem:[%s12218_s11 + $0x108] sm:$0xff]  }
 0x4a1   : > { %9253 = vmatmul.mubr.f32.vlgmr.msra.gmra.mrb[20].mxu0 %v11291_v27  ;;  %v5305_v29 = vsub.f32 %v5303_v33, %v5304_v62  ;;  %v11446_v50 = vpack.c.bf16 %v5311_v37, %v5304_v62  ;;  %v6323_v33 = vld [vmem:[#allocation3 + $0x3c] sm:$0x8]  ;;  %v6335_v62 = vld [vmem:[#allocation3 + $0x14] sm:$0x1] }
 0x4a2   : > { %9329 = vmatprep.mubr.msk.f32.mxu0 %vm10155_vm0, %v12284_v35  ;;  %9705 = vmatpush3.bf16.msra.mxu1 %v11432_v55  ;;  %v5290_v34 = vand.u32 4294901760, %v5289_v38  ;;  %v9716_v28 = vpack.c.bf16 %v5296_v7, %v5289_v38  ;;  %v6320_v7 = vld [vmem:[#allocation3 + $0x30] sm:$0x8] }
 0x4a3   : > { %9741 = vmatpush3.bf16.msra.mxu0 %v11432_v55  ;;  %9706 = vmatprep.subr.bf16.mxu1 %v12276_v2  ;;  %v5306_v42 = vand.u32 4294901760, %v5305_v29 }
 0x4a4   : > { %9742 = vmatprep.subr.bf16.mxu0 %v12276_v2  ;;  %v5291_v21 = vsub.f32 %v5289_v38, %v5290_v34  ;;  %v11444_v59 = vpack.c.bf16 %v5297_v58, %v5290_v34  ;;  %v6317_v38 = vld [vmem:[#allocation3 + $0x24] sm:$0x8] }
 0x4a5   : > { %v9713_v3 = vpack.c.bf16 %v5313_v15, %v5306_v42  ;;  %v9964_v58 = vld [vmem:[%s12218_s11 + $0x118] sm:$0xff]   ;;  %v6344_v42 = vld [vmem:[#allocation3 + $0x38] sm:$0x1] }
 0x4a6   : > { %9708 = vmatpush3.bf16.msra.mxu1 %v11434_v10  ;;  %v5292_v45 = vand.u32 4294901760, %v5291_v21  ;;  %v6347_v15 = vld [vmem:[#allocation3 + $0x44] sm:$0x1] }
 0x4a7   : > { %9744 = vmatpush3.bf16.msra.mxu0 %v11434_v10  ;;  %9709 = vmatprep.subr.bf16.mxu1 %v12276_v2 }
 0x4a8   : > { %9745 = vmatprep.subr.bf16.mxu0 %v12276_v2  ;;  %v9710_v54 = vpack.c.bf16 %v5299_v47, %v5292_v45  ;;  %v6338_v47 = vld [vmem:[#allocation3 + $0x20] sm:$0x1] }
 0x572   : > { %v4653_v23 = vpop.f32.mrb[12].mxu1 }
 0x573   : > { %v5198_v31 = vmul.f32 0.0078125, %v4653_v23  ;;  %v9140_v25 = vpop.f32.mrb[13].mxu1 }
 0x574   : > { %v5193_v17 = vpop.f32.mrb[20].mxu0  ;;  %v6332_v25 = vld [vmem:[#allocation3 + $0x60] sm:$0x8] }
 0x575   : > { %v5200_v4 = vmul.f32 %v5198_v31, %v5198_v31  ;;  %v5206_v57 = vsel %vm512_vm1, %v5198_v31, 0  ;;  %v5199_v26 = vmul.f32 0.0078125, %v5193_v17  ;;  %v9254_v32 = vpop.f32.mrb[21].mxu0  ;;  %v6329_v31 = vld [vmem:[#allocation3 + $0x54] sm:$0x8] }
 0x576   : > { %v5277_v14 = vand.u32 4294901760, %v5206_v57  ;;  %v6356_v32 = vld [vmem:[#allocation3 + $0x68] sm:$0x1] }
 0x577   : > { %v5201_v12 = vsub.f32 %v5199_v26, %v5200_v4  ;;  %v6307_v26 = vld [vmem:[#allocation3 + $0x74] sm:$0x1] }
 0x578   : > { %v5278_v49 = vsub.f32 %v5206_v57, %v5277_v14  ;;  %v6292_v57 = vld [vmem:[#allocation3] sm:$0x8] }
 0x579   : > { %v5202_v9 = vmax.f32 %v5201_v12, 0.0 }
 0x57a   : > { %v5279_v27 = vand.u32 4294901760, %v5278_v49 }
 0x57b   : > { %v5203_v36 = vadd.f32 1e-05, %v5202_v9  ;;  %v6299_v9 = vld [vmem:[#allocation3 + $0x8] sm:$0x1] }
 0x57c   : > { %v5280_v16 = vsub.f32 %v5278_v49, %v5279_v27 }
 0x57d   : > { %10041 = vrsqrt.f32 %v5203_v36  ;;  %v9966_v36 = vld [vmem:[%s12220_s13] sm:$0xff]  }
 0x57e   : > { %v5281_v43 = vand.u32 4294901760, %v5280_v16 }
 0x580   : > { %9264 = vmatmul.mubr.f32.vlgmr.msra.gmra.mrb[14].mxu1 %v5281_v43 }
 0x581   : > { %9711 = vmatpush3.bf16.msra.mxu1 %v9710_v54  ;;  %9274 = vmatprep.mubr.msk.f32.mxu1 %vm10155_vm0, %v12284_v35 }
 0x582   : > { %9712 = vmatprep.subr.bf16.mxu1 %v12276_v2 }
 0x585   : > { %9714 = vmatpush3.bf16.msra.mxu1 %v9713_v3 }
 0x586   : > { %9715 = vmatprep.subr.bf16.mxu1 %v12276_v2 }
 0x587   : > { %v10042_v20 = vpop.eup %10041 }
 0x588   : > { %9275 = vmatmul.mubr.f32.vlgmr.msra.gmra.mrb[14].mxu1 %v5277_v14  ;;  %v5694_v8 = vsel %vm512_vm1, %v10042_v20, 0  ;;  %v6303_v20 = vld [vmem:[#allocation3 + $0x6c] sm:$0x8] }
 0x589   : > { %9717 = vmatpush3.bf16.msra.mxu1 %v9716_v28  ;;  %9285 = vmatprep.mubr.msk.f32.mxu1 %vm10155_vm0, %v12284_v35  ;;  %v5765_v48 = vand.u32 4294901760, %v5694_v8 }
 0x58a   : > { %9718 = vmatprep.subr.bf16.mxu1 %v12276_v2 }
 0x58b   : > { %v5766_v56 = vsub.f32 %v5694_v8, %v5765_v48  ;;  %v9971_v8 = vld [vmem:[%s12218_s11 + $0x40] sm:$0xff]  }
 0x58d   : > { %9720 = vmatpush3.bf16.msra.mxu1 %v9719_v19  ;;  %v5767_v13 = vand.u32 4294901760, %v5766_v56 }
 0x58e   : > { %9721 = vmatprep.subr.bf16.mxu1 %v12276_v2 }
 0x58f   : > { %v5768_v53 = vsub.f32 %v5766_v56, %v5767_v13 }
 0x590   : > { %9286 = vmatmul.mubr.f32.vlgmr.msra.gmra.mrb[14].mxu1 %v5278_v49 }
 0x591   : > { %9723 = vmatpush3.bf16.msra.mxu1 %v11432_v55  ;;  %v5769_v11 = vand.u32 4294901760, %v5768_v53  ;;  %9296 = vmatprep.mubr.msk.f32.mxu1 %vm10155_vm0, %v12284_v35 }
 0x592   : > { %9724 = vmatprep.subr.bf16.mxu1 %v12276_v2 }
 0x593   : > { %9330 = vmatmul.mubr.f32.vlgmr.msra.gmra.mrb[22].mxu0 %v5769_v11 }
 0x594   : > { %9747 = vmatpush3.bf16.msra.mxu0 %v9710_v54  ;;  %9340 = vmatprep.mubr.msk.f32.mxu0 %vm10155_vm0, %v12284_v35 }
 0x595   : > { %9726 = vmatpush3.bf16.msra.mxu1 %v11434_v10  ;;  %9748 = vmatprep.subr.bf16.mxu0 %v12276_v2 }
 0x596   : > { %9727 = vmatprep.subr.bf16.mxu1 %v12276_v2 }
 0x598   : > { %9750 = vmatpush3.bf16.msra.mxu0 %v9713_v3  ;;  %9297 = vmatmul.mubr.f32.vlgmr.msra.gmra.mrb[14].mxu1 %v5279_v27 }
 0x599   : > { %9729 = vmatpush3.bf16.msra.mxu1 %v11444_v59  ;;  %9751 = vmatprep.subr.bf16.mxu0 %v12276_v2 }
 0x59a   : > { %9730 = vmatprep.subr.bf16.mxu1 %v12276_v2  ;;  %9307 = vmatprep.mubr.msk.f32.mxu1 %vm10155_vm0, %v12284_v35 }
 0x59b   : > { %9341 = vmatmul.mubr.f32.vlgmr.msra.gmra.mrb[22].mxu0 %v5765_v48 }
 0x59c   : > { %9753 = vmatpush3.bf16.msra.mxu0 %v9716_v28  ;;  %9351 = vmatprep.mubr.msk.f32.mxu0 %vm10155_vm0, %v12284_v35 }
 0x59d   : > { %9732 = vmatpush3.bf16.msra.mxu1 %v11446_v50  ;;  %9754 = vmatprep.subr.bf16.mxu0 %v12276_v2 }
 0x59e   : > { %9733 = vmatprep.subr.bf16.mxu1 %v12276_v2 }
 0x5a0   : > { %9756 = vmatpush3.bf16.msra.mxu0 %v9719_v19  ;;  %9308 = vmatmul.mubr.f32.vlgmr.msra.gmra.mrb[14].mxu1 %v5277_v14  ;;  %v6350_v19 = vld [vmem:[#allocation3 + $0x50] sm:$0x1] }
 0x5a1   : > { %9735 = vmatpush3.bf16.msra.mxu1 %v11432_v55  ;;  %9757 = vmatprep.subr.bf16.mxu0 %v12276_v2 }
 0x5a2   : > { %9736 = vmatprep.subr.bf16.mxu1 %v12276_v2  ;;  %9318 = vmatprep.mubr.msk.f32.mxu1 %vm10155_vm0, %v12284_v35 }
 0x5a3   : > { %9352 = vmatmul.mubr.f32.vlgmr.msra.gmra.mrb[22].mxu0 %v5766_v56  ;;  %v9973_v56 = vld [vmem:[%s12218_s11 + $0x48] sm:$0xff]  }
 0x5a4   : > { %9759 = vmatpush3.bf16.msra.mxu0 %v11432_v55  ;;  %9362 = vmatprep.mubr.msk.f32.mxu0 %vm10155_vm0, %v12284_v35 }
 0x5a5   : > { %9738 = vmatpush3.bf16.msra.mxu1 %v11434_v10  ;;  %9760 = vmatprep.subr.bf16.mxu0 %v12276_v2 }
 0x5a6   : > { %8657 = vmatprep.subr.bf16.mxu1 %v9971_v8 }
 0x5a8   : > { %9762 = vmatpush3.bf16.msra.mxu0 %v11434_v10  ;;  %9319 = vmatmul.mubr.f32.vlgmr.msra.gmra.mrb[14].mxu1 %v5277_v14 }
 0x5a9   : > { %9763 = vmatprep.subr.bf16.mxu0 %v12276_v2 }
 0x5ab   : > { %9363 = vmatmul.mubr.f32.vlgmr.msra.gmra.mrb[22].mxu0 %v5767_v13 }
 0x5ac   : > { %9765 = vmatpush3.bf16.msra.mxu0 %v11444_v59  ;;  %9373 = vmatprep.mubr.msk.f32.mxu0 %vm10155_vm0, %v12284_v35  ;;  %v6353_v59 = vld [vmem:[#allocation3 + $0x5c] sm:$0x1] }
 0x5ad   : > { %9766 = vmatprep.subr.bf16.mxu0 %v12276_v2 }
 0x5b0   : > { %9768 = vmatpush3.bf16.msra.mxu0 %v11446_v50 }
 0x5b1   : > { %9769 = vmatprep.subr.bf16.mxu0 %v12276_v2 }
 0x5b3   : > { %9374 = vmatmul.mubr.f32.vlgmr.msra.gmra.mrb[22].mxu0 %v5765_v48 }
 0x5b4   : > { %9771 = vmatpush3.bf16.msra.mxu0 %v11432_v55  ;;  %9384 = vmatprep.mubr.msk.f32.mxu0 %vm10155_vm0, %v12284_v35  ;;  %vm11507_vm0 = vmand %vm6290_vm8, %vm2633_vm4  ;;  %v9962_v55 = vld [vmem:[%s12218_s11 + $0x110] sm:$0xff]   ;;  %vm6297_vm4 = vcmask 516096  }
 0x5b5   : > { %9772 = vmatprep.subr.bf16.mxu0 %v12276_v2  ;;  %v6312_v2 = vsel %vm11507_vm0, 0, %v6311_v30  ;;  %v6315_v22 = vsel %vm11507_vm0, 0, %v6314_v52  ;;  %v6321_v34 = vsel %vm11507_vm0, 0, %v6320_v7  ;;  %v6324_v21 = vsel %vm11507_vm0, 0, %v6323_v33  ;;  %vm11530_vm9 = vmand %vm6297_vm4, %vm2641_vm6  ;;  %v9974_v30 = vld [vmem:[%s12218_s11 + $0x8] sm:$0xff]   ;;  %v9976_v35 = vld [vmem:[%s12218_s11 + $0x10] sm:$0xff]  }
 0x5b6   : > { %6313 = vst [vmem:[#allocation3 + $0xc] sm:$0x8] %v6312_v2  ;;  %6316 = vst [vmem:[#allocation3 + $0x18] sm:$0x8] %v6315_v22  ;;  %v6327_v6 = vsel %vm11507_vm0, 0, %v6326_v44  ;;  %v6336_v45 = vsel %vm11530_vm9, 0, %v6335_v62 }
 0x5b7   : > { %6322 = vst [vmem:[#allocation3 + $0x30] sm:$0x8] %v6321_v34  ;;  %6325 = vst [vmem:[#allocation3 + $0x3c] sm:$0x8] %v6324_v21  ;;  %v6339_v29 = vsel %vm11530_vm9, 0, %v6338_v47  ;;  %v6342_v54 = vsel %vm11530_vm9, 0, %v6341_v24 }
 0x5b8   : > { %9774 = vmatpush3.bf16.msra.mxu0 %v11434_v10  ;;  %v6318_v10 = vsel %vm11507_vm0, 0, %v6317_v38  ;;  %6328 = vst [vmem:[#allocation3 + $0x48] sm:$0x8] %v6327_v6  ;;  %6337 = vst [vmem:[#allocation3 + $0x14] sm:$0x1] %v6336_v45  ;;  %v6345_v28 = vsel %vm11530_vm9, 0, %v6344_v42 }
 0x5b9   : > { %9387 = vmatprep.subr.bf16.mxu0 %v9958_v18  ;;  %6319 = vst [vmem:[#allocation3 + $0x24] sm:$0x8] %v6318_v10  ;;  %6340 = vst [vmem:[#allocation3 + $0x20] sm:$0x1] %v6339_v29  ;;  %v6348_v3 = vsel %vm11530_vm9, 0, %v6347_v15  ;;  %v6351_v50 = vsel %vm11530_vm9, 0, %v6350_v19 }
 0x5ba   : > { %6343 = vst [vmem:[#allocation3 + $0x2c] sm:$0x1] %v6342_v54  ;;  %6346 = vst [vmem:[#allocation3 + $0x38] sm:$0x1] %v6345_v28  ;;  %v6354_v23 = vsel %vm11530_vm9, 0, %v6353_v59  ;;  %v6330_v17 = vsel %vm11507_vm0, 0, %v6329_v31 }
 0x5bb   : > { %9385 = vmatmul.mubr.f32.vlgmr.msra.gmra.mrb[22].mxu0 %v5765_v48  ;;  %6349 = vst [vmem:[#allocation3 + $0x44] sm:$0x1] %v6348_v3  ;;  %6352 = vst [vmem:[#allocation3 + $0x50] sm:$0x1] %v6351_v50  ;;  %v6333_v4 = vsel %vm11507_vm0, 0, %v6332_v25  ;;  %v6293_v14 = vsel %vm11507_vm0, 0, %v6292_v57 }
 0x5bc   : > { %9388 = vmatpush3.bf16.msra.mxu0 %v9958_v18  ;;  %6355 = vst [vmem:[#allocation3 + $0x5c] sm:$0x1] %v6354_v23  ;;  %6331 = vst [vmem:[#allocation3 + $0x54] sm:$0x8] %v6330_v17  ;;  %v6308_v12 = vsel %vm11530_vm9, 0, %v6307_v26  ;;  %v6357_v49 = vsel %vm11530_vm9, 0, %v6356_v32 }
 0x5bd   : > { %9389 = vmatprep.subr.bf16.mxu0 %v9960_v40  ;;  %6334 = vst [vmem:[#allocation3 + $0x60] sm:$0x8] %v6333_v4  ;;  %6294 = vst [vmem:[#allocation3] sm:$0x8] %v6293_v14  ;;  %v6300_v27 = vsel %vm11530_vm9, 0, %v6299_v9  ;;  %v9972_v48 = vld [vmem:[%s12218_s11] sm:$0xff]  }
 0x5be   : > { %6309 = vst [vmem:[#allocation3 + $0x74] sm:$0x1] %v6308_v12  ;;  %6358 = vst [vmem:[#allocation3 + $0x68] sm:$0x1] %v6357_v49  ;;  %v6708_v13 = vld [vmem:[#allocation3 + $0xc] sm:$0x8]  ;;  %8658 = vmatpush3.bf16.msra.mxu1 %v9972_v48 }
 0x5bf   : > { %6301 = vst [vmem:[#allocation3 + $0x8] sm:$0x1] %v6300_v27  ;;  %v6710_v53 = vld [vmem:[#allocation3 + $0x18] sm:$0x8]  ;;  %v6714_v18 = vld [vmem:[#allocation3 + $0x30] sm:$0x8]  ;;  %8659 = vmatprep.subr.bf16.mxu1 %v9973_v56 }
 0x5c0   : > { %9390 = vmatpush3.bf16.msra.mxu0 %v9960_v40  ;;  %v6712_v11 = vld [vmem:[#allocation3 + $0x24] sm:$0x8]  ;;  %v6716_v40 = vld [vmem:[#allocation3 + $0x3c] sm:$0x8]  ;;  %v6304_v52 = vsel %vm11507_vm0, 0, %v6303_v20  ;;  %v6725_v10 = vshrl.u32 %v6708_v13, 16 }
 0x5c1   : > { %9391 = vmatprep.subr.bf16.mxu0 %v9962_v55  ;;  %v6718_v2 = vld [vmem:[#allocation3 + $0x48] sm:$0x8]  ;;  %v6893_v22 = vld [vmem:[#allocation3 + $0x14] sm:$0x1]  ;;  %6305 = vst [vmem:[#allocation3 + $0x6c] sm:$0x8] %v6304_v52 }
 0x5c2   : > { %v6895_v38 = vld [vmem:[#allocation3 + $0x20] sm:$0x1]  ;;  %v6738_v34 = vshrl.u32 %v6710_v53, 16  ;;  %v6764_v33 = vshrl.u32 %v6714_v18, 16  ;;  %v6777_v44 = vshrl.u32 %v6716_v40, 16  ;;  %v6790_v21 = vshrl.u32 %v6718_v2, 16  ;;  %8660 = vmatpush3.bf16.msra.mxu1 %v9974_v30 }
 0x5c3   : > { %v7234_v7 = vld [vmem:[#allocation3 + $0x20] sm:$0x1]  ;;  %v6918_v6 = vshll.u32 %v6893_v22, 16  ;;  %v12303_v62 = vld [vmem:[#allocation10_spill] sm:$0xff]  ;;  %v6932_v45 = vshll.u32 %v6895_v38, 16  ;;  %v11587_v54 = vrot.slane %v6725_v10, 11 }
 0x5c4   : > { %9392 = vmatpush3.bf16.msra.mxu0 %v9962_v55  ;;  %v9975_v55 = vld [vmem:[%s12218_s11 + $0x50] sm:$0xff]   ;;  %v7259_v47 = vshll.u32 %v7234_v7, 16  ;;  %v9977_v29 = vld [vmem:[%s12218_s11 + $0x58] sm:$0xff]   ;;  %v7236_v24 = vld [vmem:[#allocation3 + $0x2c] sm:$0x1]  ;;  %v11589_v42 = vrot.slane %v6738_v34, 11 }
 0x5c5   : > { %9393 = vmatprep.subr.bf16.mxu0 %v9964_v58  ;;  %8661 = vmatprep.subr.bf16.mxu1 %v9975_v55  ;;  %v11593_v28 = vrot.slane %v6764_v33, 11  ;;  %v11595_v3 = vrot.slane %v6777_v44, 11  ;;  %v11597_v19 = vrot.slane %v6790_v21, 11  ;;  %v11599_v59 = vrot.slane %v6918_v6, 5  ;;  %v9978_v50 = vld [vmem:[%s12218_s11 + $0x18] sm:$0xff]   ;;  %v9979_v57 = vld [vmem:[%s12218_s11 + $0x60] sm:$0xff]  }
 0x5c6   : > { %8662 = vmatpush3.bf16.msra.mxu1 %v9976_v35  ;;  %v11605_v25 = vrot.slane %v6932_v45, 5  ;;  %v11607_v17 = vrot.slane %v7259_v47, 5  ;;  %v7273_v4 = vshll.u32 %v7236_v24, 16  ;;  %v7238_v53 = vld [vmem:[#allocation3 + $0x38] sm:$0x1] }
 0x5c7   : > { %8663 = vmatprep.subr.bf16.mxu1 %v9977_v29  ;;  %v7240_v38 = vld [vmem:[#allocation3 + $0x44] sm:$0x1]  ;;  %v6897_v7 = vld [vmem:[#allocation3 + $0x2c] sm:$0x1]  ;;  %v7287_v33 = vshll.u32 %v7238_v53, 16 }
 0x5c8   : > { %9394 = vmatpush3.bf16.msra.mxu0 %v9964_v58  ;;  %v6751_v58 = vshrl.u32 %v6712_v11, 16  ;;  %v6899_v44 = vld [vmem:[#allocation3 + $0x38] sm:$0x1]  ;;  %v6901_v21 = vld [vmem:[#allocation3 + $0x44] sm:$0x1]  ;;  %v7301_v29 = vshll.u32 %v7240_v38, 16 }
 0x5c9   : > { %9403 = vmatprep.subr.bf16.mxu0 %v9966_v36  ;;  %v6946_v24 = vshll.u32 %v6897_v7, 16 }
 0x5ca   : > { %v11591_v15 = vrot.slane %v6751_v58, 11  ;;  %8664 = vmatpush3.bf16.msra.mxu1 %v9978_v50  ;;  %v11638_v58 = vrot.slane %v7273_v4, 5 }
 0x5cb   : > { %8665 = vmatprep.subr.bf16.mxu1 %v9979_v57  ;;  %v7242_v57 = vld [vmem:[#allocation3 + $0x50] sm:$0x1] }
 0x67b   : > { %v5689_v16 = vpop.f32.mrb[14].mxu1 }
 0x67c   : > { %v9320_v43 = vpop.f32.mrb[15].mxu1  ;;  %v6184_v37 = vrot.slane %v5689_v16, %v12303_v62  ;;  %v8198_v16 = vld [vmem:[%s12214_s7] ss:$0 sm:$0xff] }
 0x67e   : > { %v6185_v23 = vsub.f32 %v11214_v63, %v6184_v37  ;;  %v6186_v26 = vsub.f32 %v11218_v51, %v6184_v37  ;;  %v6187_v32 = vsub.f32 %v11222_v60, %v6184_v37  ;;  %v6188_v14 = vsub.f32 %v11226_v0, %v6184_v37  ;;  %v8199_v0 = vld [vmem:[%s12215_s8] ss:$0 sm:$0xff] }
 0x67f   : > { %v6189_v49 = vsub.f32 %v11238_v39, %v6184_v37  ;;  %v6190_v9 = vsub.f32 %v11247_v1, %v6184_v37  ;;  %v6191_v27 = vsub.f32 %v11268_v61, %v6184_v37  ;;  %v6192_v36 = vsub.f32 %v11276_v46, %v6184_v37 }
 0x68e   : > { %v6177_v31 = vpop.f32.mrb[22].mxu0 }
 0x68f   : > { %v6196_v12 = vrot.slane %v6177_v31, %v12303_v62  ;;  %v9386_v63 = vpop.f32.mrb[23].mxu0  ;;  %v6974_v31 = vshll.u32 %v6901_v21, 16  ;;  %v6560_v21 = vld [vmem:[#allocation3 + $0x4] sm:$0xf] }
 0x691   : > { %v6197_v51 = vmul.f32 %v6196_v12, %v6185_v23  ;;  %v6198_v43 = vmul.f32 %v6196_v12, %v6186_v26  ;;  %v6199_v60 = vmul.f32 %v6196_v12, %v6187_v32  ;;  %v6200_v20 = vmul.f32 %v6196_v12, %v6188_v14  ;;  %v7244_v26 = vld [vmem:[#allocation3 + $0x5c] sm:$0x1]  ;;  %v6720_v14 = vld [vmem:[#allocation3 + $0x54] sm:$0x8] }
 0x692   : > { %v6201_v39 = vmul.f32 %v6196_v12, %v6189_v49  ;;  %v6202_v8 = vmul.f32 %v6196_v12, %v6190_v9  ;;  %v6203_v1 = vmul.f32 %v6196_v12, %v6191_v27  ;;  %v6204_v48 = vmul.f32 %v6196_v12, %v6192_v36  ;;  %v6903_v12 = vld [vmem:[#allocation3 + $0x50] sm:$0x1]  ;;  %v6722_v49 = vld [vmem:[#allocation3 + $0x60] sm:$0x8]  ;;  %v7246_v9 = vld [vmem:[#allocation3 + $0x68] sm:$0x1] }
 0x693   : > { %v6211_v61 = vmul.f32 %v8198_v16, %v6197_v51  ;;  %v6212_v46 = vmul.f32 %v8198_v16, %v6198_v43  ;;  %v6213_v56 = vmul.f32 %v8198_v16, %v6199_v60  ;;  %v6214_v13 = vmul.f32 %v8198_v16, %v6200_v20  ;;  %v7247_v51 = vld [vmem:[#allocation3 + $0x70] sm:$0xf]  ;;  %v7248_v20 = vld [vmem:[#allocation3 + $0x74] sm:$0x1] }
 0x694   : > { %v6215_v11 = vmul.f32 %v8198_v16, %v6201_v39  ;;  %v6216_v18 = vmul.f32 %v8198_v16, %v6202_v8  ;;  %v6217_v40 = vmul.f32 %v8198_v16, %v6203_v1  ;;  %v6218_v30 = vmul.f32 %v8198_v16, %v6204_v48  ;;  %v6907_v48 = vld [vmem:[#allocation3 + $0x68] sm:$0x1] }
 0x695   : > { %v11626_v52 = vadd.f32 %v8199_v0, %v6211_v61  ;;  %v11628_v2 = vadd.f32 %v8199_v0, %v6212_v46  ;;  %v11630_v22 = vadd.f32 %v8199_v0, %v6213_v56  ;;  %v11632_v55 = vadd.f32 %v8199_v0, %v6214_v13  ;;  %v6375_v13 = vld [vmem:[#allocation3] sm:$0x8] }
 0x696   : > { %v11634_v10 = vadd.f32 %v8199_v0, %v6215_v11  ;;  %v11636_v34 = vadd.f32 %v8199_v0, %v6216_v18  ;;  %v11640_v6 = vadd.f32 %v8199_v0, %v6217_v40  ;;  %v11645_v45 = vadd.f32 %v8199_v0, %v6218_v30  ;;  %v6905_v0 = vld [vmem:[#allocation3 + $0x5c] sm:$0x1]  ;;  %v11662_v30 = vld [vmem:[#allocation3 + $0x4] sm:$0xf] }
 0x697   : > { %v8200_v35 = vmul.f32 -1.442695, %v11626_v52  ;;  %v8201_v62 = vmul.f32 -1.442695, %v11628_v2  ;;  %v8202_v37 = vmul.f32 -1.442695, %v11630_v22 }
 0x698   : > { %v8203_v47 = vmul.f32 -1.442695, %v11632_v55  ;;  %v8204_v50 = vmul.f32 -1.442695, %v11634_v10  ;;  %v6960_v23 = vshll.u32 %v6899_v44, 16  ;;  %v11652_v27 = vrot.slane %v7287_v33, 5 }
 0x699   : > { %10043 = vpow2.f32 %v8200_v35  ;;  %v8205_v4 = vmul.f32 -1.442695, %v11636_v34  ;;  %v8206_v32 = vmul.f32 -1.442695, %v11640_v6  ;;  %v8207_v63 = vmul.f32 -1.442695, %v11645_v45 }
 0x69a   : > { %10045 = vpow2.f32 %v8201_v62  ;;  %v11654_v36 = vrot.slane %v7301_v29, 5  ;;  %v7315_v16 = vshll.u32 %v7242_v57, 16  ;;  %v7329_v43 = vshll.u32 %v7244_v26, 16 }
 0x69b   : > { %10047 = vpow2.f32 %v8202_v37  ;;  %v6803_v60 = vshrl.u32 %v6720_v14, 16  ;;  %v6816_v39 = vshrl.u32 %v6722_v49, 16  ;;  %v6988_v8 = vshll.u32 %v6903_v12, 16 }
 0x69c   : > { %10049 = vpow2.f32 %v8203_v47  ;;  %v7343_v1 = vshll.u32 %v7246_v9, 16  ;;  %v11656_v61 = vrot.slane %v6946_v24, 5  ;;  %v7348_v46 = vshrl.u32 %v7247_v51, 16 }
 0x69d   : > { %10051 = vpow2.f32 %v8204_v50  ;;  %v7351_v56 = vshll.u32 %v7247_v51, 16  ;;  %v11658_v53 = vrot.slane %v6960_v23, 5  ;;  %v11660_v11 = vrot.slane %v6974_v31, 5 }
 0x69e   : > { %10053 = vpow2.f32 %v8205_v4  ;;  %v7357_v18 = vshll.u32 %v7248_v20, 16  ;;  %v7002_v40 = vshll.u32 %v6905_v0, 16  ;;  %v11664_v38 = vrot.slane %v7315_v16, 5  ;;  %v6377_v4 = vld [vmem:[#allocation3 + $0xc] sm:$0x8] }
 0x69f   : > { %10055 = vpow2.f32 %v8206_v32  ;;  %v11666_v7 = vrot.slane %v7329_v43, 5  ;;  %v11668_v33 = vrot.slane %v6803_v60, 11  ;;  %v7016_v44 = vshll.u32 %v6907_v48, 16 }
 0x6a0   : > { %10057 = vpow2.f32 %v8207_v63  ;;  %v11670_v62 = vrot.slane %v6816_v39, 11  ;;  %v11672_v37 = vrot.slane %v6988_v8, 5  ;;  %v11674_v47 = vrot.slane %v7343_v1, 5  ;;  %v6379_v63 = vld [vmem:[#allocation3 + $0x18] sm:$0x8] }
 0x6a1   : > { %v6392_v29 = vshrl.u32 %v6375_v13, 16  ;;  %v7350_v23 = vrot.slane %v7348_v46, 4  ;;  %v7353_v31 = vrot.slane %v7351_v56, 5  ;;  %v6397_v57 = vshrl.u32 %v11662_v30, 16  ;;  %v6381_v8 = vld [vmem:[#allocation3 + $0x24] sm:$0x8] }
 0x6a2   : > { %12304 = vst [vmem:[#allocation11_spill] sm:$0xff] %v11674_v47  ;;  %v11677_v14 = vrot.slane %v7357_v18, 5  ;;  %v11679_v12 = vrot.slane %v7002_v40, 5  ;;  %v6577_v49 = vshrl.u32 %v6560_v21, 16  ;;  %v11681_v51 = vrot.slane %v7016_v44, 5 }
 0x6a3   : > { %v10044_v35 = vpop.eup %10043  ;;  %v6580_v43 = vshll.u32 %v6560_v21, 16  ;;  %v11683_v0 = vrot.slane %v6392_v29, 11  ;;  %v6405_v39 = vshrl.u32 %v6377_v4, 16  ;;  %v6418_v46 = vshrl.u32 %v6379_v63, 16  ;;  %v6561_v56 = vld [vmem:[#allocation3 + $0x8] sm:$0x1] }
 0x6a4   : > { %v10046_v24 = vpop.eup %10045  ;;  %v6257_v50 = vadd.f32 1.0, %v10044_v35  ;;  %12305 = vst [vmem:[#allocation12_spill] sm:$0xff] %v11679_v12  ;;  %12306 = vst [vmem:[#allocation13_spill] sm:$0xff] %v11681_v51  ;;  %v6563_v13 = vld [vmem:[#allocation3 + $0x14] sm:$0x1]  ;;  %v6579_v35 = vrot.slane %v6577_v49, 4 }
 0x6a5   : > { %v10048_v26 = vpop.eup %10047  ;;  %v6258_v32 = vadd.f32 1.0, %v10046_v24  ;;  %v6383_v44 = vld [vmem:[#allocation3 + $0x30] sm:$0x8]  ;;  %v6385_v24 = vld [vmem:[#allocation3 + $0x3c] sm:$0x8]  ;;  %v6582_v29 = vrot.slane %v6580_v43, 5 }
 0x6a6   : > { %v10050_v9 = vpop.eup %10049  ;;  %v6259_v16 = vadd.f32 1.0, %v10048_v26  ;;  %10059 = vrcp.f32 %v6257_v50  ;;  %v7354_v26 = vor.u32 %v7353_v31, %v7350_v23  ;;  %v6567_v4 = vld [vmem:[#allocation3 + $0x2c] sm:$0x1]  ;;  %v6600_v63 = vshll.u32 %v6563_v13, 16 }
 0x6a7   : > { %v10052_v60 = vpop.eup %10051  ;;  %v6260_v20 = vadd.f32 1.0, %v10050_v9  ;;  %10061 = vrcp.f32 %v6258_v32  ;;  %v6565_v32 = vld [vmem:[#allocation3 + $0x20] sm:$0x1]  ;;  %v6444_v51 = vshrl.u32 %v6383_v44, 16  ;;  %v6457_v12 = vshrl.u32 %v6385_v24, 16 }
 0x6a8   : > { %v10054_v1 = vpop.eup %10053  ;;  %v6261_v48 = vadd.f32 1.0, %v10052_v60  ;;  %10063 = vrcp.f32 %v6259_v16  ;;  %v6431_v60 = vshrl.u32 %v6381_v8, 16  ;;  %v6586_v16 = vshll.u32 %v6561_v56, 16  ;;  %v6569_v44 = vld [vmem:[#allocation3 + $0x38] sm:$0x1] }
 0x6a9   : > { %v10056_v18 = vpop.eup %10055  ;;  %v6262_v40 = vadd.f32 1.0, %v10054_v1  ;;  %10065 = vrcp.f32 %v6260_v20  ;;  %v6387_v1 = vld [vmem:[#allocation3 + $0x48] sm:$0x8]  ;;  %v11685_v49 = vrot.slane %v6397_v57, 7  ;;  %v6614_v20 = vshll.u32 %v6565_v32, 16 }
 0x6aa   : > { %v10058_v21 = vpop.eup %10057  ;;  %v6263_v50 = vadd.f32 1.0, %v10056_v18  ;;  %10067 = vrcp.f32 %v6261_v48  ;;  %v6628_v47 = vshll.u32 %v6567_v4, 16  ;;  %v6389_v18 = vld [vmem:[#allocation3 + $0x54] sm:$0x8]  ;;  %v11687_v48 = vrot.slane %v7354_v26, 4 }
 0x6ab   : > { %v6264_v9 = vadd.f32 1.0, %v10058_v21  ;;  %10069 = vrcp.f32 %v6262_v40  ;;  %v11690_v31 = vrot.slane %v6405_v39, 11  ;;  %v6583_v43 = vor.u32 %v6582_v29, %v6579_v35  ;;  %v6571_v32 = vld [vmem:[#allocation3 + $0x44] sm:$0x1]  ;;  %v9981_v29 = vld [vmem:[%s12218_s11 + $0x68] sm:$0xff]  }
 0x6ac   : > { %10071 = vrcp.f32 %v6263_v50  ;;  %v11692_v8 = vrot.slane %v6418_v46, 11  ;;  %v11694_v56 = vrot.slane %v6431_v60, 11  ;;  %v11696_v13 = vrot.slane %v6586_v16, 5  ;;  %v9980_v46 = vld [vmem:[%s12218_s11 + $0x20] sm:$0xff]  }
 0x6ad   : > { %10073 = vrcp.f32 %v6264_v9  ;;  %v6470_v40 = vshrl.u32 %v6387_v1, 16  ;;  %v11698_v24 = vrot.slane %v6600_v63, 5  ;;  %v11700_v21 = vrot.slane %v6444_v51, 11  ;;  %v6573_v51 = vld [vmem:[#allocation3 + $0x50] sm:$0x1]  ;;  %8666 = vmatpush3.bf16.msra.mxu1 %v9980_v46 }
 0x6ae   : > { %12307 = vst [vmem:[#allocation14_spill] sm:$0xff] %v11694_v56  ;;  %v11702_v50 = vrot.slane %v6457_v12, 11  ;;  %v6483_v26 = vshrl.u32 %v6389_v18, 16  ;;  %v11711_v4 = vrot.slane %v6614_v20, 5  ;;  %v11713_v9 = vrot.slane %v6628_v47, 5  ;;  %8667 = vmatprep.subr.bf16.mxu1 %v9981_v29 }
 0x6af   : > { %12308 = vst [vmem:[#allocation15_spill] sm:$0xff] %v11698_v24  ;;  %12309 = vst [vmem:[#allocation17_spill] sm:$0xff] %v11700_v21  ;;  %v11716_v16 = vrot.slane %v6583_v43, 4  ;;  %v6642_v63 = vshll.u32 %v6569_v44, 16  ;;  %v7049_v1 = vld [vmem:[#allocation3 + $0x18] sm:$0x8] }
 0x6b0   : > { %v10060_v57 = vpop.eup %10059  ;;  %12310 = vst [vmem:[#allocation16_spill] sm:$0xff] %v11702_v50  ;;  %12311 = vst [vmem:[#allocation18_spill] sm:$0xff] %v11711_v4  ;;  %v11719_v50 = vrot.slane %v6470_v40, 11  ;;  %v6656_v20 = vshll.u32 %v6571_v32, 16  ;;  %v7051_v4 = vld [vmem:[#allocation3 + $0x24] sm:$0x8] }
 0x6b1   : > { %v10062_v39 = vpop.eup %10061  ;;  %v6281_v35 = vmul.f32 %v10060_v57, %v11626_v52  ;;  %12312 = vst [vmem:[#allocation19_spill] sm:$0xff] %v11713_v9  ;;  %v6575_v52 = vld [vmem:[#allocation3 + $0x5c] sm:$0x1]  ;;  %v7053_v47 = vld [vmem:[#allocation3 + $0x30] sm:$0x8]  ;;  %v6670_v43 = vshll.u32 %v6573_v51, 16 }
 0x6b2   : > { %v10064_v12 = vpop.eup %10063  ;;  %v6282_v60 = vmul.f32 %v10062_v39, %v11628_v2  ;;  %v11722_v2 = vrot.slane %v6483_v26, 11  ;;  %v7055_v44 = vld [vmem:[#allocation3 + $0x3c] sm:$0x8]  ;;  %v11724_v39 = vld [vmem:[#allocation3 + $0x70] sm:$0xf]  ;;  %v7079_v51 = vshrl.u32 %v7051_v4, 16 }
 0x6b3   : > { %v10066_v18 = vpop.eup %10065  ;;  %v6283_v57 = vmul.f32 %v10064_v12, %v11630_v22  ;;  %v6359_v23 = vpack.c.bf16 %v6281_v35, %v6281_v35  ;;  %v9982_v32 = vld [vmem:[%s12218_s11 + $0x28] sm:$0xff]   ;;  %v6684_v35 = vshll.u32 %v6575_v52, 16  ;;  %v7092_v12 = vshrl.u32 %v7053_v47, 16 }
 0x6b4   : > { %v10068_v9 = vpop.eup %10067  ;;  %v6284_v21 = vmul.f32 %v10066_v18, %v11632_v55  ;;  %v6360_v24 = vpack.c.bf16 %v6282_v60, %v6282_v60  ;;  %v7066_v55 = vshrl.u32 %v7049_v1, 16  ;;  %8668 = vmatpush3.bf16.msra.mxu1 %v9982_v32  ;;  %v7162_v18 = vshrl.u32 %v11724_v39, 16 }
 0x6b5   : > { %v10070_v56 = vpop.eup %10069  ;;  %v6285_v22 = vmul.f32 %v10068_v9, %v11634_v10  ;;  %6367 = vst.msk [vmem:[#allocation3 + $0x10] sm:$0xf] %vm6295_vm7, %v6359_v23  ;;  %v6361_v40 = vpack.c.bf16 %v6283_v57, %v6283_v57  ;;  %v7105_v9 = vshrl.u32 %v7055_v44, 16  ;;  %v11745_v4 = vrot.slane %v6670_v43, 5  ;;  %v9984_v43 = vld [vmem:[%s12218_s11 + $0x30] sm:$0xff]  }
 0x6b6   : > { %v10072_v46 = vpop.eup %10071  ;;  %v6286_v26 = vmul.f32 %v10070_v56, %v11636_v34  ;;  %6368 = vst.msk [vmem:[#allocation3 + $0x1c] sm:$0xf] %vm6295_vm7, %v6360_v24  ;;  %v6362_v29 = vpack.c.bf16 %v6284_v21, %v6284_v21  ;;  %v11738_v56 = vrot.slane %v6642_v63, 5  ;;  %v11740_v24 = vrot.slane %v6656_v20, 5  ;;  %v11742_v21 = vld [vmem:[#allocation3 + $0x48] sm:$0x8] }
 0x6b7   : > { %v10074_v60 = vpop.eup %10073  ;;  %v6287_v10 = vmul.f32 %v10072_v46, %v11640_v6  ;;  %6369 = vst.msk [vmem:[#allocation3 + $0x28] sm:$0xf] %vm6295_vm7, %v6361_v40  ;;  %v6363_v23 = vpack.c.bf16 %v6285_v22, %v6285_v22  ;;  %12315 = vst [vmem:[#allocation22_spill] sm:$0xff] %v11742_v21  ;;  %v11747_v1 = vrot.slane %v6684_v35, 5  ;;  %v11749_v57 = vrot.slane %v7066_v55, 11  ;;  %v9983_v20 = vld [vmem:[%s12218_s11 + $0x70] sm:$0xff]  }
 0x6b8   : > { %v6288_v52 = vmul.f32 %v10074_v60, %v11645_v45  ;;  %6370 = vst.msk [vmem:[#allocation3 + $0x34] sm:$0xf] %vm6295_vm7, %v6362_v29  ;;  %v6364_v34 = vpack.c.bf16 %v6286_v26, %v6286_v26  ;;  %12313 = vst [vmem:[#allocation20_spill] sm:$0xff] %v11738_v56  ;;  %v12319_v45 = vshll.u32 %v11662_v30, 16  ;;  %v11763_v44 = vrot.slane %v7079_v51, 11  ;;  %8669 = vmatprep.subr.bf16.mxu1 %v9983_v20 }
 0x6b9   : > { %12314 = vst [vmem:[#allocation24_spill] sm:$0xff] %v11740_v24  ;;  %6371 = vst.msk [vmem:[#allocation3 + $0x40] sm:$0xf] %vm6295_vm7, %v6363_v23  ;;  %v6365_v6 = vpack.c.bf16 %v6287_v10, %v6287_v10  ;;  %v11765_v22 = vrot.slane %v7092_v12, 11  ;;  %v7063_v40 = vld [vmem:[#allocation3 + $0x6c] sm:$0x8]  ;;  %8670 = vmatpush3.bf16.msra.mxu1 %v9984_v43 }
 0x6ba   : > { %12316 = vst [vmem:[#allocation21_spill] sm:$0xff] %v11745_v4  ;;  %12317 = vst [vmem:[#allocation25_spill] sm:$0xff] %v11747_v1  ;;  %v6366_v47 = vpack.c.bf16 %v6288_v52, %v6288_v52  ;;  %v11755_v63 = vor.u32 %v12319_v45, %v11685_v49  ;;  %v11768_v32 = vrot.slane %v7105_v9, 11  ;;  %v11770_v30 = vld [vmem:[#allocation3 + $0x54] sm:$0x8]  ;;  %v7164_v35 = vrot.slane %v7162_v18, 7 }
 0x6bb   : > { %12318 = vst [vmem:[#allocation23_spill] sm:$0xff] %v11749_v57  ;;  %6372 = vst.msk [vmem:[#allocation3 + $0x4c] sm:$0xf] %vm6295_vm7, %v6364_v34  ;;  %v7165_v55 = vshll.u32 %v11724_v39, 16  ;;  %v11775_v29 = vld [vmem:[#allocation3 + $0x60] sm:$0x8] }
 0x6bc   : > { %12320 = vst [vmem:[#allocation10_spill] sm:$0xff] %v11763_v44  ;;  %12321 = vst [vmem:[#allocation26_spill] sm:$0xff] %v11765_v22  ;;  %v9957_v46 = vld [vmem:[#allocation3 + $0x4] ss:$12 sps:$4 sm:$0xff]   ;;  %v7157_v60 = vshrl.u32 %v7063_v40, 16  ;;  %v11779_v9 = vld [vmem:[%s10335_s30] sm:$0xff] }
 0x6bd   : > { %6373 = vst.msk [vmem:[#allocation3 + $0x58] sm:$0xf] %vm6295_vm7, %v6365_v6  ;;  %12322 = vst [vmem:[#allocation27_spill] sm:$0xff] %v11768_v32  ;;  %v6709_v26 = vld [vmem:[#allocation3 + $0x10] sm:$0xf]  ;;  %6543 = vrot.lane.b32.xlu1 %v9957_v46, %s12325_s26  ;;  %v11787_v34 = vld [vmem:[%s10335_s30 + $0x10] sm:$0xff] }
 0x6be   : > { %12323 = vst [vmem:[#allocation28_spill] sm:$0xff] %v11770_v30  ;;  %6374 = vst.msk [vmem:[#allocation3 + $0x64] sm:$0xf] %vm6295_vm7, %v6366_v47  ;;  %v6711_v51 = vld [vmem:[#allocation3 + $0x1c] sm:$0xf]  ;;  %v6730_v12 = vshrl.u32 %v6709_v26, 16 }
 0x6bf   : > { %12324 = vst [vmem:[#allocation29_spill] sm:$0xff] %v11775_v29  ;;  %v9959_v10 = vld [vmem:[#allocation3 + $0x1c] ss:$12 sps:$4 sm:$0xff]   ;;  %v6733_v23 = vshll.u32 %v6709_v26, 16  ;;  %v6743_v39 = vshrl.u32 %v6711_v51, 16  ;;  %v11782_v18 = vld [vmem:[%s10335_s30 + $0x8] sm:$0xff] }
 0x6c0   : > { %v11790_v6 = vld [vmem:[%s10335_s30 + $0x18] sm:$0xff]  ;;  %v6732_v45 = vrot.slane %v6730_v12, 7  ;;  %v6713_v20 = vld [vmem:[#allocation3 + $0x28] sm:$0xf]  ;;  %v11802_v46 = vld [vmem:[%s10335_s30 + $0x28] sm:$0xff]  ;;  %v6746_v52 = vshll.u32 %v6711_v51, 16 }
 0x6c1   : > { %v11799_v40 = vld [vmem:[%s10335_s30 + $0x20] sm:$0xff]  ;;  %v9985_v12 = vld [vmem:[%s12218_s11 + $0x78] sm:$0xff]   ;;  %v6745_v47 = vrot.slane %v6743_v39, 7  ;;  %v6756_v32 = vshrl.u32 %v6713_v20, 16  ;;  %v6715_v21 = vld [vmem:[#allocation3 + $0x34] sm:$0xf]  ;;  %6545 = vrot.lane.b32.xlu1 %v9959_v10, %s12325_s26  ;;  %v11839_v10 = vor.u32 %v7165_v55, %v7164_v35 }
 0x6c2   : > { %v6735_v22 = vor.u32 %v6733_v23, %v6732_v45  ;;  %v11815_v1 = vld [vmem:[%s10335_s30 + $0x30] sm:$0xff]  ;;  %v11818_v4 = vld [vmem:[%s10335_s30 + $0x38] sm:$0xff]  ;;  %8671 = vmatprep.subr.bf16.mxu1 %v9985_v12  ;;  %v6759_v30 = vshll.u32 %v6713_v20, 16  ;;  %v6769_v44 = vshrl.u32 %v6715_v21, 16  ;;  %v9987_v26 = vld [vmem:[%s12218_s11 + $0xc0] sm:$0xff]   ;;  %v6772_v49 = vshll.u32 %v6715_v21, 16 }
 0x6c3   : > { %12326 = vst [vmem:[#allocation30_spill] sm:$0xff] %v11815_v1  ;;  %12327 = vst [vmem:[#allocation31_spill] sm:$0xff] %v11818_v4  ;;  %v9986_v51 = vld [vmem:[%s12218_s11 + $0x38] sm:$0xff]   ;;  %v6748_v39 = vor.u32 %v6746_v52, %v6745_v47  ;;  %v6758_v43 = vrot.slane %v6756_v32, 7  ;;  %v6719_v4 = vld [vmem:[#allocation3 + $0x4c] sm:$0xf] }
 0x6c4   : > { %v9961_v45 = vld [vmem:[#allocation3 + $0x34] ss:$12 sps:$4 sm:$0xff]   ;;  %v6736_v12 = vsel %vm10807_vm13, %v11587_v54, %v6735_v22  ;;  %8672 = vmatpush3.bf16.msra.mxu1 %v9986_v51  ;;  %v11837_v23 = vrot.slane %v7157_v60, 11  ;;  %v6771_v47 = vrot.slane %v6769_v44, 7  ;;  %v6892_v29 = vld [vmem:[#allocation3 + $0x10] sm:$0xf] }
 0x6c5   : > { %v6717_v1 = vld [vmem:[#allocation3 + $0x40] sm:$0xf]  ;;  %v6749_v32 = vsel %vm10807_vm13, %v11589_v42, %v6748_v39  ;;  %v6761_v52 = vor.u32 %v6759_v30, %v6758_v43  ;;  %v6894_v57 = vld [vmem:[#allocation3 + $0x1c] sm:$0xf]  ;;  %8697 = vmatprep.subr.bf16.mxu1 %v9987_v26  ;;  %v6795_v21 = vshrl.u32 %v6719_v4, 16  ;;  %v6798_v22 = vshll.u32 %v6719_v4, 16  ;;  %6547 = vrot.lane.b32.xlu1 %v9961_v45, %s12325_s26 }
 0x6c6   : > { %v6782_v20 = vshrl.u32 %v6717_v1, 16  ;;  %v8236_v24 = vcombine.low %v6736_v12, %v6749_v32  ;;  %v6785_v54 = vshll.u32 %v6717_v1, 16  ;;  %v7233_v56 = vld [vmem:[#allocation3 + $0x1c] sm:$0xf]  ;;  %v6774_v55 = vor.u32 %v6772_v49, %v6771_v47  ;;  %v9963_v1 = vld [vmem:[#allocation3 + $0x4c] ss:$12 sps:$4 sm:$0xff]  }
 0x6c7   : > { %v6762_v35 = vsel %vm10807_vm13, %v11591_v15, %v6761_v52  ;;  %v6909_v42 = vshrl.u32 %v6892_v29, 16  ;;  %v6797_v44 = vrot.slane %v6795_v21, 7  ;;  %v6912_v30 = vshll.u32 %v6892_v29, 16  ;;  %v7235_v45 = vld [vmem:[#allocation3 + $0x28] sm:$0xf]  ;;  %v12356_v41 = vld [vmem:[#allocation26_spill] sm:$0xff] }
 0x6c8   : > { %v6784_v60 = vrot.slane %v6782_v20, 7  ;;  %6840 = vrot.lane.b32.xlu0 %v8236_v24, %s12325_s26  ;;  %v6923_v43 = vshrl.u32 %v6894_v57, 16  ;;  %v6926_v26 = vshll.u32 %v6894_v57, 16  ;;  %v6775_v4 = vsel %vm10807_vm13, %v11593_v28, %v6774_v55  ;;  %v7237_v47 = vld [vmem:[#allocation3 + $0x34] sm:$0xf] }
 0x6c9   : > { %v6911_v39 = vrot.slane %v6909_v42, 4  ;;  %v7250_v12 = vshrl.u32 %v7233_v56, 16  ;;  %v8237_v32 = vcombine.low %v6762_v35, %v6775_v4  ;;  %v6800_v15 = vor.u32 %v6798_v22, %v6797_v44  ;;  %6549 = vrot.lane.b32.xlu1 %v9963_v1, %s12325_s26  ;;  %v7239_v35 = vld [vmem:[#allocation3 + $0x40] sm:$0xf]  ;;  %v7241_v4 = vld [vmem:[#allocation3 + $0x4c] sm:$0xf] }
 0x6ca   : > { %v6787_v51 = vor.u32 %v6785_v54, %v6784_v60  ;;  %v6914_v49 = vrot.slane %v6912_v30, 5  ;;  %v6925_v52 = vrot.slane %v6923_v43, 4  ;;  %v6928_v57 = vrot.slane %v6926_v26, 5 }
 0x6cb   : > { %v7252_v29 = vrot.slane %v7250_v12, 4  ;;  %v7253_v20 = vshll.u32 %v7233_v56, 16  ;;  %v6801_v28 = vsel %vm10807_vm13, %v11597_v19, %v6800_v15  ;;  %v7264_v21 = vshrl.u32 %v7235_v45, 16  ;;  %v7243_v15 = vld [vmem:[#allocation3 + $0x58] sm:$0xf] }
 0x6cc   : > { %v6788_v24 = vsel %vm10807_vm13, %v11595_v3, %v6787_v51  ;;  %6842 = vrot.lane.b32.xlu0 %v8237_v32, %s12325_s26  ;;  %v6915_v54 = vor.u32 %v6914_v49, %v6911_v39  ;;  %v7267_v22 = vshll.u32 %v7235_v45, 16  ;;  %v6929_v60 = vor.u32 %v6928_v57, %v6925_v52 }
 0x6cd   : > { %v8238_v55 = vcombine.low %v6788_v24, %v6801_v28  ;;  %v7255_v42 = vrot.slane %v7253_v20, 5  ;;  %v7278_v44 = vshrl.u32 %v7237_v47, 16  ;;  %v7266_v43 = vrot.slane %v7264_v21, 4 }
 0x6ce   : > { %v6916_v30 = vrot.slane %v6915_v54, 4  ;;  %v7269_v3 = vrot.slane %v7267_v22, 5  ;;  %v7281_v26 = vshll.u32 %v7237_v47, 16  ;;  %v6930_v56 = vrot.slane %v6929_v60, 4  ;;  %v6721_v54 = vld [vmem:[#allocation3 + $0x58] sm:$0xf] }
 0x6cf   : > { %v7256_v1 = vor.u32 %v7255_v42, %v7252_v29  ;;  %v7280_v51 = vrot.slane %v7278_v44, 4  ;;  %v7292_v12 = vshrl.u32 %v7239_v35, 16  ;;  %v7295_v32 = vshll.u32 %v7239_v35, 16 }
 0x6d0   : > { %6844 = vrot.lane.b32.xlu0 %v8238_v55, %s12325_s26  ;;  %v6921_v19 = vsel %vm10821_vm14, %v6916_v30, %v11599_v59  ;;  %v7270_v39 = vor.u32 %v7269_v3, %v7266_v43  ;;  %v7283_v45 = vrot.slane %v7281_v26, 5  ;;  %v6935_v49 = vsel %vm10821_vm14, %v6930_v56, %v11605_v25  ;;  %v6723_v55 = vld [vmem:[#allocation3 + $0x64] sm:$0xf]  ;;  %v6896_v56 = vld [vmem:[#allocation3 + $0x28] sm:$0xf] }
 0x6d1   : > { %v7257_v52 = vrot.slane %v7256_v1, 4  ;;  %v7294_v47 = vrot.slane %v7292_v12, 4  ;;  %v7306_v24 = vshrl.u32 %v7241_v4, 16  ;;  %v8244_v57 = vcombine.low %v6921_v19, %v6935_v49 }
 0x6d2   : > { %v7271_v29 = vrot.slane %v7270_v39, 4  ;;  %v7284_v20 = vor.u32 %v7283_v45, %v7280_v51  ;;  %v7297_v28 = vrot.slane %v7295_v32, 5  ;;  %v7309_v22 = vshll.u32 %v7241_v4, 16  ;;  %v6898_v45 = vld [vmem:[#allocation3 + $0x34] sm:$0xf] }
 0x6d3   : > { %v7262_v59 = vsel %vm10821_vm14, %v7257_v52, %v11607_v17  ;;  %v7308_v21 = vrot.slane %v7306_v24, 4  ;;  %v7320_v35 = vshrl.u32 %v7243_v15, 16  ;;  %7032 = vrot.lane.b32.xlu1 %v8244_v57, %s12325_s26  ;;  %v7323_v44 = vshll.u32 %v7243_v15, 16 }
 0x6d4   : > { %v7276_v25 = vsel %vm10821_vm14, %v7271_v29, %v11638_v58  ;;  %v7285_v60 = vrot.slane %v7284_v20, 4  ;;  %v7298_v42 = vor.u32 %v7297_v28, %v7294_v47  ;;  %v7311_v43 = vrot.slane %v7309_v22, 5  ;;  %v6900_v29 = vld [vmem:[#allocation3 + $0x40] sm:$0xf] }
 0x6d5   : > { %v8264_v30 = vcombine.low %v7262_v59, %v7276_v25  ;;  %v7322_v3 = vrot.slane %v7320_v35, 4  ;;  %v6808_v26 = vshrl.u32 %v6721_v54, 16  ;;  %v7325_v1 = vrot.slane %v7323_v44, 5 }
 0x6d6   : > { %v7290_v17 = vsel %vm10821_vm14, %v7285_v60, %v11652_v27  ;;  %v7299_v4 = vrot.slane %v7298_v42, 4  ;;  %v6811_v51 = vshll.u32 %v6721_v54, 16  ;;  %v7312_v12 = vor.u32 %v7311_v43, %v7308_v21 }
 0x6d7   : > { %7377 = vst.msk [vmem:[#allocation5 + $0x20] sm:$0xff] %vm4066_vm5, %v8264_v30  ;;  %v6810_v19 = vrot.slane %v6808_v26, 7  ;;  %v6821_v58 = vshrl.u32 %v6723_v55, 16  ;;  %v6824_v39 = vshll.u32 %v6723_v55, 16  ;;  %v7326_v15 = vor.u32 %v7325_v1, %v7322_v3  ;;  %v6902_v55 = vld [vmem:[#allocation3 + $0x4c] sm:$0xf] }
 0x6d8   : > { %v7304_v32 = vsel %vm10821_vm14, %v7299_v4, %v11654_v36  ;;  %v6937_v49 = vshrl.u32 %v6896_v56, 16  ;;  %v6940_v52 = vshll.u32 %v6896_v56, 16  ;;  %v7313_v24 = vrot.slane %v7312_v12, 4  ;;  %v7245_v30 = vld [vmem:[#allocation3 + $0x64] sm:$0xf] }
 0x6d9   : > { %v8265_v47 = vcombine.low %v7290_v17, %v7304_v32  ;;  %v6813_v27 = vor.u32 %v6811_v51, %v6810_v19  ;;  %v6823_v57 = vrot.slane %v6821_v58, 7  ;;  %v7327_v20 = vrot.slane %v7326_v15, 4  ;;  %v6904_v56 = vld [vmem:[#allocation3 + $0x58] sm:$0xf]  ;;  %v6906_v12 = vld [vmem:[#allocation3 + $0x64] sm:$0xf] }
 0x6da   : > { %v6939_v28 = vrot.slane %v6937_v49, 4  ;;  %v6942_v54 = vrot.slane %v6940_v52, 5  ;;  %v6951_v59 = vshrl.u32 %v6898_v45, 16  ;;  %v7318_v21 = vsel %vm10821_vm14, %v7313_v24, %v11664_v38  ;;  %v6378_v52 = vld [vmem:[#allocation3 + $0x10] sm:$0xf] }
 0x6db   : > { %7378 = vst.msk [vmem:[#allocation5 + $0x48] sm:$0xff] %vm4066_vm5, %v8265_v47  ;;  %v6814_v36 = vsel %vm10807_vm13, %v11668_v33, %v6813_v27  ;;  %v6826_v22 = vor.u32 %v6824_v39, %v6823_v57  ;;  %v6954_v35 = vshll.u32 %v6898_v45, 16  ;;  %v7332_v25 = vsel %vm10821_vm14, %v7327_v20, %v11666_v7  ;;  %v9965_v45 = vld [vmem:[#allocation3 + $0x1c] ss:$12 sps:$4 sm:$0xff]  }
 0x6dc   : > { %v6943_v60 = vor.u32 %v6942_v54, %v6939_v28  ;;  %v6953_v42 = vrot.slane %v6951_v59, 4  ;;  %v6965_v44 = vshrl.u32 %v6900_v29, 16  ;;  %v8266_v43 = vcombine.low %v7318_v21, %v7332_v25  ;;  %v9988_v20 = vld [vmem:[#allocation3 + $0x10] ss:$12 sps:$4 sm:$0xff]  }
 0x6dd   : > { %v6827_v38 = vsel %vm10807_vm13, %v11670_v62, %v6826_v22  ;;  %v6956_v3 = vrot.slane %v6954_v35, 5  ;;  %v6968_v26 = vshll.u32 %v6900_v29, 16  ;;  %v6979_v51 = vshrl.u32 %v6902_v55, 16  ;;  %v9968_v29 = vld [vmem:[%s12220_s13 + $0x8] sm:$0xff]   ;;  %v6380_v25 = vld [vmem:[#allocation3 + $0x1c] sm:$0xf] }
 0x6de   : > { %v7385_v33 = vld [vmem:[#allocation5 + $0x20] sm:$0xff]  ;;  %v8239_v17 = vcombine.low %v6814_v36, %v6827_v38  ;;  %v6944_v4 = vrot.slane %v6943_v60, 4  ;;  %v6967_v1 = vrot.slane %v6965_v44, 4  ;;  %7379 = vst.msk [vmem:[#allocation5 + $0x70] sm:$0xff] %vm4066_vm5, %v8266_v43  ;;  %v6982_v58 = vshll.u32 %v6902_v55, 16  ;;  %6888 = vst.msk [vmem:[#allocation5 + $0x10] sm:$0xff] %vm4066_vm5, %v9988_v20 }
 0x6df   : > { %9395 = vmatprep.mubr.msk.bf16.mxu0 %vm4066_vm5, %v7385_v33  ;;  %v6957_v7 = vor.u32 %v6956_v3, %v6953_v42  ;;  %v6970_v19 = vrot.slane %v6968_v26, 5  ;;  %v7334_v39 = vshrl.u32 %v7245_v30, 16  ;;  %v6981_v32 = vrot.slane %v6979_v51, 4  ;;  %v10089_v44 = vld [vmem:[%s12220_s13] sm:$0xff]  }
 0x6e0   : > { %6846 = vrot.lane.b32.xlu0 %v8239_v17, %s12325_s26  ;;  %v6949_v62 = vsel %vm10821_vm14, %v6944_v4, %v11656_v61  ;;  %v7337_v15 = vshll.u32 %v7245_v30, 16  ;;  %v6993_v49 = vshrl.u32 %v6904_v56, 16  ;;  %v6984_v27 = vrot.slane %v6982_v58, 5  ;;  %v9967_v30 = vld [vmem:[#allocation3 + $0x34] ss:$12 sps:$4 sm:$0xff]  }
 0x6e1   : > { %v6958_v47 = vrot.slane %v6957_v7, 4  ;;  %v6971_v24 = vor.u32 %v6970_v19, %v6967_v1  ;;  %v7336_v57 = vrot.slane %v7334_v39, 4  ;;  %v6996_v21 = vshll.u32 %v6904_v56, 16  ;;  %v9990_v33 = vld [vmem:[#allocation3 + $0x28] ss:$12 sps:$4 sm:$0xff]  }
 0x6e2   : > { %v7390_v28 = vld [vmem:[#allocation5 + $0x48] sm:$0xff]  ;;  %v7339_v54 = vrot.slane %v7337_v15, 5  ;;  %v6995_v59 = vrot.slane %v6993_v49, 4  ;;  %v7007_v36 = vshrl.u32 %v6906_v12, 16  ;;  %v6985_v35 = vor.u32 %v6984_v27, %v6981_v32  ;;  %6889 = vst.msk [vmem:[#allocation5 + $0x38] sm:$0xff] %vm4066_vm5, %v9990_v33 }
 0x6e3   : > { %9396 = vmatmul.mubr.msk.bf16.vlgmr.msra.gmra.mrb[24].mxu0 %vm4066_vm5, %v7390_v28  ;;  %v6963_v61 = vsel %vm10821_vm14, %v6958_v47, %v11658_v53  ;;  %v6972_v22 = vrot.slane %v6971_v24, 4  ;;  %v7010_v55 = vshll.u32 %v6906_v12, 16  ;;  %v6998_v43 = vrot.slane %v6996_v21, 5  ;;  %v6382_v12 = vld [vmem:[#allocation3 + $0x28] sm:$0xf]  ;;  %v12328_v32 = vld [vmem:[#allocation11_spill] sm:$0xff] }
 0x6e4   : > { %v8245_v60 = vcombine.low %v6949_v62, %v6963_v61  ;;  %7217 = vrot.lane.b32.xlu0 %v9965_v45, %s12325_s26  ;;  %v7340_v42 = vor.u32 %v7339_v54, %v7336_v57  ;;  %9404 = vmatpush3.bf16.msra.mxu0 %v10089_v44  ;;  %v7009_v38 = vrot.slane %v7007_v36, 4  ;;  %v6986_v3 = vrot.slane %v6985_v35, 4  ;;  %v6562_v62 = vld [vmem:[#allocation3 + $0x10] sm:$0xf]  ;;  %v9993_v24 = vld [vmem:[#allocation3 + $0x40] ss:$12 sps:$4 sm:$0xff]  }
 0x6e5   : > { %v6977_v53 = vsel %vm10821_vm14, %v6972_v22, %v11660_v11  ;;  %v7012_v26 = vrot.slane %v7010_v55, 5  ;;  %9405 = vmatprep.subr.bf16.mxu0 %v9968_v29  ;;  %v6410_v56 = vshrl.u32 %v6378_v52, 16  ;;  %v7395_v17 = vld [vmem:[#allocation5 + $0x70] sm:$0xff]  ;;  %v6999_v1 = vor.u32 %v6998_v43, %v6995_v59  ;;  %v6384_v54 = vld [vmem:[#allocation3 + $0x34] sm:$0xf]  ;;  %6890 = vst.msk [vmem:[#allocation5 + $0x60] sm:$0xff] %vm4066_vm5, %v9993_v24 }
 0x6e6   : > { %7034 = vrot.lane.b32.xlu1 %v8245_v60, %s12325_s26  ;;  %v7341_v4 = vrot.slane %v7340_v42, 4  ;;  %v6413_v51 = vshll.u32 %v6378_v52, 16  ;;  %v6423_v7 = vshrl.u32 %v6380_v25, 16  ;;  %9399 = vmatprep.mubr.msk.bf16.mxu0 %vm4066_vm5, %v7395_v17  ;;  %v6991_v19 = vsel %vm10821_vm14, %v6986_v3, %v11672_v37  ;;  %v9969_v52 = vld [vmem:[#allocation3 + $0x4c] ss:$12 sps:$4 sm:$0xff]  }
 0x6e7   : > { %v7013_v11 = vor.u32 %v7012_v26, %v7009_v38  ;;  %v6412_v58 = vrot.slane %v6410_v56, 7  ;;  %v6426_v39 = vshll.u32 %v6380_v25, 16  ;;  %v8246_v45 = vcombine.low %v6977_v53, %v6991_v19  ;;  %v6386_v59 = vld [vmem:[#allocation3 + $0x40] sm:$0xf]  ;;  %v12330_v21 = vld [vmem:[#allocation12_spill] sm:$0xff] }
 0x6e8   : > { %v7346_v15 = vsel %vm10821_vm14, %v7341_v4, %v12328_v32  ;;  %7219 = vrot.lane.b32.xlu0 %v9967_v30, %s12325_s26  ;;  %v7000_v49 = vrot.slane %v6999_v1, 4  ;;  %9406 = vmatpush3.bf16.msra.mxu0 %v9968_v29  ;;  %v6425_v47 = vrot.slane %v6423_v7, 7  ;;  %v12329_v37 = vsel %vm10821_vm14, %v11687_v48, %v11677_v14  ;;  %v12331_v14 = vld [vmem:[#allocation13_spill] sm:$0xff]  ;;  %v6564_v60 = vld [vmem:[#allocation3 + $0x1c] sm:$0xf] }
 0x6e9   : > { %v8267_v27 = vcombine.low %v7346_v15, %v12329_v37  ;;  %v7014_v57 = vrot.slane %v7013_v11, 4  ;;  %v6415_v20 = vor.u32 %v6413_v51, %v6412_v58  ;;  %v6436_v28 = vshrl.u32 %v6382_v12, 16  ;;  %v9996_v42 = vld [vmem:[#allocation3 + $0x58] ss:$12 sps:$4 sm:$0xff]   ;;  %v6566_v3 = vld [vmem:[#allocation3 + $0x28] sm:$0xf] }
 0x6ea   : > { %7036 = vrot.lane.b32.xlu1 %v8246_v45, %s12325_s26  ;;  %v7005_v29 = vsel %vm10821_vm14, %v7000_v49, %v12330_v21  ;;  %v6428_v36 = vor.u32 %v6426_v39, %v6425_v47  ;;  %v6439_v61 = vshll.u32 %v6382_v12, 16  ;;  %v6591_v22 = vshrl.u32 %v6562_v62, 16  ;;  %6891 = vst.msk [vmem:[#allocation5 + $0x88] sm:$0xff] %vm4066_vm5, %v9996_v42  ;;  %v9970_v17 = vld [vmem:[#allocation3 + $0x64] ss:$12 sps:$4 sm:$0xff]   ;;  %v12333_v51 = vld [vmem:[#allocation14_spill] sm:$0xff] }
 0x6eb   : > { %7380 = vst.msk [vmem:[#allocation5 + $0x98] sm:$0xff] %vm4066_vm5, %v8267_v27  ;;  %v7019_v48 = vsel %vm10821_vm14, %v7014_v57, %v12331_v14  ;;  %v6416_v35 = vsel %vm10807_vm13, %v11690_v31, %v6415_v20  ;;  %v6438_v55 = vrot.slane %v6436_v28, 7  ;;  %v6594_v25 = vshll.u32 %v6562_v62, 16  ;;  %v6388_v11 = vld [vmem:[#allocation3 + $0x4c] sm:$0xf]  ;;  %v12334_v28 = vld [vmem:[#allocation15_spill] sm:$0xff] }
 0x6ec   : > { %v8247_v44 = vcombine.low %v7005_v29, %v7019_v48  ;;  %7221 = vrot.lane.b32.xlu0 %v9969_v52, %s12325_s26  ;;  %v12332_v30 = vsel %vm10807_vm13, %v11683_v0, %v11755_v63  ;;  %v6429_v38 = vsel %vm10807_vm13, %v11692_v8, %v6428_v36  ;;  %v6593_v53 = vrot.slane %v6591_v22, 4  ;;  %v6390_v32 = vld [vmem:[#allocation3 + $0x58] sm:$0xf]  ;;  %v6570_v42 = vld [vmem:[#allocation3 + $0x40] sm:$0xf] }
 0x6ed   : > { %v8216_v43 = vcombine.low %v12332_v30, %v6416_v35  ;;  %v6441_v31 = vor.u32 %v6439_v61, %v6438_v55  ;;  %v6596_v26 = vrot.slane %v6594_v25, 5  ;;  %v6449_v56 = vshrl.u32 %v6384_v54, 16  ;;  %v6568_v61 = vld [vmem:[#allocation3 + $0x34] sm:$0xf]  ;;  %v12338_v35 = vld [vmem:[#allocation16_spill] sm:$0xff] }
 0x6ee   : > { %v6452_v33 = vshll.u32 %v6384_v54, 16  ;;  %7038 = vrot.lane.b32.xlu1 %v8247_v44, %s12325_s26  ;;  %v6462_v4 = vshrl.u32 %v6386_v59, 16  ;;  %v6465_v0 = vshll.u32 %v6386_v59, 16  ;;  %v6605_v63 = vshrl.u32 %v6564_v60, 16  ;;  %v12335_v59 = vld [vmem:[#allocation17_spill] sm:$0xff] }
 0x6ef   : > { %6511 = vst.msk [vmem:[#allocation5] sm:$0xff] %vm4066_vm5, %v8216_v43  ;;  %v6608_v1 = vshll.u32 %v6564_v60, 16  ;;  %v6442_v8 = vsel %vm10807_vm13, %v12333_v51, %v6441_v31  ;;  %v6597_v12 = vor.u32 %v6596_v26, %v6593_v53  ;;  %v6451_v7 = vrot.slane %v6449_v56, 7  ;;  %v12340_v51 = vld [vmem:[#allocation19_spill] sm:$0xff] }
 0x6f0   : > { %v6619_v19 = vshrl.u32 %v6566_v3, 16  ;;  %7223 = vrot.lane.b32.xlu0 %v9970_v17, %s12325_s26  ;;  %v8217_v58 = vcombine.low %v6429_v38, %v6442_v8  ;;  %v6464_v39 = vrot.slane %v6462_v4, 7  ;;  %v6607_v62 = vrot.slane %v6605_v63, 4  ;;  %v6574_v63 = vld [vmem:[#allocation3 + $0x58] sm:$0xf]  ;;  %s8102_s26 = sshll.u32 %s485_s23, 6 }
 0x6f1   : > { %v6610_v45 = vrot.slane %v6608_v1, 5  ;;  %v6598_v15 = vrot.slane %v6597_v12, 4  ;;  %v6454_v49 = vor.u32 %v6452_v33, %v6451_v7  ;;  %v6622_v47 = vshll.u32 %v6566_v3, 16  ;;  %s12132_s3 = scalar_lea.vmem [#allocation6], %s8102_s26  ;;  %s10161_s26 = smov [#allocation6]  }
 0x6f2   : > { %v6621_v52 = vrot.slane %v6619_v19, 4  ;;  %v7400_v24 = vld [vmem:[#allocation5 + $0x98] sm:$0xff]  ;;  %6512 = vst.msk [vmem:[#allocation5 + $0x28] sm:$0xff] %vm4066_vm5, %v8217_v58  ;;  %v6467_v37 = vor.u32 %v6465_v0, %v6464_v39  ;;  %v6475_v57 = vshrl.u32 %v6388_v11, 16  ;;  %v6478_v20 = vshll.u32 %v6388_v11, 16  ;;  %s8036_s30 = sshll.u32 %s12132_s3, 4  ;;  %s12157_s30 = int_to_ptr.vmem [resolvable:$true] %s8036_s30 }
 0x6f3   : > { %v6611_v27 = vor.u32 %v6610_v45, %v6607_v62  ;;  %9400 = vmatmul.mubr.msk.bf16.gmra.mrb[28].mxu0 %vm4066_vm5, %v7400_v24  ;;  %v6603_v54 = vsel %vm10821_vm14, %v6598_v15, %v12334_v28  ;;  %v6455_v21 = vsel %vm10807_vm13, %v12335_v59, %v6454_v49  ;;  %v6624_v29 = vrot.slane %v6622_v47, 5  ;;  %v7050_v11 = vld [vmem:[#allocation3 + $0x1c] sm:$0xf]  ;;  %v7052_v58 = vld [vmem:[#allocation3 + $0x28] sm:$0xf]  ;;  %s10090_s17 = scalar_lea.vmem %s12157_s30, 1024 }
 0x6f4   : > { %v6488_v36 = vshrl.u32 %v6390_v32, 16  ;;  %v12336_v22 = vpack.c.bf16 %v11782_v18, %v11779_v9  ;;  %v12337_v14 = vsel %vm10821_vm14, %v11716_v16, %v11696_v13  ;;  %v6468_v55 = vsel %vm10807_vm13, %v12338_v35, %v6467_v37  ;;  %v6572_v9 = vld [vmem:[#allocation3 + $0x4c] sm:$0xf]  ;;  %v12339_v18 = vld [vmem:[#allocation18_spill] sm:$0xff]  ;;  %p10091_p11 = scmp.ne.s32.totalorder %s12157_s30, %s10090_s17  ;;  %s10094_s27 = sshll.u32 %s10161_s26, 4  ;;  %s10095_s27 = int_to_ptr.vmem [resolvable:$false] %s10094_s27 }
 0x6f5   : > { %v8224_v48 = vcombine.low %v12337_v14, %v6603_v54  ;;  %v6612_v25 = vrot.slane %v6611_v27, 4  ;;  %v6477_v60 = vrot.slane %v6475_v57, 7  ;;  %v8218_v44 = vcombine.low %v6455_v21, %v6468_v55  ;;  %v12343_v59 = vld [vmem:[#allocation20_spill] sm:$0xff]  ;;  %s10096_s0 = scalar_lea.vmem %s10095_s27, 2048  ;;  %p10097_p0 = scmp.lt.s32.totalorder %s12157_s30, %s10095_s27 }
 0x6f6   : > { %9407 = vmatprep.mubr.msk.bf16.mxu0 %vm512_vm1, %v12336_v22  ;;  %v6625_v30 = vor.u32 %v6624_v29, %v6621_v52  ;;  %v6490_v43 = vrot.slane %v6488_v36, 7  ;;  %v6491_v38 = vshll.u32 %v6390_v32, 16  ;;  %v6633_v16 = vshrl.u32 %v6568_v61, 16  ;;  %v7056_v36 = vld [vmem:[#allocation3 + $0x40] sm:$0xf]  ;;  %p10092_p12 = pnand %p10091_p11, %p10282_p5  ;;  %p10098_p1 = scmp.lt.s32.totalorder %s10096_s0, %s10090_s17 }
 0x6f7   : > { %6704 = vst.msk [vmem:[#allocation5 + $0x8] sm:$0xff] %vm4066_vm5, %v8224_v48  ;;  %v6617_v53 = vsel %vm10821_vm14, %v6612_v25, %v12339_v18  ;;  %v6480_v13 = vor.u32 %v6478_v20, %v6477_v60  ;;  %v6636_v3 = vshll.u32 %v6568_v61, 16  ;;  %6513 = vst.msk [vmem:[#allocation5 + $0x50] sm:$0xff] %vm4066_vm5, %v8218_v44  ;;  %v6647_v56 = vshrl.u32 %v6570_v42, 16  ;;  %v12344_v61 = vld [vmem:[#allocation24_spill] sm:$0xff]  ;;  %v12345_v18 = vld [vmem:[#allocation23_spill] sm:$0xff] }
 0x6f8   : > { %v6626_v31 = vrot.slane %v6625_v30, 4  ;;  %v6493_v26 = vor.u32 %v6491_v38, %v6490_v43  ;;  %v6650_v33 = vshll.u32 %v6570_v42, 16  ;;  %v6635_v4 = vrot.slane %v6633_v16, 4  ;;  %v7058_v55 = vld [vmem:[#allocation3 + $0x4c] sm:$0xf]  ;;  %p10093_p13 = pneg %p10092_p12  ;;  %p10099_p2 = por %p10098_p1, %p10097_p0 }
 0x6f9   : > { %v6481_v17 = vsel %vm10807_vm13, %v11719_v50, %v6480_v13  ;;  %v6638_v0 = vrot.slane %v6636_v3, 5  ;;  %v6661_v1 = vshrl.u32 %v6572_v9, 16  ;;  %v6649_v7 = vrot.slane %v6647_v56, 4  ;;  %v12346_v13 = vld [vmem:[#allocation10_spill] sm:$0xff]  ;;  %v7062_v56 = vld [vmem:[#allocation3 + $0x64] sm:$0xf] }
 0x6fa   : > { %v6631_v8 = vsel %vm10821_vm14, %v6626_v31, %v12340_v51  ;;  %v6494_v12 = vsel %vm10807_vm13, %v11722_v2, %v6493_v26  ;;  %v6652_v19 = vrot.slane %v6650_v33, 5  ;;  %v12341_v32 = vpack.c.bf16 %v11790_v6, %v11787_v34  ;;  %v7054_v34 = vld [vmem:[#allocation3 + $0x34] sm:$0xf]  ;;  %v7060_v31 = vld [vmem:[#allocation3 + $0x58] sm:$0xf]  ;;  %v12347_v33 = vld [vmem:[#allocation31_spill] sm:$0xff]  ;;  %p10100_p3 = pnand %p10099_p2, %p10093_p13 }
 0x6fb   : > { %v8225_v39 = vcombine.low %v6617_v53, %v6631_v8  ;;  %v8219_v62 = vcombine.low %v6481_v17, %v6494_v12  ;;  %v6639_v45 = vor.u32 %v6638_v0, %v6635_v4  ;;  %v6663_v50 = vrot.slane %v6661_v1, 4  ;;  %v12348_v17 = vld [vmem:[#allocation30_spill] sm:$0xff]  ;;  %v12350_v0 = vld [vmem:[#allocation21_spill] sm:$0xff] }
 0x6fc   : > { %9408 = vmatmul.mubr.msk.bf16.vlgmr.msra.gmra.mrb[24].mxu0 %vm512_vm1, %v12341_v32  ;;  %v6653_v15 = vor.u32 %v6652_v19, %v6649_v7  ;;  %v6664_v49 = vshll.u32 %v6572_v9, 16  ;;  %v6675_v52 = vshrl.u32 %v6574_v63, 16  ;;  %v6678_v47 = vshll.u32 %v6574_v63, 16  ;;  %v12351_v1 = vld [vmem:[#allocation25_spill] sm:$0xff] }
 0x6fd   : > { %v12342_v2 = vpack.c.bf16 %v11802_v46, %v11799_v40  ;;  %6705 = vst.msk [vmem:[#allocation5 + $0x30] sm:$0xff] %vm4066_vm5, %v8225_v39  ;;  %6514 = vst.msk [vmem:[#allocation5 + $0x78] sm:$0xff] %vm4066_vm5, %v8219_v62  ;;  %v6640_v24 = vrot.slane %v6639_v45, 4  ;;  %v7071_v37 = vshrl.u32 %v7050_v11, 16  ;;  %v7074_v27 = vshll.u32 %v7050_v11, 16  ;;  %v12352_v39 = vld [vmem:[#allocation22_spill] sm:$0xff] }
 0x6fe   : > { %v7084_v57 = vshrl.u32 %v7052_v58, 16  ;;  %v6654_v6 = vrot.slane %v6653_v15, 4  ;;  %v6666_v20 = vrot.slane %v6664_v49, 5  ;;  %v6677_v28 = vrot.slane %v6675_v52, 4 }
 0x6ff   : > { %9411 = vmatprep.mubr.msk.bf16.mxu0 %vm512_vm1, %v12342_v2  ;;  %v6680_v54 = vrot.slane %v6678_v47, 5  ;;  %v6645_v21 = vsel %vm10821_vm14, %v6640_v24, %v12343_v59  ;;  %v7073_v40 = vrot.slane %v7071_v37, 7  ;;  %v7087_v29 = vshll.u32 %v7052_v58, 16  ;;  %v12357_v37 = vld [vmem:[#allocation29_spill] sm:$0xff] }
 0x700   : > { %v7086_v46 = vrot.slane %v7084_v57, 7  ;;  %v6659_v22 = vsel %vm10821_vm14, %v6654_v6, %v12344_v61  ;;  %v6667_v14 = vor.u32 %v6666_v20, %v6663_v50  ;;  %v7097_v35 = vshrl.u32 %v7054_v34, 16  ;;  %v12354_v50 = vld [vmem:[#allocation28_spill] sm:$0xff] }
 0x701   : > { %v6681_v48 = vor.u32 %v6680_v54, %v6677_v28  ;;  %v8226_v25 = vcombine.low %v6645_v21, %v6659_v22  ;;  %v7076_v60 = vor.u32 %v7074_v27, %v7073_v40  ;;  %v7100_v44 = vshll.u32 %v7054_v34, 16  ;;  %v12359_v54 = vld [vmem:[#allocation27_spill] sm:$0xff] }
 0x702   : > { %v7089_v42 = vor.u32 %v7087_v29, %v7086_v46  ;;  %v6668_v30 = vrot.slane %v6667_v14, 4  ;;  %v7099_v38 = vrot.slane %v7097_v35, 7  ;;  %v7110_v9 = vshrl.u32 %v7056_v36, 16 }
 0x703   : > { %v6682_v43 = vrot.slane %v6681_v48, 4  ;;  %6706 = vst.msk [vmem:[#allocation5 + $0x58] sm:$0xff] %vm4066_vm5, %v8226_v25  ;;  %v7077_v53 = vsel %vm10807_vm13, %v12345_v18, %v7076_v60  ;;  %v7113_v3 = vshll.u32 %v7056_v36, 16  ;;  %v7123_v26 = vshrl.u32 %v7058_v55, 16  ;;  %v9989_v60 = vld [vmem:[%s12218_s11 + $0x80] sm:$0xff]  }
 0x704   : > { %v7090_v16 = vsel %vm10807_vm13, %v12346_v13, %v7089_v42  ;;  %v12349_v4 = vpack.c.bf16 %v12347_v33, %v12348_v17  ;;  %v6673_v63 = vsel %vm10821_vm14, %v6668_v30, %v12350_v0  ;;  %v7102_v12 = vor.u32 %v7100_v44, %v7099_v38  ;;  %v9991_v30 = vld [vmem:[%s12218_s11 + $0xc8] sm:$0xff]   ;;  %v9995_v13 = vld [vmem:[%s12218_s11 + $0x90] sm:$0xff]   ;;  %v10000_v33 = vld [vmem:[%s12218_s11 + $0xa0] sm:$0xff]  }
 0x705   : > { %v6687_v51 = vsel %vm10821_vm14, %v6682_v43, %v12351_v1  ;;  %v8256_v8 = vcombine.low %v7077_v53, %v7090_v16  ;;  %v7112_v19 = vrot.slane %v7110_v9, 7  ;;  %v7125_v11 = vrot.slane %v7123_v26, 7  ;;  %v9992_v38 = vld [vmem:[%s12218_s11 + $0x88] sm:$0xff]   ;;  %v9994_v53 = vld [vmem:[%s12218_s11 + $0xd0] sm:$0xff]   ;;  %v9997_v16 = vld [vmem:[%s12218_s11 + $0xd8] sm:$0xff]  }
 0x706   : > { %9412 = vmatmul.mubr.msk.bf16.gmra.mrb[28].mxu0 %vm512_vm1, %v12349_v4  ;;  %v8227_v7 = vcombine.low %v6673_v63, %v6687_v51  ;;  %v7126_v58 = vshll.u32 %v7058_v55, 16  ;;  %v12353_v62 = vshrl.u32 %v12352_v39, 16  ;;  %v12355_v32 = vshrl.u32 %v12354_v50, 16  ;;  %v9998_v26 = vld [vmem:[%s12218_s11 + $0x98] sm:$0xff]   ;;  %v10001_v4 = vld [vmem:[%s12218_s11 + $0xe8] sm:$0xff]   ;;  %v10003_v51 = vld [vmem:[%s12218_s11 + $0xf0] sm:$0xff]  }
 0x707   : > { %7185 = vst.msk [vmem:[#allocation5 + $0x18] sm:$0xff] %vm4066_vm5, %v8256_v8  ;;  %v7136_v49 = vshrl.u32 %v7060_v31, 16  ;;  %v7149_v52 = vshrl.u32 %v7062_v56, 16  ;;  %v7103_v47 = vsel %vm10807_vm13, %v12356_v41, %v7102_v12  ;;  %v7115_v2 = vor.u32 %v7113_v3, %v7112_v19  ;;  %v10002_v63 = vld [vmem:[%s12218_s11 + $0xa8] sm:$0xff]   ;;  %v10004_v12 = vld [vmem:[%s12218_s11 + $0xb0] sm:$0xff]  }
 0x708   : > { %v8252_v45 = vrot.slane %v12353_v62, 11  ;;  %v8253_v15 = vrot.slane %v12355_v32, 11  ;;  %6707 = vst.msk [vmem:[#allocation5 + $0x80] sm:$0xff] %vm4066_vm5, %v8227_v7  ;;  %v7128_v24 = vor.u32 %v7126_v58, %v7125_v11  ;;  %v12358_v27 = vshrl.u32 %v12357_v37, 16  ;;  %v10005_v11 = vld [vmem:[%s12218_s11 + $0xf8] sm:$0xff]  }
 0x709   : > { %v7138_v34 = vrot.slane %v7136_v49, 7  ;;  %v7139_v6 = vshll.u32 %v7060_v31, 16  ;;  %v7151_v20 = vrot.slane %v7149_v52, 7  ;;  %v7152_v28 = vshll.u32 %v7062_v56, 16  ;;  %v9999_v56 = vld [vmem:[%s12218_s11 + $0xe0] sm:$0xff]   ;;  %v10006_v62 = vld [vmem:[%s12218_s11 + $0xb8] sm:$0xff]  }
 0x70a   : > { %v8254_v57 = vrot.slane %v12358_v27, 11  ;;  %v7116_v59 = vsel %vm10807_vm13, %v12359_v54, %v7115_v2  ;;  %v7168_v21 = vsel %vm10807_vm13, %v11837_v23, %v11839_v10  ;;  %v7129_v46 = vsel %vm10807_vm13, %v8252_v45, %v7128_v24 }
 0x70b   : > { %v8257_v40 = vcombine.low %v7103_v47, %v7116_v59  ;;  %v7141_v29 = vor.u32 %v7139_v6, %v7138_v34  ;;  %v7154_v36 = vor.u32 %v7152_v28, %v7151_v20  ;;  %vm6555_vm1 = vcmask 1048064  }
 0x70d   : > { %7186 = vst.msk [vmem:[#allocation5 + $0x40] sm:$0xff] %vm4066_vm5, %v8257_v40  ;;  %v7142_v61 = vsel %vm10807_vm13, %v8253_v15, %v7141_v29  ;;  %v7155_v22 = vsel %vm10807_vm13, %v8254_v57, %v7154_v36 }
 0x70e   : > { %v8258_v14 = vcombine.low %v7129_v46, %v7142_v61  ;;  %v8259_v48 = vcombine.low %v7155_v22, %v7168_v21 }
 0x710   : > { %7187 = vst.msk [vmem:[#allocation5 + $0x68] sm:$0xff] %vm4066_vm5, %v8258_v14  ;;  %7188 = vst.msk [vmem:[#allocation5 + $0x90] sm:$0xff] %vm4066_vm5, %v8259_v48 }
 0x72f   : > { %v6544_v23 = vpop.permute.xlu1 %6543 }
 0x730   : > { %6556 = vst.msk [vmem:[#allocation5] sm:$0xff] %vm6555_vm1, %v6544_v23 }
 0x733   : > { %v6546_v10 = vpop.permute.xlu1 %6545 }
 0x734   : > { %6557 = vst.msk [vmem:[#allocation5 + $0x28] sm:$0xff] %vm6555_vm1, %v6546_v10 }
 0x737   : > { %v6548_v35 = vpop.permute.xlu1 %6547  ;;  %v7381_v43 = vld [vmem:[#allocation5] sm:$0xff] }
 0x738   : > { %6558 = vst.msk [vmem:[#allocation5 + $0x50] sm:$0xff] %vm6555_vm1, %v6548_v35 }
 0x73a   : > { %v6841_v55 = vpop.permute.xlu0 %6840 }
 0x73b   : > { %6852 = vst.msk [vmem:[#allocation5 + $0x8] sm:$0xff] %vm6555_vm1, %v6841_v55  ;;  %v6550_v5 = vpop.permute.xlu1 %6549  ;;  %v7386_v3 = vld [vmem:[#allocation5 + $0x28] sm:$0xff] }
 0x73c   : > { %6559 = vst.msk [vmem:[#allocation5 + $0x78] sm:$0xff] %vm6555_vm1, %v6550_v5 }
 0x73e   : > { %v6843_v25 = vpop.permute.xlu0 %6842 }
 0x73f   : > { %6853 = vst.msk [vmem:[#allocation5 + $0x30] sm:$0xff] %vm6555_vm1, %v6843_v25  ;;  %v7391_v0 = vld [vmem:[#allocation5 + $0x50] sm:$0xff] }
 0x742   : > { %v6845_v42 = vpop.permute.xlu0 %6844  ;;  %v7382_v44 = vld [vmem:[#allocation5 + $0x8] sm:$0xff] }
 0x743   : > { %6854 = vst.msk [vmem:[#allocation5 + $0x58] sm:$0xff] %vm6555_vm1, %v6845_v42  ;;  %7739 = vmatprep.mubr.bf16.mxu1 %v7382_v44  ;;  %v7396_v58 = vld [vmem:[#allocation5 + $0x78] sm:$0xff] }
 0x744   : > { %7740 = vmatmul.mubr.bf16.vlgmr.msra.gmra.mrb[16].mxu1 %v7381_v43 }
 0x745   : > { %8698 = vmatpush3.bf16.msra.mxu1 %v9989_v60  ;;  %v7033_v9 = vpop.permute.xlu1 %7032 }
 0x746   : > { %v7387_v18 = vld [vmem:[#allocation5 + $0x30] sm:$0xff]  ;;  %8699 = vmatprep.subr.bf16.mxu1 %v9991_v30  ;;  %7044 = vst.msk [vmem:[#allocation5 + $0x10] sm:$0xff] %vm6555_vm1, %v7033_v9 }
 0x747   : > { %7747 = vmatprep.mubr.bf16.mxu1 %v7387_v18 }
 0x749   : > { %8700 = vmatpush3.bf16.msra.mxu1 %v9992_v38 }
 0x74a   : > { %8701 = vmatprep.subr.bf16.mxu1 %v9994_v53  ;;  %v7392_v31 = vld [vmem:[#allocation5 + $0x58] sm:$0xff] }
 0x74c   : > { %7748 = vmatmul.mubr.bf16.gmra.mrb[20].mxu1 %v7386_v3 }
 0x74d   : > { %8702 = vmatpush3.bf16.msra.mxu1 %v9995_v13  ;;  %7755 = vmatprep.mubr.bf16.mxu1 %v7392_v31  ;;  %v7383_v49 = vld [vmem:[#allocation5 + $0x10] sm:$0xff] }
 0x74e   : > { %8703 = vmatprep.subr.bf16.mxu1 %v9997_v16  ;;  %v8268_v13 = vld [vmem:[%s12219_s12] ss:$0 sm:$0xff] }
 0x751   : > { %8704 = vmatpush3.bf16.msra.mxu1 %v9998_v26 }
 0x752   : > { %v6847_v17 = vpop.permute.xlu0 %6846  ;;  %8705 = vmatprep.subr.bf16.mxu1 %v9999_v56 }
 0x753   : > { %6855 = vst.msk [vmem:[#allocation5 + $0x80] sm:$0xff] %vm6555_vm1, %v6847_v17 }
 0x754   : > { %7756 = vmatmul.mubr.bf16.gmra.mrb[24].mxu1 %v7391_v0 }
 0x755   : > { %8706 = vmatpush3.bf16.msra.mxu1 %v10000_v33 }
 0x756   : > { %v7218_v1 = vpop.permute.xlu0 %7217  ;;  %8707 = vmatprep.subr.bf16.mxu1 %v10001_v4 }
 0x757   : > { %7229 = vst.msk [vmem:[#allocation5 + $0x18] sm:$0xff] %vm6555_vm1, %v7218_v1 }
 0x758   : > { %v7035_v8 = vpop.permute.xlu1 %7034 }
 0x759   : > { %7045 = vst.msk [vmem:[#allocation5 + $0x38] sm:$0xff] %vm6555_vm1, %v7035_v8  ;;  %8708 = vmatpush3.bf16.msra.mxu1 %v10002_v63  ;;  %v8309_v63 = vld [vmem:[%s12221_s14] ss:$0 sm:$0xff] }
 0x75a   : > { %v7220_v7 = vpop.permute.xlu0 %7219  ;;  %v7397_v19 = vld [vmem:[#allocation5 + $0x80] sm:$0xff]  ;;  %8709 = vmatprep.subr.bf16.mxu1 %v10003_v51 }
 0x75b   : > { %7230 = vst.msk [vmem:[#allocation5 + $0x40] sm:$0xff] %vm6555_vm1, %v7220_v7  ;;  %7763 = vmatprep.mubr.bf16.mxu1 %v7397_v19 }
 0x75c   : > { %v7037_v39 = vpop.permute.xlu1 %7036  ;;  %7764 = vmatmul.mubr.bf16.gmra.mrb[28].mxu1 %v7396_v58 }
 0x75d   : > { %7046 = vst.msk [vmem:[#allocation5 + $0x60] sm:$0xff] %vm6555_vm1, %v7037_v39  ;;  %8710 = vmatpush3.bf16.msra.mxu1 %v10004_v12 }
 0x75e   : > { %v7222_v45 = vpop.permute.xlu0 %7221  ;;  %v7384_v50 = vld [vmem:[#allocation5 + $0x18] sm:$0xff]  ;;  %8711 = vmatprep.subr.bf16.mxu1 %v10005_v11 }
 0x75f   : > { %7231 = vst.msk [vmem:[#allocation5 + $0x68] sm:$0xff] %vm6555_vm1, %v7222_v45  ;;  %7804 = vmatprep.mubr.bf16.mxu1 %v7384_v50 }
 0x760   : > { %v7039_v32 = vpop.permute.xlu1 %7038  ;;  %v7388_v41 = vld [vmem:[#allocation5 + $0x38] sm:$0xff] }
 0x761   : > { %7047 = vst.msk [vmem:[#allocation5 + $0x88] sm:$0xff] %vm6555_vm1, %v7039_v32  ;;  %8712 = vmatpush3.bf16.msra.mxu1 %v10006_v62 }
 0x762   : > { %v7224_v15 = vpop.permute.xlu0 %7223  ;;  %v7389_v52 = vld [vmem:[#allocation5 + $0x40] sm:$0xff] }
 0x763   : > { %7232 = vst.msk [vmem:[#allocation5 + $0x90] sm:$0xff] %vm6555_vm1, %v7224_v15 }
 0x764   : > { %7805 = vmatmul.mubr.bf16.vlgmr.msra.gmra.mrb[32].mxu1 %v7383_v49  ;;  %v7393_v2 = vld [vmem:[#allocation5 + $0x60] sm:$0xff] }
 0x765   : > { %7812 = vmatprep.mubr.bf16.mxu1 %v7389_v52 }
 0x766   : > { %v7394_v47 = vld [vmem:[#allocation5 + $0x68] sm:$0xff] }
 0x768   : > { %v7398_v37 = vld [vmem:[#allocation5 + $0x88] sm:$0xff] }
 0x76a   : > { %v7399_v24 = vld [vmem:[#allocation5 + $0x90] sm:$0xff] }
 0x76c   : > { %7813 = vmatmul.mubr.bf16.gmra.mrb[36].mxu1 %v7388_v41 }
 0x76d   : > { %7820 = vmatprep.mubr.bf16.mxu1 %v7394_v47 }
 0x774   : > { %7821 = vmatmul.mubr.bf16.gmra.mrb[40].mxu1 %v7393_v2 }
 0x775   : > { %7828 = vmatprep.mubr.bf16.mxu1 %v7399_v24 }
 0x77c   : > { %7829 = vmatmul.mubr.bf16.gmra.mrb[44].mxu1 %v7398_v37 }
 0x7cf   : > { %v9409_v27 = vpop.f32.mrb[24].mxu0 }
 0x7d0   : > { %v7975_v57 = vpop.f32.mrb[25].mxu0 }
 0x7d1   : > { %v12113_v34 = vpop.f32.mrb[26].mxu0 }
 0x7d2   : > { %v7978_v6 = vpop.f32.mrb[27].mxu0 }
 0x7d9   : > { %v12115_v20 = vpop.f32.mrb[28].mxu0 }
 0x7da   : > { %v12117_v28 = vpop.f32.mrb[29].mxu0 }
 0x7db   : > { %v12119_v54 = vpop.f32.mrb[30].mxu0 }
 0x7dc   : > { %v12121_v59 = vpop.f32.mrb[31].mxu0 }
 0x817   : > { %v8673_v21 = vpop.f32.mrb[16].mxu1 }
 0x818   : > { %v8674_v40 = vpop.f32.mrb[17].mxu1 }
 0x819   : > { %v8675_v46 = vadd.f32 %v8674_v40, %v8673_v21  ;;  %v8676_v29 = vpop.f32.mrb[18].mxu1 }
 0x81a   : > { %v8677_v36 = vpop.f32.mrb[19].mxu1 }
 0x81b   : > { %v8678_v61 = vadd.f32 %v8677_v36, %v8676_v29  ;;  %v7742_v31 = vadd.f32 %v8675_v46, %v8268_v13 }
 0x81d   : > { %v7745_v17 = vadd.f32 %v8678_v61, %v8268_v13 }
 0x81f   : > { %v8679_v22 = vpop.f32.mrb[20].mxu1 }
 0x820   : > { %v8680_v14 = vpop.f32.mrb[21].mxu1 }
 0x821   : > { %v8681_v48 = vadd.f32 %v8680_v14, %v8679_v22  ;;  %v8682_v23 = vpop.f32.mrb[22].mxu1 }
 0x822   : > { %v8683_v10 = vpop.f32.mrb[23].mxu1 }
 0x823   : > { %v8684_v35 = vadd.f32 %v8683_v10, %v8682_v23  ;;  %v7750_v11 = vadd.f32 %v8681_v48, %v8268_v13 }
 0x825   : > { %v7753_v50 = vadd.f32 %v8684_v35, %v8268_v13 }
 0x827   : > { %v8685_v55 = vpop.f32.mrb[24].mxu1 }
 0x828   : > { %v8686_v5 = vpop.f32.mrb[25].mxu1 }
 0x829   : > { %v8687_v25 = vadd.f32 %v8686_v5, %v8685_v55  ;;  %v8688_v60 = vpop.f32.mrb[26].mxu1 }
 0x82a   : > { %v8689_v42 = vpop.f32.mrb[27].mxu1 }
 0x82b   : > { %v8690_v44 = vadd.f32 %v8689_v42, %v8688_v60  ;;  %v7758_v37 = vadd.f32 %v8687_v25, %v8268_v13 }
 0x82d   : > { %v7761_v46 = vadd.f32 %v8690_v44, %v8268_v13 }
 0x82f   : > { %v8691_v30 = vpop.f32.mrb[28].mxu1 }
 0x830   : > { %v8692_v43 = vpop.f32.mrb[29].mxu1 }
 0x831   : > { %v8693_v38 = vadd.f32 %v8692_v43, %v8691_v30  ;;  %v8694_v9 = vpop.f32.mrb[30].mxu1 }
 0x832   : > { %v8695_v18 = vpop.f32.mrb[31].mxu1 }
 0x833   : > { %v8696_v53 = vadd.f32 %v8695_v18, %v8694_v9  ;;  %v7766_v10 = vadd.f32 %v8693_v38, %v8268_v13 }
 0x835   : > { %v7769_v25 = vadd.f32 %v8696_v53, %v8268_v13 }
 0x837   : > { %v8713_v16 = vpop.f32.mrb[32].mxu1 }
 0x838   : > { %v8714_v3 = vpop.f32.mrb[33].mxu1 }
 0x839   : > { %v8715_v26 = vadd.f32 %v8714_v3, %v8713_v16  ;;  %v8716_v56 = vpop.f32.mrb[34].mxu1 }
 0x83a   : > { %v8717_v33 = vpop.f32.mrb[35].mxu1 }
 0x83b   : > { %v7807_v4 = vadd.f32 %v8715_v26, %v7742_v31  ;;  %v8718_v0 = vadd.f32 %v8717_v33, %v8716_v56 }
 0x83d   : > { %v9777_v1 = vadd.f32 %v7975_v57, %v7807_v4  ;;  %v7810_v51 = vadd.f32 %v8718_v0, %v7745_v17 }
 0x83f   : > { %v9778_v8 = vadd.f32 %v9777_v1, %v8309_v63  ;;  %v9781_v12 = vadd.f32 %v8309_v63, %v7810_v51  ;;  %v8719_v7 = vpop.f32.mrb[36].mxu1 }
 0x840   : > { %v8720_v19 = vpop.f32.mrb[37].mxu1 }
 0x841   : > { %8014 = vst.msk [vmem:[%s12132_s3] sm:$0xff] %vm4066_vm5, %v9778_v8  ;;  %v9782_v58 = vadd.f32 %v9781_v12, %v7978_v6  ;;  %v8721_v39 = vadd.f32 %v8720_v19, %v8719_v7  ;;  %v8722_v62 = vpop.f32.mrb[38].mxu1 }
 0x842   : > { %v8723_v45 = vpop.f32.mrb[39].mxu1 }
 0x843   : > { %8015 = vst.msk [vmem:[%s12132_s3 + $0x8] sm:$0xff] %vm4066_vm5, %v9782_v58  ;;  %v7815_v32 = vadd.f32 %v8721_v39, %v7750_v11  ;;  %v8724_v15 = vadd.f32 %v8723_v45, %v8722_v62 }
 0x845   : > { %v9775_v49 = vadd.f32 %v9409_v27, %v7815_v32  ;;  %v7818_v52 = vadd.f32 %v8724_v15, %v7753_v50 }
 0x847   : > { %v9776_v41 = vadd.f32 %v9775_v49, %v8309_v63  ;;  %v9779_v47 = vadd.f32 %v8309_v63, %v7818_v52  ;;  %v8725_v2 = vpop.f32.mrb[40].mxu1 }
 0x848   : > { %v8726_v24 = vpop.f32.mrb[41].mxu1 }
 0x849   : > { %8016 = vst.msk [vmem:[%s12132_s3 + $0x10] sm:$0xff] %vm4066_vm5, %v9776_v41  ;;  %v9780_v57 = vadd.f32 %v9779_v47, %v12113_v34  ;;  %v8727_v6 = vadd.f32 %v8726_v24, %v8725_v2  ;;  %v8728_v21 = vpop.f32.mrb[42].mxu1 }
 0x84a   : > { %v8729_v40 = vpop.f32.mrb[43].mxu1 }
 0x84b   : > { %8017 = vst.msk [vmem:[%s12132_s3 + $0x18] sm:$0xff] %vm4066_vm5, %v9780_v57  ;;  %v7823_v29 = vadd.f32 %v8727_v6, %v7758_v37  ;;  %v8730_v27 = vadd.f32 %v8729_v40, %v8728_v21 }
 0x84d   : > { %v9785_v36 = vadd.f32 %v8309_v63, %v7823_v29  ;;  %v7826_v61 = vadd.f32 %v8730_v27, %v7761_v46 }
 0x84f   : > { %v9786_v22 = vadd.f32 %v9785_v36, %v12117_v28  ;;  %v9789_v14 = vadd.f32 %v8309_v63, %v7826_v61  ;;  %v8731_v48 = vpop.f32.mrb[44].mxu1 }
 0x850   : > { %v8732_v23 = vpop.f32.mrb[45].mxu1 }
 0x851   : > { %8018 = vst.msk [vmem:[%s12132_s3 + $0x20] sm:$0xff] %vm4066_vm5, %v9786_v22  ;;  %v9790_v34 = vadd.f32 %v9789_v14, %v12121_v59  ;;  %v8733_v35 = vadd.f32 %v8732_v23, %v8731_v48  ;;  %v8734_v55 = vpop.f32.mrb[46].mxu1 }
 0x852   : > { %v8735_v5 = vpop.f32.mrb[47].mxu1 }
 0x853   : > { %8019 = vst.msk [vmem:[%s12132_s3 + $0x28] sm:$0xff] %vm4066_vm5, %v9790_v34  ;;  %v7831_v28 = vadd.f32 %v8733_v35, %v7766_v10  ;;  %v8736_v60 = vadd.f32 %v8735_v5, %v8734_v55 }
 0x855   : > { %v9783_v42 = vadd.f32 %v8309_v63, %v7831_v28  ;;  %v7834_v44 = vadd.f32 %v8736_v60, %v7769_v25 }
 0x857   : > { %v9784_v30 = vadd.f32 %v9783_v42, %v12115_v20  ;;  %v9787_v43 = vadd.f32 %v8309_v63, %v7834_v44 }
 0x859   : > { %8020 = vst.msk [vmem:[%s12132_s3 + $0x30] sm:$0xff] %vm4066_vm5, %v9784_v30  ;;  %v9788_v59 = vadd.f32 %v9787_v43, %v12119_v54 }
 0x85b   : > { %8021 = vst.msk [vmem:[%s12132_s3 + $0x38] sm:$0xff] %vm4066_vm5, %v9788_v59 }
 0x85c   : > { %10103 = shalt.err (!%p10100_p3)
}
 0x85d   : > { %s10104_s23 = scalar_lea.hbm %s12155_s16, 1024  ;;  %s10108_s2 = scalar_lea.hbm %s12222_s15, 2048 }
 0x85e   : > { %p10105_p4 = scmp.ne.s32.totalorder %s12155_s16, %s10104_s23  ;;  %p10109_p9 = scmp.lt.u32.totalorder %s12155_s16, %s12222_s15 }
 0x85f   : > { %p10110_p10 = scmp.lt.u32.totalorder %s10108_s2, %s10104_s23  ;;  %p10112_p12 = scmp.lt.u32.totalorder %s10104_s23, %s12155_s16 }
 0x860   : > { %p10106_p7 = pnand %p10105_p4, %p10282_p5 }
 0x861   : > { %p10111_p11 = por %p10110_p10, %p10109_p9 }
 0x862   : > { %p10107_p8 = pneg %p10106_p7 }
 0x863   : > { %p10113_p13 = por %p10112_p12, %p10111_p11 }
 0x865   : > { %p10114_p0 = pnand %p10113_p13, %p10107_p8 }
 0x867   : > { %10117 = shalt.err (!%p10114_p0)
}
 0x868   : > { %s10162_s17 = smov 128   ;;  %s10163_s27 = smov 8  }
 0x869   : > { %9879 = dma.vmem_to_hbm [thread:$0]  (%p10282_p5), %s12157_s30, 1024, %s12155_s16, %s12166_s22, %s10162_s17, %s10162_s17, %s10163_s27  }
 0x86a PF: > { %p9885_p1 = scmp.ge.s32.totalorder %s10152_s21, 2  ;;  %s8051_s0 = sand.u32 1, %s10140_s18  }
 0x86b   : > { %s8052_s23 = scalar_lea.sflag [#allocation7], %s8051_s0 }
 0x86c   : > { %p9882_p2 = pnand %p9885_p1, %p10286_p6 }
 0x86e   : > { %10135 = dma.done.wait (!%p9882_p2), %s8052_s23, 1024  }
 0x86f   : > { %10137 = vsyncadd (!%p9882_p2), %s8052_s23, 4294966272  ;;  %s12360_s3 = sld [smem:[#allocation9_spill]]  ;;  %p25_p3 = scmp.ge.s32.totalorder %s10269_s24, 4  }
 0x870   : > { %s12361_s18 = smov %s10144_s19  ;;  %s12362_s19 = smov %s10148_s20 }
 0x871   : > { %s12364_s21 = smov %s10269_s24  ;;  %27 = sbr.rel (!%p25_p3) target bundleno = 8 (0x8), region = 121 }
 0x875   : > { %s12363_s20 = smov %s12360_s3 }
 0x878   :  { %8057 = vsyncpa [#allocation7], 1 }
 0x879   :  { %8059 = vsyncpa [#allocation7 + $0x1], 1 }

</bundles_post_ra>
